<compile_context>
chip_gen: v6e
topology: v6e:2x2x1
jax: 0.10.0
libtpu: 0.0.40
codegen_flags: <defaults>
</compile_context>

<pallas_src>
import math
import functools

import numpy as np
import jax
import jax.numpy as jnp
from jax.experimental import pallas as pl
from jax.experimental.pallas import tpu as pltpu


def _round_up(x, m):
    return ((x + m - 1) // m) * m


# ----------------------------------------------------------------------------
# Generation-aware VMEM budget / tile caps
# ----------------------------------------------------------------------------
@functools.lru_cache(maxsize=None)
def _vmem_limit():
    cap = 64 * 1024 * 1024            # conservative fallback (v7x physical)
    try:
        info = pltpu.get_tpu_info()
        c = getattr(info, "vmem_capacity_bytes", None)
        if c:
            cap = int(c)
    except Exception:
        pass
    # ~96 MiB on 128 MiB chips (v5e/v6e), ~48 MiB on 64 MiB chips (v7x)
    return int(min(cap * 3 // 4, 96 * 1024 * 1024))


@functools.lru_cache(maxsize=None)
def _big_vmem():
    return _vmem_limit() >= 64 * 1024 * 1024


# ----------------------------------------------------------------------------
# Generic fused matmul kernel:  out = act(A @ W + bias), tiled over (M, N, K)
# ----------------------------------------------------------------------------
def _make_mm_kernel(act):
    def kernel(a_ref, w_ref, b_ref, o_ref, acc_ref):
        k = pl.program_id(2)

        @pl.when(k == 0)
        def _():
            acc_ref[...] = jnp.zeros_like(acc_ref)

        acc_ref[...] += jnp.dot(a_ref[...], w_ref[...],
                                preferred_element_type=jnp.float32)

        @pl.when(k == pl.num_programs(2) - 1)
        def _():
            y = acc_ref[...] + b_ref[...]
            if act == "relu":
                y = jnp.maximum(y, 0.0)
            elif act == "sigmoid":
                y = jax.nn.sigmoid(y)
            o_ref[...] = y.astype(o_ref.dtype)

    return kernel


def matmul_bias_act(a, w, b, act="none", *, compute_dtype=jnp.float32,
                    out_dtype=jnp.float32):
    """act(a @ w + b); a: (M, K), w: (K, N), b: (N,)."""
    M, K = a.shape
    K2, N = w.shape
    assert K == K2, (K, K2)

    # pad the output-channel (lane) axis to a multiple of 128 -> unmasked stores
    Np = _round_up(N, 128)
    if Np != N:
        w = jnp.pad(w, ((0, 0), (0, Np - N)))
        b = jnp.pad(b, ((0, Np - N),))
    tn = 512 if Np % 512 == 0 else (256 if Np % 256 == 0 else 128)

    # K tiling (only kicks in for big contractions); bigger tiles on 128 MiB VMEM
    tk_cap = 1024 if _big_vmem() else 512
    if K <= tk_cap:
        tk, Kp = K, K
    else:
        tk = tk_cap
        Kp = _round_up(K, tk)
        if Kp != K:
            a = jnp.pad(a, ((0, 0), (0, Kp - K)))
            w = jnp.pad(w, ((0, Kp - K), (0, 0)))

    # M tiling, right-sized for the small 1D-conv matmuls
    tm_cap = 1024 if _big_vmem() else 512
    tm = min(tm_cap, _round_up(M, 8))
    Mp = _round_up(M, tm)
    # v7x has 2 TensorCores: make sure any non-trivial matmul exposes >=2
    # "parallel" grid blocks so both cores get work.
    while ((Mp // tm) * (Np // tn) < 2 and tm > 256
           and tm % 2 == 0 and (tm // 2) % 8 == 0):
        tm //= 2
        Mp = _round_up(M, tm)
    if Mp != M:
        a = jnp.pad(a, ((0, Mp - M), (0, 0)))

    a = a.astype(compute_dtype)
    w = w.astype(compute_dtype)
    b2 = jnp.reshape(b, (1, Np)).astype(jnp.float32)

    grid = (Mp // tm, Np // tn, Kp // tk)
    isz = jnp.dtype(compute_dtype).itemsize
    osz = jnp.dtype(out_dtype).itemsize
    cost = pl.CostEstimate(
        flops=2 * M * K * N,
        transcendentals=(M * N if act == "sigmoid" else 0),
        bytes_accessed=M * K * isz + K * N * isz + M * N * osz + N * 4)

    out = pl.pallas_call(
        _make_mm_kernel(act),
        out_shape=jax.ShapeDtypeStruct((Mp, Np), out_dtype),
        grid=grid,
        in_specs=[
            pl.BlockSpec((tm, tk), lambda i, j, k: (i, k)),
            pl.BlockSpec((tk, tn), lambda i, j, k: (k, j)),
            pl.BlockSpec((1, tn), lambda i, j, k: (0, j)),
        ],
        out_specs=pl.BlockSpec((tm, tn), lambda i, j, k: (i, j)),
        scratch_shapes=[pltpu.VMEM((tm, tn), jnp.float32)],
        compiler_params=pltpu.CompilerParams(
            dimension_semantics=("parallel", "parallel", "arbitrary"),
            vmem_limit_bytes=_vmem_limit()),
        cost_estimate=cost,
    )(a, w, b2)

    if Mp == M and Np == N:
        return out
    return out[:M, :N]


# ----------------------------------------------------------------------------
# 1D convolutions, channel-last, dense (block-diagonal for groups) weights
# ----------------------------------------------------------------------------
def grouped_conv1d_weight(w, groups):
    """Torch conv1d weight (Cout, Cin//groups, K) -> dense (Cin*K, Cout)
    block-diagonal matmul weight (row index = ci*K + k)."""
    Cout, Cin_g, Kk = w.shape
    Cin = Cin_g * groups
    Cout_g = Cout // groups
    if groups == 1:
        return jnp.transpose(w, (1, 2, 0)).reshape(Cin * Kk, Cout)
    dense = jnp.zeros((Cin, Kk, Cout), w.dtype)
    for g in range(groups):
        wg = jnp.transpose(w[g * Cout_g:(g + 1) * Cout_g], (1, 2, 0))
        dense = dense.at[g * Cin_g:(g + 1) * Cin_g, :,
                         g * Cout_g:(g + 1) * Cout_g].set(wg)
    return dense.reshape(Cin * Kk, Cout)


def conv1d_cl(x, wmat, b, ksize, act, *, compute_dtype=jnp.bfloat16,
              out_dtype=jnp.float32):
    """'same' conv1d on channel-last x: (B, T, Cin) with a dense (Cin*K, Cout)
    matmul weight; a grouped conv is passed as its block-diagonal weight
    (one pallas_call per layer instead of one per group)."""
    B, T, Cin = x.shape
    Cout = wmat.shape[1]
    x = x.astype(compute_dtype)          # halves the im2col tensor, bf16 MXU
    if ksize == 1:
        a = x.reshape(B * T, Cin)
    else:
        pad = (ksize - 1) // 2
        xpad = jnp.pad(x, ((0, 0), (pad, pad), (0, 0)))
        cols = jnp.stack([xpad[:, k:k + T, :] for k in range(ksize)], axis=-1)
        a = cols.reshape(B * T, Cin * ksize)                 # cols ordered (ci, k)
    out = matmul_bias_act(a, wmat, b, act=act, compute_dtype=compute_dtype,
                          out_dtype=out_dtype)
    return out.reshape(B, T, Cout)


# ----------------------------------------------------------------------------
# 3x3 conv2d, channel-last.  Horizontal (dx) taps are stacked along the
# channel/lane axis in the wrapper; the kernel applies only the 3 vertical
# (dy) taps as fully sublane-aligned row shifts with K = 3*C per dot.
# ----------------------------------------------------------------------------
def _conv3x3_kernel(x_ref, w_ref, b_ref, o_ref, *, row_stride, lout, act):
    acc = jnp.zeros((lout, o_ref.shape[-1]), jnp.float32)
    for dy in range(3):
        s = dy * row_stride                                   # multiple of 8
        acc = acc + jnp.dot(x_ref[0, s:s + lout, :], w_ref[dy],
                            preferred_element_type=jnp.float32)
    y = acc + b_ref[...]
    if act == "relu":
        y = jnp.maximum(y, 0.0)
    elif act == "sigmoid":
        y = jax.nn.sigmoid(y)
    o_ref[0] = y.astype(o_ref.dtype)


def conv2d_3x3(x, w, b, act="relu", *, compute_dtype=jnp.bfloat16,
               out_dtype=jnp.bfloat16):
    """'same' 3x3 conv, stride 1.  x: (B, H, W, C) channel-last,
    w: torch layout (Cout, Cin, 3, 3)."""
    B, H, W, C = x.shape
    Cout = w.shape[0]
    x = x.astype(compute_dtype)
    xpad = jnp.pad(x, ((0, 0), (1, 1), (1, 1), (0, 0)))       # (B, H+2, W+2, C)
    # stack the 3 horizontal taps along the channel (lane) axis -> (B, H+2, W, 3C)
    cols = jnp.concatenate([xpad[:, :, d:d + W, :] for d in range(3)], axis=-1)
    Wr = _round_up(W, 8)          # sublane-aligned row stride for the dy shifts
    if Wr != W:
        cols = jnp.pad(cols, ((0, 0), (0, 0), (0, Wr - W), (0, 0)))
    Lr = (H + 2) * Wr
    lout = H * Wr
    xf = cols.reshape(B, Lr, 3 * C)
    # wk[dy, dx*C + c, o] = w[o, c, dy, dx]
    wk = jnp.transpose(w, (2, 3, 1, 0)).reshape(3, 3 * C, Cout).astype(compute_dtype)
    b2 = jnp.reshape(b, (1, Cout)).astype(jnp.float32)

    isz = jnp.dtype(compute_dtype).itemsize
    cost = pl.CostEstimate(
        flops=2 * 9 * B * H * W * C * Cout,
        transcendentals=(B * H * W * Cout if act == "sigmoid" else 0),
        bytes_accessed=B * Lr * 3 * C * isz + 9 * C * Cout * isz
        + B * lout * Cout * jnp.dtype(out_dtype).itemsize)

    out = pl.pallas_call(
        functools.partial(_conv3x3_kernel, row_stride=Wr, lout=lout, act=act),
        out_shape=jax.ShapeDtypeStruct((B, lout, Cout), out_dtype),
        grid=(B,),
        in_specs=[
            pl.BlockSpec((1, Lr, 3 * C), lambda bi: (bi, 0, 0)),
            pl.BlockSpec((3, 3 * C, Cout), lambda bi: (0, 0, 0)),
            pl.BlockSpec((1, Cout), lambda bi: (0, 0)),
        ],
        out_specs=pl.BlockSpec((1, lout, Cout), lambda bi: (bi, 0, 0)),
        compiler_params=pltpu.CompilerParams(
            dimension_semantics=("parallel",),
            vmem_limit_bytes=_vmem_limit()),
        cost_estimate=cost,
    )(xf, wk, b2)

    return out.reshape(B, H, Wr, Cout)[:, :, :W, :]


# ----------------------------------------------------------------------------
# Fused boundary-matching layer + conv3d(num_sample,1,1) + ReLU.
# ----------------------------------------------------------------------------
def _bm_tile(x_size, cap=1024):
    """Pick tx: largest multiple-of-8 divisor of x_size <= cap, so Xp == X and
    no padded proposal rows ever reach HBM.  Falls back to padding if no such
    divisor exists."""
    best = 0
    d = 8
    while d <= min(cap, x_size):
        if x_size % d == 0:
            best = d
        d += 8
    if best:
        return best, x_size
    tx = min(cap, _round_up(x_size, 8))
    return tx, _round_up(x_size, tx)


def _bm_c3_kernel(m_ref, p_ref, w_ref, b_ref, o_ref, acc_ref):
    n = pl.program_id(2)

    @pl.when(n == 0)
    def _():
        acc_ref[...] = jnp.zeros_like(acc_ref)

    # tmp[x, c] = sum_t mask[n, x, t] * p[b, t, c]
    tmp = jnp.dot(m_ref[0], p_ref[0], preferred_element_type=jnp.float32)
    # acc[x, o] += sum_c tmp[x, c] * w3[n, c, o]
    acc_ref[...] += jnp.dot(tmp.astype(o_ref.dtype), w_ref[0],
                            preferred_element_type=jnp.float32)

    @pl.when(n == pl.num_programs(2) - 1)
    def _():
        o_ref[0] = jnp.maximum(acc_ref[...] + b_ref[...], 0.0).astype(o_ref.dtype)


def bm_conv3d_fused(p, mask_t, w3, bias, *, compute_dtype=jnp.bfloat16,
                    out_dtype=jnp.bfloat16):
    """p: (B, T, C) channel-last; mask_t: (N, Xp, T) with
    mask_t[n, i*T+j, t] = sample_mask[t, n, i, j]; w3: (N, C, H3) with
    w3[n, c, o] = conv3d_weight[o, c, n]; bias: (H3,).

    Returns (B, Xp, H3) bf16 with
      out[b, i*T+j, o] = relu( sum_n (mask_t[n, i*T+j, :] @ p[b]) @ w3[n] + bias[o] )
    i.e. the BM layer followed by the (num_sample,1,1) conv3d, never
    materialising the (B, X, num_sample*C) intermediate in HBM."""
    B, T, C = p.shape
    N, Xp, T2 = mask_t.shape
    assert T2 == T
    H3 = w3.shape[-1]
    tx, xp_expect = _bm_tile(T * T)
    assert Xp == xp_expect, (Xp, xp_expect)

    p = p.astype(compute_dtype)
    mask_t = mask_t.astype(compute_dtype)
    w3 = w3.astype(compute_dtype)
    b2 = jnp.reshape(bias, (1, H3)).astype(jnp.float32)

    isz = jnp.dtype(compute_dtype).itemsize
    cost = pl.CostEstimate(
        flops=2 * B * N * Xp * T * C + 2 * B * N * Xp * C * H3,
        transcendentals=0,
        bytes_accessed=(N * Xp * T + B * T * C + N * C * H3) * isz
        + B * Xp * H3 * jnp.dtype(out_dtype).itemsize)

    out = pl.pallas_call(
        _bm_c3_kernel,
        out_shape=jax.ShapeDtypeStruct((B, Xp, H3), out_dtype),
        grid=(B, Xp // tx, N),
        in_specs=[
            pl.BlockSpec((1, tx, T), lambda b, x, n: (n, x, 0)),
            pl.BlockSpec((1, T, C), lambda b, x, n: (b, 0, 0)),
            pl.BlockSpec((1, C, H3), lambda b, x, n: (n, 0, 0)),
            pl.BlockSpec((1, H3), lambda b, x, n: (0, 0)),
        ],
        out_specs=pl.BlockSpec((1, tx, H3), lambda b, x, n: (b, x, 0)),
        scratch_shapes=[pltpu.VMEM((tx, H3), jnp.float32)],
        compiler_params=pltpu.CompilerParams(
            dimension_semantics=("parallel", "parallel", "arbitrary"),
            vmem_limit_bytes=_vmem_limit()),
        cost_estimate=cost,
    )(mask_t, p, w3, b2)
    return out


# ----------------------------------------------------------------------------
# Sample mask (faithful port of BMN._get_interp1d_mask, host-side setup)
# ----------------------------------------------------------------------------
def _get_interp1d_bin_mask(seg_xmin, seg_xmax, tscale, num_sample, num_sample_perbin):
    plen = float(seg_xmax - seg_xmin)
    plen_sample = plen / (num_sample * num_sample_perbin - 1.0)
    total_samples = [seg_xmin + plen_sample * ii
                     for ii in range(num_sample * num_sample_perbin)]
    p_mask = []
    for idx in range(num_sample):
        bin_samples = total_samples[idx * num_sample_perbin:(idx + 1) * num_sample_perbin]
        bin_vector = np.zeros([tscale])
        for sample in bin_samples:
            sample_upper = math.ceil(sample)
            sample_decimal, sample_down = math.modf(sample)
            if 0 <= int(sample_down) <= tscale - 1:
                bin_vector[int(sample_down)] += 1 - sample_decimal
            if 0 <= int(sample_upper) <= tscale - 1:
                bin_vector[int(sample_upper)] += sample_decimal
        p_mask.append(bin_vector / num_sample_perbin)
    return np.stack(p_mask, axis=1)


def build_interp1d_mask(tscale, prop_boundary_ratio, num_sample, num_sample_perbin):
    """Returns the raw numpy mask of shape (T, num_sample, T, T)."""
    mask_mat = []
    for end_index in range(tscale):
        mask_mat_vector = []
        for start_index in range(tscale):
            if start_index <= end_index:
                p_xmin = start_index
                p_xmax = end_index + 1
                center_len = float(p_xmax - p_xmin) + 1
                sample_xmin = p_xmin - center_len * prop_boundary_ratio
                sample_xmax = p_xmax + center_len * prop_boundary_ratio
                p_mask = _get_interp1d_bin_mask(
                    sample_xmin, sample_xmax, tscale, num_sample, num_sample_perbin)
            else:
                p_mask = np.zeros([tscale, num_sample])
            mask_mat_vector.append(p_mask)
        mask_mat.append(np.stack(mask_mat_vector, axis=2))
    return np.stack(mask_mat, axis=3).astype(np.float32)      # (T, N, T, T)


def prepare_bm_mask(mask_np):
    """(T, N, T, T) -> (N, Xp, T) bf16 operand for the fused BM+c3 kernel."""
    T, N, T1, T2 = mask_np.shape
    X = T1 * T2
    mask_t = np.transpose(mask_np, (1, 2, 3, 0)).reshape(N, X, T)
    tx, Xp = _bm_tile(X)
    if Xp != X:
        mask_t = np.pad(mask_t, ((0, 0), (0, Xp - X), (0, 0)))
    return jnp.asarray(mask_t.astype(np.float32)).astype(jnp.bfloat16)


# ----------------------------------------------------------------------------
# Parameter construction (deterministic, synthetic, PyTorch layouts)
# ----------------------------------------------------------------------------
def init_params(key, feat_dim, num_sample,
                hidden_1d=256, hidden_2d=128, hidden_3d=512):
    def make(k, shape, fan_in):
        s = 1.0 / math.sqrt(fan_in)
        return jax.random.uniform(k, shape, jnp.float32, -s, s)

    shapes = {
        "b1_w": (hidden_1d, feat_dim // 4, 3), "b1_b": (hidden_1d,),
        "b2_w": (hidden_1d, hidden_1d // 4, 3), "b2_b": (hidden_1d,),
        "s1_w": (hidden_1d, hidden_1d // 4, 3), "s1_b": (hidden_1d,),
        "s2_w": (1, hidden_1d, 1), "s2_b": (1,),
        "e1_w": (hidden_1d, hidden_1d // 4, 3), "e1_b": (hidden_1d,),
        "e2_w": (1, hidden_1d, 1), "e2_b": (1,),
        "p1_w": (hidden_1d, hidden_1d, 3), "p1_b": (hidden_1d,),
        "c3_w": (hidden_3d, hidden_1d, num_sample), "c3_b": (hidden_3d,),
        "d1_w": (hidden_2d, hidden_3d, 1, 1), "d1_b": (hidden_2d,),
        "d2_w": (hidden_2d, hidden_2d, 3, 3), "d2_b": (hidden_2d,),
        "d3_w": (hidden_2d, hidden_2d, 3, 3), "d3_b": (hidden_2d,),
        "d4_w": (2, hidden_2d, 1, 1), "d4_b": (2,),
    }
    params = {}
    keys = jax.random.split(key, len(shapes))
    for (name, shape), k in zip(sorted(shapes.items()), keys):
        fan_in = int(np.prod(shape[1:])) if len(shape) > 1 else int(shape[0])
        params[name] = make(k, shape, max(fan_in, 1))
    return params


# ----------------------------------------------------------------------------
# BMN forward (Pallas path)
# ----------------------------------------------------------------------------
@functools.partial(jax.jit, static_argnames=("num_sample", "tscale"))
def bmn_forward(x, params, mask_t, *, num_sample, tscale):
    B = x.shape[0]
    T = tscale
    H1 = params["b1_b"].shape[0]          # 256
    H2 = params["d1_b"].shape[0]          # 128
    H3 = params["c3_b"].shape[0]          # 512
    bf16 = jnp.bfloat16

    x_tc = jnp.transpose(x, (0, 2, 1))    # (B, T, feat)  -- channel-last

    # ---- x_1d_b : two grouped conv1d (groups=4) as single block-diag matmuls
    base = conv1d_cl(x_tc, grouped_conv1d_weight(params["b1_w"], 4),
                     params["b1_b"], 3, "relu", compute_dtype=bf16, out_dtype=bf16)
    base = conv1d_cl(base, grouped_conv1d_weight(params["b2_w"], 4),
                     params["b2_b"], 3, "relu", compute_dtype=bf16, out_dtype=bf16)

    # ---- start / end branches
    sfeat = conv1d_cl(base, grouped_conv1d_weight(params["s1_w"], 4),
                      params["s1_b"], 3, "relu", compute_dtype=bf16, out_dtype=bf16)
    efeat = conv1d_cl(base, grouped_conv1d_weight(params["e1_w"], 4),
                      params["e1_b"], 3, "relu", compute_dtype=bf16, out_dtype=bf16)
    # fuse the two 1-channel 1x1 heads into one lane-padded matmul
    w_se = jnp.zeros((2 * H1, 2), jnp.float32)
    w_se = w_se.at[:H1, 0].set(params["s2_w"][0, :, 0])
    w_se = w_se.at[H1:, 1].set(params["e2_w"][0, :, 0])
    b_se = jnp.stack([params["s2_b"][0], params["e2_b"][0]])
    se_in = jnp.concatenate([sfeat, efeat], axis=-1).reshape(B * T, 2 * H1)
    se = matmul_bias_act(se_in, w_se, b_se, act="sigmoid",
                         compute_dtype=bf16, out_dtype=jnp.float32)   # (B*T, 2)
    start = se[:, 0].reshape(B, T)
    end = se[:, 1].reshape(B, T)

    # ---- x_1d_p
    p = conv1d_cl(base, grouped_conv1d_weight(params["p1_w"], 1),
                  params["p1_b"], 3, "relu", compute_dtype=bf16, out_dtype=bf16)

    # ---- fused boundary matching + x_3d_p  ->  (B, T*T, 512) bf16
    w3 = jnp.transpose(params["c3_w"], (2, 1, 0))              # (N, C, H3)
    f3 = bm_conv3d_fused(p, mask_t, w3, params["c3_b"])
    X = T * T
    if f3.shape[1] != X:                                       # only if X % 8 != 0
        f3 = f3[:, :X, :]

    # ---- x_2d_p (channel-last)
    w_d1 = jnp.transpose(params["d1_w"][:, :, 0, 0], (1, 0))   # (512, 128)
    f = matmul_bias_act(f3.reshape(B * X, H3), w_d1, params["d1_b"],
                        act="relu", compute_dtype=bf16, out_dtype=bf16)
    f = f.reshape(B, T, T, H2)
    f = conv2d_3x3(f, params["d2_w"], params["d2_b"], act="relu")
    f = conv2d_3x3(f, params["d3_w"], params["d3_b"], act="relu")
    w_d4 = jnp.transpose(params["d4_w"][:, :, 0, 0], (1, 0))   # (128, 2)
    conf = matmul_bias_act(f.reshape(B * X, H2), w_d4, params["d4_b"],
                           act="sigmoid", compute_dtype=bf16, out_dtype=jnp.float32)
    conf = conf.reshape(B, T, T, 2).transpose(0, 3, 1, 2)      # (B, 2, T, T)
    return conf, start, end


# ----------------------------------------------------------------------------
# Plain-JAX reference (f32, HIGHEST precision) for the numerical self-check
# ----------------------------------------------------------------------------
def reference_forward(x, params, mask_flat, num_sample):
    P = jax.lax.Precision.HIGHEST

    def conv1d_ref(h, w, b, groups=1):
        pad = (w.shape[-1] - 1) // 2
        out = jax.lax.conv_general_dilated(
            h, w, window_strides=(1,), padding=[(pad, pad)],
            dimension_numbers=("NCH", "OIH", "NCH"),
            feature_group_count=groups, precision=P)
        return out + b[None, :, None]

    def conv2d_ref(h, w, b):
        pad = (w.shape[-1] - 1) // 2
        out = jax.lax.conv_general_dilated(
            h, w, window_strides=(1, 1), padding=[(pad, pad), (pad, pad)],
            dimension_numbers=("NCHW", "OIHW", "NCHW"), precision=P)
        return out + b[None, :, None, None]

    relu = lambda v: jnp.maximum(v, 0.0)
    sig = jax.nn.sigmoid

    base = relu(conv1d_ref(x, params["b1_w"], params["b1_b"], 4))
    base = relu(conv1d_ref(base, params["b2_w"], params["b2_b"], 4))
    s = sig(conv1d_ref(relu(conv1d_ref(base, params["s1_w"], params["s1_b"], 4)),
                       params["s2_w"], params["s2_b"], 1))[:, 0]
    e = sig(conv1d_ref(relu(conv1d_ref(base, params["e1_w"], params["e1_b"], 4)),
                       params["e2_w"], params["e2_b"], 1))[:, 0]
    p = relu(conv1d_ref(base, params["p1_w"], params["p1_b"], 1))
    B, C, T = p.shape
    cm = jnp.matmul(p, mask_flat, precision=P).reshape(B, C, num_sample, T, T)
    f = relu(jnp.einsum("ocn,bcnij->boij", params["c3_w"], cm, precision=P)
             + params["c3_b"][None, :, None, None])
    f = relu(conv2d_ref(f, params["d1_w"], params["d1_b"]))
    f = relu(conv2d_ref(f, params["d2_w"], params["d2_b"]))
    f = relu(conv2d_ref(f, params["d3_w"], params["d3_b"]))
    conf = sig(conv2d_ref(f, params["d4_w"], params["d4_b"]))
    return conf, s, e


# ----------------------------------------------------------------------------
if __name__ == "__main__":
    opt = dict(temporal_scale=16, prop_boundary_ratio=0.5,
               num_sample=8, num_sample_perbin=2, feat_dim=16)
    B = 2
    T = opt["temporal_scale"]

    key = jax.random.PRNGKey(0)
    k_x, k_p = jax.random.split(key)
    x = jax.random.normal(k_x, (B, opt["feat_dim"], T), jnp.float32)

    params = init_params(k_p, opt["feat_dim"], opt["num_sample"])
    mask_np = build_interp1d_mask(T, opt["prop_boundary_ratio"],
                                  opt["num_sample"], opt["num_sample_perbin"])
    mask_t = prepare_bm_mask(mask_np)                     # (N, Xp, T) bf16

    conf, start, end = bmn_forward(x, params, mask_t,
                                   num_sample=opt["num_sample"], tscale=T)
    jax.block_until_ready((conf, start, end))

    assert conf.shape == (B, 2, T, T), conf.shape
    assert start.shape == (B, T), start.shape
    assert end.shape == (B, T), end.shape
    assert bool(jnp.all(jnp.isfinite(conf)))

    # numerical self-check against an independent plain-JAX f32 reference
    # (bf16 operand path throughout -> tolerance on the sigmoid outputs)
    mask_flat = jnp.asarray(mask_np.reshape(T, -1))       # torch layout (T, N*T*T)
    conf_r, start_r, end_r = reference_forward(x, params, mask_flat,
                                               opt["num_sample"])
    err = max(float(jnp.max(jnp.abs(conf - conf_r))),
              float(jnp.max(jnp.abs(start - start_r))),
              float(jnp.max(jnp.abs(end - end_r))))
    assert err < 0.1, f"numerical mismatch vs reference: max abs err {err}"

    print("KERNEL_OK")
</pallas_src>

<mosaic_0001>
module attributes {stable_mosaic.version = 11 : i64} {
  func.func @kernel(%arg0: i32, %arg1: i32, %arg2: i32, %arg3: memref<32x48xbf16, #tpu.memory_space<vmem>>, %arg4: memref<48x256xbf16, #tpu.memory_space<vmem>>, %arg5: memref<1x256xf32, #tpu.memory_space<vmem>>, %arg6: memref<32x256xbf16, #tpu.memory_space<vmem>>, %arg7: memref<32x256xf32, #tpu.memory_space<vmem>>) attributes {dimension_semantics = [#tpu.dimension_semantics<parallel>, #tpu.dimension_semantics<parallel>, #tpu.dimension_semantics<arbitrary>], iteration_bounds = array<i64: 1, 1, 1>, scalar_prefetch = 0 : i64, scratch_operands = 1 : i64, tpu.core_type = #tpu.core_type<tc>, window_params = [{transform_indices = @transform_0, window_bounds = array<i64: 32, 48>}, {transform_indices = @transform_1, window_bounds = array<i64: 48, 256>}, {transform_indices = @transform_2, window_bounds = array<i64: 1, 256>}, {transform_indices = @transform_3, window_bounds = array<i64: 32, 256>}]} {
    %c0_i32 = arith.constant 0 : i32
    %0 = arith.cmpi eq, %arg2, %c0_i32 : i32
    %1 = arith.extui %0 : i1 to i32
    %c0_i32_0 = arith.constant 0 : i32
    %2 = arith.cmpi ne, %1, %c0_i32_0 : i32
    scf.if %2 {
      %cst_10 = arith.constant 0.000000e+00 : f32
      %12 = vector.broadcast %cst_10 : f32 to vector<32x256xf32>
      %c0_11 = arith.constant 0 : index
      %c0_12 = arith.constant 0 : index
      %13 = vector.load %arg7[%c0_11, %c0_12] : memref<32x256xf32, #tpu.memory_space<vmem>>, vector<32x256xf32>
      tpu.vector_store %arg7[%c0_11, %c0_12], %12 {strides = array<i32>} : memref<32x256xf32, #tpu.memory_space<vmem>>, vector<32x256xf32>,
    } else {
    }
    %c0 = arith.constant 0 : index
    %c0_1 = arith.constant 0 : index
    %3 = vector.load %arg7[%c0, %c0_1] : memref<32x256xf32, #tpu.memory_space<vmem>>, vector<32x256xf32>
    %c0_2 = arith.constant 0 : index
    %c0_3 = arith.constant 0 : index
    %4 = vector.load %arg3[%c0_2, %c0_3] : memref<32x48xbf16, #tpu.memory_space<vmem>>, vector<32x48xbf16>
    %c0_4 = arith.constant 0 : index
    %c0_5 = arith.constant 0 : index
    %5 = vector.load %arg4[%c0_4, %c0_5] : memref<48x256xbf16, #tpu.memory_space<vmem>>, vector<48x256xbf16>
    %cst = arith.constant dense<0.000000e+00> : vector<32x256xf32>
    %6 = tpu.matmul %4, %5, %cst {dimension_numbers = #tpu.dot_dimension_numbers<[1], [0], [0], [1], [0, 0, 1, 1], [], []>} : vector<32x48xbf16>, vector<48x256xbf16>, vector<32x256xf32> -> vector<32x256xf32>
    %7 = arith.addf %3, %6 : vector<32x256xf32>
    %c0_6 = arith.constant 0 : index
    %c0_7 = arith.constant 0 : index
    %8 = vector.load %arg7[%c0_6, %c0_7] : memref<32x256xf32, #tpu.memory_space<vmem>>, vector<32x256xf32>
    tpu.vector_store %arg7[%c0_6, %c0_7], %7 {strides = array<i32>} : memref<32x256xf32, #tpu.memory_space<vmem>>, vector<32x256xf32>,
    %c0_i32_8 = arith.constant 0 : i32
    %9 = arith.cmpi eq, %arg2, %c0_i32_8 : i32
    %10 = arith.extui %9 : i1 to i32
    %c0_i32_9 = arith.constant 0 : i32
    %11 = arith.cmpi ne, %10, %c0_i32_9 : i32
    scf.if %11 {
      %c0_10 = arith.constant 0 : index
      %c0_11 = arith.constant 0 : index
      %12 = vector.load %arg7[%c0_10, %c0_11] : memref<32x256xf32, #tpu.memory_space<vmem>>, vector<32x256xf32>
      %c0_12 = arith.constant 0 : index
      %c0_13 = arith.constant 0 : index
      %13 = vector.load %arg5[%c0_12, %c0_13] : memref<1x256xf32, #tpu.memory_space<vmem>>, vector<1x256xf32>
      %14 = vector.broadcast %13 : vector<1x256xf32> to vector<32x256xf32>
      %15 = arith.addf %12, %14 : vector<32x256xf32>
      %cst_14 = arith.constant 0.000000e+00 : f32
      %16 = vector.broadcast %cst_14 : f32 to vector<32x256xf32>
      %17 = arith.maximumf %15, %16 : vector<32x256xf32>
      %18 = arith.truncf %17 : vector<32x256xf32> to vector<32x256xbf16>
      %c0_15 = arith.constant 0 : index
      %c0_16 = arith.constant 0 : index
      %19 = vector.load %arg6[%c0_15, %c0_16] : memref<32x256xbf16, #tpu.memory_space<vmem>>, vector<32x256xbf16>
      tpu.vector_store %arg6[%c0_15, %c0_16], %18 {strides = array<i32>} : memref<32x256xbf16, #tpu.memory_space<vmem>>, vector<32x256xbf16>,
    } else {
    }
    return
  }
  func.func @transform_0(%arg0: i32, %arg1: i32, %arg2: i32) -> (i32, i32) {
    %c0_i32 = arith.constant 0 : i32
    return %arg0, %arg2 : i32, i32
  }
  func.func @transform_1(%arg0: i32, %arg1: i32, %arg2: i32) -> (i32, i32) {
    %c0_i32 = arith.constant 0 : i32
    return %arg2, %arg1 : i32, i32
  }
  func.func @transform_2(%arg0: i32, %arg1: i32, %arg2: i32) -> (i32, i32) {
    %c0_i32 = arith.constant 0 : i32
    %c0_i32_0 = arith.constant 0 : i32
    return %c0_i32, %arg1 : i32, i32
  }
  func.func @transform_3(%arg0: i32, %arg1: i32, %arg2: i32) -> (i32, i32) {
    %c0_i32 = arith.constant 0 : i32
    return %arg0, %arg1 : i32, i32
  }
}

module attributes {stable_mosaic.version = 11 : i64} {
  func.func @kernel(%arg0: i32, %arg1: i32, %arg2: i32, %arg3: memref<32x512xbf16, #tpu.memory_space<vmem>>, %arg4: memref<512x256xbf16, #tpu.memory_space<vmem>>, %arg5: memref<1x256xf32, #tpu.memory_space<vmem>>, %arg6: memref<32x256xbf16, #tpu.memory_space<vmem>>, %arg7: memref<32x256xf32, #tpu.memory_space<vmem>>) attributes {dimension_semantics = [#tpu.dimension_semantics<parallel>, #tpu.dimension_semantics<parallel>, #tpu.dimension_semantics<arbitrary>], iteration_bounds = array<i64: 1, 1, 2>, scalar_prefetch = 0 : i64, scratch_operands = 1 : i64, tpu.core_type = #tpu.core_type<tc>, window_params = [{transform_indices = @transform_0, window_bounds = array<i64: 32, 512>}, {transform_indices = @transform_1, window_bounds = array<i64: 512, 256>}, {transform_indices = @transform_2, window_bounds = array<i64: 1, 256>}, {transform_indices = @transform_3, window_bounds = array<i64: 32, 256>}]} {
    %c0_i32 = arith.constant 0 : i32
    %0 = arith.cmpi eq, %arg2, %c0_i32 : i32
    %1 = arith.extui %0 : i1 to i32
    %c0_i32_0 = arith.constant 0 : i32
    %2 = arith.cmpi ne, %1, %c0_i32_0 : i32
    scf.if %2 {
      %cst_9 = arith.constant 0.000000e+00 : f32
      %12 = vector.broadcast %cst_9 : f32 to vector<32x256xf32>
      %c0_10 = arith.constant 0 : index
      %c0_11 = arith.constant 0 : index
      %13 = vector.load %arg7[%c0_10, %c0_11] : memref<32x256xf32, #tpu.memory_space<vmem>>, vector<32x256xf32>
      tpu.vector_store %arg7[%c0_10, %c0_11], %12 {strides = array<i32>} : memref<32x256xf32, #tpu.memory_space<vmem>>, vector<32x256xf32>,
    } else {
    }
    %c0 = arith.constant 0 : index
    %c0_1 = arith.constant 0 : index
    %3 = vector.load %arg7[%c0, %c0_1] : memref<32x256xf32, #tpu.memory_space<vmem>>, vector<32x256xf32>
    %c0_2 = arith.constant 0 : index
    %c0_3 = arith.constant 0 : index
    %4 = vector.load %arg3[%c0_2, %c0_3] : memref<32x512xbf16, #tpu.memory_space<vmem>>, vector<32x512xbf16>
    %c0_4 = arith.constant 0 : index
    %c0_5 = arith.constant 0 : index
    %5 = vector.load %arg4[%c0_4, %c0_5] : memref<512x256xbf16, #tpu.memory_space<vmem>>, vector<512x256xbf16>
    %cst = arith.constant dense<0.000000e+00> : vector<32x256xf32>
    %6 = tpu.matmul %4, %5, %cst {dimension_numbers = #tpu.dot_dimension_numbers<[1], [0], [0], [1], [0, 0, 1, 1], [], []>} : vector<32x512xbf16>, vector<512x256xbf16>, vector<32x256xf32> -> vector<32x256xf32>
    %7 = arith.addf %3, %6 : vector<32x256xf32>
    %c0_6 = arith.constant 0 : index
    %c0_7 = arith.constant 0 : index
    %8 = vector.load %arg7[%c0_6, %c0_7] : memref<32x256xf32, #tpu.memory_space<vmem>>, vector<32x256xf32>
    tpu.vector_store %arg7[%c0_6, %c0_7], %7 {strides = array<i32>} : memref<32x256xf32, #tpu.memory_space<vmem>>, vector<32x256xf32>,
    %c1_i32 = arith.constant 1 : i32
    %9 = arith.cmpi eq, %arg2, %c1_i32 : i32
    %10 = arith.extui %9 : i1 to i32
    %c0_i32_8 = arith.constant 0 : i32
    %11 = arith.cmpi ne, %10, %c0_i32_8 : i32
    scf.if %11 {
      %c0_9 = arith.constant 0 : index
      %c0_10 = arith.constant 0 : index
      %12 = vector.load %arg7[%c0_9, %c0_10] : memref<32x256xf32, #tpu.memory_space<vmem>>, vector<32x256xf32>
      %c0_11 = arith.constant 0 : index
      %c0_12 = arith.constant 0 : index
      %13 = vector.load %arg5[%c0_11, %c0_12] : memref<1x256xf32, #tpu.memory_space<vmem>>, vector<1x256xf32>
      %14 = vector.broadcast %13 : vector<1x256xf32> to vector<32x256xf32>
      %15 = arith.addf %12, %14 : vector<32x256xf32>
      %cst_13 = arith.constant 0.000000e+00 : f32
      %16 = vector.broadcast %cst_13 : f32 to vector<32x256xf32>
      %17 = arith.maximumf %15, %16 : vector<32x256xf32>
      %18 = arith.truncf %17 : vector<32x256xf32> to vector<32x256xbf16>
      %c0_14 = arith.constant 0 : index
      %c0_15 = arith.constant 0 : index
      %19 = vector.load %arg6[%c0_14, %c0_15] : memref<32x256xbf16, #tpu.memory_space<vmem>>, vector<32x256xbf16>
      tpu.vector_store %arg6[%c0_14, %c0_15], %18 {strides = array<i32>} : memref<32x256xbf16, #tpu.memory_space<vmem>>, vector<32x256xbf16>,
    } else {
    }
    return
  }
  func.func @transform_0(%arg0: i32, %arg1: i32, %arg2: i32) -> (i32, i32) {
    %c0_i32 = arith.constant 0 : i32
    return %arg0, %arg2 : i32, i32
  }
  func.func @transform_1(%arg0: i32, %arg1: i32, %arg2: i32) -> (i32, i32) {
    %c0_i32 = arith.constant 0 : i32
    return %arg2, %arg1 : i32, i32
  }
  func.func @transform_2(%arg0: i32, %arg1: i32, %arg2: i32) -> (i32, i32) {
    %c0_i32 = arith.constant 0 : i32
    %c0_i32_0 = arith.constant 0 : i32
    return %c0_i32, %arg1 : i32, i32
  }
  func.func @transform_3(%arg0: i32, %arg1: i32, %arg2: i32) -> (i32, i32) {
    %c0_i32 = arith.constant 0 : i32
    return %arg0, %arg1 : i32, i32
  }
}

module attributes {stable_mosaic.version = 11 : i64} {
  func.func @kernel(%arg0: i32, %arg1: i32, %arg2: i32, %arg3: memref<32x512xbf16, #tpu.memory_space<vmem>>, %arg4: memref<512x128xbf16, #tpu.memory_space<vmem>>, %arg5: memref<1x128xf32, #tpu.memory_space<vmem>>, %arg6: memref<32x128xf32, #tpu.memory_space<vmem>>, %arg7: memref<32x128xf32, #tpu.memory_space<vmem>>) attributes {dimension_semantics = [#tpu.dimension_semantics<parallel>, #tpu.dimension_semantics<parallel>, #tpu.dimension_semantics<arbitrary>], iteration_bounds = array<i64: 1, 1, 1>, scalar_prefetch = 0 : i64, scratch_operands = 1 : i64, tpu.core_type = #tpu.core_type<tc>, window_params = [{transform_indices = @transform_0, window_bounds = array<i64: 32, 512>}, {transform_indices = @transform_1, window_bounds = array<i64: 512, 128>}, {transform_indices = @transform_2, window_bounds = array<i64: 1, 128>}, {transform_indices = @transform_3, window_bounds = array<i64: 32, 128>}]} {
    %c0_i32 = arith.constant 0 : i32
    %0 = arith.cmpi eq, %arg2, %c0_i32 : i32
    %1 = arith.extui %0 : i1 to i32
    %c0_i32_0 = arith.constant 0 : i32
    %2 = arith.cmpi ne, %1, %c0_i32_0 : i32
    scf.if %2 {
      %cst_10 = arith.constant 0.000000e+00 : f32
      %12 = vector.broadcast %cst_10 : f32 to vector<32x128xf32>
      %c0_11 = arith.constant 0 : index
      %c0_12 = arith.constant 0 : index
      %13 = vector.load %arg7[%c0_11, %c0_12] : memref<32x128xf32, #tpu.memory_space<vmem>>, vector<32x128xf32>
      tpu.vector_store %arg7[%c0_11, %c0_12], %12 {strides = array<i32>} : memref<32x128xf32, #tpu.memory_space<vmem>>, vector<32x128xf32>,
    } else {
    }
    %c0 = arith.constant 0 : index
    %c0_1 = arith.constant 0 : index
    %3 = vector.load %arg7[%c0, %c0_1] : memref<32x128xf32, #tpu.memory_space<vmem>>, vector<32x128xf32>
    %c0_2 = arith.constant 0 : index
    %c0_3 = arith.constant 0 : index
    %4 = vector.load %arg3[%c0_2, %c0_3] : memref<32x512xbf16, #tpu.memory_space<vmem>>, vector<32x512xbf16>
    %c0_4 = arith.constant 0 : index
    %c0_5 = arith.constant 0 : index
    %5 = vector.load %arg4[%c0_4, %c0_5] : memref<512x128xbf16, #tpu.memory_space<vmem>>, vector<512x128xbf16>
    %cst = arith.constant dense<0.000000e+00> : vector<32x128xf32>
    %6 = tpu.matmul %4, %5, %cst {dimension_numbers = #tpu.dot_dimension_numbers<[1], [0], [0], [1], [0, 0, 1, 1], [], []>} : vector<32x512xbf16>, vector<512x128xbf16>, vector<32x128xf32> -> vector<32x128xf32>
    %7 = arith.addf %3, %6 : vector<32x128xf32>
    %c0_6 = arith.constant 0 : index
    %c0_7 = arith.constant 0 : index
    %8 = vector.load %arg7[%c0_6, %c0_7] : memref<32x128xf32, #tpu.memory_space<vmem>>, vector<32x128xf32>
    tpu.vector_store %arg7[%c0_6, %c0_7], %7 {strides = array<i32>} : memref<32x128xf32, #tpu.memory_space<vmem>>, vector<32x128xf32>,
    %c0_i32_8 = arith.constant 0 : i32
    %9 = arith.cmpi eq, %arg2, %c0_i32_8 : i32
    %10 = arith.extui %9 : i1 to i32
    %c0_i32_9 = arith.constant 0 : i32
    %11 = arith.cmpi ne, %10, %c0_i32_9 : i32
    scf.if %11 {
      %c0_10 = arith.constant 0 : index
      %c0_11 = arith.constant 0 : index
      %12 = vector.load %arg7[%c0_10, %c0_11] : memref<32x128xf32, #tpu.memory_space<vmem>>, vector<32x128xf32>
      %c0_12 = arith.constant 0 : index
      %c0_13 = arith.constant 0 : index
      %13 = vector.load %arg5[%c0_12, %c0_13] : memref<1x128xf32, #tpu.memory_space<vmem>>, vector<1x128xf32>
      %14 = vector.broadcast %13 : vector<1x128xf32> to vector<32x128xf32>
      %15 = arith.addf %12, %14 : vector<32x128xf32>
      %16 = arith.negf %15 : vector<32x128xf32>
      %17 = math.exp %16 : vector<32x128xf32>
      %cst_14 = arith.constant 1.000000e+00 : f32
      %18 = vector.broadcast %cst_14 : f32 to vector<32x128xf32>
      %19 = arith.addf %18, %17 : vector<32x128xf32>
      %20 = arith.divf %18, %19 : vector<32x128xf32>
      %c0_15 = arith.constant 0 : index
      %c0_16 = arith.constant 0 : index
      %21 = vector.load %arg6[%c0_15, %c0_16] : memref<32x128xf32, #tpu.memory_space<vmem>>, vector<32x128xf32>
      tpu.vector_store %arg6[%c0_15, %c0_16], %20 {strides = array<i32>} : memref<32x128xf32, #tpu.memory_space<vmem>>, vector<32x128xf32>,
    } else {
    }
    return
  }
  func.func @transform_0(%arg0: i32, %arg1: i32, %arg2: i32) -> (i32, i32) {
    %c0_i32 = arith.constant 0 : i32
    return %arg0, %arg2 : i32, i32
  }
  func.func @transform_1(%arg0: i32, %arg1: i32, %arg2: i32) -> (i32, i32) {
    %c0_i32 = arith.constant 0 : i32
    return %arg2, %arg1 : i32, i32
  }
  func.func @transform_2(%arg0: i32, %arg1: i32, %arg2: i32) -> (i32, i32) {
    %c0_i32 = arith.constant 0 : i32
    %c0_i32_0 = arith.constant 0 : i32
    return %c0_i32, %arg1 : i32, i32
  }
  func.func @transform_3(%arg0: i32, %arg1: i32, %arg2: i32) -> (i32, i32) {
    %c0_i32 = arith.constant 0 : i32
    return %arg0, %arg1 : i32, i32
  }
}

module attributes {stable_mosaic.version = 11 : i64} {
  func.func @_bm_c3_kernel(%arg0: i32, %arg1: i32, %arg2: i32, %arg3: memref<1x256x16xbf16, #tpu.memory_space<vmem>>, %arg4: memref<1x16x256xbf16, #tpu.memory_space<vmem>>, %arg5: memref<1x256x512xbf16, #tpu.memory_space<vmem>>, %arg6: memref<1x512xf32, #tpu.memory_space<vmem>>, %arg7: memref<1x256x512xbf16, #tpu.memory_space<vmem>>, %arg8: memref<256x512xf32, #tpu.memory_space<vmem>>) attributes {dimension_semantics = [#tpu.dimension_semantics<parallel>, #tpu.dimension_semantics<parallel>, #tpu.dimension_semantics<arbitrary>], iteration_bounds = array<i64: 2, 1, 8>, scalar_prefetch = 0 : i64, scratch_operands = 1 : i64, tpu.core_type = #tpu.core_type<tc>, window_params = [{transform_indices = @transform_0, window_bounds = array<i64: 1, 256, 16>}, {transform_indices = @transform_1, window_bounds = array<i64: 1, 16, 256>}, {transform_indices = @transform_2, window_bounds = array<i64: 1, 256, 512>}, {pipeline_mode = #tpu.pipeline_mode<synchronous>, transform_indices = @transform_3, window_bounds = array<i64: 1, 512>}, {transform_indices = @transform_4, window_bounds = array<i64: 1, 256, 512>}]} {
    %c0_i32 = arith.constant 0 : i32
    %0 = arith.cmpi eq, %arg2, %c0_i32 : i32
    %1 = arith.extui %0 : i1 to i32
    %c0_i32_0 = arith.constant 0 : i32
    %2 = arith.cmpi ne, %1, %c0_i32_0 : i32
    scf.if %2 {
      %cst_15 = arith.constant 0.000000e+00 : f32
      %18 = vector.broadcast %cst_15 : f32 to vector<256x512xf32>
      %c0_16 = arith.constant 0 : index
      %c0_17 = arith.constant 0 : index
      %19 = vector.load %arg8[%c0_16, %c0_17] : memref<256x512xf32, #tpu.memory_space<vmem>>, vector<256x512xf32>
      tpu.vector_store %arg8[%c0_16, %c0_17], %18 {strides = array<i32>} : memref<256x512xf32, #tpu.memory_space<vmem>>, vector<256x512xf32>,
    } else {
    }
    %c0 = arith.constant 0 : index
    %c0_1 = arith.constant 0 : index
    %c0_2 = arith.constant 0 : index
    %3 = vector.load %arg3[%c0, %c0_1, %c0_2] : memref<1x256x16xbf16, #tpu.memory_space<vmem>>, vector<1x256x16xbf16>
    %4 = vector.shape_cast %3 : vector<1x256x16xbf16> to vector<256x16xbf16>
    %c0_3 = arith.constant 0 : index
    %c0_4 = arith.constant 0 : index
    %c0_5 = arith.constant 0 : index
    %5 = vector.load %arg4[%c0_3, %c0_4, %c0_5] : memref<1x16x256xbf16, #tpu.memory_space<vmem>>, vector<1x16x256xbf16>
    %6 = vector.shape_cast %5 : vector<1x16x256xbf16> to vector<16x256xbf16>
    %cst = arith.constant dense<0.000000e+00> : vector<256x256xf32>
    %7 = tpu.matmul %4, %6, %cst {dimension_numbers = #tpu.dot_dimension_numbers<[1], [0], [0], [1], [0, 0, 1, 1], [], []>} : vector<256x16xbf16>, vector<16x256xbf16>, vector<256x256xf32> -> vector<256x256xf32>
    %c0_6 = arith.constant 0 : index
    %c0_7 = arith.constant 0 : index
    %8 = vector.load %arg8[%c0_6, %c0_7] : memref<256x512xf32, #tpu.memory_space<vmem>>, vector<256x512xf32>
    %9 = arith.truncf %7 : vector<256x256xf32> to vector<256x256xbf16>
    %c0_8 = arith.constant 0 : index
    %c0_9 = arith.constant 0 : index
    %c0_10 = arith.constant 0 : index
    %10 = vector.load %arg5[%c0_8, %c0_9, %c0_10] : memref<1x256x512xbf16, #tpu.memory_space<vmem>>, vector<1x256x512xbf16>
    %11 = vector.shape_cast %10 : vector<1x256x512xbf16> to vector<256x512xbf16>
    %cst_11 = arith.constant dense<0.000000e+00> : vector<256x512xf32>
    %12 = tpu.matmul %9, %11, %cst_11 {dimension_numbers = #tpu.dot_dimension_numbers<[1], [0], [0], [1], [0, 0, 1, 1], [], []>} : vector<256x256xbf16>, vector<256x512xbf16>, vector<256x512xf32> -> vector<256x512xf32>
    %13 = arith.addf %8, %12 : vector<256x512xf32>
    %c0_12 = arith.constant 0 : index
    %c0_13 = arith.constant 0 : index
    %14 = vector.load %arg8[%c0_12, %c0_13] : memref<256x512xf32, #tpu.memory_space<vmem>>, vector<256x512xf32>
    tpu.vector_store %arg8[%c0_12, %c0_13], %13 {strides = array<i32>} : memref<256x512xf32, #tpu.memory_space<vmem>>, vector<256x512xf32>,
    %c7_i32 = arith.constant 7 : i32
    %15 = arith.cmpi eq, %arg2, %c7_i32 : i32
    %16 = arith.extui %15 : i1 to i32
    %c0_i32_14 = arith.constant 0 : i32
    %17 = arith.cmpi ne, %16, %c0_i32_14 : i32
    scf.if %17 {
      %c0_15 = arith.constant 0 : index
      %c0_16 = arith.constant 0 : index
      %18 = vector.load %arg8[%c0_15, %c0_16] : memref<256x512xf32, #tpu.memory_space<vmem>>, vector<256x512xf32>
      %c0_17 = arith.constant 0 : index
      %c0_18 = arith.constant 0 : index
      %19 = vector.load %arg6[%c0_17, %c0_18] : memref<1x512xf32, #tpu.memory_space<vmem>>, vector<1x512xf32>
      %20 = vector.broadcast %19 : vector<1x512xf32> to vector<256x512xf32>
      %21 = arith.addf %18, %20 : vector<256x512xf32>
      %cst_19 = arith.constant 0.000000e+00 : f32
      %22 = vector.broadcast %cst_19 : f32 to vector<256x512xf32>
      %23 = arith.maximumf %21, %22 : vector<256x512xf32>
      %24 = arith.truncf %23 : vector<256x512xf32> to vector<256x512xbf16>
      %c0_20 = arith.constant 0 : index
      %c0_21 = arith.constant 0 : index
      %c0_22 = arith.constant 0 : index
      %25 = vector.load %arg7[%c0_20, %c0_21, %c0_22] : memref<1x256x512xbf16, #tpu.memory_space<vmem>>, vector<1x256x512xbf16>
      %26 = vector.shape_cast %25 : vector<1x256x512xbf16> to vector<256x512xbf16>
      %27 = vector.shape_cast %24 : vector<256x512xbf16> to vector<1x256x512xbf16>
      tpu.vector_store %arg7[%c0_20, %c0_21, %c0_22], %27 {strides = array<i32>} : memref<1x256x512xbf16, #tpu.memory_space<vmem>>, vector<1x256x512xbf16>,
    } else {
    }
    return
  }
  func.func @transform_0(%arg0: i32, %arg1: i32, %arg2: i32) -> (i32, i32, i32) {
    %c0_i32 = arith.constant 0 : i32
    %c0_i32_0 = arith.constant 0 : i32
    return %arg2, %arg1, %c0_i32 : i32, i32, i32
  }
  func.func @transform_1(%arg0: i32, %arg1: i32, %arg2: i32) -> (i32, i32, i32) {
    %c0_i32 = arith.constant 0 : i32
    %c0_i32_0 = arith.constant 0 : i32
    %c0_i32_1 = arith.constant 0 : i32
    return %arg0, %c0_i32, %c0_i32_0 : i32, i32, i32
  }
  func.func @transform_2(%arg0: i32, %arg1: i32, %arg2: i32) -> (i32, i32, i32) {
    %c0_i32 = arith.constant 0 : i32
    %c0_i32_0 = arith.constant 0 : i32
    %c0_i32_1 = arith.constant 0 : i32
    return %arg2, %c0_i32, %c0_i32_0 : i32, i32, i32
  }
  func.func @transform_3(%arg0: i32, %arg1: i32, %arg2: i32) -> (i32, i32) {
    %c0_i32 = arith.constant 0 : i32
    %c0_i32_0 = arith.constant 0 : i32
    %c0_i32_1 = arith.constant 0 : i32
    return %c0_i32, %c0_i32_0 : i32, i32
  }
  func.func @transform_4(%arg0: i32, %arg1: i32, %arg2: i32) -> (i32, i32, i32) {
    %c0_i32 = arith.constant 0 : i32
    %c0_i32_0 = arith.constant 0 : i32
    return %arg0, %arg1, %c0_i32 : i32, i32, i32
  }
}

module attributes {stable_mosaic.version = 11 : i64} {
  func.func @kernel(%arg0: i32, %arg1: i32, %arg2: i32, %arg3: memref<256x512xbf16, #tpu.memory_space<vmem>>, %arg4: memref<512x128xbf16, #tpu.memory_space<vmem>>, %arg5: memref<1x128xf32, #tpu.memory_space<vmem>>, %arg6: memref<256x128xbf16, #tpu.memory_space<vmem>>, %arg7: memref<256x128xf32, #tpu.memory_space<vmem>>) attributes {dimension_semantics = [#tpu.dimension_semantics<parallel>, #tpu.dimension_semantics<parallel>, #tpu.dimension_semantics<arbitrary>], iteration_bounds = array<i64: 2, 1, 1>, scalar_prefetch = 0 : i64, scratch_operands = 1 : i64, tpu.core_type = #tpu.core_type<tc>, window_params = [{transform_indices = @transform_0, window_bounds = array<i64: 256, 512>}, {transform_indices = @transform_1, window_bounds = array<i64: 512, 128>}, {transform_indices = @transform_2, window_bounds = array<i64: 1, 128>}, {transform_indices = @transform_3, window_bounds = array<i64: 256, 128>}]} {
    %c0_i32 = arith.constant 0 : i32
    %0 = arith.cmpi eq, %arg2, %c0_i32 : i32
    %1 = arith.extui %0 : i1 to i32
    %c0_i32_0 = arith.constant 0 : i32
    %2 = arith.cmpi ne, %1, %c0_i32_0 : i32
    scf.if %2 {
      %cst_10 = arith.constant 0.000000e+00 : f32
      %12 = vector.broadcast %cst_10 : f32 to vector<256x128xf32>
      %c0_11 = arith.constant 0 : index
      %c0_12 = arith.constant 0 : index
      %13 = vector.load %arg7[%c0_11, %c0_12] : memref<256x128xf32, #tpu.memory_space<vmem>>, vector<256x128xf32>
      tpu.vector_store %arg7[%c0_11, %c0_12], %12 {strides = array<i32>} : memref<256x128xf32, #tpu.memory_space<vmem>>, vector<256x128xf32>,
    } else {
    }
    %c0 = arith.constant 0 : index
    %c0_1 = arith.constant 0 : index
    %3 = vector.load %arg7[%c0, %c0_1] : memref<256x128xf32, #tpu.memory_space<vmem>>, vector<256x128xf32>
    %c0_2 = arith.constant 0 : index
    %c0_3 = arith.constant 0 : index
    %4 = vector.load %arg3[%c0_2, %c0_3] : memref<256x512xbf16, #tpu.memory_space<vmem>>, vector<256x512xbf16>
    %c0_4 = arith.constant 0 : index
    %c0_5 = arith.constant 0 : index
    %5 = vector.load %arg4[%c0_4, %c0_5] : memref<512x128xbf16, #tpu.memory_space<vmem>>, vector<512x128xbf16>
    %cst = arith.constant dense<0.000000e+00> : vector<256x128xf32>
    %6 = tpu.matmul %4, %5, %cst {dimension_numbers = #tpu.dot_dimension_numbers<[1], [0], [0], [1], [0, 0, 1, 1], [], []>} : vector<256x512xbf16>, vector<512x128xbf16>, vector<256x128xf32> -> vector<256x128xf32>
    %7 = arith.addf %3, %6 : vector<256x128xf32>
    %c0_6 = arith.constant 0 : index
    %c0_7 = arith.constant 0 : index
    %8 = vector.load %arg7[%c0_6, %c0_7] : memref<256x128xf32, #tpu.memory_space<vmem>>, vector<256x128xf32>
    tpu.vector_store %arg7[%c0_6, %c0_7], %7 {strides = array<i32>} : memref<256x128xf32, #tpu.memory_space<vmem>>, vector<256x128xf32>,
    %c0_i32_8 = arith.constant 0 : i32
    %9 = arith.cmpi eq, %arg2, %c0_i32_8 : i32
    %10 = arith.extui %9 : i1 to i32
    %c0_i32_9 = arith.constant 0 : i32
    %11 = arith.cmpi ne, %10, %c0_i32_9 : i32
    scf.if %11 {
      %c0_10 = arith.constant 0 : index
      %c0_11 = arith.constant 0 : index
      %12 = vector.load %arg7[%c0_10, %c0_11] : memref<256x128xf32, #tpu.memory_space<vmem>>, vector<256x128xf32>
      %c0_12 = arith.constant 0 : index
      %c0_13 = arith.constant 0 : index
      %13 = vector.load %arg5[%c0_12, %c0_13] : memref<1x128xf32, #tpu.memory_space<vmem>>, vector<1x128xf32>
      %14 = vector.broadcast %13 : vector<1x128xf32> to vector<256x128xf32>
      %15 = arith.addf %12, %14 : vector<256x128xf32>
      %cst_14 = arith.constant 0.000000e+00 : f32
      %16 = vector.broadcast %cst_14 : f32 to vector<256x128xf32>
      %17 = arith.maximumf %15, %16 : vector<256x128xf32>
      %18 = arith.truncf %17 : vector<256x128xf32> to vector<256x128xbf16>
      %c0_15 = arith.constant 0 : index
      %c0_16 = arith.constant 0 : index
      %19 = vector.load %arg6[%c0_15, %c0_16] : memref<256x128xbf16, #tpu.memory_space<vmem>>, vector<256x128xbf16>
      tpu.vector_store %arg6[%c0_15, %c0_16], %18 {strides = array<i32>} : memref<256x128xbf16, #tpu.memory_space<vmem>>, vector<256x128xbf16>,
    } else {
    }
    return
  }
  func.func @transform_0(%arg0: i32, %arg1: i32, %arg2: i32) -> (i32, i32) {
    %c0_i32 = arith.constant 0 : i32
    return %arg0, %arg2 : i32, i32
  }
  func.func @transform_1(%arg0: i32, %arg1: i32, %arg2: i32) -> (i32, i32) {
    %c0_i32 = arith.constant 0 : i32
    return %arg2, %arg1 : i32, i32
  }
  func.func @transform_2(%arg0: i32, %arg1: i32, %arg2: i32) -> (i32, i32) {
    %c0_i32 = arith.constant 0 : i32
    %c0_i32_0 = arith.constant 0 : i32
    return %c0_i32, %arg1 : i32, i32
  }
  func.func @transform_3(%arg0: i32, %arg1: i32, %arg2: i32) -> (i32, i32) {
    %c0_i32 = arith.constant 0 : i32
    return %arg0, %arg1 : i32, i32
  }
}

module attributes {stable_mosaic.version = 11 : i64} {
  func.func @_conv3x3_kernel(%arg0: i32, %arg1: memref<1x288x384xbf16, #tpu.memory_space<vmem>>, %arg2: memref<3x384x128xbf16, #tpu.memory_space<vmem>>, %arg3: memref<1x128xf32, #tpu.memory_space<vmem>>, %arg4: memref<1x256x128xbf16, #tpu.memory_space<vmem>>) attributes {dimension_semantics = [#tpu.dimension_semantics<parallel>], iteration_bounds = array<i64: 2>, scalar_prefetch = 0 : i64, scratch_operands = 0 : i64, tpu.core_type = #tpu.core_type<tc>, window_params = [{transform_indices = @transform_0, window_bounds = array<i64: 1, 288, 384>}, {pipeline_mode = #tpu.pipeline_mode<synchronous>, transform_indices = @transform_1, window_bounds = array<i64: 3, 384, 128>}, {pipeline_mode = #tpu.pipeline_mode<synchronous>, transform_indices = @transform_2, window_bounds = array<i64: 1, 128>}, {transform_indices = @transform_3, window_bounds = array<i64: 1, 256, 128>}]} {
    %cst = arith.constant 0.000000e+00 : f32
    %0 = vector.broadcast %cst : f32 to vector<256x128xf32>
    %c0 = arith.constant 0 : index
    %c0_0 = arith.constant 0 : index
    %c0_1 = arith.constant 0 : index
    %1 = vector.load %arg1[%c0, %c0_0, %c0_1] : memref<1x288x384xbf16, #tpu.memory_space<vmem>>, vector<1x256x384xbf16>
    %2 = vector.shape_cast %1 : vector<1x256x384xbf16> to vector<256x384xbf16>
    %c0_2 = arith.constant 0 : index
    %c0_3 = arith.constant 0 : index
    %c0_4 = arith.constant 0 : index
    %3 = vector.load %arg2[%c0_2, %c0_3, %c0_4] : memref<3x384x128xbf16, #tpu.memory_space<vmem>>, vector<1x384x128xbf16>
    %4 = vector.shape_cast %3 : vector<1x384x128xbf16> to vector<384x128xbf16>
    %cst_5 = arith.constant dense<0.000000e+00> : vector<256x128xf32>
    %5 = tpu.matmul %2, %4, %cst_5 {dimension_numbers = #tpu.dot_dimension_numbers<[1], [0], [0], [1], [0, 0, 1, 1], [], []>} : vector<256x384xbf16>, vector<384x128xbf16>, vector<256x128xf32> -> vector<256x128xf32>
    %6 = arith.addf %0, %5 : vector<256x128xf32>
    %c0_6 = arith.constant 0 : index
    %c16 = arith.constant 16 : index
    %c0_7 = arith.constant 0 : index
    %7 = vector.load %arg1[%c0_6, %c16, %c0_7] : memref<1x288x384xbf16, #tpu.memory_space<vmem>>, vector<1x256x384xbf16>
    %8 = vector.shape_cast %7 : vector<1x256x384xbf16> to vector<256x384xbf16>
    %c1 = arith.constant 1 : index
    %c0_8 = arith.constant 0 : index
    %c0_9 = arith.constant 0 : index
    %9 = vector.load %arg2[%c1, %c0_8, %c0_9] : memref<3x384x128xbf16, #tpu.memory_space<vmem>>, vector<1x384x128xbf16>
    %10 = vector.shape_cast %9 : vector<1x384x128xbf16> to vector<384x128xbf16>
    %cst_10 = arith.constant dense<0.000000e+00> : vector<256x128xf32>
    %11 = tpu.matmul %8, %10, %cst_10 {dimension_numbers = #tpu.dot_dimension_numbers<[1], [0], [0], [1], [0, 0, 1, 1], [], []>} : vector<256x384xbf16>, vector<384x128xbf16>, vector<256x128xf32> -> vector<256x128xf32>
    %12 = arith.addf %6, %11 : vector<256x128xf32>
    %c0_11 = arith.constant 0 : index
    %c32 = arith.constant 32 : index
    %c0_12 = arith.constant 0 : index
    %13 = vector.load %arg1[%c0_11, %c32, %c0_12] : memref<1x288x384xbf16, #tpu.memory_space<vmem>>, vector<1x256x384xbf16>
    %14 = vector.shape_cast %13 : vector<1x256x384xbf16> to vector<256x384xbf16>
    %c2 = arith.constant 2 : index
    %c0_13 = arith.constant 0 : index
    %c0_14 = arith.constant 0 : index
    %15 = vector.load %arg2[%c2, %c0_13, %c0_14] : memref<3x384x128xbf16, #tpu.memory_space<vmem>>, vector<1x384x128xbf16>
    %16 = vector.shape_cast %15 : vector<1x384x128xbf16> to vector<384x128xbf16>
    %cst_15 = arith.constant dense<0.000000e+00> : vector<256x128xf32>
    %17 = tpu.matmul %14, %16, %cst_15 {dimension_numbers = #tpu.dot_dimension_numbers<[1], [0], [0], [1], [0, 0, 1, 1], [], []>} : vector<256x384xbf16>, vector<384x128xbf16>, vector<256x128xf32> -> vector<256x128xf32>
    %18 = arith.addf %12, %17 : vector<256x128xf32>
    %c0_16 = arith.constant 0 : index
    %c0_17 = arith.constant 0 : index
    %19 = vector.load %arg3[%c0_16, %c0_17] : memref<1x128xf32, #tpu.memory_space<vmem>>, vector<1x128xf32>
    %20 = vector.broadcast %19 : vector<1x128xf32> to vector<256x128xf32>
    %21 = arith.addf %18, %20 : vector<256x128xf32>
    %cst_18 = arith.constant 0.000000e+00 : f32
    %22 = vector.broadcast %cst_18 : f32 to vector<256x128xf32>
    %23 = arith.maximumf %21, %22 : vector<256x128xf32>
    %24 = arith.truncf %23 : vector<256x128xf32> to vector<256x128xbf16>
    %c0_19 = arith.constant 0 : index
    %c0_20 = arith.constant 0 : index
    %c0_21 = arith.constant 0 : index
    %25 = vector.load %arg4[%c0_19, %c0_20, %c0_21] : memref<1x256x128xbf16, #tpu.memory_space<vmem>>, vector<1x256x128xbf16>
    %26 = vector.shape_cast %25 : vector<1x256x128xbf16> to vector<256x128xbf16>
    %27 = vector.shape_cast %24 : vector<256x128xbf16> to vector<1x256x128xbf16>
    tpu.vector_store %arg4[%c0_19, %c0_20, %c0_21], %27 {strides = array<i32>} : memref<1x256x128xbf16, #tpu.memory_space<vmem>>, vector<1x256x128xbf16>,
    return
  }
  func.func @transform_0(%arg0: i32) -> (i32, i32, i32) {
    %c0_i32 = arith.constant 0 : i32
    %c0_i32_0 = arith.constant 0 : i32
    %c0_i32_1 = arith.constant 0 : i32
    return %arg0, %c0_i32, %c0_i32_0 : i32, i32, i32
  }
  func.func @transform_1(%arg0: i32) -> (i32, i32, i32) {
    %c0_i32 = arith.constant 0 : i32
    %c0_i32_0 = arith.constant 0 : i32
    %c0_i32_1 = arith.constant 0 : i32
    %c0_i32_2 = arith.constant 0 : i32
    return %c0_i32, %c0_i32_0, %c0_i32_1 : i32, i32, i32
  }
  func.func @transform_2(%arg0: i32) -> (i32, i32) {
    %c0_i32 = arith.constant 0 : i32
    %c0_i32_0 = arith.constant 0 : i32
    %c0_i32_1 = arith.constant 0 : i32
    return %c0_i32, %c0_i32_0 : i32, i32
  }
  func.func @transform_3(%arg0: i32) -> (i32, i32, i32) {
    %c0_i32 = arith.constant 0 : i32
    %c0_i32_0 = arith.constant 0 : i32
    %c0_i32_1 = arith.constant 0 : i32
    return %arg0, %c0_i32, %c0_i32_0 : i32, i32, i32
  }
}

module attributes {stable_mosaic.version = 11 : i64} {
  func.func @kernel(%arg0: i32, %arg1: i32, %arg2: i32, %arg3: memref<256x128xbf16, #tpu.memory_space<vmem>>, %arg4: memref<128x128xbf16, #tpu.memory_space<vmem>>, %arg5: memref<1x128xf32, #tpu.memory_space<vmem>>, %arg6: memref<256x128xf32, #tpu.memory_space<vmem>>, %arg7: memref<256x128xf32, #tpu.memory_space<vmem>>) attributes {dimension_semantics = [#tpu.dimension_semantics<parallel>, #tpu.dimension_semantics<parallel>, #tpu.dimension_semantics<arbitrary>], iteration_bounds = array<i64: 2, 1, 1>, scalar_prefetch = 0 : i64, scratch_operands = 1 : i64, tpu.core_type = #tpu.core_type<tc>, window_params = [{transform_indices = @transform_0, window_bounds = array<i64: 256, 128>}, {transform_indices = @transform_1, window_bounds = array<i64: 128, 128>}, {transform_indices = @transform_2, window_bounds = array<i64: 1, 128>}, {transform_indices = @transform_3, window_bounds = array<i64: 256, 128>}]} {
    %c0_i32 = arith.constant 0 : i32
    %0 = arith.cmpi eq, %arg2, %c0_i32 : i32
    %1 = arith.extui %0 : i1 to i32
    %c0_i32_0 = arith.constant 0 : i32
    %2 = arith.cmpi ne, %1, %c0_i32_0 : i32
    scf.if %2 {
      %cst_10 = arith.constant 0.000000e+00 : f32
      %12 = vector.broadcast %cst_10 : f32 to vector<256x128xf32>
      %c0_11 = arith.constant 0 : index
      %c0_12 = arith.constant 0 : index
      %13 = vector.load %arg7[%c0_11, %c0_12] : memref<256x128xf32, #tpu.memory_space<vmem>>, vector<256x128xf32>
      tpu.vector_store %arg7[%c0_11, %c0_12], %12 {strides = array<i32>} : memref<256x128xf32, #tpu.memory_space<vmem>>, vector<256x128xf32>,
    } else {
    }
    %c0 = arith.constant 0 : index
    %c0_1 = arith.constant 0 : index
    %3 = vector.load %arg7[%c0, %c0_1] : memref<256x128xf32, #tpu.memory_space<vmem>>, vector<256x128xf32>
    %c0_2 = arith.constant 0 : index
    %c0_3 = arith.constant 0 : index
    %4 = vector.load %arg3[%c0_2, %c0_3] : memref<256x128xbf16, #tpu.memory_space<vmem>>, vector<256x128xbf16>
    %c0_4 = arith.constant 0 : index
    %c0_5 = arith.constant 0 : index
    %5 = vector.load %arg4[%c0_4, %c0_5] : memref<128x128xbf16, #tpu.memory_space<vmem>>, vector<128x128xbf16>
    %cst = arith.constant dense<0.000000e+00> : vector<256x128xf32>
    %6 = tpu.matmul %4, %5, %cst {dimension_numbers = #tpu.dot_dimension_numbers<[1], [0], [0], [1], [0, 0, 1, 1], [], []>} : vector<256x128xbf16>, vector<128x128xbf16>, vector<256x128xf32> -> vector<256x128xf32>
    %7 = arith.addf %3, %6 : vector<256x128xf32>
    %c0_6 = arith.constant 0 : index
    %c0_7 = arith.constant 0 : index
    %8 = vector.load %arg7[%c0_6, %c0_7] : memref<256x128xf32, #tpu.memory_space<vmem>>, vector<256x128xf32>
    tpu.vector_store %arg7[%c0_6, %c0_7], %7 {strides = array<i32>} : memref<256x128xf32, #tpu.memory_space<vmem>>, vector<256x128xf32>,
    %c0_i32_8 = arith.constant 0 : i32
    %9 = arith.cmpi eq, %arg2, %c0_i32_8 : i32
    %10 = arith.extui %9 : i1 to i32
    %c0_i32_9 = arith.constant 0 : i32
    %11 = arith.cmpi ne, %10, %c0_i32_9 : i32
    scf.if %11 {
      %c0_10 = arith.constant 0 : index
      %c0_11 = arith.constant 0 : index
      %12 = vector.load %arg7[%c0_10, %c0_11] : memref<256x128xf32, #tpu.memory_space<vmem>>, vector<256x128xf32>
      %c0_12 = arith.constant 0 : index
      %c0_13 = arith.constant 0 : index
      %13 = vector.load %arg5[%c0_12, %c0_13] : memref<1x128xf32, #tpu.memory_space<vmem>>, vector<1x128xf32>
      %14 = vector.broadcast %13 : vector<1x128xf32> to vector<256x128xf32>
      %15 = arith.addf %12, %14 : vector<256x128xf32>
      %16 = arith.negf %15 : vector<256x128xf32>
      %17 = math.exp %16 : vector<256x128xf32>
      %cst_14 = arith.constant 1.000000e+00 : f32
      %18 = vector.broadcast %cst_14 : f32 to vector<256x128xf32>
      %19 = arith.addf %18, %17 : vector<256x128xf32>
      %20 = arith.divf %18, %19 : vector<256x128xf32>
      %c0_15 = arith.constant 0 : index
      %c0_16 = arith.constant 0 : index
      %21 = vector.load %arg6[%c0_15, %c0_16] : memref<256x128xf32, #tpu.memory_space<vmem>>, vector<256x128xf32>
      tpu.vector_store %arg6[%c0_15, %c0_16], %20 {strides = array<i32>} : memref<256x128xf32, #tpu.memory_space<vmem>>, vector<256x128xf32>,
    } else {
    }
    return
  }
  func.func @transform_0(%arg0: i32, %arg1: i32, %arg2: i32) -> (i32, i32) {
    %c0_i32 = arith.constant 0 : i32
    return %arg0, %arg2 : i32, i32
  }
  func.func @transform_1(%arg0: i32, %arg1: i32, %arg2: i32) -> (i32, i32) {
    %c0_i32 = arith.constant 0 : i32
    return %arg2, %arg1 : i32, i32
  }
  func.func @transform_2(%arg0: i32, %arg1: i32, %arg2: i32) -> (i32, i32) {
    %c0_i32 = arith.constant 0 : i32
    %c0_i32_0 = arith.constant 0 : i32
    return %c0_i32, %arg1 : i32, i32
  }
  func.func @transform_3(%arg0: i32, %arg1: i32, %arg2: i32) -> (i32, i32) {
    %c0_i32 = arith.constant 0 : i32
    return %arg0, %arg1 : i32, i32
  }
}

</mosaic_0001>

<bundles_post_ra>
// kernel: bmn_forward.11
= control target key start
LH: loop header
LB: loop body
LE: loop exit
PB: predicated region body
PF: predicated region fallthrough
CT: control target
= control target key end

     0   :  { %8 = vsyncpa [#allocation4], 0  ;;  %s304_s12 = smov [#allocation3]   ;;  %s365_s0 = inlined_call_operand.vmem [shape: bf16[32,48], index: 0, kind: input, shape index: {}]   ;;  %s366_s1 = inlined_call_operand.vmem [shape: bf16[48,256], index: 1, kind: input, shape index: {}]   ;;  %s367_s2 = inlined_call_operand.hbm [shape: f32[1,256], index: 2, kind: input, shape index: {}]   ;;  %s368_s3 = inlined_call_operand.vmem [shape: bf16[32,256], index: 3, kind: output, shape index: {}]  }
   0x1   :  { %s19_s13 = sshll.u32 %s304_s12, 4  ;;  %s20_s13 = int_to_ptr.vmem [resolvable:$true] %s19_s13 }
   0x2   :  { %s290_s14 = scalar_lea.vmem %s20_s13, 32  ;;  %p295_p1 = scmp.lt.s32.totalorder %s20_s13, %s20_s13 }
   0x3   :  { %p291_p0 = scmp.ne.s32.totalorder %s20_s13, %s290_s14  ;;  %p296_p2 = scmp.lt.s32.totalorder %s290_s14, %s290_s14 }
   0x5   :  { %p297_p3 = por %p296_p2, %p295_p1 }
   0x7   :  { %p298_p4 = pnand %p297_p3, %p291_p0 }
   0x9   :  { %301 = shalt.err (!%p298_p4)
}
   0xa   :  { %22 = dma.hbm_to_vmem [thread:$0]  %s367_s2, 32, %s20_s13, [#allocation4]  }
   0xb   :  { %302 = dma.done.wait [#allocation4], 32  }
   0xc   :  { %303 = vsyncadd [#allocation4], 4294967264  ;;  %v305_v0 = vmov 0   ;;  %v271_v1 = vld [vmem:[%s366_s1 + $0x24] ss:$8 sps:$4 sm:$0xff]   ;;  %vm97_vm0 = vcmask 392192   ;;  %v186_v9 = vlaneseq }
   0xd   :  { %136 = vmatprep.mubr.bf16.mxu0 %v305_v0  ;;  %146 = vmatprep.mubr.bf16.mxu1 %v305_v0  ;;  %v273_v2 = vld [vmem:[%s366_s1 + $0x20] ss:$8 sps:$4 sm:$0xff]   ;;  %v274_v3 = vld [vmem:[%s366_s1 + $0x14] ss:$8 sps:$4 sm:$0xff]   ;;  %v276_v4 = vld [vmem:[%s366_s1 + $0x10] ss:$8 sps:$4 sm:$0xff]  }
   0xe   :  { %114 = vmatprep.subr.bf16.mxu0 %v271_v1  ;;  %263 = vmatprep.subr.bf16.mxu1 %v271_v1  ;;  %v277_v5 = vld [vmem:[%s366_s1 + $0x4] ss:$8 sps:$4 sm:$0xff]   ;;  %v279_v6 = vld [vmem:[%s366_s1] ss:$8 sps:$4 sm:$0xff]   ;;  %v187_v10 = vshrl.u32 %v186_v9, 7 }
   0xf   :  { %115 = vmatpush1.bf16.msra.mxu0 %v273_v2  ;;  %266 = vmatpush1.bf16.msra.mxu1 %v273_v2  ;;  %v280_v7 = vld [vmem:[%s365_s0] sm:$0xff]   ;;  %v281_v8 = vld [vmem:[%s365_s0 + $0x8] sm:$0xff]  }
  0x10   :  { %116 = vmatprep.subr.bf16.mxu0 %v274_v3  ;;  %264 = vmatprep.subr.bf16.mxu1 %v274_v3  ;;  %v188_v11 = vsub.s32 0, %v187_v10  ;;  %v184_v12 = vld [vmem:[#allocation3] sm:$0x3]  ;;  %v192_v13 = vsub.s32 1, %v187_v10 }
  0x12   :  { %v189_v14 = vrot.slane %v184_v12, %v188_v11  ;;  %v193_v15 = vrot.slane %v184_v12, %v192_v13 }
  0x13   :  { %117 = vmatpush1.bf16.msra.mxu0 %v276_v4  ;;  %267 = vmatpush1.bf16.msra.mxu1 %v276_v4 }
  0x14   :  { %118 = vmatprep.subr.bf16.mxu0 %v277_v5  ;;  %265 = vmatprep.subr.bf16.mxu1 %v277_v5 }
  0x17   :  { %119 = vmatpush1.bf16.msra.mxu0 %v279_v6  ;;  %268 = vmatpush1.bf16.msra.mxu1 %v279_v6 }
  0x1a   :  { %253 = vmatmul.mubr.msk.bf16.vlgmr.msra.gmra.mxu0 %vm97_vm0, %v280_v7  ;;  %254 = vmatmul.mubr.msk.bf16.vlgmr.msra.gmra.mxu1 %vm97_vm0, %v281_v8 }
  0xda   :  { %v138_v16 = vpop.f32.mrf.mxu0  ;;  %v148_v17 = vpop.f32.mrf.mxu1 }
  0xdb   :  { %v196_v18 = vadd.f32 %v189_v14, %v138_v16  ;;  %v200_v19 = vadd.f32 %v189_v14, %v148_v17 }
  0xdc   :  { %v140_v20 = vpop.f32.mrf.mxu0  ;;  %v150_v21 = vpop.f32.mrf.mxu1 }
  0xdd   :  { %v197_v22 = vadd.f32 %v193_v15, %v140_v20  ;;  %v201_v23 = vadd.f32 %v193_v15, %v150_v21  ;;  %v204_v26 = vmax.f32 %v196_v18, 0.0  ;;  %v208_v27 = vmax.f32 %v200_v19, 0.0 }
  0xde   :  { %v142_v24 = vpop.f32.mrf.mxu0  ;;  %v152_v25 = vpop.f32.mrf.mxu1 }
  0xdf   :  { %v205_v28 = vmax.f32 %v197_v22, 0.0  ;;  %v209_v29 = vmax.f32 %v201_v23, 0.0  ;;  %v198_v30 = vadd.f32 %v189_v14, %v142_v24  ;;  %v202_v31 = vadd.f32 %v189_v14, %v152_v25 }
  0xe0   :  { %v144_v32 = vpop.f32.mrf.mxu0  ;;  %v154_v33 = vpop.f32.mrf.mxu1 }
  0xe1   :  { %v259_v34 = vpack.c.bf16 %v205_v28, %v204_v26  ;;  %v261_v35 = vpack.c.bf16 %v209_v29, %v208_v27  ;;  %v199_v36 = vadd.f32 %v193_v15, %v144_v32  ;;  %v203_v37 = vadd.f32 %v193_v15, %v154_v33 }
  0xe2   :  { %v206_v38 = vmax.f32 %v198_v30, 0.0  ;;  %v210_v39 = vmax.f32 %v202_v31, 0.0 }
  0xe3   :  { %236 = vst [vmem:[%s368_s3] sm:$0xff] %v259_v34  ;;  %238 = vst [vmem:[%s368_s3 + $0x10] sm:$0xff] %v261_v35  ;;  %v207_v40 = vmax.f32 %v199_v36, 0.0  ;;  %v211_v41 = vmax.f32 %v203_v37, 0.0 }
  0xe5   :  { %v260_v42 = vpack.c.bf16 %v207_v40, %v206_v38  ;;  %v262_v43 = vpack.c.bf16 %v211_v41, %v210_v39 }
  0xe7   :  { %237 = vst [vmem:[%s368_s3 + $0x8] sm:$0xff] %v260_v42  ;;  %239 = vst [vmem:[%s368_s3 + $0x18] sm:$0xff] %v262_v43 }
  0xe8   :  { %244 = vsyncpa [#allocation4], 1 }

// kernel: bmn_forward.12
= control target key start
LH: loop header
LB: loop body
LE: loop exit
PB: predicated region body
PF: predicated region fallthrough
CT: control target
= control target key end

     0   :  { %s1380_s12 = smov 0   ;;  %s1382_s13 = smov 0   ;;  %s1538_s0 = inlined_call_operand.vmem [shape: bf16[32,1024], index: 0, kind: input, shape index: {}]   ;;  %s1539_s1 = inlined_call_operand.vmem [shape: bf16[1024,256], index: 1, kind: input, shape index: {}]   ;;  %s1540_s2 = inlined_call_operand.vmem [shape: f32[1,256], index: 2, kind: input, shape index: {}]   ;;  %s1541_s3 = inlined_call_operand.vmem [shape: bf16[32,256], index: 3, kind: output, shape index: {}]  }
   0x1   :  { %s1384_s14 = smov 0   ;;  %s1386_s15 = smov 0  }
   0x2   :  { %s1388_s16 = smov 0  }
   0x3 LB: > { %s25_s17 = sadd.s32 1, %s1353_s15  ;;  %p48_p1 = scmp.ne.s32.totalorder %s1345_s13, %s1341_s12  ;;  %s1357_s16 = sphi %s1388_s16, %s13_s16   ;;  %s1353_s15 = sphi %s1386_s15, %s1545_s15   ;;  %s1349_s14 = sphi %s1384_s14, %s1544_s14   ;;  %s1345_s13 = sphi %s1382_s13, %s1543_s13   ;;  %s1341_s12 = sphi %s1380_s12, %s1542_s12  }
   0x4   : > { %p26_p0 = scmp.ge.s32.totalorder %s25_s17, 2  ;;  %p49_p2 = scmp.eq.s32.totalorder %s1357_s16, 0 }
   0x5   : > { %s41_s19 = sadd.s32 1, %s1345_s13  ;;  %p1073_p5 = scmp.ge.s32.totalorder %s1357_s16, 2 }
   0x6   : > { %s1547_s17 = smov (%p26_p0, %s25_s17), 0  ;;  %p50_p3 = por %p49_p2, %p48_p1 }
   0x7   : > { %s37_s18 = ssub.s32 %s1353_s15, %s1547_s17  ;;  %164 = sbr.rel (%p1073_p5) target bundleno = 20 (0x14), region = 20 }
   0x8   : > { %p39_p4 = scmp.eq.s32.totalorder %s37_s18, 0 }
   0xa   : > { %s1415_s20 = scalar_select %p39_p4, %s1345_s13, %s41_s19  }
   0xc   : > { %167 = sbr.rel (!%p50_p3) target bundleno = 20 (0x14), region = 24  ;;  %s169_s21 = sand.u32 (%p50_p3), 1, %s1345_s13  }
   0xd   : > { %s1164_s22 = sshll.u32 (%p50_p3), %s1353_s15, 4  ;;  %s1074_s23 = sshll.u32 (%p50_p3), %s169_s21, 6 }
   0xe   : > { %s177_s26 = scalar_lea.vmem (%p50_p3), %s1538_s0, %s1164_s22  ;;  %s171_s27 = scalar_lea.vmem (%p50_p3), [#allocation3], %s1074_s23 }
   0xf   : > { %v190_v0 = vld [vmem:[%s177_s26] sm:$0xff] (%p50_p3)  ;;  %v192_v1 = vld [vmem:[%s177_s26 + $0x8] sm:$0xff] (%p50_p3) }
  0x10   : > { %v194_v2 = vld [vmem:[%s177_s26 + $0x20] sm:$0xff] (%p50_p3)  ;;  %191 = vst [vmem:[%s171_s27] sm:$0xff] (%p50_p3), %v190_v0  ;;  %193 = vst [vmem:[%s171_s27 + $0x8] sm:$0xff] (%p50_p3), %v192_v1  ;;  %v196_v3 = vld [vmem:[%s177_s26 + $0x28] sm:$0xff] (%p50_p3) }
  0x11   : > { %195 = vst [vmem:[%s171_s27 + $0x10] sm:$0xff] %v194_v2  ;;  %v198_v4 = vld [vmem:[%s177_s26 + $0x40] sm:$0xff]  ;;  %v200_v5 = vld [vmem:[%s177_s26 + $0x48] sm:$0xff]  ;;  %197 = vst [vmem:[%s171_s27 + $0x18] sm:$0xff] %v196_v3 }
  0x12   : > { %199 = vst [vmem:[%s171_s27 + $0x20] sm:$0xff] %v198_v4  ;;  %201 = vst [vmem:[%s171_s27 + $0x28] sm:$0xff] %v200_v5  ;;  %v202_v6 = vld [vmem:[%s177_s26 + $0x60] sm:$0xff]  ;;  %v204_v7 = vld [vmem:[%s177_s26 + $0x68] sm:$0xff] }
  0x13   : > { %203 = vst [vmem:[%s171_s27 + $0x30] sm:$0xff] %v202_v6  ;;  %205 = vst [vmem:[%s171_s27 + $0x38] sm:$0xff] %v204_v7 }
  0x14 PF: > { %p1077_p6 = scmp.ge.s32.totalorder %s1357_s16, 1  ;;  %p225_p7 = scmp.lt.s32.totalorder %s1357_s16, 3 }
  0x16   : > { %p226_p8 = pnand %p1077_p6, %p225_p7 }
  0x17   : > { %s232_s28 = sand.u32 (!%p226_p8), 1, %s1341_s12   ;;  %s1079_s29 = sshll.u32 (!%p226_p8), %s1349_s14, 6 }
  0x18   : > { %229 = sbr.rel (%p226_p8) target bundleno = 333 (0x14d), region = 51  ;;  %s1078_s30 = sshll.u32 (!%p226_p8), %s232_s28, 6 }
  0x19   : > { %p278_p9 = scmp.lt.s32.totalorder (!%p226_p8), %s1079_s29, 127  ;;  %s1432_s8 = scalar_lea.vmem (!%p226_p8), [#allocation3], %s1078_s30 }
  0x1a   : > { %p1082_p10 = scmp.ne.s32.totalorder (!%p226_p8), %s1349_s14, 0 }
  0x1d   : > { %s1549_s29 = smov (!%p278_p9, %s1079_s29), 127  ;;  %308 = sbr.rel (%p1082_p10) target bundleno = 39 (0x27), region = 59 }
  0x1e   : > { %s1165_s4 = sshll.u32 %s1549_s29, 3 }
  0x1f   : > { %s1430_s7 = scalar_lea.vmem %s1539_s1, %s1165_s4 }
  0x22   : > { %v1359_v8 = vmov 0.0  }
  0x23   : > { %309 = vst [vmem:[#allocation2 + $0x30] sm:$0xff] %v1359_v8  ;;  %310 = vst [vmem:[#allocation2] sm:$0xff] %v1359_v8 }
  0x24   : > { %311 = vst [vmem:[#allocation2 + $0x18] sm:$0xff] %v1359_v8  ;;  %312 = vst [vmem:[#allocation2 + $0x10] sm:$0xff] %v1359_v8 }
  0x25   : > { %313 = vst [vmem:[#allocation2 + $0x8] sm:$0xff] %v1359_v8  ;;  %314 = vst [vmem:[#allocation2 + $0x20] sm:$0xff] %v1359_v8 }
  0x26   : > { %315 = vst [vmem:[#allocation2 + $0x28] sm:$0xff] %v1359_v8  ;;  %316 = vst [vmem:[#allocation2 + $0x38] sm:$0xff] %v1359_v8 }
  0x27 PF: > { %v1211_v9 = vld [vmem:[%s1430_s7 + $0x74] ss:$8 sps:$4 sm:$0xff]   ;;  %v1215_v11 = vld [vmem:[%s1430_s7 + $0x70] ss:$8 sps:$4 sm:$0xff]   ;;  %v1217_v13 = vld [vmem:[%s1430_s7 + $0x64] ss:$8 sps:$4 sm:$0xff]  }
  0x28   : > { %v1213_v10 = vld [vmem:[%s1430_s7 + $0x174] ss:$8 sps:$4 sm:$0xff]   ;;  %757 = vmatprep.subr.bf16.mxu0 %v1211_v9  ;;  %v1216_v12 = vld [vmem:[%s1430_s7 + $0x170] ss:$8 sps:$4 sm:$0xff]   ;;  %v1219_v14 = vld [vmem:[%s1430_s7 + $0x164] ss:$8 sps:$4 sm:$0xff]  }
  0x29   : > { %810 = vmatprep.subr.bf16.mxu1 %v1213_v10  ;;  %758 = vmatpush1.bf16.msra.mxu0 %v1215_v11  ;;  %v1221_v15 = vld [vmem:[%s1430_s7 + $0x60] ss:$8 sps:$4 sm:$0xff]   ;;  %v1223_v17 = vld [vmem:[%s1430_s7 + $0x54] ss:$8 sps:$4 sm:$0xff]   ;;  %v1227_v19 = vld [vmem:[%s1430_s7 + $0x50] ss:$8 sps:$4 sm:$0xff]  }
  0x2a   : > { %811 = vmatpush1.bf16.msra.mxu1 %v1216_v12  ;;  %759 = vmatprep.subr.bf16.mxu0 %v1217_v13  ;;  %v1222_v16 = vld [vmem:[%s1430_s7 + $0x160] ss:$8 sps:$4 sm:$0xff]   ;;  %v1225_v18 = vld [vmem:[%s1430_s7 + $0x154] ss:$8 sps:$4 sm:$0xff]   ;;  %v1228_v20 = vld [vmem:[%s1430_s7 + $0x150] ss:$8 sps:$4 sm:$0xff]  }
  0x2b   : > { %812 = vmatprep.subr.bf16.mxu1 %v1219_v14  ;;  %v1229_v21 = vld [vmem:[%s1430_s7 + $0x44] ss:$8 sps:$4 sm:$0xff]   ;;  %v1233_v23 = vld [vmem:[%s1430_s7 + $0x40] ss:$8 sps:$4 sm:$0xff]   ;;  %v1235_v25 = vld [vmem:[%s1430_s7 + $0x34] ss:$8 sps:$4 sm:$0xff]  }
  0x2c   : > { %v1231_v22 = vld [vmem:[%s1430_s7 + $0x144] ss:$8 sps:$4 sm:$0xff]   ;;  %v1234_v24 = vld [vmem:[%s1430_s7 + $0x140] ss:$8 sps:$4 sm:$0xff]   ;;  %v1237_v26 = vld [vmem:[%s1430_s7 + $0x134] ss:$8 sps:$4 sm:$0xff]  }
  0x2d   : > { %760 = vmatpush1.bf16.msra.mxu0 %v1221_v15  ;;  %v1239_v27 = vld [vmem:[%s1430_s7 + $0x30] ss:$8 sps:$4 sm:$0xff]   ;;  %v1241_v29 = vld [vmem:[%s1430_s7 + $0x24] ss:$8 sps:$4 sm:$0xff]   ;;  %v1245_v31 = vld [vmem:[%s1430_s7 + $0x20] ss:$8 sps:$4 sm:$0xff]  }
  0x2e   : > { %813 = vmatpush1.bf16.msra.mxu1 %v1222_v16  ;;  %761 = vmatprep.subr.bf16.mxu0 %v1223_v17  ;;  %v1240_v28 = vld [vmem:[%s1430_s7 + $0x130] ss:$8 sps:$4 sm:$0xff]   ;;  %v1243_v30 = vld [vmem:[%s1430_s7 + $0x124] ss:$8 sps:$4 sm:$0xff]   ;;  %v1246_v32 = vld [vmem:[%s1430_s7 + $0x120] ss:$8 sps:$4 sm:$0xff]  }
  0x2f   : > { %814 = vmatprep.subr.bf16.mxu1 %v1225_v18  ;;  %v1247_v33 = vld [vmem:[%s1430_s7 + $0x14] ss:$8 sps:$4 sm:$0xff]   ;;  %v1251_v35 = vld [vmem:[%s1430_s7 + $0x10] ss:$8 sps:$4 sm:$0xff]   ;;  %v1253_v37 = vld [vmem:[%s1430_s7 + $0x4] ss:$8 sps:$4 sm:$0xff]  }
  0x30   : > { %v1249_v34 = vld [vmem:[%s1430_s7 + $0x114] ss:$8 sps:$4 sm:$0xff]   ;;  %v1252_v36 = vld [vmem:[%s1430_s7 + $0x110] ss:$8 sps:$4 sm:$0xff]   ;;  %v1255_v38 = vld [vmem:[%s1430_s7 + $0x104] ss:$8 sps:$4 sm:$0xff]  }
  0x31   : > { %762 = vmatpush1.bf16.msra.mxu0 %v1227_v19  ;;  %v1257_v39 = vld [vmem:[%s1430_s7] ss:$8 sps:$4 sm:$0xff]   ;;  %v1259_v41 = vld [vmem:[%s1430_s7 + $0xf4] ss:$8 sps:$4 sm:$0xff]   ;;  %v1263_v43 = vld [vmem:[%s1430_s7 + $0xf0] ss:$8 sps:$4 sm:$0xff]  }
  0x32   : > { %815 = vmatpush1.bf16.msra.mxu1 %v1228_v20  ;;  %763 = vmatprep.subr.bf16.mxu0 %v1229_v21  ;;  %v1258_v40 = vld [vmem:[%s1430_s7 + $0x100] ss:$8 sps:$4 sm:$0xff]   ;;  %v1261_v42 = vld [vmem:[%s1430_s7 + $0x1f4] ss:$8 sps:$4 sm:$0xff]   ;;  %v1264_v44 = vld [vmem:[%s1430_s7 + $0x1f0] ss:$8 sps:$4 sm:$0xff]  }
  0x33   : > { %816 = vmatprep.subr.bf16.mxu1 %v1231_v22  ;;  %v1265_v45 = vld [vmem:[%s1430_s7 + $0xe4] ss:$8 sps:$4 sm:$0xff]   ;;  %v1269_v47 = vld [vmem:[%s1430_s7 + $0xe0] ss:$8 sps:$4 sm:$0xff]   ;;  %v1271_v49 = vld [vmem:[%s1430_s7 + $0xd4] ss:$8 sps:$4 sm:$0xff]  }
  0x34   : > { %v1267_v46 = vld [vmem:[%s1430_s7 + $0x1e4] ss:$8 sps:$4 sm:$0xff]   ;;  %v1270_v48 = vld [vmem:[%s1430_s7 + $0x1e0] ss:$8 sps:$4 sm:$0xff]   ;;  %v1273_v50 = vld [vmem:[%s1430_s7 + $0x1d4] ss:$8 sps:$4 sm:$0xff]  }
  0x35   : > { %764 = vmatpush1.bf16.msra.mxu0 %v1233_v23  ;;  %v1275_v51 = vld [vmem:[%s1430_s7 + $0xd0] ss:$8 sps:$4 sm:$0xff]   ;;  %v1277_v53 = vld [vmem:[%s1430_s7 + $0xc4] ss:$8 sps:$4 sm:$0xff]   ;;  %v1281_v55 = vld [vmem:[%s1430_s7 + $0xc0] ss:$8 sps:$4 sm:$0xff]  }
  0x36   : > { %817 = vmatpush1.bf16.msra.mxu1 %v1234_v24  ;;  %765 = vmatprep.subr.bf16.mxu0 %v1235_v25  ;;  %v1276_v52 = vld [vmem:[%s1430_s7 + $0x1d0] ss:$8 sps:$4 sm:$0xff]   ;;  %v1279_v54 = vld [vmem:[%s1430_s7 + $0x1c4] ss:$8 sps:$4 sm:$0xff]   ;;  %v1282_v56 = vld [vmem:[%s1430_s7 + $0x1c0] ss:$8 sps:$4 sm:$0xff]  }
  0x37   : > { %818 = vmatprep.subr.bf16.mxu1 %v1237_v26  ;;  %v1283_v57 = vld [vmem:[%s1430_s7 + $0xb4] ss:$8 sps:$4 sm:$0xff]   ;;  %v1287_v61 = vld [vmem:[%s1430_s7 + $0xb0] ss:$8 sps:$4 sm:$0xff]   ;;  %v1289_v63 = vld [vmem:[%s1430_s7 + $0xa4] ss:$8 sps:$4 sm:$0xff]  }
  0x38   : > { %v1309_v58 = vld [vmem:[%s1432_s8 + $0x4] ss:$16 sps:$4 sm:$0xff]   ;;  %v1312_v60 = vld [vmem:[%s1432_s8 + $0xc] ss:$16 sps:$4 sm:$0xff]   ;;  %v1288_v62 = vld [vmem:[%s1430_s7 + $0x1b0] ss:$8 sps:$4 sm:$0xff]  }
  0x39   : > { %766 = vmatpush1.bf16.msra.mxu0 %v1239_v27  ;;  %v1285_v59 = vld [vmem:[%s1430_s7 + $0x1b4] ss:$8 sps:$4 sm:$0xff]   ;;  %789 = vmatprep.mubr.bf16.mxu0 %v1309_v58  ;;  %v1291_v0 = vld [vmem:[%s1430_s7 + $0x1a4] ss:$8 sps:$4 sm:$0xff]   ;;  %v1293_v1 = vld [vmem:[%s1430_s7 + $0xa0] ss:$8 sps:$4 sm:$0xff]  }
  0x3a   : > { %819 = vmatpush1.bf16.msra.mxu1 %v1240_v28  ;;  %767 = vmatprep.subr.bf16.mxu0 %v1241_v29  ;;  %v1294_v2 = vld [vmem:[%s1430_s7 + $0x1a0] ss:$8 sps:$4 sm:$0xff]   ;;  %v1295_v3 = vld [vmem:[%s1430_s7 + $0x94] ss:$8 sps:$4 sm:$0xff]   ;;  %v1299_v5 = vld [vmem:[%s1430_s7 + $0x90] ss:$8 sps:$4 sm:$0xff]  }
  0x3b   : > { %820 = vmatprep.subr.bf16.mxu1 %v1243_v30  ;;  %842 = vmatprep.mubr.bf16.mxu1 %v1312_v60  ;;  %v1297_v4 = vld [vmem:[%s1430_s7 + $0x194] ss:$8 sps:$4 sm:$0xff]   ;;  %v1300_v6 = vld [vmem:[%s1430_s7 + $0x190] ss:$8 sps:$4 sm:$0xff]   ;;  %v1301_v7 = vld [vmem:[%s1430_s7 + $0x84] ss:$8 sps:$4 sm:$0xff]  }
  0x3c   : > { %v1303_v8 = vld [vmem:[%s1430_s7 + $0x184] ss:$8 sps:$4 sm:$0xff]   ;;  %v1305_v9 = vld [vmem:[%s1430_s7 + $0x80] ss:$8 sps:$4 sm:$0xff]   ;;  %v317_v18 = vld [vmem:[#allocation2 + $0x30] sm:$0xff]  ;;  %p1155_p11 = scmp.ne.s32.totalorder %s1349_s14, 1 }
  0x3d   : > { %768 = vmatpush1.bf16.msra.mxu0 %v1245_v31  ;;  %v1306_v10 = vld [vmem:[%s1430_s7 + $0x180] ss:$8 sps:$4 sm:$0xff]   ;;  %v1313_v13 = vld [vmem:[%s1432_s8 + $0x24] ss:$16 sps:$4 sm:$0xff]   ;;  %v1315_v14 = vld [vmem:[%s1432_s8 + $0x2c] ss:$16 sps:$4 sm:$0xff]  }
  0x3e   : > { %821 = vmatpush1.bf16.msra.mxu1 %v1246_v32  ;;  %769 = vmatprep.subr.bf16.mxu0 %v1247_v33  ;;  %v1307_v11 = vld [vmem:[%s1432_s8] ss:$16 sps:$4 sm:$0xff]   ;;  %v1310_v12 = vld [vmem:[%s1432_s8 + $0x8] ss:$16 sps:$4 sm:$0xff]  }
  0x3f   : > { %822 = vmatprep.subr.bf16.mxu1 %v1249_v34  ;;  %v1317_v15 = vld [vmem:[%s1432_s8 + $0x20] ss:$16 sps:$4 sm:$0xff]   ;;  %v1318_v16 = vld [vmem:[%s1432_s8 + $0x28] ss:$16 sps:$4 sm:$0xff]  }
  0x40   : > { %v318_v22 = vld [vmem:[#allocation2] sm:$0xff]  ;;  %v319_v27 = vld [vmem:[#allocation2 + $0x18] sm:$0xff]  ;;  %v320_v32 = vld [vmem:[#allocation2 + $0x10] sm:$0xff] }
  0x41   : > { %770 = vmatpush1.bf16.msra.mxu0 %v1251_v35 }
  0x42   : > { %823 = vmatpush1.bf16.msra.mxu1 %v1252_v36  ;;  %771 = vmatprep.subr.bf16.mxu0 %v1253_v37  ;;  %v321_v37 = vld [vmem:[#allocation2 + $0x8] sm:$0xff] }
  0x43   : > { %824 = vmatprep.subr.bf16.mxu1 %v1255_v38 }
  0x45   : > { %772 = vmatpush1.bf16.msra.mxu0 %v1257_v39 }
  0x46   : > { %825 = vmatpush1.bf16.msra.mxu1 %v1258_v40  ;;  %773 = vmatprep.subr.bf16.mxu0 %v1259_v41 }
  0x47   : > { %826 = vmatprep.subr.bf16.mxu1 %v1261_v42  ;;  %v322_v42 = vld [vmem:[#allocation2 + $0x20] sm:$0xff] }
  0x49   : > { %774 = vmatpush2.bf16.msra.mxu0 %v1263_v43 }
  0x4a   : > { %827 = vmatpush2.bf16.msra.mxu1 %v1264_v44  ;;  %775 = vmatprep.subr.bf16.mxu0 %v1265_v45 }
  0x4b   : > { %828 = vmatprep.subr.bf16.mxu1 %v1267_v46 }
  0x4d   : > { %776 = vmatpush2.bf16.msra.mxu0 %v1269_v47  ;;  %v323_v47 = vld [vmem:[#allocation2 + $0x28] sm:$0xff] }
  0x4e   : > { %829 = vmatpush2.bf16.msra.mxu1 %v1270_v48  ;;  %777 = vmatprep.subr.bf16.mxu0 %v1271_v49 }
  0x4f   : > { %830 = vmatprep.subr.bf16.mxu1 %v1273_v50 }
  0x51   : > { %778 = vmatpush2.bf16.msra.mxu0 %v1275_v51 }
  0x52   : > { %831 = vmatpush2.bf16.msra.mxu1 %v1276_v52  ;;  %779 = vmatprep.subr.bf16.mxu0 %v1277_v53  ;;  %v324_v52 = vld [vmem:[#allocation2 + $0x38] sm:$0xff] }
  0x53   : > { %832 = vmatprep.subr.bf16.mxu1 %v1279_v54 }
  0x55   : > { %780 = vmatpush2.bf16.msra.mxu0 %v1281_v55 }
  0x56   : > { %833 = vmatpush2.bf16.msra.mxu1 %v1282_v56  ;;  %781 = vmatprep.subr.bf16.mxu0 %v1283_v57 }
  0x57   : > { %834 = vmatprep.subr.bf16.mxu1 %v1285_v59 }
  0x59   : > { %782 = vmatpush2.bf16.msra.mxu0 %v1287_v61 }
  0x5a   : > { %835 = vmatpush2.bf16.msra.mxu1 %v1288_v62  ;;  %783 = vmatprep.subr.bf16.mxu0 %v1289_v63 }
  0x5b   : > { %836 = vmatprep.subr.bf16.mxu1 %v1291_v0 }
  0x5d   : > { %784 = vmatpush2.bf16.msra.mxu0 %v1293_v1 }
  0x5e   : > { %837 = vmatpush2.bf16.msra.mxu1 %v1294_v2  ;;  %785 = vmatprep.subr.bf16.mxu0 %v1295_v3 }
  0x5f   : > { %838 = vmatprep.subr.bf16.mxu1 %v1297_v4 }
  0x61   : > { %786 = vmatpush2.bf16.msra.mxu0 %v1299_v5 }
  0x62   : > { %839 = vmatpush2.bf16.msra.mxu1 %v1300_v6  ;;  %787 = vmatprep.subr.bf16.mxu0 %v1301_v7 }
  0x63   : > { %840 = vmatprep.subr.bf16.mxu1 %v1303_v8 }
  0x65   : > { %788 = vmatpush2.bf16.msra.mxu0 %v1305_v9 }
  0x66   : > { %841 = vmatpush2.bf16.msra.mxu1 %v1306_v10 }
  0x68   : > { %790 = vmatmul.mubr.bf16.vlgmr.msra.gmra.mxu0 %v1307_v11 }
  0x69   : > { %843 = vmatmul.mubr.bf16.vlgmr.msra.gmra.mxu1 %v1310_v12  ;;  %799 = vmatprep.mubr.bf16.mxu0 %v1313_v13 }
  0x6a   : > { %852 = vmatprep.mubr.bf16.mxu1 %v1315_v14 }
  0x70   : > { %800 = vmatmul.mubr.bf16.gmra.mxu0 %v1317_v15 }
  0x71   : > { %853 = vmatmul.mubr.bf16.gmra.mxu1 %v1318_v16 }
 0x128   : > { %v791_v17 = vpop.f32.mrf.mxu0 }
 0x129   : > { %v844_v19 = vpop.f32.mrf.mxu1 }
 0x12a   : > { %v845_v20 = vadd.f32 %v844_v19, %v791_v17  ;;  %v793_v21 = vpop.f32.mrf.mxu0 }
 0x12b   : > { %v846_v23 = vpop.f32.mrf.mxu1 }
 0x12c   : > { %v863_v24 = vadd.f32 %v845_v20, %v317_v18  ;;  %v847_v25 = vadd.f32 %v846_v23, %v793_v21  ;;  %v795_v26 = vpop.f32.mrf.mxu0 }
 0x12d   : > { %v848_v28 = vpop.f32.mrf.mxu1 }
 0x12e   : > { %871 = vst [vmem:[#allocation2 + $0x30] sm:$0xff] %v863_v24  ;;  %v864_v29 = vadd.f32 %v847_v25, %v318_v22  ;;  %v849_v30 = vadd.f32 %v848_v28, %v795_v26  ;;  %v797_v31 = vpop.f32.mrf.mxu0 }
 0x12f   : > { %v850_v33 = vpop.f32.mrf.mxu1 }
 0x130   : > { %872 = vst [vmem:[#allocation2] sm:$0xff] %v864_v29  ;;  %v865_v34 = vadd.f32 %v849_v30, %v319_v27  ;;  %v851_v35 = vadd.f32 %v850_v33, %v797_v31  ;;  %v801_v36 = vpop.f32.mrf.mxu0 }
 0x131   : > { %v854_v38 = vpop.f32.mrf.mxu1 }
 0x132   : > { %873 = vst [vmem:[#allocation2 + $0x18] sm:$0xff] %v865_v34  ;;  %v866_v39 = vadd.f32 %v851_v35, %v320_v32  ;;  %v855_v40 = vadd.f32 %v854_v38, %v801_v36  ;;  %v803_v41 = vpop.f32.mrf.mxu0 }
 0x133   : > { %v856_v43 = vpop.f32.mrf.mxu1 }
 0x134   : > { %874 = vst [vmem:[#allocation2 + $0x10] sm:$0xff] %v866_v39  ;;  %v867_v44 = vadd.f32 %v855_v40, %v321_v37  ;;  %v857_v45 = vadd.f32 %v856_v43, %v803_v41  ;;  %v805_v46 = vpop.f32.mrf.mxu0 }
 0x135   : > { %v858_v48 = vpop.f32.mrf.mxu1 }
 0x136   : > { %875 = vst [vmem:[#allocation2 + $0x8] sm:$0xff] %v867_v44  ;;  %v868_v49 = vadd.f32 %v857_v45, %v322_v42  ;;  %v859_v50 = vadd.f32 %v858_v48, %v805_v46  ;;  %v807_v51 = vpop.f32.mrf.mxu0 }
 0x137   : > { %v860_v53 = vpop.f32.mrf.mxu1 }
 0x138   : > { %876 = vst [vmem:[#allocation2 + $0x20] sm:$0xff] %v868_v49  ;;  %v869_v54 = vadd.f32 %v859_v50, %v323_v47  ;;  %v861_v55 = vadd.f32 %v860_v53, %v807_v51  ;;  %882 = sbr.rel (%p1155_p11) target bundleno = 333 (0x14d), region = 63 }
 0x13a   : > { %877 = vst [vmem:[#allocation2 + $0x28] sm:$0xff] %v869_v54  ;;  %v870_v56 = vadd.f32 %v861_v55, %v324_v52 }
 0x13c   : > { %878 = vst [vmem:[#allocation2 + $0x38] sm:$0xff] %v870_v56 }
 0x13d   : > { %v893_v57 = vlaneseq  ;;  %v891_v59 = vld [vmem:[%s1540_s2] sm:$0x3]  ;;  %v883_v60 = vld [vmem:[#allocation2 + $0x30] sm:$0xff]  ;;  %v885_v0 = vld [vmem:[#allocation2 + $0x18] sm:$0xff] }
 0x13e   : > { %v884_v61 = vld [vmem:[#allocation2] sm:$0xff]  ;;  %v886_v1 = vld [vmem:[#allocation2 + $0x10] sm:$0xff]  ;;  %v887_v2 = vld [vmem:[#allocation2 + $0x8] sm:$0xff] }
 0x13f   : > { %v894_v58 = vshrl.u32 %v893_v57, 7  ;;  %v888_v5 = vld [vmem:[#allocation2 + $0x20] sm:$0xff] }
 0x141   : > { %v895_v62 = vsub.s32 0, %v894_v58  ;;  %v899_v63 = vsub.s32 1, %v894_v58  ;;  %v889_v6 = vld [vmem:[#allocation2 + $0x28] sm:$0xff] }
 0x143   : > { %v896_v3 = vrot.slane %v891_v59, %v895_v62  ;;  %v900_v4 = vrot.slane %v891_v59, %v899_v63  ;;  %v890_v7 = vld [vmem:[#allocation2 + $0x38] sm:$0xff] }
 0x145   : > { %v903_v8 = vadd.f32 %v896_v3, %v883_v60  ;;  %v904_v9 = vadd.f32 %v900_v4, %v884_v61  ;;  %v905_v10 = vadd.f32 %v896_v3, %v885_v0  ;;  %v906_v11 = vadd.f32 %v900_v4, %v886_v1 }
 0x146   : > { %v907_v12 = vadd.f32 %v896_v3, %v887_v2  ;;  %v908_v13 = vadd.f32 %v900_v4, %v888_v5  ;;  %v909_v14 = vadd.f32 %v896_v3, %v889_v6  ;;  %v910_v15 = vadd.f32 %v900_v4, %v890_v7 }
 0x147   : > { %v911_v16 = vmax.f32 %v903_v8, 0.0  ;;  %v912_v17 = vmax.f32 %v904_v9, 0.0  ;;  %v913_v18 = vmax.f32 %v905_v10, 0.0  ;;  %v914_v19 = vmax.f32 %v906_v11, 0.0 }
 0x148   : > { %v915_v20 = vmax.f32 %v907_v12, 0.0  ;;  %v916_v21 = vmax.f32 %v908_v13, 0.0  ;;  %v917_v22 = vmax.f32 %v909_v14, 0.0  ;;  %v918_v23 = vmax.f32 %v910_v15, 0.0 }
 0x149   : > { %v1166_v24 = vpack.c.bf16 %v912_v17, %v911_v16  ;;  %v1167_v25 = vpack.c.bf16 %v914_v19, %v913_v18 }
 0x14a   : > { %v1168_v26 = vpack.c.bf16 %v916_v21, %v915_v20  ;;  %v1169_v27 = vpack.c.bf16 %v918_v23, %v917_v22 }
 0x14b   : > { %943 = vst [vmem:[%s1541_s3] sm:$0xff] %v1166_v24  ;;  %944 = vst [vmem:[%s1541_s3 + $0x8] sm:$0xff] %v1167_v25 }
 0x14c   : > { %945 = vst [vmem:[%s1541_s3 + $0x10] sm:$0xff] %v1168_v26  ;;  %946 = vst [vmem:[%s1541_s3 + $0x18] sm:$0xff] %v1169_v27 }
 0x14d PF: > { %s13_s16 = sadd.s32 1, %s1357_s16   ;;  %s1542_s12 = smov %s1345_s13 }
 0x14e   : > { %p10_p12 = scmp.ge.s32.totalorder %s13_s16, 4   ;;  %s1543_s13 = smov %s1415_s20 }
 0x14f   : > { %s1544_s14 = smov %s1353_s15  ;;  %s1545_s15 = smov %s1547_s17 }
 0x150   :  { %12 = sbr.rel (!%p10_p12) target bundleno = 3 (0x3), region = 104 }

// kernel: squeeze.8
= control target key start
LH: loop header
LB: loop body
LE: loop exit
PB: predicated region body
PF: predicated region fallthrough
CT: control target
= control target key end

     0   :  { %s77_s0 = inlined_call_operand.vmem [shape: f32[32], index: 0, kind: input, shape index: {}]   ;;  %s78_s1 = inlined_call_operand.hbm [shape: f32[2,16], index: 1, kind: output, shape index: {}]  }
   0x1   :  { %v6_v0 = vld [vmem:[%s77_s0] sm:$0x1] }
   0x2   :  { %2 = vsyncpa [#allocation1], 0  ;;  %7 = vst [vmem:[#allocation3] sm:$0x1] %v6_v0  ;;  %vm9_vm0 = vcmask 130048   ;;  %s59_s0 = smov 112  }
   0x3   :  { %s60_s8 = smov [#allocation0]  }
   0x4   :  { %s29_s9 = sshll.u32 %s60_s8, 4  ;;  %s30_s9 = int_to_ptr.vmem [resolvable:$true] %s29_s9 }
   0x5   :  { %s37_s10 = scalar_lea.vmem %s30_s9, 32  ;;  %p42_p1 = scmp.lt.s32.totalorder %s30_s9, %s30_s9 }
   0x6   :  { %p38_p0 = scmp.ne.s32.totalorder %s30_s9, %s37_s10  ;;  %p43_p2 = scmp.lt.s32.totalorder %s37_s10, %s37_s10 }
   0x8   :  { %p44_p3 = por %p43_p2, %p42_p1 }
   0x9   :  { %v11_v1 = vld [vmem:[#allocation3] sm:$0x1]  }
   0xa   :  { %v8_v2 = vld [vmem:[#allocation3] sm:$0x1]   ;;  %12 = vrot.lane.b32.xlu0 %v11_v1, %s59_s0  ;;  %p45_p4 = pnand %p44_p3, %p38_p0 }
   0xb   :  { %10 = vst.msk [vmem:[#allocation2] sm:$0x1] %vm9_vm0, %v8_v2  }
  0x7c   :  { %v13_v3 = vpop.permute.xlu0 %12  }
  0x7d   :  { %16 = vst.msk [vmem:[#allocation2 + $0x1] sm:$0x1] %vm9_vm0, %v13_v3  }
  0x84   :  { %v21_v4 = vld [vmem:[#allocation2] sm:$0x3] }
  0x85   :  { %24 = vst [vmem:[#allocation0] sm:$0x3] %v21_v4 }
  0x86   :  { %48 = shalt.err (!%p45_p4)
}
  0x87   :  { %32 = dma.vmem_to_hbm [thread:$0]  %s30_s9, 32, %s78_s1, [#allocation1]  }
  0x88   :  { %57 = dma.done.wait [#allocation1], 32  }
  0x89   :  { %58 = vsyncadd [#allocation1], 4294967264 }
  0x8a   :  { %34 = vsyncpa [#allocation1], 1 }

// kernel: bmn_forward.15
= control target key start
LH: loop header
LB: loop body
LE: loop exit
PB: predicated region body
PF: predicated region fallthrough
CT: control target
= control target key end

     0   :  { %s803_s1 = inlined_call_operand.vmem [shape: bf16[512,128], index: 1, kind: input, shape index: {}]   ;;  %s804_s0 = inlined_call_operand.vmem [shape: bf16[32,512], index: 0, kind: input, shape index: {}]   ;;  %s805_s2 = inlined_call_operand.vmem [shape: f32[1,128], index: 2, kind: input, shape index: {}]   ;;  %s806_s3 = inlined_call_operand.vmem [shape: f32[32,128], index: 3, kind: output, shape index: {}]  }
   0x1   :  { %v588_v0 = vld [vmem:[%s803_s1 + $0x78] sm:$0xff]   ;;  %v592_v4 = vld [vmem:[%s803_s1 + $0x70] sm:$0xff]   ;;  %v596_v8 = vld [vmem:[%s803_s1 + $0x68] sm:$0xff]  }
   0x2   :  { %v589_v1 = vld [vmem:[%s803_s1 + $0xf8] sm:$0xff]   ;;  %532 = vmatprep.subr.bf16.mxu0 %v588_v0  ;;  %v593_v5 = vld [vmem:[%s803_s1 + $0xf0] sm:$0xff]   ;;  %v597_v9 = vld [vmem:[%s803_s1 + $0xe8] sm:$0xff]  }
   0x3   :  { %v590_v2 = vld [vmem:[%s803_s1 + $0x38] sm:$0xff]   ;;  %560 = vmatprep.subr.bf16.mxu1 %v589_v1  ;;  %v594_v6 = vld [vmem:[%s803_s1 + $0x30] sm:$0xff]   ;;  %v598_v10 = vld [vmem:[%s803_s1 + $0x28] sm:$0xff]  }
   0x4   :  { %v591_v3 = vld [vmem:[%s803_s1 + $0xb8] sm:$0xff]   ;;  %533 = vmatpush3.bf16.msra.mxu0 %v590_v2  ;;  %v595_v7 = vld [vmem:[%s803_s1 + $0xb0] sm:$0xff]   ;;  %v599_v11 = vld [vmem:[%s803_s1 + $0xa8] sm:$0xff]  }
   0x5   :  { %561 = vmatpush3.bf16.msra.mxu1 %v591_v3  ;;  %534 = vmatprep.subr.bf16.mxu0 %v592_v4  ;;  %v600_v12 = vld [vmem:[%s803_s1 + $0x60] sm:$0xff]   ;;  %v604_v16 = vld [vmem:[%s803_s1 + $0x58] sm:$0xff]   ;;  %v608_v20 = vld [vmem:[%s803_s1 + $0x50] sm:$0xff]  }
   0x6   :  { %562 = vmatprep.subr.bf16.mxu1 %v593_v5  ;;  %v601_v13 = vld [vmem:[%s803_s1 + $0xe0] sm:$0xff]   ;;  %v605_v17 = vld [vmem:[%s803_s1 + $0xd8] sm:$0xff]   ;;  %v609_v21 = vld [vmem:[%s803_s1 + $0xd0] sm:$0xff]  }
   0x7   :  { %v602_v14 = vld [vmem:[%s803_s1 + $0x20] sm:$0xff]   ;;  %v606_v18 = vld [vmem:[%s803_s1 + $0x18] sm:$0xff]   ;;  %v610_v22 = vld [vmem:[%s803_s1 + $0x10] sm:$0xff]  }
   0x8   :  { %535 = vmatpush3.bf16.msra.mxu0 %v594_v6  ;;  %v603_v15 = vld [vmem:[%s803_s1 + $0xa0] sm:$0xff]   ;;  %v607_v19 = vld [vmem:[%s803_s1 + $0x98] sm:$0xff]   ;;  %v611_v23 = vld [vmem:[%s803_s1 + $0x90] sm:$0xff]  }
   0x9   :  { %563 = vmatpush3.bf16.msra.mxu1 %v595_v7  ;;  %536 = vmatprep.subr.bf16.mxu0 %v596_v8  ;;  %v612_v24 = vld [vmem:[%s803_s1 + $0x48] sm:$0xff]   ;;  %v616_v28 = vld [vmem:[%s803_s1 + $0x40] sm:$0xff]  }
   0xa   :  { %564 = vmatprep.subr.bf16.mxu1 %v597_v9  ;;  %v613_v25 = vld [vmem:[%s803_s1 + $0xc8] sm:$0xff]   ;;  %v617_v29 = vld [vmem:[%s803_s1 + $0xc0] sm:$0xff]  }
   0xb   :  { %v614_v26 = vld [vmem:[%s803_s1 + $0x8] sm:$0xff]   ;;  %v618_v30 = vld [vmem:[%s803_s1] sm:$0xff]  }
   0xc   :  { %537 = vmatpush3.bf16.msra.mxu0 %v598_v10  ;;  %v615_v27 = vld [vmem:[%s803_s1 + $0x88] sm:$0xff]   ;;  %v619_v31 = vld [vmem:[%s803_s1 + $0x80] sm:$0xff]  }
   0xd   :  { %565 = vmatpush3.bf16.msra.mxu1 %v599_v11  ;;  %538 = vmatprep.subr.bf16.mxu0 %v600_v12  ;;  %v620_v32 = vld [vmem:[%s804_s0] ss:$16 sps:$4 sm:$0xff]   ;;  %v622_v33 = vld [vmem:[%s804_s0 + $0x4] ss:$16 sps:$4 sm:$0xff]   ;;  %v623_v34 = vld [vmem:[%s804_s0 + $0x8] ss:$16 sps:$4 sm:$0xff]  }
   0xe   :  { %566 = vmatprep.subr.bf16.mxu1 %v601_v13  ;;  %v625_v35 = vld [vmem:[%s804_s0 + $0xc] ss:$16 sps:$4 sm:$0xff]   ;;  %363 = vmatprep.mubr.bf16.mxu0 %v622_v33  ;;  %v626_v36 = vld [vmem:[%s804_s0 + $0x24] ss:$16 sps:$4 sm:$0xff]   ;;  %v630_v38 = vld [vmem:[%s804_s0 + $0x20] ss:$16 sps:$4 sm:$0xff]  }
   0xf   :  { %412 = vmatprep.mubr.bf16.mxu1 %v625_v35  ;;  %v628_v37 = vld [vmem:[%s804_s0 + $0x2c] ss:$16 sps:$4 sm:$0xff]   ;;  %v631_v39 = vld [vmem:[%s804_s0 + $0x28] ss:$16 sps:$4 sm:$0xff]   ;;  %v527_v47 = vld [vmem:[%s805_s2] ss:$0 sm:$0xff] }
  0x10   :  { %539 = vmatpush3.bf16.msra.mxu0 %v602_v14 }
  0x11   :  { %567 = vmatpush3.bf16.msra.mxu1 %v603_v15  ;;  %540 = vmatprep.subr.bf16.mxu0 %v604_v16 }
  0x12   :  { %568 = vmatprep.subr.bf16.mxu1 %v605_v17 }
  0x14   :  { %541 = vmatpush3.bf16.msra.mxu0 %v606_v18 }
  0x15   :  { %569 = vmatpush3.bf16.msra.mxu1 %v607_v19  ;;  %542 = vmatprep.subr.bf16.mxu0 %v608_v20 }
  0x16   :  { %570 = vmatprep.subr.bf16.mxu1 %v609_v21 }
  0x18   :  { %543 = vmatpush3.bf16.msra.mxu0 %v610_v22 }
  0x19   :  { %571 = vmatpush3.bf16.msra.mxu1 %v611_v23  ;;  %544 = vmatprep.subr.bf16.mxu0 %v612_v24 }
  0x1a   :  { %572 = vmatprep.subr.bf16.mxu1 %v613_v25 }
  0x1c   :  { %545 = vmatpush3.bf16.msra.mxu0 %v614_v26 }
  0x1d   :  { %573 = vmatpush3.bf16.msra.mxu1 %v615_v27  ;;  %546 = vmatprep.subr.bf16.mxu0 %v616_v28 }
  0x1e   :  { %574 = vmatprep.subr.bf16.mxu1 %v617_v29 }
  0x20   :  { %547 = vmatpush3.bf16.msra.mxu0 %v618_v30 }
  0x21   :  { %575 = vmatpush3.bf16.msra.mxu1 %v619_v31 }
  0x23   :  { %364 = vmatmul.mubr.bf16.vlgmr.msra.gmra.mxu0 %v620_v32 }
  0x24   :  { %413 = vmatmul.mubr.bf16.vlgmr.msra.gmra.mxu1 %v623_v34  ;;  %371 = vmatprep.mubr.bf16.mxu0 %v626_v36 }
  0x25   :  { %420 = vmatprep.mubr.bf16.mxu1 %v628_v37 }
  0x2b   :  { %372 = vmatmul.mubr.bf16.gmra.mxu0 %v630_v38 }
  0x2c   :  { %421 = vmatmul.mubr.bf16.gmra.mxu1 %v631_v39 }
  0xe3   :  { %v548_v40 = vpop.f32.mrf.mxu0 }
  0xe4   :  { %v576_v41 = vpop.f32.mrf.mxu1 }
  0xe5   :  { %v549_v42 = vpop.f32.mrf.mxu0 }
  0xe6   :  { %v550_v43 = vadd.f32 %v549_v42, %v548_v40  ;;  %v577_v44 = vpop.f32.mrf.mxu1 }
  0xe7   :  { %v578_v45 = vadd.f32 %v577_v44, %v576_v41  ;;  %v551_v46 = vpop.f32.mrf.mxu0 }
  0xe8   :  { %v579_v48 = vpop.f32.mrf.mxu1 }
  0xe9   :  { %v415_v49 = vadd.f32 %v578_v45, %v550_v43  ;;  %v552_v50 = vpop.f32.mrf.mxu0 }
  0xea   :  { %v553_v51 = vadd.f32 %v552_v50, %v551_v46  ;;  %v580_v52 = vpop.f32.mrf.mxu1 }
  0xeb   :  { %v451_v53 = vadd.f32 %v527_v47, %v415_v49  ;;  %v581_v54 = vadd.f32 %v580_v52, %v579_v48  ;;  %v554_v55 = vpop.f32.mrf.mxu0 }
  0xec   :  { %v582_v56 = vpop.f32.mrf.mxu1 }
  0xed   :  { %v528_v57 = vmul.f32 -1.442695, %v451_v53  ;;  %v418_v58 = vadd.f32 %v581_v54, %v553_v51  ;;  %v555_v59 = vpop.f32.mrf.mxu0 }
  0xee   :  { %v556_v60 = vadd.f32 %v555_v59, %v554_v55  ;;  %v583_v61 = vpop.f32.mrf.mxu1 }
  0xef   :  { %632 = vpow2.f32 %v528_v57  ;;  %v452_v62 = vadd.f32 %v527_v47, %v418_v58  ;;  %v584_v63 = vadd.f32 %v583_v61, %v582_v56  ;;  %v557_v0 = vpop.f32.mrf.mxu0 }
  0xf0   :  { %v585_v1 = vpop.f32.mrf.mxu1 }
  0xf1   :  { %v529_v2 = vmul.f32 -1.442695, %v452_v62  ;;  %v423_v3 = vadd.f32 %v584_v63, %v556_v60  ;;  %v558_v4 = vpop.f32.mrf.mxu0 }
  0xf2   :  { %v559_v5 = vadd.f32 %v558_v4, %v557_v0  ;;  %v586_v6 = vpop.f32.mrf.mxu1 }
  0xf3   :  { %634 = vpow2.f32 %v529_v2  ;;  %v453_v7 = vadd.f32 %v527_v47, %v423_v3  ;;  %v587_v8 = vadd.f32 %v586_v6, %v585_v1 }
  0xf5   :  { %v530_v9 = vmul.f32 -1.442695, %v453_v7  ;;  %v426_v10 = vadd.f32 %v587_v8, %v559_v5 }
  0xf7   :  { %636 = vpow2.f32 %v530_v9  ;;  %v454_v11 = vadd.f32 %v527_v47, %v426_v10 }
  0xf9   :  { %v531_v12 = vmul.f32 -1.442695, %v454_v11 }
  0xfb   :  { %638 = vpow2.f32 %v531_v12 }
  0xfc   :  { %v633_v13 = vpop.eup %632 }
  0xfd   :  { %v467_v14 = vadd.f32 1.0, %v633_v13 }
  0xff   :  { %640 = vrcp.f32 %v467_v14 }
 0x100   :  { %v635_v15 = vpop.eup %634 }
 0x101   :  { %v468_v16 = vadd.f32 1.0, %v635_v15 }
 0x103   :  { %642 = vrcp.f32 %v468_v16 }
 0x104   :  { %v637_v17 = vpop.eup %636 }
 0x105   :  { %v469_v18 = vadd.f32 1.0, %v637_v17 }
 0x107   :  { %644 = vrcp.f32 %v469_v18 }
 0x108   :  { %v639_v19 = vpop.eup %638 }
 0x109   :  { %v470_v20 = vadd.f32 1.0, %v639_v19 }
 0x10b   :  { %646 = vrcp.f32 %v470_v20 }
 0x10c   :  { %v641_v21 = vpop.eup %640 }
 0x10d   :  { %479 = vst [vmem:[%s806_s3] sm:$0xff] %v641_v21 }
 0x110   :  { %v643_v22 = vpop.eup %642 }
 0x111   :  { %480 = vst [vmem:[%s806_s3 + $0x8] sm:$0xff] %v643_v22 }
 0x114   :  { %v645_v23 = vpop.eup %644 }
 0x115   :  { %481 = vst [vmem:[%s806_s3 + $0x10] sm:$0xff] %v645_v23 }
 0x118   :  { %v647_v24 = vpop.eup %646 }
 0x119   :  { %482 = vst [vmem:[%s806_s3 + $0x18] sm:$0xff] %v647_v24 }

// kernel: bmn_forward.18
= control target key start
LH: loop header
LB: loop body
LE: loop exit
PB: predicated region body
PF: predicated region fallthrough
CT: control target
= control target key end

     0   :  { %s2433_s12 = smov 0   ;;  %s2435_s13 = smov 0   ;;  %s2690_s0 = inlined_call_operand.vmem [shape: bf16[512,512], index: 0, kind: input, shape index: {}]   ;;  %s2691_s1 = inlined_call_operand.vmem [shape: bf16[512,128], index: 1, kind: input, shape index: {}]   ;;  %s2692_s2 = inlined_call_operand.vmem [shape: f32[1,128], index: 2, kind: input, shape index: {}]   ;;  %s2693_s3 = inlined_call_operand.vmem [shape: bf16[512,128], index: 3, kind: output, shape index: {}]  }
   0x1   :  { %s2437_s14 = smov 0  }
   0x2 LB: > { %s32_s15 = sadd.s32 1, %s2407_s13  ;;  %p1748_p0 = scmp.ge.s32.totalorder %s2411_s14, 1  ;;  %s2411_s14 = sphi %s2437_s14, %s13_s14   ;;  %s2407_s13 = sphi %s2435_s13, %s2695_s13   ;;  %s2403_s12 = sphi %s2433_s12, %s2694_s12  }
   0x3   : > { %p34_p1 = scmp.ge.s32.totalorder %s32_s15, 2  ;;  %p191_p2 = scmp.lt.s32.totalorder %s2411_s14, 3 }
   0x5   : > { %s2697_s15 = smov (%p34_p1, %s32_s15), 0  ;;  %p192_p3 = pnand %p1748_p0, %p191_p2 }
   0x6   : > { %s1749_s25 = sshll.u32 (!%p192_p3), %s2403_s12, 5 }
   0x7   : > { %195 = sbr.rel (%p192_p3) target bundleno = 377 (0x179), region = 32  ;;  %p236_p4 = scmp.lt.s32.totalorder (!%p192_p3), %s1749_s25, 63 }
   0xc   : > { %v2261_v0 = vld [vmem:[%s2691_s1 + $0x78] sm:$0xff]   ;;  %v2265_v4 = vld [vmem:[%s2691_s1 + $0x70] sm:$0xff]   ;;  %v2269_v8 = vld [vmem:[%s2691_s1 + $0x68] sm:$0xff]   ;;  %s2699_s25 = smov (!%p236_p4, %s1749_s25), 63 }
   0xd   : > { %v2262_v1 = vld [vmem:[%s2691_s1 + $0xf8] sm:$0xff]   ;;  %2013 = vmatprep.subr.bf16.mxu0 %v2261_v0  ;;  %v2266_v5 = vld [vmem:[%s2691_s1 + $0xf0] sm:$0xff]   ;;  %v2270_v9 = vld [vmem:[%s2691_s1 + $0xe8] sm:$0xff]   ;;  %s1885_s24 = sshll.u32 %s2699_s25, 4  ;;  %s1753_s17 = sshll.u32 %s2699_s25, 2 }
   0xe   : > { %v2263_v2 = vld [vmem:[%s2691_s1 + $0x38] sm:$0xff]   ;;  %2125 = vmatprep.subr.bf16.mxu1 %v2262_v1  ;;  %v2267_v6 = vld [vmem:[%s2691_s1 + $0x30] sm:$0xff]   ;;  %v2271_v10 = vld [vmem:[%s2691_s1 + $0x28] sm:$0xff]   ;;  %s2550_s12 = scalar_lea.vmem %s2690_s0, %s1885_s24  ;;  %s2633_s20 = scalar_lea.vmem %s2693_s3, %s1753_s17 }
   0xf   : > { %v2264_v3 = vld [vmem:[%s2691_s1 + $0xb8] sm:$0xff]   ;;  %2014 = vmatpush3.bf16.msra.mxu0 %v2263_v2  ;;  %v2268_v7 = vld [vmem:[%s2691_s1 + $0xb0] sm:$0xff]   ;;  %v2272_v11 = vld [vmem:[%s2691_s1 + $0xa8] sm:$0xff]  }
  0x10   : > { %2126 = vmatpush3.bf16.msra.mxu1 %v2264_v3  ;;  %2015 = vmatprep.subr.bf16.mxu0 %v2265_v4  ;;  %v2273_v12 = vld [vmem:[%s2691_s1 + $0x60] sm:$0xff]   ;;  %v2277_v16 = vld [vmem:[%s2691_s1 + $0x58] sm:$0xff]   ;;  %v2281_v20 = vld [vmem:[%s2691_s1 + $0x50] sm:$0xff]  }
  0x11   : > { %2127 = vmatprep.subr.bf16.mxu1 %v2266_v5  ;;  %v2274_v13 = vld [vmem:[%s2691_s1 + $0xe0] sm:$0xff]   ;;  %v2278_v17 = vld [vmem:[%s2691_s1 + $0xd8] sm:$0xff]   ;;  %v2282_v21 = vld [vmem:[%s2691_s1 + $0xd0] sm:$0xff]  }
  0x12   : > { %v2275_v14 = vld [vmem:[%s2691_s1 + $0x20] sm:$0xff]   ;;  %v2279_v18 = vld [vmem:[%s2691_s1 + $0x18] sm:$0xff]   ;;  %v2283_v22 = vld [vmem:[%s2691_s1 + $0x10] sm:$0xff]  }
  0x13   : > { %2016 = vmatpush3.bf16.msra.mxu0 %v2267_v6  ;;  %v2276_v15 = vld [vmem:[%s2691_s1 + $0xa0] sm:$0xff]   ;;  %v2280_v19 = vld [vmem:[%s2691_s1 + $0x98] sm:$0xff]   ;;  %v2284_v23 = vld [vmem:[%s2691_s1 + $0x90] sm:$0xff]  }
  0x14   : > { %2128 = vmatpush3.bf16.msra.mxu1 %v2268_v7  ;;  %2017 = vmatprep.subr.bf16.mxu0 %v2269_v8  ;;  %v2285_v24 = vld [vmem:[%s2691_s1 + $0x48] sm:$0xff]   ;;  %v2289_v28 = vld [vmem:[%s2691_s1 + $0x40] sm:$0xff]  }
  0x15   : > { %2129 = vmatprep.subr.bf16.mxu1 %v2270_v9  ;;  %v2286_v25 = vld [vmem:[%s2691_s1 + $0xc8] sm:$0xff]   ;;  %v2290_v29 = vld [vmem:[%s2691_s1 + $0xc0] sm:$0xff]  }
  0x16   : > { %v2287_v26 = vld [vmem:[%s2691_s1 + $0x8] sm:$0xff]   ;;  %v2291_v30 = vld [vmem:[%s2691_s1] sm:$0xff]  }
  0x17   : > { %2018 = vmatpush3.bf16.msra.mxu0 %v2271_v10  ;;  %v2288_v27 = vld [vmem:[%s2691_s1 + $0x88] sm:$0xff]   ;;  %v2292_v31 = vld [vmem:[%s2691_s1 + $0x80] sm:$0xff]  }
  0x18   : > { %2130 = vmatpush3.bf16.msra.mxu1 %v2272_v11  ;;  %2019 = vmatprep.subr.bf16.mxu0 %v2273_v12  ;;  %v2293_v32 = vld [vmem:[%s2550_s12] ss:$16 sps:$4 sm:$0xff]   ;;  %v2295_v33 = vld [vmem:[%s2550_s12 + $0x4] ss:$16 sps:$4 sm:$0xff]   ;;  %v2296_v34 = vld [vmem:[%s2550_s12 + $0x8] ss:$16 sps:$4 sm:$0xff]  }
  0x19   : > { %2131 = vmatprep.subr.bf16.mxu1 %v2274_v13  ;;  %v2298_v35 = vld [vmem:[%s2550_s12 + $0xc] ss:$16 sps:$4 sm:$0xff]   ;;  %1008 = vmatprep.mubr.bf16.mxu0 %v2295_v33  ;;  %v2299_v36 = vld [vmem:[%s2550_s12 + $0x24] ss:$16 sps:$4 sm:$0xff]   ;;  %v2303_v38 = vld [vmem:[%s2550_s12 + $0x20] ss:$16 sps:$4 sm:$0xff]  }
  0x1a   : > { %1169 = vmatprep.mubr.bf16.mxu1 %v2298_v35  ;;  %v2301_v37 = vld [vmem:[%s2550_s12 + $0x2c] ss:$16 sps:$4 sm:$0xff]   ;;  %v2304_v39 = vld [vmem:[%s2550_s12 + $0x28] ss:$16 sps:$4 sm:$0xff]   ;;  %v2305_v40 = vld [vmem:[%s2550_s12 + $0x44] ss:$16 sps:$4 sm:$0xff]  }
  0x1b   : > { %2020 = vmatpush3.bf16.msra.mxu0 %v2275_v14  ;;  %v2307_v41 = vld [vmem:[%s2550_s12 + $0x4c] ss:$16 sps:$4 sm:$0xff]   ;;  %v2309_v42 = vld [vmem:[%s2550_s12 + $0x40] ss:$16 sps:$4 sm:$0xff]   ;;  %v2310_v43 = vld [vmem:[%s2550_s12 + $0x48] ss:$16 sps:$4 sm:$0xff]  }
  0x1c   : > { %2132 = vmatpush3.bf16.msra.mxu1 %v2276_v15  ;;  %2021 = vmatprep.subr.bf16.mxu0 %v2277_v16  ;;  %v2311_v44 = vld [vmem:[%s2550_s12 + $0x64] ss:$16 sps:$4 sm:$0xff]   ;;  %v2313_v45 = vld [vmem:[%s2550_s12 + $0x6c] ss:$16 sps:$4 sm:$0xff]   ;;  %v2315_v46 = vld [vmem:[%s2550_s12 + $0x60] ss:$16 sps:$4 sm:$0xff]  }
  0x1d   : > { %2133 = vmatprep.subr.bf16.mxu1 %v2278_v17  ;;  %v2316_v47 = vld [vmem:[%s2550_s12 + $0x68] ss:$16 sps:$4 sm:$0xff]   ;;  %v2317_v48 = vld [vmem:[%s2550_s12 + $0x84] ss:$16 sps:$4 sm:$0xff]   ;;  %v2319_v49 = vld [vmem:[%s2550_s12 + $0x8c] ss:$16 sps:$4 sm:$0xff]  }
  0x1e   : > { %v2321_v50 = vld [vmem:[%s2550_s12 + $0x80] ss:$16 sps:$4 sm:$0xff]   ;;  %v2322_v51 = vld [vmem:[%s2550_s12 + $0x88] ss:$16 sps:$4 sm:$0xff]   ;;  %v2323_v52 = vld [vmem:[%s2550_s12 + $0xa4] ss:$16 sps:$4 sm:$0xff]  }
  0x1f   : > { %2022 = vmatpush3.bf16.msra.mxu0 %v2279_v18  ;;  %v2325_v53 = vld [vmem:[%s2550_s12 + $0xac] ss:$16 sps:$4 sm:$0xff]   ;;  %v2327_v54 = vld [vmem:[%s2550_s12 + $0xa0] ss:$16 sps:$4 sm:$0xff]   ;;  %v2328_v55 = vld [vmem:[%s2550_s12 + $0xa8] ss:$16 sps:$4 sm:$0xff]  }
  0x20   : > { %2134 = vmatpush3.bf16.msra.mxu1 %v2280_v19  ;;  %2023 = vmatprep.subr.bf16.mxu0 %v2281_v20  ;;  %v2329_v56 = vld [vmem:[%s2550_s12 + $0xc4] ss:$16 sps:$4 sm:$0xff]   ;;  %v2331_v57 = vld [vmem:[%s2550_s12 + $0xcc] ss:$16 sps:$4 sm:$0xff]   ;;  %v2333_v58 = vld [vmem:[%s2550_s12 + $0xc0] ss:$16 sps:$4 sm:$0xff]  }
  0x21   : > { %2135 = vmatprep.subr.bf16.mxu1 %v2282_v21  ;;  %v2334_v59 = vld [vmem:[%s2550_s12 + $0xc8] ss:$16 sps:$4 sm:$0xff]   ;;  %v2335_v60 = vld [vmem:[%s2550_s12 + $0xe4] ss:$16 sps:$4 sm:$0xff]   ;;  %v2337_v61 = vld [vmem:[%s2550_s12 + $0xec] ss:$16 sps:$4 sm:$0xff]  }
  0x22   : > { %v2339_v62 = vld [vmem:[%s2550_s12 + $0xe0] ss:$16 sps:$4 sm:$0xff]   ;;  %v2340_v63 = vld [vmem:[%s2550_s12 + $0xe8] ss:$16 sps:$4 sm:$0xff]   ;;  %v2341_v0 = vld [vmem:[%s2550_s12 + $0x104] ss:$16 sps:$4 sm:$0xff]  }
  0x23   : > { %2024 = vmatpush3.bf16.msra.mxu0 %v2283_v22  ;;  %v2343_v1 = vld [vmem:[%s2550_s12 + $0x10c] ss:$16 sps:$4 sm:$0xff]   ;;  %v2345_v2 = vld [vmem:[%s2550_s12 + $0x100] ss:$16 sps:$4 sm:$0xff]   ;;  %v2346_v3 = vld [vmem:[%s2550_s12 + $0x108] ss:$16 sps:$4 sm:$0xff]  }
  0x24   : > { %2136 = vmatpush3.bf16.msra.mxu1 %v2284_v23  ;;  %2025 = vmatprep.subr.bf16.mxu0 %v2285_v24  ;;  %v2347_v4 = vld [vmem:[%s2550_s12 + $0x124] ss:$16 sps:$4 sm:$0xff]   ;;  %v2349_v5 = vld [vmem:[%s2550_s12 + $0x12c] ss:$16 sps:$4 sm:$0xff]   ;;  %v2351_v6 = vld [vmem:[%s2550_s12 + $0x120] ss:$16 sps:$4 sm:$0xff]  }
  0x25   : > { %2137 = vmatprep.subr.bf16.mxu1 %v2286_v25  ;;  %v2352_v7 = vld [vmem:[%s2550_s12 + $0x128] ss:$16 sps:$4 sm:$0xff]   ;;  %v2353_v8 = vld [vmem:[%s2550_s12 + $0x144] ss:$16 sps:$4 sm:$0xff]   ;;  %v2355_v9 = vld [vmem:[%s2550_s12 + $0x14c] ss:$16 sps:$4 sm:$0xff]  }
  0x26   : > { %v2357_v10 = vld [vmem:[%s2550_s12 + $0x140] ss:$16 sps:$4 sm:$0xff]   ;;  %v2358_v11 = vld [vmem:[%s2550_s12 + $0x148] ss:$16 sps:$4 sm:$0xff]   ;;  %v2359_v12 = vld [vmem:[%s2550_s12 + $0x164] ss:$16 sps:$4 sm:$0xff]  }
  0x27   : > { %2026 = vmatpush3.bf16.msra.mxu0 %v2287_v26  ;;  %v2361_v13 = vld [vmem:[%s2550_s12 + $0x16c] ss:$16 sps:$4 sm:$0xff]   ;;  %v2363_v14 = vld [vmem:[%s2550_s12 + $0x160] ss:$16 sps:$4 sm:$0xff]   ;;  %v2364_v15 = vld [vmem:[%s2550_s12 + $0x168] ss:$16 sps:$4 sm:$0xff]  }
  0x28   : > { %2138 = vmatpush3.bf16.msra.mxu1 %v2288_v27  ;;  %2027 = vmatprep.subr.bf16.mxu0 %v2289_v28  ;;  %v2365_v16 = vld [vmem:[%s2550_s12 + $0x184] ss:$16 sps:$4 sm:$0xff]   ;;  %v2367_v17 = vld [vmem:[%s2550_s12 + $0x18c] ss:$16 sps:$4 sm:$0xff]   ;;  %v2369_v18 = vld [vmem:[%s2550_s12 + $0x180] ss:$16 sps:$4 sm:$0xff]  }
  0x29   : > { %2139 = vmatprep.subr.bf16.mxu1 %v2290_v29  ;;  %v2370_v19 = vld [vmem:[%s2550_s12 + $0x188] ss:$16 sps:$4 sm:$0xff]   ;;  %v2371_v20 = vld [vmem:[%s2550_s12 + $0x1a4] ss:$16 sps:$4 sm:$0xff]   ;;  %v2373_v21 = vld [vmem:[%s2550_s12 + $0x1ac] ss:$16 sps:$4 sm:$0xff]  }
  0x2a   : > { %v2375_v22 = vld [vmem:[%s2550_s12 + $0x1a0] ss:$16 sps:$4 sm:$0xff]   ;;  %v2376_v23 = vld [vmem:[%s2550_s12 + $0x1a8] ss:$16 sps:$4 sm:$0xff]   ;;  %v2377_v24 = vld [vmem:[%s2550_s12 + $0x1c4] ss:$16 sps:$4 sm:$0xff]  }
  0x2b   : > { %2028 = vmatpush3.bf16.msra.mxu0 %v2291_v30  ;;  %v2379_v25 = vld [vmem:[%s2550_s12 + $0x1cc] ss:$16 sps:$4 sm:$0xff]   ;;  %v2381_v26 = vld [vmem:[%s2550_s12 + $0x1c0] ss:$16 sps:$4 sm:$0xff]   ;;  %v2382_v27 = vld [vmem:[%s2550_s12 + $0x1c8] ss:$16 sps:$4 sm:$0xff]  }
  0x2c   : > { %2140 = vmatpush3.bf16.msra.mxu1 %v2292_v31  ;;  %v2383_v28 = vld [vmem:[%s2550_s12 + $0x1e4] ss:$16 sps:$4 sm:$0xff]   ;;  %v2385_v29 = vld [vmem:[%s2550_s12 + $0x1ec] ss:$16 sps:$4 sm:$0xff]   ;;  %v2387_v30 = vld [vmem:[%s2550_s12 + $0x1e0] ss:$16 sps:$4 sm:$0xff]  }
  0x2d   : > { %v2388_v31 = vld [vmem:[%s2550_s12 + $0x1e8] ss:$16 sps:$4 sm:$0xff]  }
  0x2e   : > { %1009 = vmatmul.mubr.bf16.vlgmr.msra.gmra.mxu0 %v2293_v32 }
  0x2f   : > { %1170 = vmatmul.mubr.bf16.vlgmr.msra.gmra.mxu1 %v2296_v34  ;;  %1016 = vmatprep.mubr.bf16.mxu0 %v2299_v36 }
  0x30   : > { %1177 = vmatprep.mubr.bf16.mxu1 %v2301_v37 }
  0x36   : > { %1017 = vmatmul.mubr.bf16.gmra.mxu0 %v2303_v38 }
  0x37   : > { %1178 = vmatmul.mubr.bf16.gmra.mxu1 %v2304_v39  ;;  %1024 = vmatprep.mubr.bf16.mxu0 %v2305_v40 }
  0x38   : > { %1185 = vmatprep.mubr.bf16.mxu1 %v2307_v41 }
  0x3e   : > { %1025 = vmatmul.mubr.bf16.gmra.mxu0 %v2309_v42  ;;  %v2625_v42 = vld [vmem:[%s2692_s2] ss:$0 sm:$0xff] }
  0x3f   : > { %1186 = vmatmul.mubr.bf16.gmra.mxu1 %v2310_v43  ;;  %1032 = vmatprep.mubr.bf16.mxu0 %v2311_v44 }
  0x40   : > { %1193 = vmatprep.mubr.bf16.mxu1 %v2313_v45 }
  0x46   : > { %1033 = vmatmul.mubr.bf16.gmra.mxu0 %v2315_v46 }
  0x47   : > { %1194 = vmatmul.mubr.bf16.gmra.mxu1 %v2316_v47  ;;  %1040 = vmatprep.mubr.bf16.mxu0 %v2317_v48 }
  0x48   : > { %1201 = vmatprep.mubr.bf16.mxu1 %v2319_v49 }
  0x4e   : > { %1041 = vmatmul.mubr.bf16.gmra.mxu0 %v2321_v50 }
  0x4f   : > { %1202 = vmatmul.mubr.bf16.gmra.mxu1 %v2322_v51  ;;  %1048 = vmatprep.mubr.bf16.mxu0 %v2323_v52 }
  0x50   : > { %1209 = vmatprep.mubr.bf16.mxu1 %v2325_v53 }
  0x56   : > { %1049 = vmatmul.mubr.bf16.gmra.mxu0 %v2327_v54 }
  0x57   : > { %1210 = vmatmul.mubr.bf16.gmra.mxu1 %v2328_v55  ;;  %1056 = vmatprep.mubr.bf16.mxu0 %v2329_v56 }
  0x58   : > { %1217 = vmatprep.mubr.bf16.mxu1 %v2331_v57 }
  0x5e   : > { %1057 = vmatmul.mubr.bf16.gmra.mxu0 %v2333_v58 }
  0x5f   : > { %1218 = vmatmul.mubr.bf16.gmra.mxu1 %v2334_v59  ;;  %1064 = vmatprep.mubr.bf16.mxu0 %v2335_v60 }
  0x60   : > { %1225 = vmatprep.mubr.bf16.mxu1 %v2337_v61 }
  0x66   : > { %1065 = vmatmul.mubr.bf16.gmra.mxu0 %v2339_v62 }
  0x67   : > { %1226 = vmatmul.mubr.bf16.gmra.mxu1 %v2340_v63  ;;  %1072 = vmatprep.mubr.bf16.mxu0 %v2341_v0 }
  0x68   : > { %1233 = vmatprep.mubr.bf16.mxu1 %v2343_v1 }
  0x6e   : > { %1073 = vmatmul.mubr.bf16.gmra.mxu0 %v2345_v2 }
  0x6f   : > { %1234 = vmatmul.mubr.bf16.gmra.mxu1 %v2346_v3  ;;  %1080 = vmatprep.mubr.bf16.mxu0 %v2347_v4 }
  0x70   : > { %1241 = vmatprep.mubr.bf16.mxu1 %v2349_v5 }
  0x76   : > { %1081 = vmatmul.mubr.bf16.gmra.mxu0 %v2351_v6 }
  0x77   : > { %1242 = vmatmul.mubr.bf16.gmra.mxu1 %v2352_v7  ;;  %1088 = vmatprep.mubr.bf16.mxu0 %v2353_v8 }
  0x78   : > { %1249 = vmatprep.mubr.bf16.mxu1 %v2355_v9 }
  0x7e   : > { %1089 = vmatmul.mubr.bf16.gmra.mxu0 %v2357_v10 }
  0x7f   : > { %1250 = vmatmul.mubr.bf16.gmra.mxu1 %v2358_v11  ;;  %1096 = vmatprep.mubr.bf16.mxu0 %v2359_v12 }
  0x80   : > { %1257 = vmatprep.mubr.bf16.mxu1 %v2361_v13 }
  0x86   : > { %1097 = vmatmul.mubr.bf16.gmra.mxu0 %v2363_v14 }
  0x87   : > { %1258 = vmatmul.mubr.bf16.gmra.mxu1 %v2364_v15  ;;  %1104 = vmatprep.mubr.bf16.mxu0 %v2365_v16 }
  0x88   : > { %1265 = vmatprep.mubr.bf16.mxu1 %v2367_v17 }
  0x8e   : > { %1105 = vmatmul.mubr.bf16.gmra.mxu0 %v2369_v18 }
  0x8f   : > { %1266 = vmatmul.mubr.bf16.gmra.mxu1 %v2370_v19  ;;  %1112 = vmatprep.mubr.bf16.mxu0 %v2371_v20 }
  0x90   : > { %1273 = vmatprep.mubr.bf16.mxu1 %v2373_v21 }
  0x96   : > { %1113 = vmatmul.mubr.bf16.gmra.mxu0 %v2375_v22 }
  0x97   : > { %1274 = vmatmul.mubr.bf16.gmra.mxu1 %v2376_v23  ;;  %1120 = vmatprep.mubr.bf16.mxu0 %v2377_v24 }
  0x98   : > { %1281 = vmatprep.mubr.bf16.mxu1 %v2379_v25 }
  0x9e   : > { %1121 = vmatmul.mubr.bf16.gmra.mxu0 %v2381_v26 }
  0x9f   : > { %1282 = vmatmul.mubr.bf16.gmra.mxu1 %v2382_v27  ;;  %1128 = vmatprep.mubr.bf16.mxu0 %v2383_v28 }
  0xa0   : > { %1289 = vmatprep.mubr.bf16.mxu1 %v2385_v29 }
  0xa6   : > { %1129 = vmatmul.mubr.bf16.gmra.mxu0 %v2387_v30 }
  0xa7   : > { %1290 = vmatmul.mubr.bf16.gmra.mxu1 %v2388_v31 }
  0xee   : > { %v2029_v32 = vpop.f32.mrf.mxu0 }
  0xef   : > { %v2141_v33 = vpop.f32.mrf.mxu1 }
  0xf0   : > { %v2030_v34 = vpop.f32.mrf.mxu0 }
  0xf1   : > { %v2031_v35 = vadd.f32 %v2030_v34, %v2029_v32  ;;  %v2142_v36 = vpop.f32.mrf.mxu1 }
  0xf2   : > { %v2143_v37 = vadd.f32 %v2142_v36, %v2141_v33  ;;  %v2032_v38 = vpop.f32.mrf.mxu0 }
  0xf3   : > { %v2144_v39 = vpop.f32.mrf.mxu1 }
  0xf4   : > { %v1172_v40 = vadd.f32 %v2143_v37, %v2031_v35  ;;  %v2033_v41 = vpop.f32.mrf.mxu0 }
  0xf5   : > { %v2034_v43 = vadd.f32 %v2033_v41, %v2032_v38  ;;  %v2145_v44 = vpop.f32.mrf.mxu1 }
  0xf6   : > { %v2146_v45 = vadd.f32 %v2145_v44, %v2144_v39  ;;  %v2035_v46 = vpop.f32.mrf.mxu0  ;;  %v1404_v48 = vadd.f32 %v2625_v42, %v1172_v40 }
  0xf7   : > { %v2147_v47 = vpop.f32.mrf.mxu1 }
  0xf8   : > { %v1175_v49 = vadd.f32 %v2146_v45, %v2034_v43  ;;  %v2036_v50 = vpop.f32.mrf.mxu0  ;;  %v1436_v57 = vmax.f32 %v1404_v48, 0.0 }
  0xf9   : > { %v2037_v51 = vadd.f32 %v2036_v50, %v2035_v46  ;;  %v2148_v52 = vpop.f32.mrf.mxu1 }
  0xfa   : > { %v1405_v53 = vadd.f32 %v2625_v42, %v1175_v49  ;;  %v2149_v54 = vadd.f32 %v2148_v52, %v2147_v47  ;;  %v2038_v55 = vpop.f32.mrf.mxu0 }
  0xfb   : > { %v2150_v56 = vpop.f32.mrf.mxu1 }
  0xfc   : > { %v1437_v58 = vmax.f32 %v1405_v53, 0.0  ;;  %v1180_v59 = vadd.f32 %v2149_v54, %v2037_v51  ;;  %v2039_v60 = vpop.f32.mrf.mxu0 }
  0xfd   : > { %v2040_v61 = vadd.f32 %v2039_v60, %v2038_v55  ;;  %v2151_v62 = vpop.f32.mrf.mxu1 }
  0xfe   : > { %v1921_v63 = vpack.c.bf16 %v1437_v58, %v1436_v57  ;;  %v2152_v0 = vadd.f32 %v2151_v62, %v2150_v56  ;;  %v2041_v1 = vpop.f32.mrf.mxu0  ;;  %v1406_v3 = vadd.f32 %v2625_v42, %v1180_v59 }
  0xff   : > { %v2153_v2 = vpop.f32.mrf.mxu1 }
 0x100   : > { %1922 = vst [vmem:[%s2633_s20] sm:$0xff] %v1921_v63   ;;  %v1183_v4 = vadd.f32 %v2152_v0, %v2040_v61  ;;  %v2042_v5 = vpop.f32.mrf.mxu0  ;;  %v1438_v12 = vmax.f32 %v1406_v3, 0.0 }
 0x101   : > { %v2043_v6 = vadd.f32 %v2042_v5, %v2041_v1  ;;  %v2154_v7 = vpop.f32.mrf.mxu1 }
 0x102   : > { %v1407_v8 = vadd.f32 %v2625_v42, %v1183_v4  ;;  %v2155_v9 = vadd.f32 %v2154_v7, %v2153_v2  ;;  %v2044_v10 = vpop.f32.mrf.mxu0 }
 0x103   : > { %v2156_v11 = vpop.f32.mrf.mxu1 }
 0x104   : > { %v1439_v13 = vmax.f32 %v1407_v8, 0.0  ;;  %v1188_v14 = vadd.f32 %v2155_v9, %v2043_v6  ;;  %v2045_v15 = vpop.f32.mrf.mxu0 }
 0x105   : > { %v2046_v16 = vadd.f32 %v2045_v15, %v2044_v10  ;;  %v2157_v17 = vpop.f32.mrf.mxu1 }
 0x106   : > { %v1926_v18 = vpack.c.bf16 %v1439_v13, %v1438_v12  ;;  %v2158_v19 = vadd.f32 %v2157_v17, %v2156_v11  ;;  %v2047_v20 = vpop.f32.mrf.mxu0  ;;  %v1408_v22 = vadd.f32 %v2625_v42, %v1188_v14 }
 0x107   : > { %v2159_v21 = vpop.f32.mrf.mxu1 }
 0x108   : > { %1998 = vst [vmem:[%s2633_s20 + $0x8] sm:$0xff] %v1926_v18   ;;  %v1191_v23 = vadd.f32 %v2158_v19, %v2046_v16  ;;  %v2048_v24 = vpop.f32.mrf.mxu0  ;;  %v1440_v31 = vmax.f32 %v1408_v22, 0.0 }
 0x109   : > { %v2049_v25 = vadd.f32 %v2048_v24, %v2047_v20  ;;  %v2160_v26 = vpop.f32.mrf.mxu1 }
 0x10a   : > { %v1409_v27 = vadd.f32 %v2625_v42, %v1191_v23  ;;  %v2161_v28 = vadd.f32 %v2160_v26, %v2159_v21  ;;  %v2050_v29 = vpop.f32.mrf.mxu0 }
 0x10b   : > { %v2162_v30 = vpop.f32.mrf.mxu1 }
 0x10c   : > { %v1441_v32 = vmax.f32 %v1409_v27, 0.0  ;;  %v1196_v33 = vadd.f32 %v2161_v28, %v2049_v25  ;;  %v2051_v34 = vpop.f32.mrf.mxu0 }
 0x10d   : > { %v2052_v35 = vadd.f32 %v2051_v34, %v2050_v29  ;;  %v2163_v36 = vpop.f32.mrf.mxu1 }
 0x10e   : > { %v1931_v37 = vpack.c.bf16 %v1441_v32, %v1440_v31  ;;  %v2164_v38 = vadd.f32 %v2163_v36, %v2162_v30  ;;  %v2053_v39 = vpop.f32.mrf.mxu0  ;;  %v1410_v41 = vadd.f32 %v2625_v42, %v1196_v33 }
 0x10f   : > { %v2165_v40 = vpop.f32.mrf.mxu1 }
 0x110   : > { %1999 = vst [vmem:[%s2633_s20 + $0x10] sm:$0xff] %v1931_v37   ;;  %v1199_v43 = vadd.f32 %v2164_v38, %v2052_v35  ;;  %v2054_v44 = vpop.f32.mrf.mxu0  ;;  %v1442_v51 = vmax.f32 %v1410_v41, 0.0 }
 0x111   : > { %v2055_v45 = vadd.f32 %v2054_v44, %v2053_v39  ;;  %v2166_v46 = vpop.f32.mrf.mxu1 }
 0x112   : > { %v1411_v47 = vadd.f32 %v2625_v42, %v1199_v43  ;;  %v2167_v48 = vadd.f32 %v2166_v46, %v2165_v40  ;;  %v2056_v49 = vpop.f32.mrf.mxu0 }
 0x113   : > { %v2168_v50 = vpop.f32.mrf.mxu1 }
 0x114   : > { %v1443_v52 = vmax.f32 %v1411_v47, 0.0  ;;  %v1204_v53 = vadd.f32 %v2167_v48, %v2055_v45  ;;  %v2057_v54 = vpop.f32.mrf.mxu0 }
 0x115   : > { %v2058_v55 = vadd.f32 %v2057_v54, %v2056_v49  ;;  %v2169_v56 = vpop.f32.mrf.mxu1 }
 0x116   : > { %v1936_v57 = vpack.c.bf16 %v1443_v52, %v1442_v51  ;;  %v2170_v58 = vadd.f32 %v2169_v56, %v2168_v50  ;;  %v2059_v59 = vpop.f32.mrf.mxu0  ;;  %v1412_v61 = vadd.f32 %v2625_v42, %v1204_v53 }
 0x117   : > { %v2171_v60 = vpop.f32.mrf.mxu1 }
 0x118   : > { %2000 = vst [vmem:[%s2633_s20 + $0x18] sm:$0xff] %v1936_v57   ;;  %v1207_v62 = vadd.f32 %v2170_v58, %v2058_v55  ;;  %v2060_v63 = vpop.f32.mrf.mxu0  ;;  %v1444_v6 = vmax.f32 %v1412_v61, 0.0 }
 0x119   : > { %v2061_v0 = vadd.f32 %v2060_v63, %v2059_v59  ;;  %v2172_v1 = vpop.f32.mrf.mxu1 }
 0x11a   : > { %v1413_v2 = vadd.f32 %v2625_v42, %v1207_v62  ;;  %v2173_v3 = vadd.f32 %v2172_v1, %v2171_v60  ;;  %v2062_v4 = vpop.f32.mrf.mxu0 }
 0x11b   : > { %v2174_v5 = vpop.f32.mrf.mxu1 }
 0x11c   : > { %v1445_v7 = vmax.f32 %v1413_v2, 0.0  ;;  %v1212_v8 = vadd.f32 %v2173_v3, %v2061_v0  ;;  %v2063_v9 = vpop.f32.mrf.mxu0 }
 0x11d   : > { %v2064_v10 = vadd.f32 %v2063_v9, %v2062_v4  ;;  %v2175_v11 = vpop.f32.mrf.mxu1 }
 0x11e   : > { %v1941_v12 = vpack.c.bf16 %v1445_v7, %v1444_v6  ;;  %v2176_v13 = vadd.f32 %v2175_v11, %v2174_v5  ;;  %v2065_v14 = vpop.f32.mrf.mxu0  ;;  %v1414_v16 = vadd.f32 %v2625_v42, %v1212_v8 }
 0x11f   : > { %v2177_v15 = vpop.f32.mrf.mxu1 }
 0x120   : > { %2001 = vst [vmem:[%s2633_s20 + $0x20] sm:$0xff] %v1941_v12   ;;  %v1215_v17 = vadd.f32 %v2176_v13, %v2064_v10  ;;  %v2066_v18 = vpop.f32.mrf.mxu0  ;;  %v1446_v25 = vmax.f32 %v1414_v16, 0.0 }
 0x121   : > { %v2067_v19 = vadd.f32 %v2066_v18, %v2065_v14  ;;  %v2178_v20 = vpop.f32.mrf.mxu1 }
 0x122   : > { %v1415_v21 = vadd.f32 %v2625_v42, %v1215_v17  ;;  %v2179_v22 = vadd.f32 %v2178_v20, %v2177_v15  ;;  %v2068_v23 = vpop.f32.mrf.mxu0 }
 0x123   : > { %v2180_v24 = vpop.f32.mrf.mxu1 }
 0x124   : > { %v1447_v26 = vmax.f32 %v1415_v21, 0.0  ;;  %v1220_v27 = vadd.f32 %v2179_v22, %v2067_v19  ;;  %v2069_v28 = vpop.f32.mrf.mxu0 }
 0x125   : > { %v2070_v29 = vadd.f32 %v2069_v28, %v2068_v23  ;;  %v2181_v30 = vpop.f32.mrf.mxu1 }
 0x126   : > { %v1946_v31 = vpack.c.bf16 %v1447_v26, %v1446_v25  ;;  %v2182_v32 = vadd.f32 %v2181_v30, %v2180_v24  ;;  %v2071_v33 = vpop.f32.mrf.mxu0  ;;  %v1416_v35 = vadd.f32 %v2625_v42, %v1220_v27 }
 0x127   : > { %v2183_v34 = vpop.f32.mrf.mxu1 }
 0x128   : > { %2002 = vst [vmem:[%s2633_s20 + $0x28] sm:$0xff] %v1946_v31   ;;  %v1223_v36 = vadd.f32 %v2182_v32, %v2070_v29  ;;  %v2072_v37 = vpop.f32.mrf.mxu0  ;;  %v1448_v45 = vmax.f32 %v1416_v35, 0.0 }
 0x129   : > { %v2073_v38 = vadd.f32 %v2072_v37, %v2071_v33  ;;  %v2184_v39 = vpop.f32.mrf.mxu1 }
 0x12a   : > { %v1417_v40 = vadd.f32 %v2625_v42, %v1223_v36  ;;  %v2185_v41 = vadd.f32 %v2184_v39, %v2183_v34  ;;  %v2074_v43 = vpop.f32.mrf.mxu0 }
 0x12b   : > { %v2186_v44 = vpop.f32.mrf.mxu1 }
 0x12c   : > { %v1449_v46 = vmax.f32 %v1417_v40, 0.0  ;;  %v1228_v47 = vadd.f32 %v2185_v41, %v2073_v38  ;;  %v2075_v48 = vpop.f32.mrf.mxu0 }
 0x12d   : > { %v2076_v49 = vadd.f32 %v2075_v48, %v2074_v43  ;;  %v2187_v50 = vpop.f32.mrf.mxu1 }
 0x12e   : > { %v1951_v51 = vpack.c.bf16 %v1449_v46, %v1448_v45  ;;  %v2188_v52 = vadd.f32 %v2187_v50, %v2186_v44  ;;  %v2077_v53 = vpop.f32.mrf.mxu0  ;;  %v1418_v55 = vadd.f32 %v2625_v42, %v1228_v47 }
 0x12f   : > { %v2189_v54 = vpop.f32.mrf.mxu1 }
 0x130   : > { %2003 = vst [vmem:[%s2633_s20 + $0x30] sm:$0xff] %v1951_v51   ;;  %v1231_v56 = vadd.f32 %v2188_v52, %v2076_v49  ;;  %v2078_v57 = vpop.f32.mrf.mxu0  ;;  %v1450_v0 = vmax.f32 %v1418_v55, 0.0 }
 0x131   : > { %v2079_v58 = vadd.f32 %v2078_v57, %v2077_v53  ;;  %v2190_v59 = vpop.f32.mrf.mxu1 }
 0x132   : > { %v1419_v60 = vadd.f32 %v2625_v42, %v1231_v56  ;;  %v2191_v61 = vadd.f32 %v2190_v59, %v2189_v54  ;;  %v2080_v62 = vpop.f32.mrf.mxu0 }
 0x133   : > { %v2192_v63 = vpop.f32.mrf.mxu1 }
 0x134   : > { %v1451_v1 = vmax.f32 %v1419_v60, 0.0  ;;  %v1236_v2 = vadd.f32 %v2191_v61, %v2079_v58  ;;  %v2081_v3 = vpop.f32.mrf.mxu0 }
 0x135   : > { %v2082_v4 = vadd.f32 %v2081_v3, %v2080_v62  ;;  %v2193_v5 = vpop.f32.mrf.mxu1 }
 0x136   : > { %v1956_v6 = vpack.c.bf16 %v1451_v1, %v1450_v0  ;;  %v2194_v7 = vadd.f32 %v2193_v5, %v2192_v63  ;;  %v2083_v8 = vpop.f32.mrf.mxu0  ;;  %v1420_v10 = vadd.f32 %v2625_v42, %v1236_v2 }
 0x137   : > { %v2195_v9 = vpop.f32.mrf.mxu1 }
 0x138   : > { %2004 = vst [vmem:[%s2633_s20 + $0x38] sm:$0xff] %v1956_v6   ;;  %v1239_v11 = vadd.f32 %v2194_v7, %v2082_v4  ;;  %v2084_v12 = vpop.f32.mrf.mxu0  ;;  %v1452_v19 = vmax.f32 %v1420_v10, 0.0 }
 0x139   : > { %v2085_v13 = vadd.f32 %v2084_v12, %v2083_v8  ;;  %v2196_v14 = vpop.f32.mrf.mxu1 }
 0x13a   : > { %v1421_v15 = vadd.f32 %v2625_v42, %v1239_v11  ;;  %v2197_v16 = vadd.f32 %v2196_v14, %v2195_v9  ;;  %v2086_v17 = vpop.f32.mrf.mxu0 }
 0x13b   : > { %v2198_v18 = vpop.f32.mrf.mxu1 }
 0x13c   : > { %v1453_v20 = vmax.f32 %v1421_v15, 0.0  ;;  %v1244_v21 = vadd.f32 %v2197_v16, %v2085_v13  ;;  %v2087_v22 = vpop.f32.mrf.mxu0 }
 0x13d   : > { %v2088_v23 = vadd.f32 %v2087_v22, %v2086_v17  ;;  %v2199_v24 = vpop.f32.mrf.mxu1 }
 0x13e   : > { %v1961_v25 = vpack.c.bf16 %v1453_v20, %v1452_v19  ;;  %v2200_v26 = vadd.f32 %v2199_v24, %v2198_v18  ;;  %v2089_v27 = vpop.f32.mrf.mxu0  ;;  %v1422_v29 = vadd.f32 %v2625_v42, %v1244_v21 }
 0x13f   : > { %v2201_v28 = vpop.f32.mrf.mxu1 }
 0x140   : > { %2005 = vst [vmem:[%s2633_s20 + $0x40] sm:$0xff] %v1961_v25   ;;  %v1247_v30 = vadd.f32 %v2200_v26, %v2088_v23  ;;  %v2090_v31 = vpop.f32.mrf.mxu0  ;;  %v1454_v38 = vmax.f32 %v1422_v29, 0.0 }
 0x141   : > { %v2091_v32 = vadd.f32 %v2090_v31, %v2089_v27  ;;  %v2202_v33 = vpop.f32.mrf.mxu1 }
 0x142   : > { %v1423_v34 = vadd.f32 %v2625_v42, %v1247_v30  ;;  %v2203_v35 = vadd.f32 %v2202_v33, %v2201_v28  ;;  %v2092_v36 = vpop.f32.mrf.mxu0 }
 0x143   : > { %v2204_v37 = vpop.f32.mrf.mxu1 }
 0x144   : > { %v1455_v39 = vmax.f32 %v1423_v34, 0.0  ;;  %v1252_v40 = vadd.f32 %v2203_v35, %v2091_v32  ;;  %v2093_v41 = vpop.f32.mrf.mxu0 }
 0x145   : > { %v2094_v43 = vadd.f32 %v2093_v41, %v2092_v36  ;;  %v2205_v44 = vpop.f32.mrf.mxu1 }
 0x146   : > { %v1966_v45 = vpack.c.bf16 %v1455_v39, %v1454_v38  ;;  %v2206_v46 = vadd.f32 %v2205_v44, %v2204_v37  ;;  %v2095_v47 = vpop.f32.mrf.mxu0  ;;  %v1424_v49 = vadd.f32 %v2625_v42, %v1252_v40 }
 0x147   : > { %v2207_v48 = vpop.f32.mrf.mxu1 }
 0x148   : > { %2006 = vst [vmem:[%s2633_s20 + $0x48] sm:$0xff] %v1966_v45   ;;  %v1255_v50 = vadd.f32 %v2206_v46, %v2094_v43  ;;  %v2096_v51 = vpop.f32.mrf.mxu0  ;;  %v1456_v58 = vmax.f32 %v1424_v49, 0.0 }
 0x149   : > { %v2097_v52 = vadd.f32 %v2096_v51, %v2095_v47  ;;  %v2208_v53 = vpop.f32.mrf.mxu1 }
 0x14a   : > { %v1425_v54 = vadd.f32 %v2625_v42, %v1255_v50  ;;  %v2209_v55 = vadd.f32 %v2208_v53, %v2207_v48  ;;  %v2098_v56 = vpop.f32.mrf.mxu0 }
 0x14b   : > { %v2210_v57 = vpop.f32.mrf.mxu1 }
 0x14c   : > { %v1457_v59 = vmax.f32 %v1425_v54, 0.0  ;;  %v1260_v60 = vadd.f32 %v2209_v55, %v2097_v52  ;;  %v2099_v61 = vpop.f32.mrf.mxu0 }
 0x14d   : > { %v2100_v62 = vadd.f32 %v2099_v61, %v2098_v56  ;;  %v2211_v63 = vpop.f32.mrf.mxu1 }
 0x14e   : > { %v1971_v0 = vpack.c.bf16 %v1457_v59, %v1456_v58  ;;  %v2212_v1 = vadd.f32 %v2211_v63, %v2210_v57  ;;  %v2101_v2 = vpop.f32.mrf.mxu0  ;;  %v1426_v4 = vadd.f32 %v2625_v42, %v1260_v60 }
 0x14f   : > { %v2213_v3 = vpop.f32.mrf.mxu1 }
 0x150   : > { %2007 = vst [vmem:[%s2633_s20 + $0x50] sm:$0xff] %v1971_v0   ;;  %v1263_v5 = vadd.f32 %v2212_v1, %v2100_v62  ;;  %v2102_v6 = vpop.f32.mrf.mxu0  ;;  %v1458_v13 = vmax.f32 %v1426_v4, 0.0 }
 0x151   : > { %v2103_v7 = vadd.f32 %v2102_v6, %v2101_v2  ;;  %v2214_v8 = vpop.f32.mrf.mxu1 }
 0x152   : > { %v1427_v9 = vadd.f32 %v2625_v42, %v1263_v5  ;;  %v2215_v10 = vadd.f32 %v2214_v8, %v2213_v3  ;;  %v2104_v11 = vpop.f32.mrf.mxu0 }
 0x153   : > { %v2216_v12 = vpop.f32.mrf.mxu1 }
 0x154   : > { %v1459_v14 = vmax.f32 %v1427_v9, 0.0  ;;  %v1268_v15 = vadd.f32 %v2215_v10, %v2103_v7  ;;  %v2105_v16 = vpop.f32.mrf.mxu0 }
 0x155   : > { %v2106_v17 = vadd.f32 %v2105_v16, %v2104_v11  ;;  %v2217_v18 = vpop.f32.mrf.mxu1 }
 0x156   : > { %v1976_v19 = vpack.c.bf16 %v1459_v14, %v1458_v13  ;;  %v2218_v20 = vadd.f32 %v2217_v18, %v2216_v12  ;;  %v2107_v21 = vpop.f32.mrf.mxu0  ;;  %v1428_v23 = vadd.f32 %v2625_v42, %v1268_v15 }
 0x157   : > { %v2219_v22 = vpop.f32.mrf.mxu1 }
 0x158   : > { %2008 = vst [vmem:[%s2633_s20 + $0x58] sm:$0xff] %v1976_v19   ;;  %v1271_v24 = vadd.f32 %v2218_v20, %v2106_v17  ;;  %v2108_v25 = vpop.f32.mrf.mxu0  ;;  %v1460_v32 = vmax.f32 %v1428_v23, 0.0 }
 0x159   : > { %v2109_v26 = vadd.f32 %v2108_v25, %v2107_v21  ;;  %v2220_v27 = vpop.f32.mrf.mxu1 }
 0x15a   : > { %v1429_v28 = vadd.f32 %v2625_v42, %v1271_v24  ;;  %v2221_v29 = vadd.f32 %v2220_v27, %v2219_v22  ;;  %v2110_v30 = vpop.f32.mrf.mxu0 }
 0x15b   : > { %v2222_v31 = vpop.f32.mrf.mxu1 }
 0x15c   : > { %v1461_v33 = vmax.f32 %v1429_v28, 0.0  ;;  %v1276_v34 = vadd.f32 %v2221_v29, %v2109_v26  ;;  %v2111_v35 = vpop.f32.mrf.mxu0 }
 0x15d   : > { %v2112_v36 = vadd.f32 %v2111_v35, %v2110_v30  ;;  %v2223_v37 = vpop.f32.mrf.mxu1 }
 0x15e   : > { %v1981_v38 = vpack.c.bf16 %v1461_v33, %v1460_v32  ;;  %v2224_v39 = vadd.f32 %v2223_v37, %v2222_v31  ;;  %v2113_v40 = vpop.f32.mrf.mxu0  ;;  %v1430_v43 = vadd.f32 %v2625_v42, %v1276_v34 }
 0x15f   : > { %v2225_v41 = vpop.f32.mrf.mxu1 }
 0x160   : > { %2009 = vst [vmem:[%s2633_s20 + $0x60] sm:$0xff] %v1981_v38   ;;  %v1279_v44 = vadd.f32 %v2224_v39, %v2112_v36  ;;  %v2114_v45 = vpop.f32.mrf.mxu0  ;;  %v1462_v52 = vmax.f32 %v1430_v43, 0.0 }
 0x161   : > { %v2115_v46 = vadd.f32 %v2114_v45, %v2113_v40  ;;  %v2226_v47 = vpop.f32.mrf.mxu1 }
 0x162   : > { %v1431_v48 = vadd.f32 %v2625_v42, %v1279_v44  ;;  %v2227_v49 = vadd.f32 %v2226_v47, %v2225_v41  ;;  %v2116_v50 = vpop.f32.mrf.mxu0 }
 0x163   : > { %v2228_v51 = vpop.f32.mrf.mxu1 }
 0x164   : > { %v1463_v53 = vmax.f32 %v1431_v48, 0.0  ;;  %v1284_v54 = vadd.f32 %v2227_v49, %v2115_v46  ;;  %v2117_v55 = vpop.f32.mrf.mxu0 }
 0x165   : > { %v2118_v56 = vadd.f32 %v2117_v55, %v2116_v50  ;;  %v2229_v57 = vpop.f32.mrf.mxu1 }
 0x166   : > { %v1986_v58 = vpack.c.bf16 %v1463_v53, %v1462_v52  ;;  %v2230_v59 = vadd.f32 %v2229_v57, %v2228_v51  ;;  %v2119_v60 = vpop.f32.mrf.mxu0  ;;  %v1432_v62 = vadd.f32 %v2625_v42, %v1284_v54 }
 0x167   : > { %v2231_v61 = vpop.f32.mrf.mxu1 }
 0x168   : > { %2010 = vst [vmem:[%s2633_s20 + $0x68] sm:$0xff] %v1986_v58   ;;  %v1287_v63 = vadd.f32 %v2230_v59, %v2118_v56  ;;  %v2120_v0 = vpop.f32.mrf.mxu0  ;;  %v1464_v7 = vmax.f32 %v1432_v62, 0.0 }
 0x169   : > { %v2121_v1 = vadd.f32 %v2120_v0, %v2119_v60  ;;  %v2232_v2 = vpop.f32.mrf.mxu1 }
 0x16a   : > { %v1433_v3 = vadd.f32 %v2625_v42, %v1287_v63  ;;  %v2233_v4 = vadd.f32 %v2232_v2, %v2231_v61  ;;  %v2122_v5 = vpop.f32.mrf.mxu0 }
 0x16b   : > { %v2234_v6 = vpop.f32.mrf.mxu1 }
 0x16c   : > { %v1465_v8 = vmax.f32 %v1433_v3, 0.0  ;;  %v1292_v9 = vadd.f32 %v2233_v4, %v2121_v1  ;;  %v2123_v10 = vpop.f32.mrf.mxu0 }
 0x16d   : > { %v2124_v11 = vadd.f32 %v2123_v10, %v2122_v5  ;;  %v2235_v12 = vpop.f32.mrf.mxu1 }
 0x16e   : > { %v1991_v13 = vpack.c.bf16 %v1465_v8, %v1464_v7  ;;  %v2236_v14 = vadd.f32 %v2235_v12, %v2234_v6  ;;  %v1434_v15 = vadd.f32 %v2625_v42, %v1292_v9 }
 0x170   : > { %2011 = vst [vmem:[%s2633_s20 + $0x70] sm:$0xff] %v1991_v13   ;;  %v1295_v16 = vadd.f32 %v2236_v14, %v2124_v11  ;;  %v1466_v18 = vmax.f32 %v1434_v15, 0.0 }
 0x172   : > { %v1435_v17 = vadd.f32 %v2625_v42, %v1295_v16 }
 0x174   : > { %v1467_v19 = vmax.f32 %v1435_v17, 0.0 }
 0x176   : > { %v1996_v20 = vpack.c.bf16 %v1467_v19, %v1466_v18 }
 0x178   : > { %2012 = vst [vmem:[%s2633_s20 + $0x78] sm:$0xff] %v1996_v20  }
 0x179 PF: > { %s13_s14 = sadd.s32 1, %s2411_s14   ;;  %s2694_s12 = smov %s2407_s13 }
 0x17a   : > { %p10_p5 = scmp.ge.s32.totalorder %s13_s14, 4   ;;  %s2695_s13 = smov %s2697_s15 }
 0x17c   :  { %12 = sbr.rel (!%p10_p5) target bundleno = 2 (0x2), region = 76 }

// kernel: bmn_forward.17
= control target key start
LH: loop header
LB: loop body
LE: loop exit
PB: predicated region body
PF: predicated region fallthrough
CT: control target
= control target key end

     0   :  { %s3425_s15 = smov 0   ;;  %s3427_s16 = smov 0   ;;  %s3977_s0 = inlined_call_operand.vmem [shape: bf16[8,256,16], index: 0, kind: input, shape index: {}]   ;;  %s3978_s1 = inlined_call_operand.vmem [shape: bf16[2,16,256], index: 1, kind: input, shape index: {}]   ;;  %s3979_s2 = inlined_call_operand.vmem [shape: bf16[8,256,512], index: 2, kind: input, shape index: {}]   ;;  %s3980_s3 = inlined_call_operand.vmem [shape: f32[1,512], index: 3, kind: input, shape index: {}]   ;;  %s3981_s4 = inlined_call_operand.vmem [shape: bf16[2,256,512], index: 4, kind: output, shape index: {}]  }
   0x1   :  { %s3429_s17 = smov 0   ;;  %s3431_s18 = smov 0  }
   0x2   :  { %s3433_s19 = smov 0  }
   0x3 LB: > { %s26_s20 = sadd.s32 1, %s3388_s17  ;;  %s33_s21 = sadd.s32 1, %s3392_s18  ;;  %s3396_s19 = sphi %s3433_s19, %s14_s19   ;;  %s3392_s18 = sphi %s3431_s18, %s3985_s18   ;;  %s3388_s17 = sphi %s3429_s17, %s3984_s17   ;;  %s3384_s16 = sphi %s3427_s16, %s3983_s16   ;;  %s3380_s15 = sphi %s3425_s15, %s3982_s15  }
   0x4   : > { %p27_p0 = scmp.ge.s32.totalorder %s26_s20, 8  ;;  %p2956_p1 = scmp.ge.s32.totalorder %s3396_s19, 1 }
   0x5   : > { %p210_p2 = scmp.lt.s32.totalorder %s3396_s19, 17 }
   0x6   : > { %s3987_s20 = smov (%p27_p0, %s26_s20), 0  ;;  %s3989_s21 = smov (!%p27_p0, %s33_s21), %s3392_s18 }
   0x7   : > { %p211_p3 = pnand %p2956_p1, %p210_p2  ;;  %p35_p4 = scmp.ge.s32.totalorder %s3989_s21, 2 }
   0x8   : > { %p256_p5 = scmp.lt.s32.totalorder (!%p211_p3), %s3380_s15, 7  ;;  %p265_p6 = scmp.lt.s32.totalorder (!%p211_p3), %s3384_s16, 1 }
   0x9   : > { %s3991_s21 = smov (%p35_p4, %s3989_s21), 0  ;;  %214 = sbr.rel (%p211_p3) target bundleno = 711 (0x2c7), region = 36 }
   0xa   : > { %p2965_p7 = scmp.ne.s32.totalorder (!%p211_p3), %s3380_s15, 0 }
   0xe   : > { %s257_s22 = scalar_select %p256_p5, %s3380_s15, 7 }
   0xf   : > { %s3993_s16 = smov (!%p265_p6, %s3384_s16), 1 }
  0x10   : > { %s3131_s23 = sshll.u32 %s257_s22, 7  ;;  %s3133_s24 = sshll.u32 %s257_s22, 9 }
  0x11   : > { %s3462_s27 = scalar_lea.vmem %s3977_s0, %s3131_s23  ;;  %s3132_s28 = sshll.u32 %s3993_s16, 4 }
  0x12   : > { %s3467_s5 = scalar_lea.vmem %s3978_s1, %s3132_s28  ;;  %s3472_s8 = scalar_lea.vmem %s3979_s2, %s3133_s24 }
  0x13   : > { %s3134_s9 = sshll.u32 %s3993_s16, 9  ;;  %290 = sbr.rel (%p2965_p7) target bundleno = 89 (0x59), region = 40 }
  0x14   : > { %s3477_s12 = scalar_lea.vmem %s3981_s4, %s3134_s9 }
  0x18   : > { %v3398_v0 = vmov 0.0  }
  0x19   : > { %291 = vst [vmem:[#allocation2 + $0x2b0] sm:$0xff] %v3398_v0  ;;  %292 = vst [vmem:[#allocation2 + $0x3b0] sm:$0xff] %v3398_v0 }
  0x1a   : > { %293 = vst [vmem:[#allocation2 + $0xd8] sm:$0xff] %v3398_v0  ;;  %294 = vst [vmem:[#allocation2 + $0x18] sm:$0xff] %v3398_v0 }
  0x1b   : > { %295 = vst [vmem:[#allocation2 + $0x50] sm:$0xff] %v3398_v0  ;;  %296 = vst [vmem:[#allocation2 + $0x368] sm:$0xff] %v3398_v0 }
  0x1c   : > { %297 = vst [vmem:[#allocation2 + $0x330] sm:$0xff] %v3398_v0  ;;  %298 = vst [vmem:[#allocation2 + $0x48] sm:$0xff] %v3398_v0 }
  0x1d   : > { %299 = vst [vmem:[#allocation2 + $0x380] sm:$0xff] %v3398_v0  ;;  %300 = vst [vmem:[#allocation2 + $0x110] sm:$0xff] %v3398_v0 }
  0x1e   : > { %301 = vst [vmem:[#allocation2 + $0x118] sm:$0xff] %v3398_v0  ;;  %302 = vst [vmem:[#allocation2 + $0x98] sm:$0xff] %v3398_v0 }
  0x1f   : > { %303 = vst [vmem:[#allocation2 + $0x320] sm:$0xff] %v3398_v0  ;;  %304 = vst [vmem:[#allocation2 + $0x150] sm:$0xff] %v3398_v0 }
  0x20   : > { %305 = vst [vmem:[#allocation2 + $0x108] sm:$0xff] %v3398_v0  ;;  %306 = vst [vmem:[#allocation2 + $0x60] sm:$0xff] %v3398_v0 }
  0x21   : > { %307 = vst [vmem:[#allocation2 + $0x2e0] sm:$0xff] %v3398_v0  ;;  %308 = vst [vmem:[#allocation2 + $0x388] sm:$0xff] %v3398_v0 }
  0x22   : > { %309 = vst [vmem:[#allocation2 + $0x338] sm:$0xff] %v3398_v0  ;;  %310 = vst [vmem:[#allocation2 + $0x340] sm:$0xff] %v3398_v0 }
  0x23   : > { %311 = vst [vmem:[#allocation2 + $0x80] sm:$0xff] %v3398_v0  ;;  %312 = vst [vmem:[#allocation2 + $0x1a8] sm:$0xff] %v3398_v0 }
  0x24   : > { %313 = vst [vmem:[#allocation2 + $0x1b8] sm:$0xff] %v3398_v0  ;;  %314 = vst [vmem:[#allocation2 + $0x168] sm:$0xff] %v3398_v0 }
  0x25   : > { %315 = vst [vmem:[#allocation2 + $0x3e8] sm:$0xff] %v3398_v0  ;;  %316 = vst [vmem:[#allocation2 + $0x2f8] sm:$0xff] %v3398_v0 }
  0x26   : > { %317 = vst [vmem:[#allocation2 + $0x290] sm:$0xff] %v3398_v0  ;;  %318 = vst [vmem:[#allocation2 + $0x28] sm:$0xff] %v3398_v0 }
  0x27   : > { %319 = vst [vmem:[#allocation2 + $0x138] sm:$0xff] %v3398_v0  ;;  %320 = vst [vmem:[#allocation2 + $0xc0] sm:$0xff] %v3398_v0 }
  0x28   : > { %321 = vst [vmem:[#allocation2 + $0x1c0] sm:$0xff] %v3398_v0  ;;  %322 = vst [vmem:[#allocation2 + $0x280] sm:$0xff] %v3398_v0 }
  0x29   : > { %323 = vst [vmem:[#allocation2 + $0x100] sm:$0xff] %v3398_v0  ;;  %324 = vst [vmem:[#allocation2 + $0x3c0] sm:$0xff] %v3398_v0 }
  0x2a   : > { %325 = vst [vmem:[#allocation2 + $0x158] sm:$0xff] %v3398_v0  ;;  %326 = vst [vmem:[#allocation2 + $0x3e0] sm:$0xff] %v3398_v0 }
  0x2b   : > { %327 = vst [vmem:[#allocation2 + $0x218] sm:$0xff] %v3398_v0  ;;  %328 = vst [vmem:[#allocation2 + $0x3f8] sm:$0xff] %v3398_v0 }
  0x2c   : > { %329 = vst [vmem:[#allocation2 + $0x8] sm:$0xff] %v3398_v0  ;;  %330 = vst [vmem:[#allocation2 + $0x128] sm:$0xff] %v3398_v0 }
  0x2d   : > { %331 = vst [vmem:[#allocation2 + $0x2a0] sm:$0xff] %v3398_v0  ;;  %332 = vst [vmem:[#allocation2 + $0x3f0] sm:$0xff] %v3398_v0 }
  0x2e   : > { %333 = vst [vmem:[#allocation2 + $0xa0] sm:$0xff] %v3398_v0  ;;  %334 = vst [vmem:[#allocation2 + $0x2c0] sm:$0xff] %v3398_v0 }
  0x2f   : > { %335 = vst [vmem:[#allocation2 + $0xb0] sm:$0xff] %v3398_v0  ;;  %336 = vst [vmem:[#allocation2 + $0x1e0] sm:$0xff] %v3398_v0 }
  0x30   : > { %337 = vst [vmem:[#allocation2 + $0x1f0] sm:$0xff] %v3398_v0  ;;  %338 = vst [vmem:[#allocation2 + $0x10] sm:$0xff] %v3398_v0 }
  0x31   : > { %339 = vst [vmem:[#allocation2 + $0x230] sm:$0xff] %v3398_v0  ;;  %340 = vst [vmem:[#allocation2 + $0x240] sm:$0xff] %v3398_v0 }
  0x32   : > { %341 = vst [vmem:[#allocation2 + $0x90] sm:$0xff] %v3398_v0  ;;  %342 = vst [vmem:[#allocation2 + $0x3a0] sm:$0xff] %v3398_v0 }
  0x33   : > { %343 = vst [vmem:[#allocation2 + $0x208] sm:$0xff] %v3398_v0  ;;  %344 = vst [vmem:[#allocation2 + $0xd0] sm:$0xff] %v3398_v0 }
  0x34   : > { %345 = vst [vmem:[#allocation2 + $0x88] sm:$0xff] %v3398_v0  ;;  %346 = vst [vmem:[#allocation2 + $0x2f0] sm:$0xff] %v3398_v0 }
  0x35   : > { %347 = vst [vmem:[#allocation2 + $0x358] sm:$0xff] %v3398_v0  ;;  %348 = vst [vmem:[#allocation2 + $0x268] sm:$0xff] %v3398_v0 }
  0x36   : > { %349 = vst [vmem:[#allocation2 + $0x350] sm:$0xff] %v3398_v0  ;;  %350 = vst [vmem:[#allocation2 + $0x188] sm:$0xff] %v3398_v0 }
  0x37   : > { %351 = vst [vmem:[#allocation2 + $0x1d8] sm:$0xff] %v3398_v0  ;;  %352 = vst [vmem:[#allocation2 + $0x30] sm:$0xff] %v3398_v0 }
  0x38   : > { %353 = vst [vmem:[#allocation2 + $0x140] sm:$0xff] %v3398_v0  ;;  %354 = vst [vmem:[#allocation2 + $0x2a8] sm:$0xff] %v3398_v0 }
  0x39   : > { %355 = vst [vmem:[#allocation2 + $0x130] sm:$0xff] %v3398_v0  ;;  %356 = vst [vmem:[#allocation2 + $0x200] sm:$0xff] %v3398_v0 }
  0x3a   : > { %357 = vst [vmem:[#allocation2 + $0x318] sm:$0xff] %v3398_v0  ;;  %358 = vst [vmem:[#allocation2 + $0x220] sm:$0xff] %v3398_v0 }
  0x3b   : > { %359 = vst [vmem:[#allocation2 + $0x70] sm:$0xff] %v3398_v0  ;;  %360 = vst [vmem:[#allocation2 + $0x300] sm:$0xff] %v3398_v0 }
  0x3c   : > { %361 = vst [vmem:[#allocation2 + $0xe0] sm:$0xff] %v3398_v0  ;;  %362 = vst [vmem:[#allocation2 + $0x178] sm:$0xff] %v3398_v0 }
  0x3d   : > { %363 = vst [vmem:[#allocation2 + $0x328] sm:$0xff] %v3398_v0  ;;  %364 = vst [vmem:[#allocation2 + $0x260] sm:$0xff] %v3398_v0 }
  0x3e   : > { %365 = vst [vmem:[#allocation2 + $0x3b8] sm:$0xff] %v3398_v0  ;;  %366 = vst [vmem:[#allocation2 + $0x2b8] sm:$0xff] %v3398_v0 }
  0x3f   : > { %367 = vst [vmem:[#allocation2 + $0x248] sm:$0xff] %v3398_v0  ;;  %368 = vst [vmem:[#allocation2 + $0x40] sm:$0xff] %v3398_v0 }
  0x40   : > { %369 = vst [vmem:[#allocation2 + $0x20] sm:$0xff] %v3398_v0  ;;  %370 = vst [vmem:[#allocation2 + $0xe8] sm:$0xff] %v3398_v0 }
  0x41   : > { %371 = vst [vmem:[#allocation2 + $0x288] sm:$0xff] %v3398_v0  ;;  %372 = vst [vmem:[#allocation2 + $0x3a8] sm:$0xff] %v3398_v0 }
  0x42   : > { %373 = vst [vmem:[#allocation2 + $0x3c8] sm:$0xff] %v3398_v0  ;;  %374 = vst [vmem:[#allocation2 + $0x160] sm:$0xff] %v3398_v0 }
  0x43   : > { %375 = vst [vmem:[#allocation2 + $0x2c8] sm:$0xff] %v3398_v0  ;;  %376 = vst [vmem:[#allocation2 + $0x210] sm:$0xff] %v3398_v0 }
  0x44   : > { %377 = vst [vmem:[#allocation2 + $0x3d8] sm:$0xff] %v3398_v0  ;;  %378 = vst [vmem:[#allocation2 + $0x1e8] sm:$0xff] %v3398_v0 }
  0x45   : > { %379 = vst [vmem:[#allocation2 + $0x1b0] sm:$0xff] %v3398_v0  ;;  %380 = vst [vmem:[#allocation2 + $0x1c8] sm:$0xff] %v3398_v0 }
  0x46   : > { %381 = vst [vmem:[#allocation2 + $0x2d0] sm:$0xff] %v3398_v0  ;;  %382 = vst [vmem:[#allocation2 + $0x1d0] sm:$0xff] %v3398_v0 }
  0x47   : > { %383 = vst [vmem:[#allocation2 + $0x58] sm:$0xff] %v3398_v0  ;;  %384 = vst [vmem:[#allocation2 + $0x120] sm:$0xff] %v3398_v0 }
  0x48   : > { %385 = vst [vmem:[#allocation2 + $0x198] sm:$0xff] %v3398_v0  ;;  %386 = vst [vmem:[#allocation2 + $0x2e8] sm:$0xff] %v3398_v0 }
  0x49   : > { %387 = vst [vmem:[#allocation2 + $0x1f8] sm:$0xff] %v3398_v0  ;;  %388 = vst [vmem:[#allocation2 + $0x238] sm:$0xff] %v3398_v0 }
  0x4a   : > { %389 = vst [vmem:[#allocation2 + $0x398] sm:$0xff] %v3398_v0  ;;  %390 = vst [vmem:[#allocation2 + $0x390] sm:$0xff] %v3398_v0 }
  0x4b   : > { %391 = vst [vmem:[#allocation2 + $0x1a0] sm:$0xff] %v3398_v0  ;;  %392 = vst [vmem:[#allocation2 + $0xa8] sm:$0xff] %v3398_v0 }
  0x4c   : > { %393 = vst [vmem:[#allocation2 + $0x258] sm:$0xff] %v3398_v0  ;;  %394 = vst [vmem:[#allocation2 + $0x2d8] sm:$0xff] %v3398_v0 }
  0x4d   : > { %395 = vst [vmem:[#allocation2 + $0xf0] sm:$0xff] %v3398_v0  ;;  %396 = vst [vmem:[#allocation2 + $0x180] sm:$0xff] %v3398_v0 }
  0x4e   : > { %397 = vst [vmem:[#allocation2 + $0x170] sm:$0xff] %v3398_v0  ;;  %398 = vst [vmem:[#allocation2 + $0x3d0] sm:$0xff] %v3398_v0 }
  0x4f   : > { %399 = vst [vmem:[#allocation2 + $0x250] sm:$0xff] %v3398_v0  ;;  %400 = vst [vmem:[#allocation2 + $0x378] sm:$0xff] %v3398_v0 }
  0x50   : > { %401 = vst [vmem:[#allocation2 + $0xb8] sm:$0xff] %v3398_v0  ;;  %402 = vst [vmem:[#allocation2 + $0x38] sm:$0xff] %v3398_v0 }
  0x51   : > { %403 = vst [vmem:[#allocation2 + $0x78] sm:$0xff] %v3398_v0  ;;  %404 = vst [vmem:[#allocation2 + $0x308] sm:$0xff] %v3398_v0 }
  0x52   : > { %405 = vst [vmem:[#allocation2 + $0x370] sm:$0xff] %v3398_v0  ;;  %406 = vst [vmem:[#allocation2 + $0xc8] sm:$0xff] %v3398_v0 }
  0x53   : > { %407 = vst [vmem:[#allocation2 + $0x278] sm:$0xff] %v3398_v0  ;;  %408 = vst [vmem:[#allocation2 + $0x360] sm:$0xff] %v3398_v0 }
  0x54   : > { %409 = vst [vmem:[#allocation2 + $0x228] sm:$0xff] %v3398_v0  ;;  %410 = vst [vmem:[#allocation2 + $0x348] sm:$0xff] %v3398_v0 }
  0x55   : > { %411 = vst [vmem:[#allocation2 + $0x148] sm:$0xff] %v3398_v0  ;;  %412 = vst [vmem:[#allocation2 + $0xf8] sm:$0xff] %v3398_v0 }
  0x56   : > { %413 = vst [vmem:[#allocation2 + $0x68] sm:$0xff] %v3398_v0  ;;  %414 = vst [vmem:[#allocation2] sm:$0xff] %v3398_v0 }
  0x57   : > { %415 = vst [vmem:[#allocation2 + $0x298] sm:$0xff] %v3398_v0  ;;  %416 = vst [vmem:[#allocation2 + $0x270] sm:$0xff] %v3398_v0 }
  0x58   : > { %417 = vst [vmem:[#allocation2 + $0x310] sm:$0xff] %v3398_v0  ;;  %418 = vst [vmem:[#allocation2 + $0x190] sm:$0xff] %v3398_v0 }
  0x59 PF: > { %v3243_v1 = vld [vmem:[%s3467_s5 + $0x4] ss:$8 sps:$4 sm:$0xff]   ;;  %v3245_v2 = vld [vmem:[%s3467_s5] ss:$8 sps:$4 sm:$0xff]   ;;  %v3399_v3 = vmov 0   ;;  %vm543_vm0 = vcmask 130048  }
  0x5a   : > { %624 = vmatprep.mubr.bf16.mxu0 %v3399_v3  ;;  %704 = vmatprep.mubr.bf16.mxu1 %v3399_v3  ;;  %v3246_v4 = vld [vmem:[%s3462_s27] sm:$0xff]   ;;  %v3247_v5 = vld [vmem:[%s3462_s27 + $0x8] sm:$0xff]   ;;  %v3248_v8 = vld [vmem:[%s3462_s27 + $0x10] sm:$0xff]   ;;  %p3064_p8 = scmp.ne.s32.totalorder %s3380_s15, 7 }
  0x5b   : > { %606 = vmatprep.subr.bf16.mxu0 %v3243_v1  ;;  %3199 = vmatprep.subr.bf16.mxu1 %v3243_v1  ;;  %v3254_v6 = vld [vmem:[%s3462_s27 + $0x40] sm:$0xff]   ;;  %v3255_v7 = vld [vmem:[%s3462_s27 + $0x48] sm:$0xff]   ;;  %v3256_v18 = vld [vmem:[%s3462_s27 + $0x50] sm:$0xff]  }
  0x5c   : > { %607 = vmatpush1.bf16.msra.mxu0 %v3245_v2  ;;  %3200 = vmatpush1.bf16.msra.mxu1 %v3245_v2  ;;  %v3262_v9 = vld [vmem:[%s3472_s8 + $0xe0] ss:$16 sps:$4 sm:$0xff]   ;;  %v3264_v10 = vld [vmem:[%s3472_s8 + $0xe4] ss:$16 sps:$4 sm:$0xff]   ;;  %v3265_v11 = vld [vmem:[%s3472_s8 + $0xe8] ss:$16 sps:$4 sm:$0xff]  }
  0x5d   : > { %v3267_v12 = vld [vmem:[%s3472_s8 + $0xec] ss:$16 sps:$4 sm:$0xff]   ;;  %1329 = vmatprep.subr.bf16.mxu1 %v3264_v10  ;;  %v3270_v13 = vld [vmem:[%s3472_s8 + $0xc4] ss:$16 sps:$4 sm:$0xff]   ;;  %v3268_v14 = vld [vmem:[%s3472_s8 + $0xc0] ss:$16 sps:$4 sm:$0xff]  }
  0x5e   : > { %1522 = vmatprep.subr.bf16.mxu0 %v3267_v12  ;;  %v3273_v15 = vld [vmem:[%s3472_s8 + $0xcc] ss:$16 sps:$4 sm:$0xff]   ;;  %v3271_v16 = vld [vmem:[%s3472_s8 + $0xc8] ss:$16 sps:$4 sm:$0xff]   ;;  %v3276_v17 = vld [vmem:[%s3472_s8 + $0xa4] ss:$16 sps:$4 sm:$0xff]  }
  0x5f   : > { %2984 = vmatmul.mubr.msk.bf16.vlgmr.msra.gmra.mxu0 %vm543_vm0, %v3246_v4  ;;  %2992 = vmatmul.mubr.msk.bf16.vlgmr.msra.gmra.mxu1 %vm543_vm0, %v3254_v6  ;;  %v3279_v19 = vld [vmem:[%s3472_s8 + $0xac] ss:$16 sps:$4 sm:$0xff]   ;;  %v3274_v21 = vld [vmem:[%s3472_s8 + $0xa0] ss:$16 sps:$4 sm:$0xff]   ;;  %v3277_v22 = vld [vmem:[%s3472_s8 + $0xa8] ss:$16 sps:$4 sm:$0xff]  }
  0x60   : > { %634 = vmatprep.mubr.bf16.mxu0 %v3399_v3  ;;  %714 = vmatprep.mubr.bf16.mxu1 %v3399_v3  ;;  %v3249_v20 = vld [vmem:[%s3462_s27 + $0x18] sm:$0xff]   ;;  %v3282_v23 = vld [vmem:[%s3472_s8 + $0x84] ss:$16 sps:$4 sm:$0xff]   ;;  %v3280_v26 = vld [vmem:[%s3472_s8 + $0x80] ss:$16 sps:$4 sm:$0xff]  }
  0x61   : > { %1330 = vmatpush1.bf16.msra.mxu1 %v3262_v9  ;;  %1523 = vmatpush1.bf16.msra.mxu0 %v3265_v11  ;;  %v3285_v24 = vld [vmem:[%s3472_s8 + $0x8c] ss:$16 sps:$4 sm:$0xff]   ;;  %v3283_v27 = vld [vmem:[%s3472_s8 + $0x88] ss:$16 sps:$4 sm:$0xff]   ;;  %v3288_v28 = vld [vmem:[%s3472_s8 + $0x64] ss:$16 sps:$4 sm:$0xff]  }
  0x62   : > { %1331 = vmatprep.subr.bf16.mxu1 %v3270_v13  ;;  %1524 = vmatprep.subr.bf16.mxu0 %v3273_v15  ;;  %v3257_v25 = vld [vmem:[%s3462_s27 + $0x58] sm:$0xff]   ;;  %v3250_v30 = vld [vmem:[%s3462_s27 + $0x20] sm:$0xff]   ;;  %v3251_v40 = vld [vmem:[%s3462_s27 + $0x28] sm:$0xff]  }
  0x63   : > { %v3291_v29 = vld [vmem:[%s3472_s8 + $0x6c] ss:$16 sps:$4 sm:$0xff]   ;;  %v3286_v31 = vld [vmem:[%s3472_s8 + $0x60] ss:$16 sps:$4 sm:$0xff]   ;;  %v3289_v32 = vld [vmem:[%s3472_s8 + $0x68] ss:$16 sps:$4 sm:$0xff]  }
  0x64   : > { %v3294_v33 = vld [vmem:[%s3472_s8 + $0x44] ss:$16 sps:$4 sm:$0xff]   ;;  %v3297_v34 = vld [vmem:[%s3472_s8 + $0x4c] ss:$16 sps:$4 sm:$0xff]   ;;  %v3292_v36 = vld [vmem:[%s3472_s8 + $0x40] ss:$16 sps:$4 sm:$0xff]  }
  0x65   : > { %1332 = vmatpush1.bf16.msra.mxu1 %v3268_v14  ;;  %1525 = vmatpush1.bf16.msra.mxu0 %v3271_v16  ;;  %v3258_v35 = vld [vmem:[%s3462_s27 + $0x60] sm:$0xff]   ;;  %v3295_v37 = vld [vmem:[%s3472_s8 + $0x48] ss:$16 sps:$4 sm:$0xff]   ;;  %v3303_v39 = vld [vmem:[%s3472_s8 + $0x2c] ss:$16 sps:$4 sm:$0xff]  }
  0x66   : > { %1333 = vmatprep.subr.bf16.mxu1 %v3276_v17  ;;  %1526 = vmatprep.subr.bf16.mxu0 %v3279_v19  ;;  %v3300_v38 = vld [vmem:[%s3472_s8 + $0x24] ss:$16 sps:$4 sm:$0xff]   ;;  %v3298_v41 = vld [vmem:[%s3472_s8 + $0x20] ss:$16 sps:$4 sm:$0xff]   ;;  %v3301_v42 = vld [vmem:[%s3472_s8 + $0x28] ss:$16 sps:$4 sm:$0xff]  }
  0x67   : > { %2985 = vmatmul.mubr.msk.bf16.gmra.mxu0 %vm543_vm0, %v3247_v5  ;;  %2993 = vmatmul.mubr.msk.bf16.gmra.mxu1 %vm543_vm0, %v3255_v7  ;;  %v3306_v43 = vld [vmem:[%s3472_s8 + $0x4] ss:$16 sps:$4 sm:$0xff]   ;;  %v3309_v44 = vld [vmem:[%s3472_s8 + $0xc] ss:$16 sps:$4 sm:$0xff]   ;;  %v3304_v46 = vld [vmem:[%s3472_s8] ss:$16 sps:$4 sm:$0xff]  }
  0x68   : > { %644 = vmatprep.mubr.bf16.mxu0 %v3399_v3  ;;  %724 = vmatprep.mubr.bf16.mxu1 %v3399_v3  ;;  %v3259_v45 = vld [vmem:[%s3462_s27 + $0x68] sm:$0xff]   ;;  %v3312_v48 = vld [vmem:[%s3472_s8 + $0x1e4] ss:$16 sps:$4 sm:$0xff]   ;;  %v3310_v51 = vld [vmem:[%s3472_s8 + $0x1e0] ss:$16 sps:$4 sm:$0xff]  }
  0x69   : > { %1334 = vmatpush1.bf16.msra.mxu1 %v3274_v21  ;;  %1527 = vmatpush1.bf16.msra.mxu0 %v3277_v22  ;;  %v3307_v47 = vld [vmem:[%s3472_s8 + $0x8] ss:$16 sps:$4 sm:$0xff]   ;;  %v3315_v49 = vld [vmem:[%s3472_s8 + $0x1ec] ss:$16 sps:$4 sm:$0xff]   ;;  %v3252_v50 = vld [vmem:[%s3462_s27 + $0x30] sm:$0xff]  }
  0x6a   : > { %1335 = vmatprep.subr.bf16.mxu1 %v3282_v23  ;;  %1528 = vmatprep.subr.bf16.mxu0 %v3285_v24  ;;  %v3313_v52 = vld [vmem:[%s3472_s8 + $0x1e8] ss:$16 sps:$4 sm:$0xff]   ;;  %v3318_v53 = vld [vmem:[%s3472_s8 + $0x1c4] ss:$16 sps:$4 sm:$0xff]   ;;  %v3316_v54 = vld [vmem:[%s3472_s8 + $0x1c0] ss:$16 sps:$4 sm:$0xff]  }
  0x6b   : > { %v3321_v55 = vld [vmem:[%s3472_s8 + $0x1cc] ss:$16 sps:$4 sm:$0xff]   ;;  %v3319_v56 = vld [vmem:[%s3472_s8 + $0x1c8] ss:$16 sps:$4 sm:$0xff]   ;;  %v3260_v57 = vld [vmem:[%s3462_s27 + $0x70] sm:$0xff]  }
  0x6c   : > { %v3324_v58 = vld [vmem:[%s3472_s8 + $0x1a4] ss:$16 sps:$4 sm:$0xff]   ;;  %v3327_v59 = vld [vmem:[%s3472_s8 + $0x1ac] ss:$16 sps:$4 sm:$0xff]   ;;  %v3322_v61 = vld [vmem:[%s3472_s8 + $0x1a0] ss:$16 sps:$4 sm:$0xff]  }
  0x6d   : > { %1336 = vmatpush1.bf16.msra.mxu1 %v3280_v26  ;;  %1529 = vmatpush1.bf16.msra.mxu0 %v3283_v27  ;;  %v3253_v60 = vld [vmem:[%s3462_s27 + $0x38] sm:$0xff]   ;;  %v3330_v63 = vld [vmem:[%s3472_s8 + $0x184] ss:$16 sps:$4 sm:$0xff]   ;;  %v3328_v1 = vld [vmem:[%s3472_s8 + $0x180] ss:$16 sps:$4 sm:$0xff]  }
  0x6e   : > { %1337 = vmatprep.subr.bf16.mxu1 %v3288_v28  ;;  %1530 = vmatprep.subr.bf16.mxu0 %v3291_v29  ;;  %v3325_v62 = vld [vmem:[%s3472_s8 + $0x1a8] ss:$16 sps:$4 sm:$0xff]   ;;  %v3333_v0 = vld [vmem:[%s3472_s8 + $0x18c] ss:$16 sps:$4 sm:$0xff]   ;;  %v3336_v4 = vld [vmem:[%s3472_s8 + $0x164] ss:$16 sps:$4 sm:$0xff]  }
  0x6f   : > { %2986 = vmatmul.mubr.msk.bf16.gmra.mxu0 %vm543_vm0, %v3248_v8  ;;  %2994 = vmatmul.mubr.msk.bf16.gmra.mxu1 %vm543_vm0, %v3256_v18  ;;  %v3331_v2 = vld [vmem:[%s3472_s8 + $0x188] ss:$16 sps:$4 sm:$0xff]   ;;  %v3339_v6 = vld [vmem:[%s3472_s8 + $0x16c] ss:$16 sps:$4 sm:$0xff]   ;;  %v3334_v7 = vld [vmem:[%s3472_s8 + $0x160] ss:$16 sps:$4 sm:$0xff]  }
  0x70   : > { %654 = vmatprep.mubr.bf16.mxu0 %v3399_v3  ;;  %734 = vmatprep.mubr.bf16.mxu1 %v3399_v3  ;;  %v3261_v5 = vld [vmem:[%s3462_s27 + $0x78] sm:$0xff]   ;;  %v3342_v8 = vld [vmem:[%s3472_s8 + $0x144] ss:$16 sps:$4 sm:$0xff]   ;;  %v3340_v10 = vld [vmem:[%s3472_s8 + $0x140] ss:$16 sps:$4 sm:$0xff]  }
  0x71   : > { %1338 = vmatpush1.bf16.msra.mxu1 %v3286_v31  ;;  %1531 = vmatpush1.bf16.msra.mxu0 %v3289_v32  ;;  %v3345_v9 = vld [vmem:[%s3472_s8 + $0x14c] ss:$16 sps:$4 sm:$0xff]   ;;  %v3343_v11 = vld [vmem:[%s3472_s8 + $0x148] ss:$16 sps:$4 sm:$0xff]   ;;  %v3348_v12 = vld [vmem:[%s3472_s8 + $0x124] ss:$16 sps:$4 sm:$0xff]  }
  0x72   : > { %1339 = vmatprep.subr.bf16.mxu1 %v3294_v33  ;;  %1532 = vmatprep.subr.bf16.mxu0 %v3297_v34  ;;  %v3351_v13 = vld [vmem:[%s3472_s8 + $0x12c] ss:$16 sps:$4 sm:$0xff]   ;;  %v3346_v14 = vld [vmem:[%s3472_s8 + $0x120] ss:$16 sps:$4 sm:$0xff]   ;;  %v3349_v15 = vld [vmem:[%s3472_s8 + $0x128] ss:$16 sps:$4 sm:$0xff]  }
  0x73   : > { %v3354_v16 = vld [vmem:[%s3472_s8 + $0x104] ss:$16 sps:$4 sm:$0xff]   ;;  %v3357_v17 = vld [vmem:[%s3472_s8 + $0x10c] ss:$16 sps:$4 sm:$0xff]   ;;  %v3352_v18 = vld [vmem:[%s3472_s8 + $0x100] ss:$16 sps:$4 sm:$0xff]  }
  0x74   : > { %v3355_v19 = vld [vmem:[%s3472_s8 + $0x108] ss:$16 sps:$4 sm:$0xff]  }
  0x75   : > { %1340 = vmatpush1.bf16.msra.mxu1 %v3292_v36  ;;  %1533 = vmatpush1.bf16.msra.mxu0 %v3295_v37 }
  0x76   : > { %1341 = vmatprep.subr.bf16.mxu1 %v3300_v38  ;;  %1534 = vmatprep.subr.bf16.mxu0 %v3303_v39 }
  0x77   : > { %2987 = vmatmul.mubr.msk.bf16.gmra.mxu0 %vm543_vm0, %v3249_v20  ;;  %2995 = vmatmul.mubr.msk.bf16.gmra.mxu1 %vm543_vm0, %v3257_v25 }
  0x78   : > { %664 = vmatprep.mubr.bf16.mxu0 %v3399_v3  ;;  %744 = vmatprep.mubr.bf16.mxu1 %v3399_v3 }
  0x79   : > { %1342 = vmatpush1.bf16.msra.mxu1 %v3298_v41  ;;  %1535 = vmatpush1.bf16.msra.mxu0 %v3301_v42 }
  0x7a   : > { %1343 = vmatprep.subr.bf16.mxu1 %v3306_v43  ;;  %1536 = vmatprep.subr.bf16.mxu0 %v3309_v44 }
  0x7d   : > { %1344 = vmatpush1.bf16.msra.mxu1 %v3304_v46  ;;  %1537 = vmatpush1.bf16.msra.mxu0 %v3307_v47 }
  0x7e   : > { %1345 = vmatprep.subr.bf16.mxu1 %v3312_v48  ;;  %1538 = vmatprep.subr.bf16.mxu0 %v3315_v49 }
  0x7f   : > { %2988 = vmatmul.mubr.msk.bf16.gmra.mxu0 %vm543_vm0, %v3250_v30  ;;  %2996 = vmatmul.mubr.msk.bf16.gmra.mxu1 %vm543_vm0, %v3258_v35 }
  0x80   : > { %674 = vmatprep.mubr.bf16.mxu0 %v3399_v3  ;;  %754 = vmatprep.mubr.bf16.mxu1 %v3399_v3 }
  0x81   : > { %1346 = vmatpush2.bf16.msra.mxu1 %v3310_v51  ;;  %1539 = vmatpush2.bf16.msra.mxu0 %v3313_v52 }
  0x82   : > { %1347 = vmatprep.subr.bf16.mxu1 %v3318_v53  ;;  %1540 = vmatprep.subr.bf16.mxu0 %v3321_v55 }
  0x85   : > { %1348 = vmatpush2.bf16.msra.mxu1 %v3316_v54  ;;  %1541 = vmatpush2.bf16.msra.mxu0 %v3319_v56 }
  0x86   : > { %1349 = vmatprep.subr.bf16.mxu1 %v3324_v58  ;;  %1542 = vmatprep.subr.bf16.mxu0 %v3327_v59 }
  0x87   : > { %2989 = vmatmul.mubr.msk.bf16.gmra.mxu0 %vm543_vm0, %v3251_v40  ;;  %2997 = vmatmul.mubr.msk.bf16.gmra.mxu1 %vm543_vm0, %v3259_v45 }
  0x88   : > { %684 = vmatprep.mubr.bf16.mxu0 %v3399_v3  ;;  %764 = vmatprep.mubr.bf16.mxu1 %v3399_v3 }
  0x89   : > { %1350 = vmatpush2.bf16.msra.mxu1 %v3322_v61  ;;  %1543 = vmatpush2.bf16.msra.mxu0 %v3325_v62 }
  0x8a   : > { %1351 = vmatprep.subr.bf16.mxu1 %v3330_v63  ;;  %1544 = vmatprep.subr.bf16.mxu0 %v3333_v0 }
  0x8d   : > { %1352 = vmatpush2.bf16.msra.mxu1 %v3328_v1  ;;  %1545 = vmatpush2.bf16.msra.mxu0 %v3331_v2 }
  0x8e   : > { %1353 = vmatprep.subr.bf16.mxu1 %v3336_v4  ;;  %1546 = vmatprep.subr.bf16.mxu0 %v3339_v6 }
  0x8f   : > { %2990 = vmatmul.mubr.msk.bf16.gmra.mxu0 %vm543_vm0, %v3252_v50  ;;  %2998 = vmatmul.mubr.msk.bf16.gmra.mxu1 %vm543_vm0, %v3260_v57 }
  0x90   : > { %694 = vmatprep.mubr.bf16.mxu0 %v3399_v3  ;;  %774 = vmatprep.mubr.bf16.mxu1 %v3399_v3  ;;  %v3337_v3 = vld [vmem:[%s3472_s8 + $0x168] ss:$16 sps:$4 sm:$0xff]  }
  0x91   : > { %1354 = vmatpush2.bf16.msra.mxu1 %v3334_v7  ;;  %1547 = vmatpush2.bf16.msra.mxu0 %v3337_v3 }
  0x92   : > { %1355 = vmatprep.subr.bf16.mxu1 %v3342_v8  ;;  %1548 = vmatprep.subr.bf16.mxu0 %v3345_v9 }
  0x95   : > { %1356 = vmatpush2.bf16.msra.mxu1 %v3340_v10  ;;  %1549 = vmatpush2.bf16.msra.mxu0 %v3343_v11 }
  0x96   : > { %1357 = vmatprep.subr.bf16.mxu1 %v3348_v12  ;;  %1550 = vmatprep.subr.bf16.mxu0 %v3351_v13 }
  0x97   : > { %2991 = vmatmul.mubr.msk.bf16.gmra.mxu0 %vm543_vm0, %v3253_v60  ;;  %2999 = vmatmul.mubr.msk.bf16.gmra.mxu1 %vm543_vm0, %v3261_v5 }
  0x99   : > { %1358 = vmatpush2.bf16.msra.mxu1 %v3346_v14  ;;  %1551 = vmatpush2.bf16.msra.mxu0 %v3349_v15 }
  0x9a   : > { %1359 = vmatprep.subr.bf16.mxu1 %v3354_v16  ;;  %1552 = vmatprep.subr.bf16.mxu0 %v3357_v17 }
  0x9d   : > { %1360 = vmatpush2.bf16.msra.mxu1 %v3352_v18  ;;  %1553 = vmatpush2.bf16.msra.mxu0 %v3355_v19 }
 0x11f   : > { %v626_v20 = vpop.f32.mrf.mxu0  ;;  %v3722_v24 = vpop.f32.mrf.mxu1 }
 0x121   : > { %v628_v21 = vpop.f32.mrf.mxu0  ;;  %v3724_v28 = vpop.f32.mrf.mxu1 }
 0x123   : > { %v630_v22 = vpop.f32.mrf.mxu0  ;;  %v3726_v30 = vpop.f32.mrf.mxu1 }
 0x124   : > { %v913_v26 = vpack.c.bf16 %v630_v22, %v626_v20 }
 0x125   : > { %v632_v23 = vpop.f32.mrf.mxu0  ;;  %v3728_v32 = vpop.f32.mrf.mxu1 }
 0x126   : > { %v914_v25 = vpack.c.bf16 %v632_v23, %v628_v21  ;;  %v930_v21 = vpack.c.bf16 %v3728_v32, %v3724_v28 }
 0x127   : > { %v636_v27 = vpop.f32.mrf.mxu0  ;;  %v3730_v34 = vpop.f32.mrf.mxu1 }
 0x128   : > { %1361 = vmatprep.mubr.bf16.mxu1 %v914_v25  ;;  %1554 = vmatprep.mubr.bf16.mxu0 %v914_v25 }
 0x129   : > { %v638_v29 = vpop.f32.mrf.mxu0  ;;  %1362 = vmatmul.mubr.bf16.vlgmr.msra.gmra.mxu1 %v913_v26  ;;  %1555 = vmatmul.mubr.bf16.vlgmr.msra.gmra.mxu0 %v913_v26  ;;  %v3732_v38 = vpop.f32.mrf.mxu1 }
 0x12b   : > { %v640_v31 = vpop.f32.mrf.mxu0  ;;  %v3734_v40 = vpop.f32.mrf.mxu1 }
 0x12c   : > { %v915_v36 = vpack.c.bf16 %v640_v31, %v636_v27  ;;  %v929_v27 = vpack.c.bf16 %v3726_v30, %v3722_v24  ;;  %v931_v32 = vpack.c.bf16 %v3734_v40, %v3730_v34 }
 0x12d   : > { %v642_v33 = vpop.f32.mrf.mxu0  ;;  %v3736_v42 = vpop.f32.mrf.mxu1 }
 0x12e   : > { %v916_v35 = vpack.c.bf16 %v642_v33, %v638_v29  ;;  %v932_v26 = vpack.c.bf16 %v3736_v42, %v3732_v38 }
 0x12f   : > { %v646_v37 = vpop.f32.mrf.mxu0  ;;  %v3738_v47 = vpop.f32.mrf.mxu1 }
 0x130   : > { %1371 = vmatprep.mubr.bf16.mxu1 %v916_v35  ;;  %1564 = vmatprep.mubr.bf16.mxu0 %v916_v35 }
 0x131   : > { %v648_v39 = vpop.f32.mrf.mxu0  ;;  %1372 = vmatmul.mubr.bf16.gmra.mxu1 %v915_v36  ;;  %1565 = vmatmul.mubr.bf16.gmra.mxu0 %v915_v36  ;;  %v3740_v50 = vpop.f32.mrf.mxu1 }
 0x133   : > { %v650_v41 = vpop.f32.mrf.mxu0  ;;  %v3742_v55 = vpop.f32.mrf.mxu1 }
 0x134   : > { %v917_v45 = vpack.c.bf16 %v650_v41, %v646_v37  ;;  %v933_v24 = vpack.c.bf16 %v3742_v55, %v3738_v47 }
 0x135   : > { %v652_v43 = vpop.f32.mrf.mxu0  ;;  %v732_v58 = vpop.f32.mrf.mxu1 }
 0x136   : > { %v918_v44 = vpack.c.bf16 %v652_v43, %v648_v39  ;;  %v934_v31 = vpack.c.bf16 %v732_v58, %v3740_v50 }
 0x137   : > { %v656_v46 = vpop.f32.mrf.mxu0  ;;  %v3744_v63 = vpop.f32.mrf.mxu1 }
 0x138   : > { %1381 = vmatprep.mubr.bf16.mxu1 %v918_v44  ;;  %1574 = vmatprep.mubr.bf16.mxu0 %v918_v44 }
 0x139   : > { %v658_v48 = vpop.f32.mrf.mxu0  ;;  %1382 = vmatmul.mubr.bf16.gmra.mxu1 %v917_v45  ;;  %1575 = vmatmul.mubr.bf16.gmra.mxu0 %v917_v45  ;;  %v738_v2 = vpop.f32.mrf.mxu1 }
 0x13b   : > { %v660_v49 = vpop.f32.mrf.mxu0  ;;  %v740_v3 = vpop.f32.mrf.mxu1 }
 0x13c   : > { %v919_v53 = vpack.c.bf16 %v660_v49, %v656_v46  ;;  %v935_v39 = vpack.c.bf16 %v740_v3, %v3744_v63  ;;  %v791_v63 = vld [vmem:[#allocation2 + $0x330] sm:$0xff] }
 0x13d   : > { %v662_v51 = vpop.f32.mrf.mxu0  ;;  %v742_v10 = vpop.f32.mrf.mxu1 }
 0x13e   : > { %v920_v52 = vpack.c.bf16 %v662_v51, %v658_v48  ;;  %v936_v36 = vpack.c.bf16 %v742_v10, %v738_v2  ;;  %v793_v10 = vld [vmem:[#allocation2 + $0x380] sm:$0xff] }
 0x13f   : > { %v666_v54 = vpop.f32.mrf.mxu0  ;;  %v746_v15 = vpop.f32.mrf.mxu1 }
 0x140   : > { %1391 = vmatprep.mubr.bf16.mxu1 %v920_v52  ;;  %1584 = vmatprep.mubr.bf16.mxu0 %v920_v52  ;;  %v785_v52 = vld [vmem:[#allocation2 + $0x2b0] sm:$0xff] }
 0x141   : > { %v668_v56 = vpop.f32.mrf.mxu0  ;;  %1392 = vmatmul.mubr.bf16.gmra.mxu1 %v919_v53  ;;  %1585 = vmatmul.mubr.bf16.gmra.mxu0 %v919_v53  ;;  %v748_v18 = vpop.f32.mrf.mxu1  ;;  %v787_v53 = vld [vmem:[#allocation2 + $0xd8] sm:$0xff] }
 0x143   : > { %v670_v57 = vpop.f32.mrf.mxu0  ;;  %v750_v23 = vpop.f32.mrf.mxu1 }
 0x144   : > { %v921_v61 = vpack.c.bf16 %v670_v57, %v666_v54  ;;  %v937_v42 = vpack.c.bf16 %v750_v23, %v746_v15  ;;  %v788_v57 = vld [vmem:[#allocation2 + $0x18] sm:$0xff]  ;;  %v799_v23 = vld [vmem:[#allocation2 + $0x108] sm:$0xff] }
 0x145   : > { %v672_v59 = vpop.f32.mrf.mxu0  ;;  %v752_v25 = vpop.f32.mrf.mxu1 }
 0x146   : > { %v922_v60 = vpack.c.bf16 %v672_v59, %v668_v56  ;;  %v938_v38 = vpack.c.bf16 %v752_v25, %v748_v18  ;;  %v786_v56 = vld [vmem:[#allocation2 + $0x3b0] sm:$0xff] }
 0x147   : > { %v676_v62 = vpop.f32.mrf.mxu0  ;;  %v756_v29 = vpop.f32.mrf.mxu1 }
 0x148   : > { %1401 = vmatprep.mubr.bf16.mxu1 %v922_v60  ;;  %1594 = vmatprep.mubr.bf16.mxu0 %v922_v60 }
 0x149   : > { %v678_v0 = vpop.f32.mrf.mxu0  ;;  %1402 = vmatmul.mubr.bf16.gmra.mxu1 %v921_v61  ;;  %1595 = vmatmul.mubr.bf16.gmra.mxu0 %v921_v61  ;;  %v758_v28 = vpop.f32.mrf.mxu1 }
 0x14b   : > { %v680_v1 = vpop.f32.mrf.mxu0  ;;  %v760_v33 = vpop.f32.mrf.mxu1 }
 0x14c   : > { %v923_v6 = vpack.c.bf16 %v680_v1, %v676_v62  ;;  %v939_v46 = vpack.c.bf16 %v760_v33, %v756_v29  ;;  %v789_v62 = vld [vmem:[#allocation2 + $0x50] sm:$0xff] }
 0x14d   : > { %v682_v4 = vpop.f32.mrf.mxu0  ;;  %v762_v35 = vpop.f32.mrf.mxu1 }
 0x14e   : > { %v924_v5 = vpack.c.bf16 %v682_v4, %v678_v0  ;;  %v940_v41 = vpack.c.bf16 %v762_v35, %v758_v28  ;;  %v798_v28 = vld [vmem:[#allocation2 + $0x150] sm:$0xff] }
 0x14f   : > { %v686_v7 = vpop.f32.mrf.mxu0  ;;  %v766_v30 = vpop.f32.mrf.mxu1 }
 0x150   : > { %1411 = vmatprep.mubr.bf16.mxu1 %v924_v5  ;;  %1604 = vmatprep.mubr.bf16.mxu0 %v924_v5  ;;  %v790_v5 = vld [vmem:[#allocation2 + $0x368] sm:$0xff] }
 0x151   : > { %v688_v8 = vpop.f32.mrf.mxu0  ;;  %1412 = vmatmul.mubr.bf16.gmra.mxu1 %v923_v6  ;;  %1605 = vmatmul.mubr.bf16.gmra.mxu0 %v923_v6  ;;  %v768_v37 = vpop.f32.mrf.mxu1  ;;  %v792_v6 = vld [vmem:[#allocation2 + $0x48] sm:$0xff] }
 0x153   : > { %v690_v9 = vpop.f32.mrf.mxu0  ;;  %v770_v34 = vpop.f32.mrf.mxu1 }
 0x154   : > { %v925_v13 = vpack.c.bf16 %v690_v9, %v686_v7  ;;  %v941_v50 = vpack.c.bf16 %v770_v34, %v766_v30  ;;  %v803_v30 = vld [vmem:[#allocation2 + $0x338] sm:$0xff] }
 0x155   : > { %v692_v11 = vpop.f32.mrf.mxu0  ;;  %v772_v40 = vpop.f32.mrf.mxu1 }
 0x156   : > { %v926_v12 = vpack.c.bf16 %v692_v11, %v688_v8  ;;  %v942_v45 = vpack.c.bf16 %v772_v40, %v768_v37  ;;  %v795_v11 = vld [vmem:[#allocation2 + $0x118] sm:$0xff]  ;;  %v802_v40 = vld [vmem:[#allocation2 + $0x388] sm:$0xff] }
 0x157   : > { %v696_v14 = vpop.f32.mrf.mxu0  ;;  %v776_v43 = vpop.f32.mrf.mxu1 }
 0x158   : > { %1421 = vmatprep.mubr.bf16.mxu1 %v926_v12  ;;  %1614 = vmatprep.mubr.bf16.mxu0 %v926_v12 }
 0x159   : > { %v698_v16 = vpop.f32.mrf.mxu0  ;;  %1422 = vmatmul.mubr.bf16.gmra.mxu1 %v925_v13  ;;  %1615 = vmatmul.mubr.bf16.gmra.mxu0 %v925_v13  ;;  %v778_v44 = vpop.f32.mrf.mxu1 }
 0x15b   : > { %v700_v17 = vpop.f32.mrf.mxu0  ;;  %v780_v47 = vpop.f32.mrf.mxu1 }
 0x15c   : > { %v927_v22 = vpack.c.bf16 %v700_v17, %v696_v14  ;;  %v943_v51 = vpack.c.bf16 %v780_v47, %v776_v43  ;;  %v796_v17 = vld [vmem:[#allocation2 + $0x98] sm:$0xff] }
 0x15d   : > { %v702_v19 = vpop.f32.mrf.mxu0  ;;  %v782_v48 = vpop.f32.mrf.mxu1  ;;  %v807_v47 = vld [vmem:[#allocation2 + $0x1b8] sm:$0xff] }
 0x15e   : > { %v928_v20 = vpack.c.bf16 %v702_v19, %v698_v16  ;;  %v944_v49 = vpack.c.bf16 %v782_v48, %v778_v44  ;;  %v794_v16 = vld [vmem:[#allocation2 + $0x110] sm:$0xff] }
 0x160   : > { %1431 = vmatprep.mubr.bf16.mxu1 %v928_v20  ;;  %1624 = vmatprep.mubr.bf16.mxu0 %v928_v20 }
 0x161   : > { %1432 = vmatmul.mubr.bf16.gmra.mxu1 %v927_v22  ;;  %1625 = vmatmul.mubr.bf16.gmra.mxu0 %v927_v22  ;;  %v797_v22 = vld [vmem:[#allocation2 + $0x320] sm:$0xff] }
 0x162   : > { %1441 = vmatprep.mubr.bf16.mxu1 %v930_v21  ;;  %1634 = vmatprep.mubr.bf16.mxu0 %v930_v21 }
 0x169   : > { %1442 = vmatmul.mubr.bf16.gmra.mxu1 %v929_v27  ;;  %1635 = vmatmul.mubr.bf16.gmra.mxu0 %v929_v27 }
 0x16a   : > { %1451 = vmatprep.mubr.bf16.mxu1 %v932_v26  ;;  %1644 = vmatprep.mubr.bf16.mxu0 %v932_v26 }
 0x171   : > { %1452 = vmatmul.mubr.bf16.gmra.mxu1 %v931_v32  ;;  %1645 = vmatmul.mubr.bf16.gmra.mxu0 %v931_v32 }
 0x172   : > { %1461 = vmatprep.mubr.bf16.mxu1 %v934_v31  ;;  %1654 = vmatprep.mubr.bf16.mxu0 %v934_v31  ;;  %v800_v31 = vld [vmem:[#allocation2 + $0x60] sm:$0xff] }
 0x179   : > { %1462 = vmatmul.mubr.bf16.gmra.mxu1 %v933_v24  ;;  %1655 = vmatmul.mubr.bf16.gmra.mxu0 %v933_v24  ;;  %v801_v24 = vld [vmem:[#allocation2 + $0x2e0] sm:$0xff] }
 0x17a   : > { %1471 = vmatprep.mubr.bf16.mxu1 %v936_v36  ;;  %1664 = vmatprep.mubr.bf16.mxu0 %v936_v36 }
 0x181   : > { %1472 = vmatmul.mubr.bf16.gmra.mxu1 %v935_v39  ;;  %1665 = vmatmul.mubr.bf16.gmra.mxu0 %v935_v39 }
 0x182   : > { %1481 = vmatprep.mubr.bf16.mxu1 %v938_v38  ;;  %1674 = vmatprep.mubr.bf16.mxu0 %v938_v38 }
 0x189   : > { %1482 = vmatmul.mubr.bf16.gmra.mxu1 %v937_v42  ;;  %1675 = vmatmul.mubr.bf16.gmra.mxu0 %v937_v42 }
 0x18a   : > { %1491 = vmatprep.mubr.bf16.mxu1 %v940_v41  ;;  %1684 = vmatprep.mubr.bf16.mxu0 %v940_v41  ;;  %v804_v41 = vld [vmem:[#allocation2 + $0x340] sm:$0xff] }
 0x191   : > { %1492 = vmatmul.mubr.bf16.gmra.mxu1 %v939_v46  ;;  %1685 = vmatmul.mubr.bf16.gmra.mxu0 %v939_v46  ;;  %v805_v46 = vld [vmem:[#allocation2 + $0x80] sm:$0xff] }
 0x192   : > { %1501 = vmatprep.mubr.bf16.mxu1 %v942_v45  ;;  %1694 = vmatprep.mubr.bf16.mxu0 %v942_v45 }
 0x199   : > { %1502 = vmatmul.mubr.bf16.gmra.mxu1 %v941_v50  ;;  %1695 = vmatmul.mubr.bf16.gmra.mxu0 %v941_v50 }
 0x19a   : > { %1511 = vmatprep.mubr.bf16.mxu1 %v944_v49  ;;  %1704 = vmatprep.mubr.bf16.mxu0 %v944_v49 }
 0x1a1   : > { %1512 = vmatmul.mubr.bf16.gmra.mxu1 %v943_v51  ;;  %1705 = vmatmul.mubr.bf16.gmra.mxu0 %v943_v51 }
 0x1e9   : > { %v1363_v54 = vpop.f32.mrf.mxu1  ;;  %v1556_v55 = vpop.f32.mrf.mxu0 }
 0x1ea   : > { %v1715_v58 = vadd.f32 %v1363_v54, %v785_v52  ;;  %v1717_v59 = vadd.f32 %v1556_v55, %v787_v53  ;;  %v806_v52 = vld [vmem:[#allocation2 + $0x1a8] sm:$0xff] }
 0x1eb   : > { %v1365_v60 = vpop.f32.mrf.mxu1  ;;  %v1558_v61 = vpop.f32.mrf.mxu0  ;;  %v808_v53 = vld [vmem:[#allocation2 + $0x168] sm:$0xff] }
 0x1ec   : > { %1843 = vst [vmem:[#allocation2 + $0x2b0] sm:$0xff] %v1715_v58  ;;  %1845 = vst [vmem:[#allocation2 + $0xd8] sm:$0xff] %v1717_v59  ;;  %v1716_v0 = vadd.f32 %v1365_v60, %v786_v56  ;;  %v1718_v1 = vadd.f32 %v1558_v61, %v788_v57  ;;  %v809_v58 = vld [vmem:[#allocation2 + $0x3e8] sm:$0xff]  ;;  %v811_v59 = vld [vmem:[#allocation2 + $0x290] sm:$0xff] }
 0x1ed   : > { %v1367_v2 = vpop.f32.mrf.mxu1  ;;  %v1560_v4 = vpop.f32.mrf.mxu0 }
 0x1ee   : > { %1844 = vst [vmem:[#allocation2 + $0x3b0] sm:$0xff] %v1716_v0  ;;  %1846 = vst [vmem:[#allocation2 + $0x18] sm:$0xff] %v1718_v1  ;;  %v1719_v7 = vadd.f32 %v1367_v2, %v789_v62  ;;  %v1721_v3 = vadd.f32 %v1560_v4, %v791_v63  ;;  %v810_v0 = vld [vmem:[#allocation2 + $0x2f8] sm:$0xff]  ;;  %v812_v1 = vld [vmem:[#allocation2 + $0x28] sm:$0xff] }
 0x1ef   : > { %v1369_v8 = vpop.f32.mrf.mxu1  ;;  %v1562_v9 = vpop.f32.mrf.mxu0 }
 0x1f0   : > { %1847 = vst [vmem:[#allocation2 + $0x50] sm:$0xff] %v1719_v7  ;;  %1849 = vst [vmem:[#allocation2 + $0x330] sm:$0xff] %v1721_v3  ;;  %v1720_v12 = vadd.f32 %v1369_v8, %v790_v5  ;;  %v1722_v13 = vadd.f32 %v1562_v9, %v792_v6  ;;  %v813_v7 = vld [vmem:[#allocation2 + $0x138] sm:$0xff]  ;;  %v815_v3 = vld [vmem:[#allocation2 + $0x1c0] sm:$0xff] }
 0x1f1   : > { %v1373_v14 = vpop.f32.mrf.mxu1  ;;  %v1566_v15 = vpop.f32.mrf.mxu0 }
 0x1f2   : > { %1848 = vst [vmem:[#allocation2 + $0x368] sm:$0xff] %v1720_v12  ;;  %1850 = vst [vmem:[#allocation2 + $0x48] sm:$0xff] %v1722_v13  ;;  %v1723_v18 = vadd.f32 %v1373_v14, %v793_v10  ;;  %v1725_v19 = vadd.f32 %v1566_v15, %v795_v11  ;;  %v814_v12 = vld [vmem:[#allocation2 + $0xc0] sm:$0xff] }
 0x1f3   : > { %v1375_v20 = vpop.f32.mrf.mxu1  ;;  %v1568_v21 = vpop.f32.mrf.mxu0  ;;  %v816_v13 = vld [vmem:[#allocation2 + $0x280] sm:$0xff] }
 0x1f4   : > { %1851 = vst [vmem:[#allocation2 + $0x380] sm:$0xff] %v1723_v18  ;;  %1853 = vst [vmem:[#allocation2 + $0x118] sm:$0xff] %v1725_v19  ;;  %v1724_v25 = vadd.f32 %v1375_v20, %v794_v16  ;;  %v1726_v26 = vadd.f32 %v1568_v21, %v796_v17  ;;  %v817_v18 = vld [vmem:[#allocation2 + $0x100] sm:$0xff]  ;;  %v819_v19 = vld [vmem:[#allocation2 + $0x158] sm:$0xff] }
 0x1f5   : > { %v1377_v27 = vpop.f32.mrf.mxu1  ;;  %v1570_v29 = vpop.f32.mrf.mxu0 }
 0x1f6   : > { %1852 = vst [vmem:[#allocation2 + $0x110] sm:$0xff] %v1724_v25  ;;  %1854 = vst [vmem:[#allocation2 + $0x98] sm:$0xff] %v1726_v26  ;;  %v1727_v32 = vadd.f32 %v1377_v27, %v797_v22  ;;  %v1729_v33 = vadd.f32 %v1570_v29, %v799_v23  ;;  %v818_v25 = vld [vmem:[#allocation2 + $0x3c0] sm:$0xff] }
 0x1f7   : > { %v1379_v35 = vpop.f32.mrf.mxu1  ;;  %v1572_v36 = vpop.f32.mrf.mxu0  ;;  %v820_v26 = vld [vmem:[#allocation2 + $0x3e0] sm:$0xff] }
 0x1f8   : > { %1855 = vst [vmem:[#allocation2 + $0x320] sm:$0xff] %v1727_v32  ;;  %1857 = vst [vmem:[#allocation2 + $0x108] sm:$0xff] %v1729_v33  ;;  %v1728_v37 = vadd.f32 %v1379_v35, %v798_v28  ;;  %v1730_v38 = vadd.f32 %v1572_v36, %v800_v31  ;;  %v821_v32 = vld [vmem:[#allocation2 + $0x218] sm:$0xff]  ;;  %v823_v33 = vld [vmem:[#allocation2 + $0x8] sm:$0xff] }
 0x1f9   : > { %v1383_v39 = vpop.f32.mrf.mxu1  ;;  %v1576_v34 = vpop.f32.mrf.mxu0 }
 0x1fa   : > { %1856 = vst [vmem:[#allocation2 + $0x150] sm:$0xff] %v1728_v37  ;;  %1858 = vst [vmem:[#allocation2 + $0x60] sm:$0xff] %v1730_v38  ;;  %v1731_v42 = vadd.f32 %v1383_v39, %v801_v24  ;;  %v1733_v43 = vadd.f32 %v1576_v34, %v803_v30  ;;  %v822_v37 = vld [vmem:[#allocation2 + $0x3f8] sm:$0xff]  ;;  %v824_v38 = vld [vmem:[#allocation2 + $0x128] sm:$0xff] }
 0x1fb   : > { %v1385_v44 = vpop.f32.mrf.mxu1  ;;  %v1578_v45 = vpop.f32.mrf.mxu0 }
 0x1fc   : > { %1859 = vst [vmem:[#allocation2 + $0x2e0] sm:$0xff] %v1731_v42  ;;  %1861 = vst [vmem:[#allocation2 + $0x338] sm:$0xff] %v1733_v43  ;;  %v1732_v48 = vadd.f32 %v1385_v44, %v802_v40  ;;  %v1734_v49 = vadd.f32 %v1578_v45, %v804_v41  ;;  %v825_v42 = vld [vmem:[#allocation2 + $0x2a0] sm:$0xff] }
 0x1fd   : > { %v1387_v50 = vpop.f32.mrf.mxu1  ;;  %v1580_v51 = vpop.f32.mrf.mxu0  ;;  %v827_v43 = vld [vmem:[#allocation2 + $0xa0] sm:$0xff] }
 0x1fe   : > { %1860 = vst [vmem:[#allocation2 + $0x388] sm:$0xff] %v1732_v48  ;;  %1862 = vst [vmem:[#allocation2 + $0x340] sm:$0xff] %v1734_v49  ;;  %v1735_v54 = vadd.f32 %v1387_v50, %v805_v46  ;;  %v1737_v55 = vadd.f32 %v1580_v51, %v807_v47  ;;  %v826_v48 = vld [vmem:[#allocation2 + $0x3f0] sm:$0xff]  ;;  %v828_v49 = vld [vmem:[#allocation2 + $0x2c0] sm:$0xff] }
 0x1ff   : > { %v1389_v56 = vpop.f32.mrf.mxu1  ;;  %v1582_v57 = vpop.f32.mrf.mxu0 }
 0x200   : > { %1863 = vst [vmem:[#allocation2 + $0x80] sm:$0xff] %v1735_v54  ;;  %1865 = vst [vmem:[#allocation2 + $0x1b8] sm:$0xff] %v1737_v55  ;;  %v1736_v60 = vadd.f32 %v1389_v56, %v806_v52  ;;  %v1738_v61 = vadd.f32 %v1582_v57, %v808_v53  ;;  %v829_v54 = vld [vmem:[#allocation2 + $0xb0] sm:$0xff] }
 0x201   : > { %v1393_v62 = vpop.f32.mrf.mxu1  ;;  %v1586_v63 = vpop.f32.mrf.mxu0  ;;  %v831_v55 = vld [vmem:[#allocation2 + $0x1f0] sm:$0xff] }
 0x202   : > { %1864 = vst [vmem:[#allocation2 + $0x1a8] sm:$0xff] %v1736_v60  ;;  %1866 = vst [vmem:[#allocation2 + $0x168] sm:$0xff] %v1738_v61  ;;  %v1739_v2 = vadd.f32 %v1393_v62, %v809_v58  ;;  %v1741_v4 = vadd.f32 %v1586_v63, %v811_v59  ;;  %v830_v60 = vld [vmem:[#allocation2 + $0x1e0] sm:$0xff]  ;;  %v832_v61 = vld [vmem:[#allocation2 + $0x10] sm:$0xff] }
 0x203   : > { %v1395_v5 = vpop.f32.mrf.mxu1  ;;  %v1588_v6 = vpop.f32.mrf.mxu0 }
 0x204   : > { %1867 = vst [vmem:[#allocation2 + $0x3e8] sm:$0xff] %v1739_v2  ;;  %1869 = vst [vmem:[#allocation2 + $0x290] sm:$0xff] %v1741_v4  ;;  %v1740_v8 = vadd.f32 %v1395_v5, %v810_v0  ;;  %v1742_v9 = vadd.f32 %v1588_v6, %v812_v1  ;;  %v833_v2 = vld [vmem:[#allocation2 + $0x230] sm:$0xff] }
 0x205   : > { %v1397_v10 = vpop.f32.mrf.mxu1  ;;  %v1590_v11 = vpop.f32.mrf.mxu0  ;;  %v835_v4 = vld [vmem:[#allocation2 + $0x90] sm:$0xff] }
 0x206   : > { %1868 = vst [vmem:[#allocation2 + $0x2f8] sm:$0xff] %v1740_v8  ;;  %1870 = vst [vmem:[#allocation2 + $0x28] sm:$0xff] %v1742_v9  ;;  %v1743_v14 = vadd.f32 %v1397_v10, %v813_v7  ;;  %v1745_v15 = vadd.f32 %v1590_v11, %v815_v3  ;;  %v834_v8 = vld [vmem:[#allocation2 + $0x240] sm:$0xff] }
 0x207   : > { %v1399_v16 = vpop.f32.mrf.mxu1  ;;  %v1592_v17 = vpop.f32.mrf.mxu0  ;;  %v836_v9 = vld [vmem:[#allocation2 + $0x3a0] sm:$0xff] }
 0x208   : > { %1871 = vst [vmem:[#allocation2 + $0x138] sm:$0xff] %v1743_v14  ;;  %1873 = vst [vmem:[#allocation2 + $0x1c0] sm:$0xff] %v1745_v15  ;;  %v1744_v20 = vadd.f32 %v1399_v16, %v814_v12  ;;  %v1746_v21 = vadd.f32 %v1592_v17, %v816_v13  ;;  %v837_v14 = vld [vmem:[#allocation2 + $0x208] sm:$0xff] }
 0x209   : > { %v1403_v22 = vpop.f32.mrf.mxu1  ;;  %v1596_v23 = vpop.f32.mrf.mxu0  ;;  %v839_v15 = vld [vmem:[#allocation2 + $0x88] sm:$0xff] }
 0x20a   : > { %1872 = vst [vmem:[#allocation2 + $0xc0] sm:$0xff] %v1744_v20  ;;  %1874 = vst [vmem:[#allocation2 + $0x280] sm:$0xff] %v1746_v21  ;;  %v1747_v27 = vadd.f32 %v1403_v22, %v817_v18  ;;  %v1749_v29 = vadd.f32 %v1596_v23, %v819_v19  ;;  %v838_v20 = vld [vmem:[#allocation2 + $0xd0] sm:$0xff] }
 0x20b   : > { %v1405_v28 = vpop.f32.mrf.mxu1  ;;  %v1598_v31 = vpop.f32.mrf.mxu0  ;;  %v840_v21 = vld [vmem:[#allocation2 + $0x2f0] sm:$0xff] }
 0x20c   : > { %1875 = vst [vmem:[#allocation2 + $0x100] sm:$0xff] %v1747_v27  ;;  %1877 = vst [vmem:[#allocation2 + $0x158] sm:$0xff] %v1749_v29  ;;  %v1748_v35 = vadd.f32 %v1405_v28, %v818_v25  ;;  %v1750_v36 = vadd.f32 %v1598_v31, %v820_v26  ;;  %v841_v27 = vld [vmem:[#allocation2 + $0x358] sm:$0xff]  ;;  %v843_v29 = vld [vmem:[#allocation2 + $0x350] sm:$0xff] }
 0x20d   : > { %v1407_v24 = vpop.f32.mrf.mxu1  ;;  %v1600_v30 = vpop.f32.mrf.mxu0 }
 0x20e   : > { %1876 = vst [vmem:[#allocation2 + $0x3c0] sm:$0xff] %v1748_v35  ;;  %1878 = vst [vmem:[#allocation2 + $0x3e0] sm:$0xff] %v1750_v36  ;;  %v1751_v39 = vadd.f32 %v1407_v24, %v821_v32  ;;  %v1753_v34 = vadd.f32 %v1600_v30, %v823_v33  ;;  %v842_v35 = vld [vmem:[#allocation2 + $0x268] sm:$0xff] }
 0x20f   : > { %v1409_v40 = vpop.f32.mrf.mxu1  ;;  %v1602_v41 = vpop.f32.mrf.mxu0  ;;  %v844_v36 = vld [vmem:[#allocation2 + $0x188] sm:$0xff] }
 0x210   : > { %1879 = vst [vmem:[#allocation2 + $0x218] sm:$0xff] %v1751_v39  ;;  %1881 = vst [vmem:[#allocation2 + $0x8] sm:$0xff] %v1753_v34  ;;  %v1752_v44 = vadd.f32 %v1409_v40, %v822_v37  ;;  %v1754_v45 = vadd.f32 %v1602_v41, %v824_v38  ;;  %v845_v39 = vld [vmem:[#allocation2 + $0x1d8] sm:$0xff]  ;;  %v847_v34 = vld [vmem:[#allocation2 + $0x140] sm:$0xff] }
 0x211   : > { %v1413_v46 = vpop.f32.mrf.mxu1  ;;  %v1606_v47 = vpop.f32.mrf.mxu0 }
 0x212   : > { %1880 = vst [vmem:[#allocation2 + $0x3f8] sm:$0xff] %v1752_v44  ;;  %1882 = vst [vmem:[#allocation2 + $0x128] sm:$0xff] %v1754_v45  ;;  %v1755_v50 = vadd.f32 %v1413_v46, %v825_v42  ;;  %v1757_v51 = vadd.f32 %v1606_v47, %v827_v43  ;;  %v846_v44 = vld [vmem:[#allocation2 + $0x30] sm:$0xff]  ;;  %v848_v45 = vld [vmem:[#allocation2 + $0x2a8] sm:$0xff] }
 0x213   : > { %v1415_v52 = vpop.f32.mrf.mxu1  ;;  %v1608_v53 = vpop.f32.mrf.mxu0 }
 0x214   : > { %1883 = vst [vmem:[#allocation2 + $0x2a0] sm:$0xff] %v1755_v50  ;;  %1885 = vst [vmem:[#allocation2 + $0xa0] sm:$0xff] %v1757_v51  ;;  %v1756_v56 = vadd.f32 %v1415_v52, %v826_v48  ;;  %v1758_v57 = vadd.f32 %v1608_v53, %v828_v49  ;;  %v849_v50 = vld [vmem:[#allocation2 + $0x130] sm:$0xff]  ;;  %v851_v51 = vld [vmem:[#allocation2 + $0x318] sm:$0xff] }
 0x215   : > { %v1417_v58 = vpop.f32.mrf.mxu1  ;;  %v1610_v59 = vpop.f32.mrf.mxu0 }
 0x216   : > { %1884 = vst [vmem:[#allocation2 + $0x3f0] sm:$0xff] %v1756_v56  ;;  %1886 = vst [vmem:[#allocation2 + $0x2c0] sm:$0xff] %v1758_v57  ;;  %v1759_v62 = vadd.f32 %v1417_v58, %v829_v54  ;;  %v1761_v63 = vadd.f32 %v1610_v59, %v831_v55  ;;  %v850_v56 = vld [vmem:[#allocation2 + $0x200] sm:$0xff] }
 0x217   : > { %v1419_v0 = vpop.f32.mrf.mxu1  ;;  %v1612_v1 = vpop.f32.mrf.mxu0  ;;  %v852_v57 = vld [vmem:[#allocation2 + $0x220] sm:$0xff] }
 0x218   : > { %1887 = vst [vmem:[#allocation2 + $0xb0] sm:$0xff] %v1759_v62  ;;  %1889 = vst [vmem:[#allocation2 + $0x1f0] sm:$0xff] %v1761_v63  ;;  %v1760_v5 = vadd.f32 %v1419_v0, %v830_v60  ;;  %v1762_v6 = vadd.f32 %v1612_v1, %v832_v61  ;;  %v853_v62 = vld [vmem:[#allocation2 + $0x70] sm:$0xff]  ;;  %v855_v63 = vld [vmem:[#allocation2 + $0xe0] sm:$0xff] }
 0x219   : > { %v1423_v7 = vpop.f32.mrf.mxu1  ;;  %v1616_v3 = vpop.f32.mrf.mxu0 }
 0x21a   : > { %1888 = vst [vmem:[#allocation2 + $0x1e0] sm:$0xff] %v1760_v5  ;;  %1890 = vst [vmem:[#allocation2 + $0x10] sm:$0xff] %v1762_v6  ;;  %v1763_v10 = vadd.f32 %v1423_v7, %v833_v2  ;;  %v1765_v11 = vadd.f32 %v1616_v3, %v835_v4  ;;  %v854_v5 = vld [vmem:[#allocation2 + $0x300] sm:$0xff]  ;;  %v856_v6 = vld [vmem:[#allocation2 + $0x178] sm:$0xff] }
 0x21b   : > { %v1425_v12 = vpop.f32.mrf.mxu1  ;;  %v1618_v13 = vpop.f32.mrf.mxu0 }
 0x21c   : > { %1891 = vst [vmem:[#allocation2 + $0x230] sm:$0xff] %v1763_v10  ;;  %1893 = vst [vmem:[#allocation2 + $0x90] sm:$0xff] %v1765_v11  ;;  %v1764_v16 = vadd.f32 %v1425_v12, %v834_v8  ;;  %v1766_v17 = vadd.f32 %v1618_v13, %v836_v9  ;;  %v857_v10 = vld [vmem:[#allocation2 + $0x328] sm:$0xff]  ;;  %v859_v11 = vld [vmem:[#allocation2 + $0x3b8] sm:$0xff] }
 0x21d   : > { %v1427_v18 = vpop.f32.mrf.mxu1  ;;  %v1620_v19 = vpop.f32.mrf.mxu0 }
 0x21e   : > { %1892 = vst [vmem:[#allocation2 + $0x240] sm:$0xff] %v1764_v16  ;;  %1894 = vst [vmem:[#allocation2 + $0x3a0] sm:$0xff] %v1766_v17  ;;  %v1767_v22 = vadd.f32 %v1427_v18, %v837_v14  ;;  %v1769_v23 = vadd.f32 %v1620_v19, %v839_v15  ;;  %v858_v16 = vld [vmem:[#allocation2 + $0x260] sm:$0xff]  ;;  %v860_v17 = vld [vmem:[#allocation2 + $0x2b8] sm:$0xff] }
 0x21f   : > { %v1429_v25 = vpop.f32.mrf.mxu1  ;;  %v1622_v26 = vpop.f32.mrf.mxu0 }
 0x220   : > { %1895 = vst [vmem:[#allocation2 + $0x208] sm:$0xff] %v1767_v22  ;;  %1897 = vst [vmem:[#allocation2 + $0x88] sm:$0xff] %v1769_v23  ;;  %v1768_v28 = vadd.f32 %v1429_v25, %v838_v20  ;;  %v1770_v31 = vadd.f32 %v1622_v26, %v840_v21  ;;  %v861_v22 = vld [vmem:[#allocation2 + $0x248] sm:$0xff]  ;;  %v863_v23 = vld [vmem:[#allocation2 + $0x20] sm:$0xff] }
 0x221   : > { %v1433_v32 = vpop.f32.mrf.mxu1  ;;  %v1626_v33 = vpop.f32.mrf.mxu0 }
 0x222   : > { %1896 = vst [vmem:[#allocation2 + $0xd0] sm:$0xff] %v1768_v28  ;;  %1898 = vst [vmem:[#allocation2 + $0x2f0] sm:$0xff] %v1770_v31  ;;  %v1771_v24 = vadd.f32 %v1433_v32, %v841_v27  ;;  %v1773_v30 = vadd.f32 %v1626_v33, %v843_v29  ;;  %v862_v28 = vld [vmem:[#allocation2 + $0x40] sm:$0xff]  ;;  %v864_v31 = vld [vmem:[#allocation2 + $0xe8] sm:$0xff] }
 0x223   : > { %v1435_v37 = vpop.f32.mrf.mxu1  ;;  %v1628_v38 = vpop.f32.mrf.mxu0 }
 0x224   : > { %1899 = vst [vmem:[#allocation2 + $0x358] sm:$0xff] %v1771_v24  ;;  %1901 = vst [vmem:[#allocation2 + $0x350] sm:$0xff] %v1773_v30  ;;  %v1772_v40 = vadd.f32 %v1435_v37, %v842_v35  ;;  %v1774_v41 = vadd.f32 %v1628_v38, %v844_v36  ;;  %v865_v24 = vld [vmem:[#allocation2 + $0x288] sm:$0xff] }
 0x225   : > { %v1437_v42 = vpop.f32.mrf.mxu1  ;;  %v1630_v43 = vpop.f32.mrf.mxu0  ;;  %v867_v30 = vld [vmem:[#allocation2 + $0x3c8] sm:$0xff] }
 0x226   : > { %1900 = vst [vmem:[#allocation2 + $0x268] sm:$0xff] %v1772_v40  ;;  %1902 = vst [vmem:[#allocation2 + $0x188] sm:$0xff] %v1774_v41  ;;  %v1775_v46 = vadd.f32 %v1437_v42, %v845_v39  ;;  %v1777_v47 = vadd.f32 %v1630_v43, %v847_v34  ;;  %v866_v40 = vld [vmem:[#allocation2 + $0x3a8] sm:$0xff]  ;;  %v868_v41 = vld [vmem:[#allocation2 + $0x160] sm:$0xff] }
 0x227   : > { %v1439_v48 = vpop.f32.mrf.mxu1  ;;  %v1632_v49 = vpop.f32.mrf.mxu0 }
 0x228   : > { %1903 = vst [vmem:[#allocation2 + $0x1d8] sm:$0xff] %v1775_v46  ;;  %1905 = vst [vmem:[#allocation2 + $0x140] sm:$0xff] %v1777_v47  ;;  %v1776_v52 = vadd.f32 %v1439_v48, %v846_v44  ;;  %v1778_v53 = vadd.f32 %v1632_v49, %v848_v45  ;;  %v869_v46 = vld [vmem:[#allocation2 + $0x2c8] sm:$0xff]  ;;  %v871_v47 = vld [vmem:[#allocation2 + $0x3d8] sm:$0xff] }
 0x229   : > { %v1443_v54 = vpop.f32.mrf.mxu1  ;;  %v1636_v55 = vpop.f32.mrf.mxu0 }
 0x22a   : > { %1904 = vst [vmem:[#allocation2 + $0x30] sm:$0xff] %v1776_v52  ;;  %1906 = vst [vmem:[#allocation2 + $0x2a8] sm:$0xff] %v1778_v53  ;;  %v1779_v58 = vadd.f32 %v1443_v54, %v849_v50  ;;  %v1781_v59 = vadd.f32 %v1636_v55, %v851_v51  ;;  %v870_v52 = vld [vmem:[#allocation2 + $0x210] sm:$0xff]  ;;  %v872_v53 = vld [vmem:[#allocation2 + $0x1e8] sm:$0xff] }
 0x22b   : > { %v1445_v60 = vpop.f32.mrf.mxu1  ;;  %v1638_v61 = vpop.f32.mrf.mxu0 }
 0x22c   : > { %1907 = vst [vmem:[#allocation2 + $0x130] sm:$0xff] %v1779_v58  ;;  %1909 = vst [vmem:[#allocation2 + $0x318] sm:$0xff] %v1781_v59  ;;  %v1780_v0 = vadd.f32 %v1445_v60, %v850_v56  ;;  %v1782_v1 = vadd.f32 %v1638_v61, %v852_v57  ;;  %v873_v58 = vld [vmem:[#allocation2 + $0x1b0] sm:$0xff] }
 0x22d   : > { %v1447_v2 = vpop.f32.mrf.mxu1  ;;  %v1640_v4 = vpop.f32.mrf.mxu0  ;;  %v875_v59 = vld [vmem:[#allocation2 + $0x2d0] sm:$0xff] }
 0x22e   : > { %1908 = vst [vmem:[#allocation2 + $0x200] sm:$0xff] %v1780_v0  ;;  %1910 = vst [vmem:[#allocation2 + $0x220] sm:$0xff] %v1782_v1  ;;  %v1783_v7 = vadd.f32 %v1447_v2, %v853_v62  ;;  %v1785_v3 = vadd.f32 %v1640_v4, %v855_v63  ;;  %v874_v0 = vld [vmem:[#allocation2 + $0x1c8] sm:$0xff]  ;;  %v876_v1 = vld [vmem:[#allocation2 + $0x1d0] sm:$0xff] }
 0x22f   : > { %v1449_v8 = vpop.f32.mrf.mxu1  ;;  %v1642_v9 = vpop.f32.mrf.mxu0 }
 0x230   : > { %1911 = vst [vmem:[#allocation2 + $0x70] sm:$0xff] %v1783_v7  ;;  %1913 = vst [vmem:[#allocation2 + $0xe0] sm:$0xff] %v1785_v3  ;;  %v1784_v12 = vadd.f32 %v1449_v8, %v854_v5  ;;  %v1786_v13 = vadd.f32 %v1642_v9, %v856_v6  ;;  %v877_v7 = vld [vmem:[#allocation2 + $0x58] sm:$0xff] }
 0x231   : > { %v1453_v14 = vpop.f32.mrf.mxu1  ;;  %v1646_v15 = vpop.f32.mrf.mxu0  ;;  %v879_v3 = vld [vmem:[#allocation2 + $0x198] sm:$0xff] }
 0x232   : > { %1912 = vst [vmem:[#allocation2 + $0x300] sm:$0xff] %v1784_v12  ;;  %1914 = vst [vmem:[#allocation2 + $0x178] sm:$0xff] %v1786_v13  ;;  %v1787_v18 = vadd.f32 %v1453_v14, %v857_v10  ;;  %v1789_v19 = vadd.f32 %v1646_v15, %v859_v11  ;;  %v878_v12 = vld [vmem:[#allocation2 + $0x120] sm:$0xff]  ;;  %v880_v13 = vld [vmem:[#allocation2 + $0x2e8] sm:$0xff] }
 0x233   : > { %v1455_v20 = vpop.f32.mrf.mxu1  ;;  %v1648_v21 = vpop.f32.mrf.mxu0 }
 0x234   : > { %1915 = vst [vmem:[#allocation2 + $0x328] sm:$0xff] %v1787_v18  ;;  %1917 = vst [vmem:[#allocation2 + $0x3b8] sm:$0xff] %v1789_v19  ;;  %v1788_v25 = vadd.f32 %v1455_v20, %v858_v16  ;;  %v1790_v26 = vadd.f32 %v1648_v21, %v860_v17  ;;  %v881_v18 = vld [vmem:[#allocation2 + $0x1f8] sm:$0xff] }
 0x235   : > { %v1457_v27 = vpop.f32.mrf.mxu1  ;;  %v1650_v29 = vpop.f32.mrf.mxu0  ;;  %v883_v19 = vld [vmem:[#allocation2 + $0x398] sm:$0xff] }
 0x236   : > { %1916 = vst [vmem:[#allocation2 + $0x260] sm:$0xff] %v1788_v25  ;;  %1918 = vst [vmem:[#allocation2 + $0x2b8] sm:$0xff] %v1790_v26  ;;  %v1791_v32 = vadd.f32 %v1457_v27, %v861_v22  ;;  %v1793_v33 = vadd.f32 %v1650_v29, %v863_v23  ;;  %v882_v25 = vld [vmem:[#allocation2 + $0x238] sm:$0xff]  ;;  %v884_v26 = vld [vmem:[#allocation2 + $0x390] sm:$0xff] }
 0x237   : > { %v1459_v35 = vpop.f32.mrf.mxu1  ;;  %v1652_v36 = vpop.f32.mrf.mxu0 }
 0x238   : > { %1919 = vst [vmem:[#allocation2 + $0x248] sm:$0xff] %v1791_v32  ;;  %1921 = vst [vmem:[#allocation2 + $0x20] sm:$0xff] %v1793_v33  ;;  %v1792_v37 = vadd.f32 %v1459_v35, %v862_v28  ;;  %v1794_v38 = vadd.f32 %v1652_v36, %v864_v31  ;;  %v885_v32 = vld [vmem:[#allocation2 + $0x1a0] sm:$0xff]  ;;  %v887_v33 = vld [vmem:[#allocation2 + $0x258] sm:$0xff] }
 0x239   : > { %v1463_v39 = vpop.f32.mrf.mxu1  ;;  %v1656_v34 = vpop.f32.mrf.mxu0 }
 0x23a   : > { %1920 = vst [vmem:[#allocation2 + $0x40] sm:$0xff] %v1792_v37  ;;  %1922 = vst [vmem:[#allocation2 + $0xe8] sm:$0xff] %v1794_v38  ;;  %v1795_v42 = vadd.f32 %v1463_v39, %v865_v24  ;;  %v1797_v43 = vadd.f32 %v1656_v34, %v867_v30  ;;  %v886_v37 = vld [vmem:[#allocation2 + $0xa8] sm:$0xff]  ;;  %v888_v38 = vld [vmem:[#allocation2 + $0x2d8] sm:$0xff] }
 0x23b   : > { %v1465_v44 = vpop.f32.mrf.mxu1  ;;  %v1658_v45 = vpop.f32.mrf.mxu0 }
 0x23c   : > { %1923 = vst [vmem:[#allocation2 + $0x288] sm:$0xff] %v1795_v42  ;;  %1925 = vst [vmem:[#allocation2 + $0x3c8] sm:$0xff] %v1797_v43  ;;  %v1796_v48 = vadd.f32 %v1465_v44, %v866_v40  ;;  %v1798_v49 = vadd.f32 %v1658_v45, %v868_v41  ;;  %v889_v42 = vld [vmem:[#allocation2 + $0xf0] sm:$0xff] }
 0x23d   : > { %v1467_v50 = vpop.f32.mrf.mxu1  ;;  %v1660_v51 = vpop.f32.mrf.mxu0  ;;  %v891_v43 = vld [vmem:[#allocation2 + $0x170] sm:$0xff] }
 0x23e   : > { %1924 = vst [vmem:[#allocation2 + $0x3a8] sm:$0xff] %v1796_v48  ;;  %1926 = vst [vmem:[#allocation2 + $0x160] sm:$0xff] %v1798_v49  ;;  %v1799_v54 = vadd.f32 %v1467_v50, %v869_v46  ;;  %v1801_v55 = vadd.f32 %v1660_v51, %v871_v47  ;;  %v890_v48 = vld [vmem:[#allocation2 + $0x180] sm:$0xff]  ;;  %v892_v49 = vld [vmem:[#allocation2 + $0x3d0] sm:$0xff] }
 0x23f   : > { %v1469_v56 = vpop.f32.mrf.mxu1  ;;  %v1662_v57 = vpop.f32.mrf.mxu0 }
 0x240   : > { %1927 = vst [vmem:[#allocation2 + $0x2c8] sm:$0xff] %v1799_v54  ;;  %1929 = vst [vmem:[#allocation2 + $0x3d8] sm:$0xff] %v1801_v55  ;;  %v1800_v60 = vadd.f32 %v1469_v56, %v870_v52  ;;  %v1802_v61 = vadd.f32 %v1662_v57, %v872_v53  ;;  %v893_v54 = vld [vmem:[#allocation2 + $0x250] sm:$0xff]  ;;  %v895_v55 = vld [vmem:[#allocation2 + $0xb8] sm:$0xff] }
 0x241   : > { %v1473_v62 = vpop.f32.mrf.mxu1  ;;  %v1666_v63 = vpop.f32.mrf.mxu0 }
 0x242   : > { %1928 = vst [vmem:[#allocation2 + $0x210] sm:$0xff] %v1800_v60  ;;  %1930 = vst [vmem:[#allocation2 + $0x1e8] sm:$0xff] %v1802_v61  ;;  %v1803_v2 = vadd.f32 %v1473_v62, %v873_v58  ;;  %v1805_v4 = vadd.f32 %v1666_v63, %v875_v59  ;;  %v894_v60 = vld [vmem:[#allocation2 + $0x378] sm:$0xff] }
 0x243   : > { %v1475_v5 = vpop.f32.mrf.mxu1  ;;  %v1668_v6 = vpop.f32.mrf.mxu0  ;;  %v896_v61 = vld [vmem:[#allocation2 + $0x38] sm:$0xff] }
 0x244   : > { %1931 = vst [vmem:[#allocation2 + $0x1b0] sm:$0xff] %v1803_v2  ;;  %1933 = vst [vmem:[#allocation2 + $0x2d0] sm:$0xff] %v1805_v4  ;;  %v1804_v8 = vadd.f32 %v1475_v5, %v874_v0  ;;  %v1806_v9 = vadd.f32 %v1668_v6, %v876_v1  ;;  %v897_v2 = vld [vmem:[#allocation2 + $0x78] sm:$0xff]  ;;  %v899_v4 = vld [vmem:[#allocation2 + $0x370] sm:$0xff] }
 0x245   : > { %v1477_v10 = vpop.f32.mrf.mxu1  ;;  %v1670_v11 = vpop.f32.mrf.mxu0 }
 0x246   : > { %1932 = vst [vmem:[#allocation2 + $0x1c8] sm:$0xff] %v1804_v8  ;;  %1934 = vst [vmem:[#allocation2 + $0x1d0] sm:$0xff] %v1806_v9  ;;  %v1807_v14 = vadd.f32 %v1477_v10, %v877_v7  ;;  %v1809_v15 = vadd.f32 %v1670_v11, %v879_v3  ;;  %v898_v8 = vld [vmem:[#allocation2 + $0x308] sm:$0xff] }
 0x247   : > { %v1479_v16 = vpop.f32.mrf.mxu1  ;;  %v1672_v17 = vpop.f32.mrf.mxu0  ;;  %v900_v9 = vld [vmem:[#allocation2 + $0xc8] sm:$0xff] }
 0x248   : > { %1935 = vst [vmem:[#allocation2 + $0x58] sm:$0xff] %v1807_v14  ;;  %1937 = vst [vmem:[#allocation2 + $0x198] sm:$0xff] %v1809_v15  ;;  %v1808_v20 = vadd.f32 %v1479_v16, %v878_v12  ;;  %v1810_v21 = vadd.f32 %v1672_v17, %v880_v13  ;;  %v901_v14 = vld [vmem:[#allocation2 + $0x278] sm:$0xff]  ;;  %v903_v15 = vld [vmem:[#allocation2 + $0x228] sm:$0xff] }
 0x249   : > { %v1483_v22 = vpop.f32.mrf.mxu1  ;;  %v1676_v23 = vpop.f32.mrf.mxu0 }
 0x24a   : > { %1936 = vst [vmem:[#allocation2 + $0x120] sm:$0xff] %v1808_v20  ;;  %1938 = vst [vmem:[#allocation2 + $0x2e8] sm:$0xff] %v1810_v21  ;;  %v1811_v27 = vadd.f32 %v1483_v22, %v881_v18  ;;  %v1813_v29 = vadd.f32 %v1676_v23, %v883_v19  ;;  %v902_v20 = vld [vmem:[#allocation2 + $0x360] sm:$0xff]  ;;  %v904_v21 = vld [vmem:[#allocation2 + $0x348] sm:$0xff] }
 0x24b   : > { %v1485_v28 = vpop.f32.mrf.mxu1  ;;  %v1678_v31 = vpop.f32.mrf.mxu0 }
 0x24c   : > { %1939 = vst [vmem:[#allocation2 + $0x1f8] sm:$0xff] %v1811_v27  ;;  %1941 = vst [vmem:[#allocation2 + $0x398] sm:$0xff] %v1813_v29  ;;  %v1812_v35 = vadd.f32 %v1485_v28, %v882_v25  ;;  %v1814_v36 = vadd.f32 %v1678_v31, %v884_v26  ;;  %v905_v27 = vld [vmem:[#allocation2 + $0x148] sm:$0xff] }
 0x24d   : > { %v1487_v24 = vpop.f32.mrf.mxu1  ;;  %v1680_v30 = vpop.f32.mrf.mxu0  ;;  %v907_v29 = vld [vmem:[#allocation2 + $0x68] sm:$0xff] }
 0x24e   : > { %1940 = vst [vmem:[#allocation2 + $0x238] sm:$0xff] %v1812_v35  ;;  %1942 = vst [vmem:[#allocation2 + $0x390] sm:$0xff] %v1814_v36  ;;  %v1815_v39 = vadd.f32 %v1487_v24, %v885_v32  ;;  %v1817_v34 = vadd.f32 %v1680_v30, %v887_v33  ;;  %v906_v35 = vld [vmem:[#allocation2 + $0xf8] sm:$0xff]  ;;  %v908_v36 = vld [vmem:[#allocation2] sm:$0xff] }
 0x24f   : > { %v1489_v40 = vpop.f32.mrf.mxu1  ;;  %v1682_v41 = vpop.f32.mrf.mxu0 }
 0x250   : > { %1943 = vst [vmem:[#allocation2 + $0x1a0] sm:$0xff] %v1815_v39  ;;  %1945 = vst [vmem:[#allocation2 + $0x258] sm:$0xff] %v1817_v34  ;;  %v1816_v44 = vadd.f32 %v1489_v40, %v886_v37  ;;  %v1818_v45 = vadd.f32 %v1682_v41, %v888_v38  ;;  %v909_v39 = vld [vmem:[#allocation2 + $0x298] sm:$0xff]  ;;  %v911_v34 = vld [vmem:[#allocation2 + $0x310] sm:$0xff] }
 0x251   : > { %v1493_v46 = vpop.f32.mrf.mxu1  ;;  %v1686_v47 = vpop.f32.mrf.mxu0 }
 0x252   : > { %1944 = vst [vmem:[#allocation2 + $0xa8] sm:$0xff] %v1816_v44  ;;  %1946 = vst [vmem:[#allocation2 + $0x2d8] sm:$0xff] %v1818_v45  ;;  %v1819_v50 = vadd.f32 %v1493_v46, %v889_v42  ;;  %v1821_v51 = vadd.f32 %v1686_v47, %v891_v43  ;;  %v910_v44 = vld [vmem:[#allocation2 + $0x270] sm:$0xff] }
 0x253   : > { %v1495_v52 = vpop.f32.mrf.mxu1  ;;  %v1688_v53 = vpop.f32.mrf.mxu0  ;;  %v912_v45 = vld [vmem:[#allocation2 + $0x190] sm:$0xff] }
 0x254   : > { %1947 = vst [vmem:[#allocation2 + $0xf0] sm:$0xff] %v1819_v50  ;;  %1949 = vst [vmem:[#allocation2 + $0x170] sm:$0xff] %v1821_v51  ;;  %v1820_v56 = vadd.f32 %v1495_v52, %v890_v48  ;;  %v1822_v57 = vadd.f32 %v1688_v53, %v892_v49 }
 0x255   : > { %v1497_v58 = vpop.f32.mrf.mxu1  ;;  %v1690_v59 = vpop.f32.mrf.mxu0 }
 0x256   : > { %1948 = vst [vmem:[#allocation2 + $0x180] sm:$0xff] %v1820_v56  ;;  %1950 = vst [vmem:[#allocation2 + $0x3d0] sm:$0xff] %v1822_v57  ;;  %v1823_v62 = vadd.f32 %v1497_v58, %v893_v54  ;;  %v1825_v63 = vadd.f32 %v1690_v59, %v895_v55 }
 0x257   : > { %v1499_v0 = vpop.f32.mrf.mxu1  ;;  %v1692_v1 = vpop.f32.mrf.mxu0 }
 0x258   : > { %1951 = vst [vmem:[#allocation2 + $0x250] sm:$0xff] %v1823_v62  ;;  %1953 = vst [vmem:[#allocation2 + $0xb8] sm:$0xff] %v1825_v63  ;;  %v1824_v5 = vadd.f32 %v1499_v0, %v894_v60  ;;  %v1826_v6 = vadd.f32 %v1692_v1, %v896_v61 }
 0x259   : > { %v1503_v7 = vpop.f32.mrf.mxu1  ;;  %v1696_v3 = vpop.f32.mrf.mxu0 }
 0x25a   : > { %1952 = vst [vmem:[#allocation2 + $0x378] sm:$0xff] %v1824_v5  ;;  %1954 = vst [vmem:[#allocation2 + $0x38] sm:$0xff] %v1826_v6  ;;  %v1827_v10 = vadd.f32 %v1503_v7, %v897_v2  ;;  %v1829_v11 = vadd.f32 %v1696_v3, %v899_v4 }
 0x25b   : > { %v1505_v12 = vpop.f32.mrf.mxu1  ;;  %v1698_v13 = vpop.f32.mrf.mxu0 }
 0x25c   : > { %1955 = vst [vmem:[#allocation2 + $0x78] sm:$0xff] %v1827_v10  ;;  %1957 = vst [vmem:[#allocation2 + $0x370] sm:$0xff] %v1829_v11  ;;  %v1828_v16 = vadd.f32 %v1505_v12, %v898_v8  ;;  %v1830_v17 = vadd.f32 %v1698_v13, %v900_v9 }
 0x25d   : > { %v1507_v18 = vpop.f32.mrf.mxu1  ;;  %v1700_v19 = vpop.f32.mrf.mxu0 }
 0x25e   : > { %1956 = vst [vmem:[#allocation2 + $0x308] sm:$0xff] %v1828_v16  ;;  %1958 = vst [vmem:[#allocation2 + $0xc8] sm:$0xff] %v1830_v17  ;;  %v1831_v22 = vadd.f32 %v1507_v18, %v901_v14  ;;  %v1833_v23 = vadd.f32 %v1700_v19, %v903_v15 }
 0x25f   : > { %v1509_v25 = vpop.f32.mrf.mxu1  ;;  %v1702_v26 = vpop.f32.mrf.mxu0 }
 0x260   : > { %1959 = vst [vmem:[#allocation2 + $0x278] sm:$0xff] %v1831_v22  ;;  %1961 = vst [vmem:[#allocation2 + $0x228] sm:$0xff] %v1833_v23  ;;  %v1832_v28 = vadd.f32 %v1509_v25, %v902_v20  ;;  %v1834_v31 = vadd.f32 %v1702_v26, %v904_v21 }
 0x261   : > { %v1513_v32 = vpop.f32.mrf.mxu1  ;;  %v1706_v33 = vpop.f32.mrf.mxu0 }
 0x262   : > { %1960 = vst [vmem:[#allocation2 + $0x360] sm:$0xff] %v1832_v28  ;;  %1962 = vst [vmem:[#allocation2 + $0x348] sm:$0xff] %v1834_v31  ;;  %v1835_v24 = vadd.f32 %v1513_v32, %v905_v27  ;;  %v1837_v30 = vadd.f32 %v1706_v33, %v907_v29 }
 0x263   : > { %v1515_v37 = vpop.f32.mrf.mxu1  ;;  %v1708_v38 = vpop.f32.mrf.mxu0 }
 0x264   : > { %1963 = vst [vmem:[#allocation2 + $0x148] sm:$0xff] %v1835_v24  ;;  %1965 = vst [vmem:[#allocation2 + $0x68] sm:$0xff] %v1837_v30  ;;  %v1836_v40 = vadd.f32 %v1515_v37, %v906_v35  ;;  %v1838_v41 = vadd.f32 %v1708_v38, %v908_v36 }
 0x265   : > { %v1517_v42 = vpop.f32.mrf.mxu1  ;;  %v1710_v43 = vpop.f32.mrf.mxu0 }
 0x266   : > { %1964 = vst [vmem:[#allocation2 + $0xf8] sm:$0xff] %v1836_v40  ;;  %1966 = vst [vmem:[#allocation2] sm:$0xff] %v1838_v41  ;;  %v1839_v46 = vadd.f32 %v1517_v42, %v909_v39  ;;  %v1841_v47 = vadd.f32 %v1710_v43, %v911_v34  ;;  %1974 = sbr.rel (%p3064_p8) target bundleno = 711 (0x2c7), region = 44 }
 0x267   : > { %v1519_v48 = vpop.f32.mrf.mxu1  ;;  %v1712_v49 = vpop.f32.mrf.mxu0 }
 0x268   : > { %1967 = vst [vmem:[#allocation2 + $0x298] sm:$0xff] %v1839_v46  ;;  %1969 = vst [vmem:[#allocation2 + $0x310] sm:$0xff] %v1841_v47  ;;  %v1840_v50 = vadd.f32 %v1519_v48, %v910_v44  ;;  %v1842_v51 = vadd.f32 %v1712_v49, %v912_v45 }
 0x26a   : > { %1968 = vst [vmem:[#allocation2 + $0x270] sm:$0xff] %v1840_v50  ;;  %1970 = vst [vmem:[#allocation2 + $0x190] sm:$0xff] %v1842_v51 }
 0x26b   : > { %v2105_v52 = vlaneseq  ;;  %v2103_v54 = vld [vmem:[%s3980_s3] sm:$0xf]  ;;  %v1975_v55 = vld [vmem:[#allocation2 + $0x2b0] sm:$0xff]  ;;  %v1977_v61 = vld [vmem:[#allocation2 + $0xd8] sm:$0xff] }
 0x26c   : > { %v1976_v56 = vld [vmem:[#allocation2 + $0x3b0] sm:$0xff]  ;;  %v1978_v62 = vld [vmem:[#allocation2 + $0x18] sm:$0xff]  ;;  %v1980_v5 = vld [vmem:[#allocation2 + $0x368] sm:$0xff] }
 0x26d   : > { %v2106_v53 = vshrl.u32 %v2105_v52, 7  ;;  %v1979_v63 = vld [vmem:[#allocation2 + $0x50] sm:$0xff]  ;;  %v1982_v7 = vld [vmem:[#allocation2 + $0x48] sm:$0xff]  ;;  %v1983_v15 = vld [vmem:[#allocation2 + $0x380] sm:$0xff] }
 0x26e   : > { %v1981_v6 = vld [vmem:[#allocation2 + $0x330] sm:$0xff]  ;;  %v1985_v21 = vld [vmem:[#allocation2 + $0x118] sm:$0xff]  ;;  %v1987_v29 = vld [vmem:[#allocation2 + $0x320] sm:$0xff] }
 0x26f   : > { %v2107_v57 = vsub.s32 0, %v2106_v53  ;;  %v2111_v58 = vsub.s32 1, %v2106_v53  ;;  %v2115_v59 = vsub.s32 2, %v2106_v53  ;;  %v2119_v60 = vsub.s32 3, %v2106_v53  ;;  %v1984_v16 = vld [vmem:[#allocation2 + $0x110] sm:$0xff]  ;;  %v1986_v22 = vld [vmem:[#allocation2 + $0x98] sm:$0xff] }
 0x270   : > { %v1988_v28 = vld [vmem:[#allocation2 + $0x150] sm:$0xff]  ;;  %v1989_v36 = vld [vmem:[#allocation2 + $0x108] sm:$0xff]  ;;  %v1990_v24 = vld [vmem:[#allocation2 + $0x60] sm:$0xff] }
 0x271   : > { %v3762_v0 = vrot.slane %v2103_v54, %v2107_v57  ;;  %v3764_v1 = vrot.slane %v2103_v54, %v2111_v58  ;;  %v3766_v2 = vrot.slane %v2103_v54, %v2115_v59  ;;  %v3768_v4 = vrot.slane %v2103_v54, %v2119_v60  ;;  %v1991_v34 = vld [vmem:[#allocation2 + $0x2e0] sm:$0xff]  ;;  %v1992_v44 = vld [vmem:[#allocation2 + $0x388] sm:$0xff]  ;;  %v1993_v49 = vld [vmem:[#allocation2 + $0x338] sm:$0xff] }
 0x272   : > { %v1994_v50 = vld [vmem:[#allocation2 + $0x340] sm:$0xff] }
 0x273   : > { %v2125_v3 = vadd.f32 %v3762_v0, %v1975_v55  ;;  %v2126_v8 = vadd.f32 %v3764_v1, %v1976_v56  ;;  %v2127_v9 = vadd.f32 %v3766_v2, %v1977_v61  ;;  %v2128_v10 = vadd.f32 %v3768_v4, %v1978_v62  ;;  %v1995_v55 = vld [vmem:[#allocation2 + $0x80] sm:$0xff]  ;;  %v1996_v56 = vld [vmem:[#allocation2 + $0x1a8] sm:$0xff]  ;;  %v1997_v61 = vld [vmem:[#allocation2 + $0x1b8] sm:$0xff] }
 0x274   : > { %v2129_v11 = vadd.f32 %v3762_v0, %v1979_v63  ;;  %v2130_v12 = vadd.f32 %v3764_v1, %v1980_v5  ;;  %v2131_v13 = vadd.f32 %v3766_v2, %v1981_v6  ;;  %v2132_v14 = vadd.f32 %v3768_v4, %v1982_v7  ;;  %v1998_v62 = vld [vmem:[#allocation2 + $0x168] sm:$0xff] }
 0x275   : > { %v2253_v17 = vmax.f32 %v2125_v3, 0.0  ;;  %v2254_v18 = vmax.f32 %v2126_v8, 0.0  ;;  %v2255_v19 = vmax.f32 %v2127_v9, 0.0  ;;  %v2256_v20 = vmax.f32 %v2128_v10, 0.0  ;;  %v1999_v3 = vld [vmem:[#allocation2 + $0x3e8] sm:$0xff] }
 0x276   : > { %v2257_v23 = vmax.f32 %v2129_v11, 0.0  ;;  %v2258_v25 = vmax.f32 %v2130_v12, 0.0  ;;  %v2259_v26 = vmax.f32 %v2131_v13, 0.0  ;;  %v2260_v27 = vmax.f32 %v2132_v14, 0.0  ;;  %v2000_v12 = vld [vmem:[#allocation2 + $0x2f8] sm:$0xff] }
 0x277   : > { %v3135_v31 = vpack.c.bf16 %v2254_v18, %v2253_v17  ;;  %v3136_v32 = vpack.c.bf16 %v2256_v20, %v2255_v19  ;;  %v2133_v33 = vadd.f32 %v3762_v0, %v1983_v15  ;;  %v2134_v35 = vadd.f32 %v3764_v1, %v1984_v16  ;;  %v2001_v17 = vld [vmem:[#allocation2 + $0x290] sm:$0xff]  ;;  %v2002_v18 = vld [vmem:[#allocation2 + $0x28] sm:$0xff] }
 0x278   : > { %v3137_v30 = vpack.c.bf16 %v2258_v25, %v2257_v23  ;;  %v3138_v37 = vpack.c.bf16 %v2260_v27, %v2259_v26  ;;  %v2135_v38 = vadd.f32 %v3766_v2, %v1985_v21  ;;  %v2136_v39 = vadd.f32 %v3768_v4, %v1986_v22  ;;  %v2003_v23 = vld [vmem:[#allocation2 + $0x138] sm:$0xff]  ;;  %v2004_v25 = vld [vmem:[#allocation2 + $0xc0] sm:$0xff] }
 0x279   : > { %2765 = vst [vmem:[%s3477_s12] sm:$0xff] %v3135_v31  ;;  %2766 = vst [vmem:[%s3477_s12 + $0x8] sm:$0xff] %v3136_v32  ;;  %v2261_v40 = vmax.f32 %v2133_v33, 0.0  ;;  %v2262_v41 = vmax.f32 %v2134_v35, 0.0  ;;  %v2137_v42 = vadd.f32 %v3762_v0, %v1987_v29  ;;  %v2138_v43 = vadd.f32 %v3764_v1, %v1988_v28  ;;  %v2005_v31 = vld [vmem:[#allocation2 + $0x1c0] sm:$0xff] }
 0x27a   : > { %2767 = vst [vmem:[%s3477_s12 + $0x10] sm:$0xff] %v3137_v30  ;;  %2768 = vst [vmem:[%s3477_s12 + $0x18] sm:$0xff] %v3138_v37  ;;  %v2263_v45 = vmax.f32 %v2135_v38, 0.0  ;;  %v2264_v46 = vmax.f32 %v2136_v39, 0.0  ;;  %v2139_v47 = vadd.f32 %v3766_v2, %v1989_v36  ;;  %v2140_v48 = vadd.f32 %v3768_v4, %v1990_v24  ;;  %v2006_v32 = vld [vmem:[#allocation2 + $0x280] sm:$0xff] }
 0x27b   : > { %v3139_v51 = vpack.c.bf16 %v2262_v41, %v2261_v40  ;;  %v2265_v52 = vmax.f32 %v2137_v42, 0.0  ;;  %v2266_v53 = vmax.f32 %v2138_v43, 0.0  ;;  %v2141_v54 = vadd.f32 %v3762_v0, %v1991_v34  ;;  %v2007_v30 = vld [vmem:[#allocation2 + $0x100] sm:$0xff] }
 0x27c   : > { %v3140_v57 = vpack.c.bf16 %v2264_v46, %v2263_v45  ;;  %v2267_v58 = vmax.f32 %v2139_v47, 0.0  ;;  %v2268_v59 = vmax.f32 %v2140_v48, 0.0  ;;  %v2142_v60 = vadd.f32 %v3764_v1, %v1992_v44  ;;  %v2008_v40 = vld [vmem:[#allocation2 + $0x3c0] sm:$0xff]  ;;  %v2009_v45 = vld [vmem:[#allocation2 + $0x158] sm:$0xff] }
 0x27d   : > { %2769 = vst [vmem:[%s3477_s12 + $0x20] sm:$0xff] %v3139_v51  ;;  %v3141_v63 = vpack.c.bf16 %v2266_v53, %v2265_v52  ;;  %v2269_v5 = vmax.f32 %v2141_v54, 0.0  ;;  %v2143_v6 = vadd.f32 %v3766_v2, %v1993_v49  ;;  %v2144_v7 = vadd.f32 %v3768_v4, %v1994_v50  ;;  %v2010_v46 = vld [vmem:[#allocation2 + $0x3e0] sm:$0xff]  ;;  %v2011_v51 = vld [vmem:[#allocation2 + $0x218] sm:$0xff] }
 0x27e   : > { %2770 = vst [vmem:[%s3477_s12 + $0x28] sm:$0xff] %v3140_v57  ;;  %v3142_v8 = vpack.c.bf16 %v2268_v59, %v2267_v58  ;;  %v2270_v9 = vmax.f32 %v2142_v60, 0.0  ;;  %v2145_v10 = vadd.f32 %v3762_v0, %v1995_v55  ;;  %v2146_v11 = vadd.f32 %v3764_v1, %v1996_v56  ;;  %v2012_v52 = vld [vmem:[#allocation2 + $0x3f8] sm:$0xff]  ;;  %v2013_v57 = vld [vmem:[#allocation2 + $0x8] sm:$0xff] }
 0x27f   : > { %2771 = vst [vmem:[%s3477_s12 + $0x30] sm:$0xff] %v3141_v63  ;;  %v2271_v13 = vmax.f32 %v2143_v6, 0.0  ;;  %v2272_v14 = vmax.f32 %v2144_v7, 0.0  ;;  %v2147_v15 = vadd.f32 %v3766_v2, %v1997_v61  ;;  %v2148_v16 = vadd.f32 %v3768_v4, %v1998_v62  ;;  %v2014_v58 = vld [vmem:[#allocation2 + $0x128] sm:$0xff]  ;;  %v2015_v63 = vld [vmem:[#allocation2 + $0x2a0] sm:$0xff] }
 0x280   : > { %2772 = vst [vmem:[%s3477_s12 + $0x38] sm:$0xff] %v3142_v8  ;;  %v3143_v19 = vpack.c.bf16 %v2270_v9, %v2269_v5  ;;  %v2273_v20 = vmax.f32 %v2145_v10, 0.0  ;;  %v2274_v21 = vmax.f32 %v2146_v11, 0.0  ;;  %v2149_v22 = vadd.f32 %v3762_v0, %v1999_v3  ;;  %v2016_v8 = vld [vmem:[#allocation2 + $0x3f0] sm:$0xff] }
 0x281   : > { %v3144_v26 = vpack.c.bf16 %v2272_v14, %v2271_v13  ;;  %v2275_v27 = vmax.f32 %v2147_v15, 0.0  ;;  %v2276_v29 = vmax.f32 %v2148_v16, 0.0  ;;  %v2150_v28 = vadd.f32 %v3764_v1, %v2000_v12  ;;  %v2017_v13 = vld [vmem:[#allocation2 + $0xa0] sm:$0xff] }
 0x282   : > { %2773 = vst [vmem:[%s3477_s12 + $0x40] sm:$0xff] %v3143_v19  ;;  %v3145_v33 = vpack.c.bf16 %v2274_v21, %v2273_v20  ;;  %v2277_v35 = vmax.f32 %v2149_v22, 0.0  ;;  %v2151_v36 = vadd.f32 %v3766_v2, %v2001_v17  ;;  %v2152_v24 = vadd.f32 %v3768_v4, %v2002_v18  ;;  %v2018_v14 = vld [vmem:[#allocation2 + $0x2c0] sm:$0xff]  ;;  %v2019_v19 = vld [vmem:[#allocation2 + $0xb0] sm:$0xff] }
 0x283   : > { %2774 = vst [vmem:[%s3477_s12 + $0x48] sm:$0xff] %v3144_v26  ;;  %v3146_v37 = vpack.c.bf16 %v2276_v29, %v2275_v27  ;;  %v2278_v38 = vmax.f32 %v2150_v28, 0.0  ;;  %v2153_v39 = vadd.f32 %v3762_v0, %v2003_v23  ;;  %v2154_v34 = vadd.f32 %v3764_v1, %v2004_v25  ;;  %v2020_v20 = vld [vmem:[#allocation2 + $0x1e0] sm:$0xff]  ;;  %v2021_v26 = vld [vmem:[#allocation2 + $0x1f0] sm:$0xff] }
 0x284   : > { %2775 = vst [vmem:[%s3477_s12 + $0x50] sm:$0xff] %v3145_v33  ;;  %v2279_v41 = vmax.f32 %v2151_v36, 0.0  ;;  %v2280_v42 = vmax.f32 %v2152_v24, 0.0  ;;  %v2155_v43 = vadd.f32 %v3766_v2, %v2005_v31  ;;  %v2156_v44 = vadd.f32 %v3768_v4, %v2006_v32  ;;  %v2022_v27 = vld [vmem:[#allocation2 + $0x10] sm:$0xff] }
 0x285   : > { %2776 = vst [vmem:[%s3477_s12 + $0x58] sm:$0xff] %v3146_v37  ;;  %v3147_v47 = vpack.c.bf16 %v2278_v38, %v2277_v35  ;;  %v2281_v48 = vmax.f32 %v2153_v39, 0.0  ;;  %v2282_v49 = vmax.f32 %v2154_v34, 0.0  ;;  %v2157_v50 = vadd.f32 %v3762_v0, %v2007_v30  ;;  %v2023_v33 = vld [vmem:[#allocation2 + $0x230] sm:$0xff]  ;;  %v2024_v37 = vld [vmem:[#allocation2 + $0x240] sm:$0xff] }
 0x286   : > { %v3148_v53 = vpack.c.bf16 %v2280_v42, %v2279_v41  ;;  %v2283_v54 = vmax.f32 %v2155_v43, 0.0  ;;  %v2284_v55 = vmax.f32 %v2156_v44, 0.0  ;;  %v2158_v56 = vadd.f32 %v3764_v1, %v2008_v40  ;;  %v2025_v41 = vld [vmem:[#allocation2 + $0x90] sm:$0xff]  ;;  %v2026_v42 = vld [vmem:[#allocation2 + $0x3a0] sm:$0xff] }
 0x287   : > { %2777 = vst [vmem:[%s3477_s12 + $0x60] sm:$0xff] %v3147_v47  ;;  %v3149_v59 = vpack.c.bf16 %v2282_v49, %v2281_v48  ;;  %v2285_v60 = vmax.f32 %v2157_v50, 0.0  ;;  %v2159_v61 = vadd.f32 %v3766_v2, %v2009_v45  ;;  %v2160_v62 = vadd.f32 %v3768_v4, %v2010_v46  ;;  %v2027_v47 = vld [vmem:[#allocation2 + $0x208] sm:$0xff]  ;;  %v2028_v48 = vld [vmem:[#allocation2 + $0xd0] sm:$0xff] }
 0x288   : > { %2778 = vst [vmem:[%s3477_s12 + $0x68] sm:$0xff] %v3148_v53  ;;  %v3150_v5 = vpack.c.bf16 %v2284_v55, %v2283_v54  ;;  %v2286_v6 = vmax.f32 %v2158_v56, 0.0  ;;  %v2161_v7 = vadd.f32 %v3762_v0, %v2011_v51  ;;  %v2162_v3 = vadd.f32 %v3764_v1, %v2012_v52  ;;  %v2029_v53 = vld [vmem:[#allocation2 + $0x88] sm:$0xff]  ;;  %v2030_v54 = vld [vmem:[#allocation2 + $0x2f0] sm:$0xff] }
 0x289   : > { %2779 = vst [vmem:[%s3477_s12 + $0x70] sm:$0xff] %v3149_v59  ;;  %v2287_v9 = vmax.f32 %v2159_v61, 0.0  ;;  %v2288_v10 = vmax.f32 %v2160_v62, 0.0  ;;  %v2163_v11 = vadd.f32 %v3766_v2, %v2013_v57  ;;  %v2164_v12 = vadd.f32 %v3768_v4, %v2014_v58  ;;  %v2031_v59 = vld [vmem:[#allocation2 + $0x358] sm:$0xff] }
 0x28a   : > { %2780 = vst [vmem:[%s3477_s12 + $0x78] sm:$0xff] %v3150_v5  ;;  %v3151_v15 = vpack.c.bf16 %v2286_v6, %v2285_v60  ;;  %v2289_v16 = vmax.f32 %v2161_v7, 0.0  ;;  %v2290_v17 = vmax.f32 %v2162_v3, 0.0  ;;  %v2165_v18 = vadd.f32 %v3762_v0, %v2015_v63  ;;  %v2032_v5 = vld [vmem:[#allocation2 + $0x268] sm:$0xff] }
 0x28b   : > { %v3152_v21 = vpack.c.bf16 %v2288_v10, %v2287_v9  ;;  %v2291_v22 = vmax.f32 %v2163_v11, 0.0  ;;  %v2292_v23 = vmax.f32 %v2164_v12, 0.0  ;;  %v2166_v25 = vadd.f32 %v3764_v1, %v2016_v8  ;;  %v2033_v9 = vld [vmem:[#allocation2 + $0x350] sm:$0xff]  ;;  %v2034_v10 = vld [vmem:[#allocation2 + $0x188] sm:$0xff] }
 0x28c   : > { %2781 = vst [vmem:[%s3477_s12 + $0x80] sm:$0xff] %v3151_v15  ;;  %v3153_v29 = vpack.c.bf16 %v2290_v17, %v2289_v16  ;;  %v2293_v28 = vmax.f32 %v2165_v18, 0.0  ;;  %v2167_v31 = vadd.f32 %v3766_v2, %v2017_v13  ;;  %v2168_v32 = vadd.f32 %v3768_v4, %v2018_v14  ;;  %v2035_v15 = vld [vmem:[#allocation2 + $0x1d8] sm:$0xff]  ;;  %v2036_v16 = vld [vmem:[#allocation2 + $0x30] sm:$0xff] }
 0x28d   : > { %2782 = vst [vmem:[%s3477_s12 + $0x88] sm:$0xff] %v3152_v21  ;;  %v3154_v35 = vpack.c.bf16 %v2292_v23, %v2291_v22  ;;  %v2294_v36 = vmax.f32 %v2166_v25, 0.0  ;;  %v2169_v24 = vadd.f32 %v3762_v0, %v2019_v19  ;;  %v2170_v30 = vadd.f32 %v3764_v1, %v2020_v20  ;;  %v2037_v21 = vld [vmem:[#allocation2 + $0x140] sm:$0xff]  ;;  %v2038_v22 = vld [vmem:[#allocation2 + $0x2a8] sm:$0xff] }
 0x28e   : > { %2783 = vst [vmem:[%s3477_s12 + $0x90] sm:$0xff] %v3153_v29  ;;  %v2295_v38 = vmax.f32 %v2167_v31, 0.0  ;;  %v2296_v39 = vmax.f32 %v2168_v32, 0.0  ;;  %v2171_v34 = vadd.f32 %v3766_v2, %v2021_v26  ;;  %v2172_v40 = vadd.f32 %v3768_v4, %v2022_v27  ;;  %v2039_v29 = vld [vmem:[#allocation2 + $0x130] sm:$0xff] }
 0x28f   : > { %2784 = vst [vmem:[%s3477_s12 + $0x98] sm:$0xff] %v3154_v35  ;;  %v3155_v43 = vpack.c.bf16 %v2294_v36, %v2293_v28  ;;  %v2297_v44 = vmax.f32 %v2169_v24, 0.0  ;;  %v2298_v45 = vmax.f32 %v2170_v30, 0.0  ;;  %v2173_v46 = vadd.f32 %v3762_v0, %v2023_v33  ;;  %v2040_v35 = vld [vmem:[#allocation2 + $0x200] sm:$0xff] }
 0x290   : > { %v3156_v49 = vpack.c.bf16 %v2296_v39, %v2295_v38  ;;  %v2299_v50 = vmax.f32 %v2171_v34, 0.0  ;;  %v2300_v51 = vmax.f32 %v2172_v40, 0.0  ;;  %v2174_v52 = vadd.f32 %v3764_v1, %v2024_v37  ;;  %v2041_v38 = vld [vmem:[#allocation2 + $0x318] sm:$0xff]  ;;  %v2042_v39 = vld [vmem:[#allocation2 + $0x220] sm:$0xff] }
 0x291   : > { %2785 = vst [vmem:[%s3477_s12 + $0xa0] sm:$0xff] %v3155_v43  ;;  %v3157_v55 = vpack.c.bf16 %v2298_v45, %v2297_v44  ;;  %v2301_v56 = vmax.f32 %v2173_v46, 0.0  ;;  %v2175_v57 = vadd.f32 %v3766_v2, %v2025_v41  ;;  %v2176_v58 = vadd.f32 %v3768_v4, %v2026_v42  ;;  %v2043_v43 = vld [vmem:[#allocation2 + $0x70] sm:$0xff]  ;;  %v2044_v44 = vld [vmem:[#allocation2 + $0x300] sm:$0xff] }
 0x292   : > { %2786 = vst [vmem:[%s3477_s12 + $0xa8] sm:$0xff] %v3156_v49  ;;  %v3158_v60 = vpack.c.bf16 %v2300_v51, %v2299_v50  ;;  %v2302_v61 = vmax.f32 %v2174_v52, 0.0  ;;  %v2177_v62 = vadd.f32 %v3762_v0, %v2027_v47  ;;  %v2178_v63 = vadd.f32 %v3764_v1, %v2028_v48  ;;  %v2045_v49 = vld [vmem:[#allocation2 + $0xe0] sm:$0xff]  ;;  %v2046_v50 = vld [vmem:[#allocation2 + $0x178] sm:$0xff] }
 0x293   : > { %2787 = vst [vmem:[%s3477_s12 + $0xb0] sm:$0xff] %v3157_v55  ;;  %v2303_v6 = vmax.f32 %v2175_v57, 0.0  ;;  %v2304_v7 = vmax.f32 %v2176_v58, 0.0  ;;  %v2179_v3 = vadd.f32 %v3766_v2, %v2029_v53  ;;  %v2180_v8 = vadd.f32 %v3768_v4, %v2030_v54  ;;  %v2047_v55 = vld [vmem:[#allocation2 + $0x328] sm:$0xff] }
 0x294   : > { %2788 = vst [vmem:[%s3477_s12 + $0xb8] sm:$0xff] %v3158_v60  ;;  %v3159_v11 = vpack.c.bf16 %v2302_v61, %v2301_v56  ;;  %v2305_v12 = vmax.f32 %v2177_v62, 0.0  ;;  %v2306_v13 = vmax.f32 %v2178_v63, 0.0  ;;  %v2181_v14 = vadd.f32 %v3762_v0, %v2031_v59  ;;  %v2048_v60 = vld [vmem:[#allocation2 + $0x260] sm:$0xff] }
 0x295   : > { %v3160_v17 = vpack.c.bf16 %v2304_v7, %v2303_v6  ;;  %v2307_v18 = vmax.f32 %v2179_v3, 0.0  ;;  %v2308_v19 = vmax.f32 %v2180_v8, 0.0  ;;  %v2182_v20 = vadd.f32 %v3764_v1, %v2032_v5  ;;  %v2049_v6 = vld [vmem:[#allocation2 + $0x3b8] sm:$0xff] }
 0x296   : > { %2789 = vst [vmem:[%s3477_s12 + $0xc0] sm:$0xff] %v3159_v11  ;;  %v3161_v23 = vpack.c.bf16 %v2306_v13, %v2305_v12  ;;  %v2309_v25 = vmax.f32 %v2181_v14, 0.0  ;;  %v2183_v26 = vadd.f32 %v3766_v2, %v2033_v9  ;;  %v2184_v27 = vadd.f32 %v3768_v4, %v2034_v10  ;;  %v2050_v7 = vld [vmem:[#allocation2 + $0x2b8] sm:$0xff]  ;;  %v2051_v11 = vld [vmem:[#allocation2 + $0x248] sm:$0xff]  ;;  %v2052_v12 = vld [vmem:[#allocation2 + $0x40] sm:$0xff] }
 0x297   : > { %2790 = vst [vmem:[%s3477_s12 + $0xc8] sm:$0xff] %v3160_v17  ;;  %v3162_v28 = vpack.c.bf16 %v2308_v19, %v2307_v18  ;;  %v2310_v31 = vmax.f32 %v2182_v20, 0.0  ;;  %v2185_v32 = vadd.f32 %v3762_v0, %v2035_v15  ;;  %v2186_v33 = vadd.f32 %v3764_v1, %v2036_v16  ;;  %v2053_v17 = vld [vmem:[#allocation2 + $0x20] sm:$0xff]  ;;  %v2054_v18 = vld [vmem:[#allocation2 + $0xe8] sm:$0xff] }
 0x298   : > { %2791 = vst [vmem:[%s3477_s12 + $0xd0] sm:$0xff] %v3161_v23  ;;  %v2311_v36 = vmax.f32 %v2183_v26, 0.0  ;;  %v2312_v24 = vmax.f32 %v2184_v27, 0.0  ;;  %v2187_v30 = vadd.f32 %v3766_v2, %v2037_v21  ;;  %v2188_v37 = vadd.f32 %v3768_v4, %v2038_v22  ;;  %v2055_v23 = vld [vmem:[#allocation2 + $0x288] sm:$0xff] }
 0x299   : > { %2792 = vst [vmem:[%s3477_s12 + $0xd8] sm:$0xff] %v3162_v28  ;;  %v3163_v34 = vpack.c.bf16 %v2310_v31, %v2309_v25  ;;  %v2313_v40 = vmax.f32 %v2185_v32, 0.0  ;;  %v2314_v41 = vmax.f32 %v2186_v33, 0.0  ;;  %v2189_v42 = vadd.f32 %v3762_v0, %v2039_v29  ;;  %v2056_v28 = vld [vmem:[#allocation2 + $0x3a8] sm:$0xff] }
 0x29a   : > { %v3164_v45 = vpack.c.bf16 %v2312_v24, %v2311_v36  ;;  %v2315_v46 = vmax.f32 %v2187_v30, 0.0  ;;  %v2316_v47 = vmax.f32 %v2188_v37, 0.0  ;;  %v2190_v48 = vadd.f32 %v3764_v1, %v2040_v35  ;;  %v2057_v36 = vld [vmem:[#allocation2 + $0x3c8] sm:$0xff]  ;;  %v2058_v24 = vld [vmem:[#allocation2 + $0x160] sm:$0xff] }
 0x29b   : > { %2793 = vst [vmem:[%s3477_s12 + $0xe0] sm:$0xff] %v3163_v34  ;;  %v3165_v51 = vpack.c.bf16 %v2314_v41, %v2313_v40  ;;  %v2317_v52 = vmax.f32 %v2189_v42, 0.0  ;;  %v2191_v53 = vadd.f32 %v3766_v2, %v2041_v38  ;;  %v2192_v54 = vadd.f32 %v3768_v4, %v2042_v39  ;;  %v2059_v34 = vld [vmem:[#allocation2 + $0x2c8] sm:$0xff]  ;;  %v2060_v40 = vld [vmem:[#allocation2 + $0x210] sm:$0xff] }
 0x29c   : > { %2794 = vst [vmem:[%s3477_s12 + $0xe8] sm:$0xff] %v3164_v45  ;;  %v3166_v56 = vpack.c.bf16 %v2316_v47, %v2315_v46  ;;  %v2318_v57 = vmax.f32 %v2190_v48, 0.0  ;;  %v2193_v58 = vadd.f32 %v3762_v0, %v2043_v43  ;;  %v2194_v59 = vadd.f32 %v3764_v1, %v2044_v44  ;;  %v2061_v45 = vld [vmem:[#allocation2 + $0x3d8] sm:$0xff]  ;;  %v2062_v46 = vld [vmem:[#allocation2 + $0x1e8] sm:$0xff] }
 0x29d   : > { %2795 = vst [vmem:[%s3477_s12 + $0xf0] sm:$0xff] %v3165_v51  ;;  %v2319_v61 = vmax.f32 %v2191_v53, 0.0  ;;  %v2320_v62 = vmax.f32 %v2192_v54, 0.0  ;;  %v2195_v63 = vadd.f32 %v3766_v2, %v2045_v49  ;;  %v2196_v5 = vadd.f32 %v3768_v4, %v2046_v50  ;;  %v2063_v51 = vld [vmem:[#allocation2 + $0x1b0] sm:$0xff] }
 0x29e   : > { %2796 = vst [vmem:[%s3477_s12 + $0xf8] sm:$0xff] %v3166_v56  ;;  %v3167_v3 = vpack.c.bf16 %v2318_v57, %v2317_v52  ;;  %v2321_v8 = vmax.f32 %v2193_v58, 0.0  ;;  %v2322_v9 = vmax.f32 %v2194_v59, 0.0  ;;  %v2197_v10 = vadd.f32 %v3762_v0, %v2047_v55  ;;  %v2064_v56 = vld [vmem:[#allocation2 + $0x1c8] sm:$0xff] }
 0x29f   : > { %v3168_v13 = vpack.c.bf16 %v2320_v62, %v2319_v61  ;;  %v2323_v14 = vmax.f32 %v2195_v63, 0.0  ;;  %v2324_v15 = vmax.f32 %v2196_v5, 0.0  ;;  %v2198_v16 = vadd.f32 %v3764_v1, %v2048_v60  ;;  %v2065_v61 = vld [vmem:[#allocation2 + $0x2d0] sm:$0xff] }
 0x2a0   : > { %2797 = vst [vmem:[%s3477_s12 + $0x100] sm:$0xff] %v3167_v3  ;;  %v3169_v19 = vpack.c.bf16 %v2322_v9, %v2321_v8  ;;  %v2325_v20 = vmax.f32 %v2197_v10, 0.0  ;;  %v2199_v21 = vadd.f32 %v3766_v2, %v2049_v6  ;;  %v2200_v22 = vadd.f32 %v3768_v4, %v2050_v7  ;;  %v2066_v62 = vld [vmem:[#allocation2 + $0x1d0] sm:$0xff]  ;;  %v2067_v3 = vld [vmem:[#allocation2 + $0x58] sm:$0xff]  ;;  %v2068_v8 = vld [vmem:[#allocation2 + $0x120] sm:$0xff] }
 0x2a1   : > { %2798 = vst [vmem:[%s3477_s12 + $0x108] sm:$0xff] %v3168_v13  ;;  %v3170_v25 = vpack.c.bf16 %v2324_v15, %v2323_v14  ;;  %v2326_v26 = vmax.f32 %v2198_v16, 0.0  ;;  %v2201_v27 = vadd.f32 %v3762_v0, %v2051_v11  ;;  %v2202_v29 = vadd.f32 %v3764_v1, %v2052_v12  ;;  %v2069_v13 = vld [vmem:[#allocation2 + $0x198] sm:$0xff]  ;;  %v2070_v14 = vld [vmem:[#allocation2 + $0x2e8] sm:$0xff] }
 0x2a2   : > { %2799 = vst [vmem:[%s3477_s12 + $0x110] sm:$0xff] %v3169_v19  ;;  %v2327_v31 = vmax.f32 %v2199_v21, 0.0  ;;  %v2328_v32 = vmax.f32 %v2200_v22, 0.0  ;;  %v2203_v33 = vadd.f32 %v3766_v2, %v2053_v17  ;;  %v2204_v35 = vadd.f32 %v3768_v4, %v2054_v18  ;;  %v2071_v19 = vld [vmem:[#allocation2 + $0x1f8] sm:$0xff] }
 0x2a3   : > { %2800 = vst [vmem:[%s3477_s12 + $0x118] sm:$0xff] %v3170_v25  ;;  %v3171_v30 = vpack.c.bf16 %v2326_v26, %v2325_v20  ;;  %v2329_v37 = vmax.f32 %v2201_v27, 0.0  ;;  %v2330_v38 = vmax.f32 %v2202_v29, 0.0  ;;  %v2205_v39 = vadd.f32 %v3762_v0, %v2055_v23  ;;  %v2072_v25 = vld [vmem:[#allocation2 + $0x238] sm:$0xff] }
 0x2a4   : > { %v3172_v41 = vpack.c.bf16 %v2328_v32, %v2327_v31  ;;  %v2331_v42 = vmax.f32 %v2203_v33, 0.0  ;;  %v2332_v43 = vmax.f32 %v2204_v35, 0.0  ;;  %v2206_v44 = vadd.f32 %v3764_v1, %v2056_v28  ;;  %v2073_v31 = vld [vmem:[#allocation2 + $0x398] sm:$0xff]  ;;  %v2074_v32 = vld [vmem:[#allocation2 + $0x390] sm:$0xff] }
 0x2a5   : > { %2801 = vst [vmem:[%s3477_s12 + $0x120] sm:$0xff] %v3171_v30  ;;  %v3173_v47 = vpack.c.bf16 %v2330_v38, %v2329_v37  ;;  %v2333_v48 = vmax.f32 %v2205_v39, 0.0  ;;  %v2207_v49 = vadd.f32 %v3766_v2, %v2057_v36  ;;  %v2208_v50 = vadd.f32 %v3768_v4, %v2058_v24  ;;  %v2075_v30 = vld [vmem:[#allocation2 + $0x1a0] sm:$0xff]  ;;  %v2076_v37 = vld [vmem:[#allocation2 + $0xa8] sm:$0xff] }
 0x2a6   : > { %2802 = vst [vmem:[%s3477_s12 + $0x128] sm:$0xff] %v3172_v41  ;;  %v3174_v52 = vpack.c.bf16 %v2332_v43, %v2331_v42  ;;  %v2334_v53 = vmax.f32 %v2206_v44, 0.0  ;;  %v2209_v54 = vadd.f32 %v3762_v0, %v2059_v34  ;;  %v2210_v55 = vadd.f32 %v3764_v1, %v2060_v40  ;;  %v2077_v41 = vld [vmem:[#allocation2 + $0x258] sm:$0xff] }
 0x2a7   : > { %2803 = vst [vmem:[%s3477_s12 + $0x130] sm:$0xff] %v3173_v47  ;;  %v2335_v57 = vmax.f32 %v2207_v49, 0.0  ;;  %v2336_v58 = vmax.f32 %v2208_v50, 0.0  ;;  %v2211_v59 = vadd.f32 %v3766_v2, %v2061_v45  ;;  %v2212_v60 = vadd.f32 %v3768_v4, %v2062_v46  ;;  %v2078_v42 = vld [vmem:[#allocation2 + $0x2d8] sm:$0xff]  ;;  %v2079_v47 = vld [vmem:[#allocation2 + $0xf0] sm:$0xff] }
 0x2a8   : > { %2804 = vst [vmem:[%s3477_s12 + $0x138] sm:$0xff] %v3174_v52  ;;  %v3175_v63 = vpack.c.bf16 %v2334_v53, %v2333_v48  ;;  %v2337_v5 = vmax.f32 %v2209_v54, 0.0  ;;  %v2338_v6 = vmax.f32 %v2210_v55, 0.0  ;;  %v2213_v7 = vadd.f32 %v3762_v0, %v2063_v51  ;;  %v2080_v52 = vld [vmem:[#allocation2 + $0x180] sm:$0xff] }
 0x2a9   : > { %v3176_v9 = vpack.c.bf16 %v2336_v58, %v2335_v57  ;;  %v2339_v10 = vmax.f32 %v2211_v59, 0.0  ;;  %v2340_v11 = vmax.f32 %v2212_v60, 0.0  ;;  %v2214_v12 = vadd.f32 %v3764_v1, %v2064_v56  ;;  %v2081_v57 = vld [vmem:[#allocation2 + $0x170] sm:$0xff] }
 0x2aa   : > { %2805 = vst [vmem:[%s3477_s12 + $0x140] sm:$0xff] %v3175_v63  ;;  %v3177_v15 = vpack.c.bf16 %v2338_v6, %v2337_v5  ;;  %v2341_v16 = vmax.f32 %v2213_v7, 0.0  ;;  %v2215_v17 = vadd.f32 %v3766_v2, %v2065_v61  ;;  %v2216_v18 = vadd.f32 %v3768_v4, %v2066_v62  ;;  %v2082_v58 = vld [vmem:[#allocation2 + $0x3d0] sm:$0xff]  ;;  %v2084_v5 = vld [vmem:[#allocation2 + $0x378] sm:$0xff] }
 0x2ab   : > { %2806 = vst [vmem:[%s3477_s12 + $0x148] sm:$0xff] %v3176_v9  ;;  %v3178_v20 = vpack.c.bf16 %v2340_v11, %v2339_v10  ;;  %v2342_v21 = vmax.f32 %v2214_v12, 0.0  ;;  %v2217_v22 = vadd.f32 %v3762_v0, %v2067_v3  ;;  %v2218_v23 = vadd.f32 %v3764_v1, %v2068_v8  ;;  %v2083_v63 = vld [vmem:[#allocation2 + $0x250] sm:$0xff]  ;;  %v2085_v9 = vld [vmem:[#allocation2 + $0xb8] sm:$0xff] }
 0x2ac   : > { %2807 = vst [vmem:[%s3477_s12 + $0x150] sm:$0xff] %v3177_v15  ;;  %v2343_v26 = vmax.f32 %v2215_v17, 0.0  ;;  %v2344_v27 = vmax.f32 %v2216_v18, 0.0  ;;  %v2219_v29 = vadd.f32 %v3766_v2, %v2069_v13  ;;  %v2220_v28 = vadd.f32 %v3768_v4, %v2070_v14  ;;  %v2086_v10 = vld [vmem:[#allocation2 + $0x38] sm:$0xff] }
 0x2ad   : > { %2808 = vst [vmem:[%s3477_s12 + $0x158] sm:$0xff] %v3178_v20  ;;  %v3179_v33 = vpack.c.bf16 %v2342_v21, %v2341_v16  ;;  %v2345_v35 = vmax.f32 %v2217_v22, 0.0  ;;  %v2346_v36 = vmax.f32 %v2218_v23, 0.0  ;;  %v2221_v24 = vadd.f32 %v3762_v0, %v2071_v19  ;;  %v2087_v15 = vld [vmem:[#allocation2 + $0x78] sm:$0xff]  ;;  %v2088_v20 = vld [vmem:[#allocation2 + $0x308] sm:$0xff] }
 0x2ae   : > { %v3180_v38 = vpack.c.bf16 %v2344_v27, %v2343_v26  ;;  %v2347_v39 = vmax.f32 %v2219_v29, 0.0  ;;  %v2348_v34 = vmax.f32 %v2220_v28, 0.0  ;;  %v2222_v40 = vadd.f32 %v3764_v1, %v2072_v25  ;;  %v2089_v26 = vld [vmem:[#allocation2 + $0x370] sm:$0xff]  ;;  %v2090_v27 = vld [vmem:[#allocation2 + $0xc8] sm:$0xff] }
 0x2af   : > { %2809 = vst [vmem:[%s3477_s12 + $0x160] sm:$0xff] %v3179_v33  ;;  %v3181_v43 = vpack.c.bf16 %v2346_v36, %v2345_v35  ;;  %v2349_v44 = vmax.f32 %v2221_v24, 0.0  ;;  %v2223_v45 = vadd.f32 %v3766_v2, %v2073_v31  ;;  %v2224_v46 = vadd.f32 %v3768_v4, %v2074_v32  ;;  %v2091_v33 = vld [vmem:[#allocation2 + $0x278] sm:$0xff]  ;;  %v2092_v35 = vld [vmem:[#allocation2 + $0x360] sm:$0xff] }
 0x2b0   : > { %2810 = vst [vmem:[%s3477_s12 + $0x168] sm:$0xff] %v3180_v38  ;;  %v3182_v48 = vpack.c.bf16 %v2348_v34, %v2347_v39  ;;  %v2350_v49 = vmax.f32 %v2222_v40, 0.0  ;;  %v2225_v50 = vadd.f32 %v3762_v0, %v2075_v30  ;;  %v2226_v51 = vadd.f32 %v3764_v1, %v2076_v37  ;;  %v2093_v38 = vld [vmem:[#allocation2 + $0x228] sm:$0xff] }
 0x2b1   : > { %2811 = vst [vmem:[%s3477_s12 + $0x170] sm:$0xff] %v3181_v43  ;;  %v2351_v53 = vmax.f32 %v2223_v45, 0.0  ;;  %v2352_v54 = vmax.f32 %v2224_v46, 0.0  ;;  %v2227_v55 = vadd.f32 %v3766_v2, %v2077_v41  ;;  %v2228_v56 = vadd.f32 %v3768_v4, %v2078_v42  ;;  %v2094_v39 = vld [vmem:[#allocation2 + $0x348] sm:$0xff] }
 0x2b2   : > { %2812 = vst [vmem:[%s3477_s12 + $0x178] sm:$0xff] %v3182_v48  ;;  %v3183_v59 = vpack.c.bf16 %v2350_v49, %v2349_v44  ;;  %v2353_v60 = vmax.f32 %v2225_v50, 0.0  ;;  %v2354_v61 = vmax.f32 %v2226_v51, 0.0  ;;  %v2229_v62 = vadd.f32 %v3762_v0, %v2079_v47  ;;  %v2095_v43 = vld [vmem:[#allocation2 + $0x148] sm:$0xff]  ;;  %v2096_v48 = vld [vmem:[#allocation2 + $0xf8] sm:$0xff] }
 0x2b3   : > { %v3184_v6 = vpack.c.bf16 %v2352_v54, %v2351_v53  ;;  %v2355_v7 = vmax.f32 %v2227_v55, 0.0  ;;  %v2356_v3 = vmax.f32 %v2228_v56, 0.0  ;;  %v2230_v8 = vadd.f32 %v3764_v1, %v2080_v52  ;;  %v2097_v53 = vld [vmem:[#allocation2 + $0x68] sm:$0xff]  ;;  %v2098_v54 = vld [vmem:[#allocation2] sm:$0xff] }
 0x2b4   : > { %2813 = vst [vmem:[%s3477_s12 + $0x180] sm:$0xff] %v3183_v59  ;;  %v3185_v11 = vpack.c.bf16 %v2354_v61, %v2353_v60  ;;  %v2357_v12 = vmax.f32 %v2229_v62, 0.0  ;;  %v2231_v13 = vadd.f32 %v3766_v2, %v2081_v57  ;;  %v2232_v14 = vadd.f32 %v3768_v4, %v2082_v58  ;;  %v2099_v59 = vld [vmem:[#allocation2 + $0x298] sm:$0xff]  ;;  %v2100_v60 = vld [vmem:[#allocation2 + $0x270] sm:$0xff] }
 0x2b5   : > { %2814 = vst [vmem:[%s3477_s12 + $0x188] sm:$0xff] %v3184_v6  ;;  %v3186_v16 = vpack.c.bf16 %v2356_v3, %v2355_v7  ;;  %v2358_v17 = vmax.f32 %v2230_v8, 0.0  ;;  %v2233_v18 = vadd.f32 %v3762_v0, %v2083_v63  ;;  %v2234_v19 = vadd.f32 %v3764_v1, %v2084_v5  ;;  %v2101_v6 = vld [vmem:[#allocation2 + $0x310] sm:$0xff] }
 0x2b6   : > { %2815 = vst [vmem:[%s3477_s12 + $0x190] sm:$0xff] %v3185_v11  ;;  %v2359_v21 = vmax.f32 %v2231_v13, 0.0  ;;  %v2360_v22 = vmax.f32 %v2232_v14, 0.0  ;;  %v2235_v23 = vadd.f32 %v3766_v2, %v2085_v9  ;;  %v2236_v25 = vadd.f32 %v3768_v4, %v2086_v10  ;;  %v2102_v7 = vld [vmem:[#allocation2 + $0x190] sm:$0xff] }
 0x2b7   : > { %2816 = vst [vmem:[%s3477_s12 + $0x198] sm:$0xff] %v3186_v16  ;;  %v3187_v29 = vpack.c.bf16 %v2358_v17, %v2357_v12  ;;  %v2361_v28 = vmax.f32 %v2233_v18, 0.0  ;;  %v2362_v31 = vmax.f32 %v2234_v19, 0.0  ;;  %v2237_v32 = vadd.f32 %v3762_v0, %v2087_v15 }
 0x2b8   : > { %v3188_v36 = vpack.c.bf16 %v2360_v22, %v2359_v21  ;;  %v2363_v24 = vmax.f32 %v2235_v23, 0.0  ;;  %v2364_v30 = vmax.f32 %v2236_v25, 0.0  ;;  %v2238_v37 = vadd.f32 %v3764_v1, %v2088_v20 }
 0x2b9   : > { %2817 = vst [vmem:[%s3477_s12 + $0x1a0] sm:$0xff] %v3187_v29  ;;  %v3189_v34 = vpack.c.bf16 %v2362_v31, %v2361_v28  ;;  %v2365_v40 = vmax.f32 %v2237_v32, 0.0  ;;  %v2239_v41 = vadd.f32 %v3766_v2, %v2089_v26  ;;  %v2240_v42 = vadd.f32 %v3768_v4, %v2090_v27 }
 0x2ba   : > { %2818 = vst [vmem:[%s3477_s12 + $0x1a8] sm:$0xff] %v3188_v36  ;;  %v3190_v44 = vpack.c.bf16 %v2364_v30, %v2363_v24  ;;  %v2366_v45 = vmax.f32 %v2238_v37, 0.0  ;;  %v2241_v46 = vadd.f32 %v3762_v0, %v2091_v33  ;;  %v2242_v47 = vadd.f32 %v3764_v1, %v2092_v35 }
 0x2bb   : > { %2819 = vst [vmem:[%s3477_s12 + $0x1b0] sm:$0xff] %v3189_v34  ;;  %v2367_v49 = vmax.f32 %v2239_v41, 0.0  ;;  %v2368_v50 = vmax.f32 %v2240_v42, 0.0  ;;  %v2243_v51 = vadd.f32 %v3766_v2, %v2093_v38  ;;  %v2244_v52 = vadd.f32 %v3768_v4, %v2094_v39 }
 0x2bc   : > { %2820 = vst [vmem:[%s3477_s12 + $0x1b8] sm:$0xff] %v3190_v44  ;;  %v3191_v55 = vpack.c.bf16 %v2366_v45, %v2365_v40  ;;  %v2369_v56 = vmax.f32 %v2241_v46, 0.0  ;;  %v2370_v57 = vmax.f32 %v2242_v47, 0.0  ;;  %v2245_v58 = vadd.f32 %v3762_v0, %v2095_v43 }
 0x2bd   : > { %v3192_v61 = vpack.c.bf16 %v2368_v50, %v2367_v49  ;;  %v2371_v62 = vmax.f32 %v2243_v51, 0.0  ;;  %v2372_v63 = vmax.f32 %v2244_v52, 0.0  ;;  %v2246_v5 = vadd.f32 %v3764_v1, %v2096_v48 }
 0x2be   : > { %2821 = vst [vmem:[%s3477_s12 + $0x1c0] sm:$0xff] %v3191_v55  ;;  %v3193_v3 = vpack.c.bf16 %v2370_v57, %v2369_v56  ;;  %v2373_v8 = vmax.f32 %v2245_v58, 0.0  ;;  %v2247_v9 = vadd.f32 %v3766_v2, %v2097_v53  ;;  %v2248_v10 = vadd.f32 %v3768_v4, %v2098_v54 }
 0x2bf   : > { %2822 = vst [vmem:[%s3477_s12 + $0x1c8] sm:$0xff] %v3192_v61  ;;  %v3194_v11 = vpack.c.bf16 %v2372_v63, %v2371_v62  ;;  %v2374_v12 = vmax.f32 %v2246_v5, 0.0  ;;  %v2249_v13 = vadd.f32 %v3762_v0, %v2099_v59  ;;  %v2250_v14 = vadd.f32 %v3764_v1, %v2100_v60 }
 0x2c0   : > { %2823 = vst [vmem:[%s3477_s12 + $0x1d0] sm:$0xff] %v3193_v3  ;;  %v2375_v15 = vmax.f32 %v2247_v9, 0.0  ;;  %v2376_v16 = vmax.f32 %v2248_v10, 0.0  ;;  %v2251_v17 = vadd.f32 %v3766_v2, %v2101_v6  ;;  %v2252_v18 = vadd.f32 %v3768_v4, %v2102_v7 }
 0x2c1   : > { %2824 = vst [vmem:[%s3477_s12 + $0x1d8] sm:$0xff] %v3194_v11  ;;  %v3195_v19 = vpack.c.bf16 %v2374_v12, %v2373_v8  ;;  %v2377_v20 = vmax.f32 %v2249_v13, 0.0  ;;  %v2378_v21 = vmax.f32 %v2250_v14, 0.0 }
 0x2c2   : > { %v3196_v22 = vpack.c.bf16 %v2376_v16, %v2375_v15  ;;  %v2379_v23 = vmax.f32 %v2251_v17, 0.0  ;;  %v2380_v25 = vmax.f32 %v2252_v18, 0.0 }
 0x2c3   : > { %2825 = vst [vmem:[%s3477_s12 + $0x1e0] sm:$0xff] %v3195_v19  ;;  %v3197_v0 = vpack.c.bf16 %v2378_v21, %v2377_v20 }
 0x2c4   : > { %2826 = vst [vmem:[%s3477_s12 + $0x1e8] sm:$0xff] %v3196_v22  ;;  %v3198_v1 = vpack.c.bf16 %v2380_v25, %v2379_v23 }
 0x2c5   : > { %2827 = vst [vmem:[%s3477_s12 + $0x1f0] sm:$0xff] %v3197_v0 }
 0x2c6   : > { %2828 = vst [vmem:[%s3477_s12 + $0x1f8] sm:$0xff] %v3198_v1 }
 0x2c7 PF: > { %s14_s19 = sadd.s32 1, %s3396_s19   ;;  %s3982_s15 = smov %s3388_s17 }
 0x2c8   : > { %p11_p9 = scmp.ge.s32.totalorder %s14_s19, 18   ;;  %s3983_s16 = smov %s3392_s18 }
 0x2c9   : > { %s3984_s17 = smov %s3987_s20  ;;  %s3985_s18 = smov %s3991_s21 }
 0x2ca   :  { %13 = sbr.rel (!%p11_p9) target bundleno = 3 (0x3), region = 80 }

// kernel: bmn_forward.21
= control target key start
LH: loop header
LB: loop body
LE: loop exit
PB: predicated region body
PF: predicated region fallthrough
CT: control target
= control target key end

     0   :  { %s1532_s12 = smov 0   ;;  %s1534_s13 = smov 0   ;;  %s1682_s0 = inlined_call_operand.vmem [shape: bf16[512,128], index: 0, kind: input, shape index: {}]   ;;  %s1683_s1 = inlined_call_operand.vmem [shape: bf16[128,128], index: 1, kind: input, shape index: {}]   ;;  %s1684_s2 = inlined_call_operand.vmem [shape: f32[1,128], index: 2, kind: input, shape index: {}]   ;;  %s1685_s3 = inlined_call_operand.vmem [shape: f32[512,128], index: 3, kind: output, shape index: {}]  }
   0x1   :  { %s1536_s14 = smov 0  }
   0x2 LB: > { %s32_s15 = sadd.s32 1, %s1506_s13  ;;  %p1160_p0 = scmp.ge.s32.totalorder %s1510_s14, 1  ;;  %s1510_s14 = sphi %s1536_s14, %s13_s14   ;;  %s1506_s13 = sphi %s1534_s13, %s1687_s13   ;;  %s1502_s12 = sphi %s1532_s12, %s1686_s12  }
   0x3   : > { %p34_p1 = scmp.ge.s32.totalorder %s32_s15, 2  ;;  %p188_p2 = scmp.lt.s32.totalorder %s1510_s14, 3 }
   0x5   : > { %s1689_s15 = smov (%p34_p1, %s32_s15), 0  ;;  %p189_p3 = pnand %p1160_p0, %p188_p2 }
   0x6   : > { %s1161_s18 = sshll.u32 (!%p189_p3), %s1502_s12, 5 }
   0x7   : > { %192 = sbr.rel (%p189_p3) target bundleno = 320 (0x140), region = 32  ;;  %p230_p4 = scmp.lt.s32.totalorder (!%p189_p3), %s1161_s18, 63 }
   0xc   : > { %v1336_v0 = vld [vmem:[%s1683_s1 + $0x38] sm:$0xff]   ;;  %v1337_v1 = vld [vmem:[%s1683_s1 + $0x30] sm:$0xff]   ;;  %s1691_s18 = smov (!%p230_p4, %s1161_s18), 63  ;;  %v1338_v2 = vld [vmem:[%s1683_s1 + $0x28] sm:$0xff]  }
   0xd   : > { %1248 = vmatprep.subr.bf16.mxu0 %v1336_v0  ;;  %1296 = vmatprep.subr.bf16.mxu1 %v1336_v0  ;;  %s1162_s23 = sshll.u32 %s1691_s18, 2  ;;  %v1339_v3 = vld [vmem:[%s1683_s1 + $0x20] sm:$0xff]   ;;  %v1340_v6 = vld [vmem:[%s1683_s1 + $0x18] sm:$0xff]   ;;  %v1341_v7 = vld [vmem:[%s1683_s1 + $0x10] sm:$0xff]   ;;  %s1164_s12 = sshll.u32 %s1691_s18, 3 }
   0xe   : > { %1249 = vmatpush3.bf16.msra.mxu0 %v1336_v0  ;;  %1304 = vmatpush3.bf16.msra.mxu1 %v1336_v0  ;;  %s1565_s26 = scalar_lea.vmem %s1682_s0, %s1162_s23  ;;  %v1342_v8 = vld [vmem:[%s1683_s1 + $0x8] sm:$0xff]   ;;  %v1343_v9 = vld [vmem:[%s1683_s1] sm:$0xff]   ;;  %s1626_s18 = scalar_lea.vmem %s1685_s3, %s1164_s12 }
   0xf   : > { %1250 = vmatprep.subr.bf16.mxu0 %v1337_v1  ;;  %1297 = vmatprep.subr.bf16.mxu1 %v1337_v1  ;;  %v1344_v4 = vld [vmem:[%s1565_s26] sm:$0xff]   ;;  %v1346_v10 = vld [vmem:[%s1565_s26 + $0x8] sm:$0xff]   ;;  %v1348_v12 = vld [vmem:[%s1565_s26 + $0x10] sm:$0xff]  }
  0x10   : > { %v1345_v5 = vld [vmem:[%s1565_s26 + $0x40] sm:$0xff]   ;;  %1264 = vmatprep.mubr.bf16.mxu0 %v1344_v4  ;;  %v1347_v11 = vld [vmem:[%s1565_s26 + $0x48] sm:$0xff]   ;;  %v1349_v13 = vld [vmem:[%s1565_s26 + $0x50] sm:$0xff]  }
  0x11   : > { %1280 = vmatprep.mubr.bf16.mxu1 %v1345_v5  ;;  %v1350_v14 = vld [vmem:[%s1565_s26 + $0x18] sm:$0xff]   ;;  %v1352_v16 = vld [vmem:[%s1565_s26 + $0x20] sm:$0xff]   ;;  %v1354_v18 = vld [vmem:[%s1565_s26 + $0x28] sm:$0xff]  }
  0x12   : > { %1251 = vmatpush3.bf16.msra.mxu0 %v1337_v1  ;;  %1305 = vmatpush3.bf16.msra.mxu1 %v1337_v1  ;;  %v1351_v15 = vld [vmem:[%s1565_s26 + $0x58] sm:$0xff]   ;;  %v1353_v17 = vld [vmem:[%s1565_s26 + $0x60] sm:$0xff]   ;;  %v1355_v19 = vld [vmem:[%s1565_s26 + $0x68] sm:$0xff]  }
  0x13   : > { %1252 = vmatprep.subr.bf16.mxu0 %v1338_v2  ;;  %1298 = vmatprep.subr.bf16.mxu1 %v1338_v2  ;;  %v1356_v20 = vld [vmem:[%s1565_s26 + $0x30] sm:$0xff]   ;;  %v1358_v22 = vld [vmem:[%s1565_s26 + $0x38] sm:$0xff]   ;;  %v1601_v24 = vld [vmem:[%s1684_s2] ss:$0 sm:$0xff] }
  0x14   : > { %v1357_v21 = vld [vmem:[%s1565_s26 + $0x70] sm:$0xff]   ;;  %v1359_v23 = vld [vmem:[%s1565_s26 + $0x78] sm:$0xff]  }
  0x16   : > { %1253 = vmatpush3.bf16.msra.mxu0 %v1338_v2  ;;  %1306 = vmatpush3.bf16.msra.mxu1 %v1338_v2 }
  0x17   : > { %1254 = vmatprep.subr.bf16.mxu0 %v1339_v3  ;;  %1299 = vmatprep.subr.bf16.mxu1 %v1339_v3 }
  0x1a   : > { %1255 = vmatpush3.bf16.msra.mxu0 %v1339_v3  ;;  %1307 = vmatpush3.bf16.msra.mxu1 %v1339_v3 }
  0x1b   : > { %1256 = vmatprep.subr.bf16.mxu0 %v1340_v6  ;;  %1300 = vmatprep.subr.bf16.mxu1 %v1340_v6 }
  0x1e   : > { %1257 = vmatpush3.bf16.msra.mxu0 %v1340_v6  ;;  %1308 = vmatpush3.bf16.msra.mxu1 %v1340_v6 }
  0x1f   : > { %1258 = vmatprep.subr.bf16.mxu0 %v1341_v7  ;;  %1301 = vmatprep.subr.bf16.mxu1 %v1341_v7 }
  0x22   : > { %1259 = vmatpush3.bf16.msra.mxu0 %v1341_v7  ;;  %1309 = vmatpush3.bf16.msra.mxu1 %v1341_v7 }
  0x23   : > { %1260 = vmatprep.subr.bf16.mxu0 %v1342_v8  ;;  %1302 = vmatprep.subr.bf16.mxu1 %v1342_v8 }
  0x26   : > { %1261 = vmatpush3.bf16.msra.mxu0 %v1342_v8  ;;  %1310 = vmatpush3.bf16.msra.mxu1 %v1342_v8 }
  0x27   : > { %1262 = vmatprep.subr.bf16.mxu0 %v1343_v9  ;;  %1303 = vmatprep.subr.bf16.mxu1 %v1343_v9 }
  0x2a   : > { %1263 = vmatpush3.bf16.msra.mxu0 %v1343_v9  ;;  %1311 = vmatpush3.bf16.msra.mxu1 %v1343_v9 }
  0x2d   : > { %1265 = vmatmul.mubr.bf16.vlgmr.msra.gmra.mxu0 %v1346_v10  ;;  %1281 = vmatmul.mubr.bf16.vlgmr.msra.gmra.mxu1 %v1347_v11 }
  0x2e   : > { %1268 = vmatprep.mubr.bf16.mxu0 %v1348_v12  ;;  %1284 = vmatprep.mubr.bf16.mxu1 %v1349_v13 }
  0x35   : > { %1269 = vmatmul.mubr.bf16.gmra.mxu0 %v1350_v14  ;;  %1285 = vmatmul.mubr.bf16.gmra.mxu1 %v1351_v15 }
  0x36   : > { %1272 = vmatprep.mubr.bf16.mxu0 %v1352_v16  ;;  %1288 = vmatprep.mubr.bf16.mxu1 %v1353_v17 }
  0x3d   : > { %1273 = vmatmul.mubr.bf16.gmra.mxu0 %v1354_v18  ;;  %1289 = vmatmul.mubr.bf16.gmra.mxu1 %v1355_v19 }
  0x3e   : > { %1276 = vmatprep.mubr.bf16.mxu0 %v1356_v20  ;;  %1292 = vmatprep.mubr.bf16.mxu1 %v1357_v21 }
  0x45   : > { %1277 = vmatmul.mubr.bf16.gmra.mxu0 %v1358_v22  ;;  %1293 = vmatmul.mubr.bf16.gmra.mxu1 %v1359_v23 }
  0xed   : > { %v1266_v25 = vpop.f32.mrf.mxu0  ;;  %v1282_v26 = vpop.f32.mrf.mxu1 }
  0xee   : > { %v789_v27 = vadd.f32 %v1266_v25, %v1601_v24  ;;  %v805_v28 = vadd.f32 %v1282_v26, %v1601_v24 }
  0xef   : > { %v554_v29 = vpop.f32.mrf.mxu0  ;;  %v618_v30 = vpop.f32.mrf.mxu1 }
  0xf0   : > { %v1192_v31 = vmul.f32 -1.442695, %v789_v27  ;;  %v1208_v32 = vmul.f32 -1.442695, %v805_v28  ;;  %v787_v33 = vadd.f32 %v1601_v24, %v554_v29  ;;  %v803_v34 = vadd.f32 %v1601_v24, %v618_v30 }
  0xf1   : > { %v1267_v35 = vpop.f32.mrf.mxu0  ;;  %v1283_v36 = vpop.f32.mrf.mxu1 }
  0xf2   : > { %1360 = vpow2.f32 %v1192_v31  ;;  %v1190_v37 = vmul.f32 -1.442695, %v787_v33  ;;  %v1206_v38 = vmul.f32 -1.442695, %v803_v34  ;;  %v790_v39 = vadd.f32 %v1267_v35, %v1601_v24 }
  0xf3   : > { %1362 = vpow2.f32 %v1208_v32  ;;  %v806_v40 = vadd.f32 %v1283_v36, %v1601_v24  ;;  %v557_v41 = vpop.f32.mrf.mxu0  ;;  %v621_v42 = vpop.f32.mrf.mxu1 }
  0xf4   : > { %1364 = vpow2.f32 %v1190_v37  ;;  %v1193_v43 = vmul.f32 -1.442695, %v790_v39  ;;  %v788_v44 = vadd.f32 %v1601_v24, %v557_v41  ;;  %v804_v45 = vadd.f32 %v1601_v24, %v621_v42 }
  0xf5   : > { %1366 = vpow2.f32 %v1206_v38  ;;  %v1209_v46 = vmul.f32 -1.442695, %v806_v40  ;;  %v1270_v47 = vpop.f32.mrf.mxu0  ;;  %v1286_v48 = vpop.f32.mrf.mxu1 }
  0xf6   : > { %1368 = vpow2.f32 %v1193_v43  ;;  %v1191_v49 = vmul.f32 -1.442695, %v788_v44  ;;  %v1207_v50 = vmul.f32 -1.442695, %v804_v45  ;;  %v793_v51 = vadd.f32 %v1270_v47, %v1601_v24 }
  0xf7   : > { %1370 = vpow2.f32 %v1209_v46  ;;  %v809_v52 = vadd.f32 %v1286_v48, %v1601_v24  ;;  %v570_v53 = vpop.f32.mrf.mxu0  ;;  %v634_v54 = vpop.f32.mrf.mxu1 }
  0xf8   : > { %1372 = vpow2.f32 %v1191_v49  ;;  %v1196_v55 = vmul.f32 -1.442695, %v793_v51  ;;  %v791_v56 = vadd.f32 %v1601_v24, %v570_v53  ;;  %v807_v57 = vadd.f32 %v1601_v24, %v634_v54 }
  0xf9   : > { %1374 = vpow2.f32 %v1207_v50  ;;  %v1212_v58 = vmul.f32 -1.442695, %v809_v52  ;;  %v1271_v59 = vpop.f32.mrf.mxu0  ;;  %v1287_v60 = vpop.f32.mrf.mxu1 }
  0xfa   : > { %1376 = vpow2.f32 %v1196_v55  ;;  %v1194_v61 = vmul.f32 -1.442695, %v791_v56  ;;  %v1210_v62 = vmul.f32 -1.442695, %v807_v57  ;;  %v794_v63 = vadd.f32 %v1271_v59, %v1601_v24 }
  0xfb   : > { %1378 = vpow2.f32 %v1212_v58  ;;  %v810_v0 = vadd.f32 %v1287_v60, %v1601_v24  ;;  %v573_v1 = vpop.f32.mrf.mxu0  ;;  %v637_v2 = vpop.f32.mrf.mxu1 }
  0xfc   : > { %1380 = vpow2.f32 %v1194_v61  ;;  %v1197_v3 = vmul.f32 -1.442695, %v794_v63  ;;  %v792_v4 = vadd.f32 %v1601_v24, %v573_v1  ;;  %v808_v5 = vadd.f32 %v1601_v24, %v637_v2 }
  0xfd   : > { %1382 = vpow2.f32 %v1210_v62  ;;  %v1213_v6 = vmul.f32 -1.442695, %v810_v0  ;;  %v1274_v7 = vpop.f32.mrf.mxu0  ;;  %v1290_v8 = vpop.f32.mrf.mxu1 }
  0xfe   : > { %1384 = vpow2.f32 %v1197_v3  ;;  %v1195_v9 = vmul.f32 -1.442695, %v792_v4  ;;  %v1211_v10 = vmul.f32 -1.442695, %v808_v5  ;;  %v797_v42 = vadd.f32 %v1274_v7, %v1601_v24 }
  0xff   : > { %v1361_v11 = vpop.eup %1360  ;;  %1386 = vpow2.f32 %v1213_v6  ;;  %v586_v12 = vpop.f32.mrf.mxu0  ;;  %v813_v46 = vadd.f32 %v1290_v8, %v1601_v24 }
 0x100   : > { %v650_v13 = vpop.f32.mrf.mxu1  ;;  %v1363_v14 = vpop.eup %1362  ;;  %v917_v15 = vadd.f32 1.0, %v1361_v11  ;;  %1388 = vpow2.f32 %v1195_v9  ;;  %v795_v49 = vadd.f32 %v1601_v24, %v586_v12  ;;  %v1200_v56 = vmul.f32 -1.442695, %v797_v42 }
 0x101   : > { %v1365_v16 = vpop.eup %1364  ;;  %v933_v17 = vadd.f32 1.0, %v1363_v14  ;;  %1390 = vpow2.f32 %v1211_v10  ;;  %v1275_v18 = vpop.f32.mrf.mxu0  ;;  %v811_v52 = vadd.f32 %v1601_v24, %v650_v13  ;;  %v1216_v61 = vmul.f32 -1.442695, %v813_v46 }
 0x102   : > { %v1367_v19 = vpop.eup %1366  ;;  %1392 = vrcp.f32 %v917_v15  ;;  %v915_v20 = vadd.f32 1.0, %v1365_v16  ;;  %v1291_v21 = vpop.f32.mrf.mxu1  ;;  %v798_v57 = vadd.f32 %v1275_v18, %v1601_v24  ;;  %v1198_v0 = vmul.f32 -1.442695, %v795_v49 }
 0x103   : > { %v1369_v22 = vpop.eup %1368  ;;  %1394 = vrcp.f32 %v933_v17  ;;  %v931_v23 = vadd.f32 1.0, %v1367_v19  ;;  %v589_v29 = vpop.f32.mrf.mxu0  ;;  %v814_v62 = vadd.f32 %v1291_v21, %v1601_v24  ;;  %v1214_v3 = vmul.f32 -1.442695, %v811_v52 }
 0x104   : > { %v1371_v25 = vpop.eup %1370  ;;  %1396 = vrcp.f32 %v915_v20  ;;  %v918_v26 = vadd.f32 1.0, %v1369_v22  ;;  %v653_v32 = vpop.f32.mrf.mxu1  ;;  %v796_v1 = vadd.f32 %v1601_v24, %v589_v29  ;;  %v1201_v7 = vmul.f32 -1.442695, %v798_v57 }
 0x105   : > { %v1373_v27 = vpop.eup %1372  ;;  %1398 = vrcp.f32 %v931_v23  ;;  %v934_v28 = vadd.f32 1.0, %v1371_v25  ;;  %v1278_v39 = vpop.f32.mrf.mxu0  ;;  %v812_v4 = vadd.f32 %v1601_v24, %v653_v32  ;;  %v1217_v11 = vmul.f32 -1.442695, %v814_v62 }
 0x106   : > { %v1375_v30 = vpop.eup %1374  ;;  %1400 = vrcp.f32 %v918_v26  ;;  %v916_v31 = vadd.f32 1.0, %v1373_v27  ;;  %v1294_v43 = vpop.f32.mrf.mxu1  ;;  %v801_v8 = vadd.f32 %v1278_v39, %v1601_v24  ;;  %v1199_v14 = vmul.f32 -1.442695, %v796_v1 }
 0x107   : > { %v1377_v33 = vpop.eup %1376  ;;  %1402 = vrcp.f32 %v934_v28  ;;  %v932_v34 = vadd.f32 1.0, %v1375_v30  ;;  %v602_v53 = vpop.f32.mrf.mxu0  ;;  %v817_v12 = vadd.f32 %v1294_v43, %v1601_v24  ;;  %v1215_v17 = vmul.f32 -1.442695, %v812_v4 }
 0x108   : > { %v1379_v35 = vpop.eup %1378  ;;  %1404 = vrcp.f32 %v916_v31  ;;  %v921_v36 = vadd.f32 1.0, %v1377_v33  ;;  %v666_v58 = vpop.f32.mrf.mxu1  ;;  %v799_v15 = vadd.f32 %v1601_v24, %v602_v53  ;;  %v1204_v21 = vmul.f32 -1.442695, %v801_v8 }
 0x109   : > { %v1381_v37 = vpop.eup %1380  ;;  %1406 = vrcp.f32 %v932_v34  ;;  %v937_v38 = vadd.f32 1.0, %v1379_v35  ;;  %v1279_v5 = vpop.f32.mrf.mxu0  ;;  %v815_v18 = vadd.f32 %v1601_v24, %v666_v58  ;;  %v1220_v26 = vmul.f32 -1.442695, %v817_v12 }
 0x10a   : > { %v1383_v40 = vpop.eup %1382  ;;  %1408 = vrcp.f32 %v921_v36  ;;  %v919_v41 = vadd.f32 1.0, %v1381_v37  ;;  %v1295_v9 = vpop.f32.mrf.mxu1  ;;  %v802_v22 = vadd.f32 %v1279_v5, %v1601_v24  ;;  %v1202_v29 = vmul.f32 -1.442695, %v799_v15 }
 0x10b   : > { %v1385_v44 = vpop.eup %1384  ;;  %1410 = vrcp.f32 %v937_v38  ;;  %v935_v45 = vadd.f32 1.0, %v1383_v40  ;;  %v605_v19 = vpop.f32.mrf.mxu0  ;;  %v818_v27 = vadd.f32 %v1295_v9, %v1601_v24  ;;  %v1218_v32 = vmul.f32 -1.442695, %v815_v18 }
 0x10c   : > { %v1387_v47 = vpop.eup %1386  ;;  %1412 = vrcp.f32 %v919_v41  ;;  %v922_v48 = vadd.f32 1.0, %v1385_v44  ;;  %v669_v23 = vpop.f32.mrf.mxu1  ;;  %v800_v30 = vadd.f32 %v1601_v24, %v605_v19  ;;  %v1205_v35 = vmul.f32 -1.442695, %v802_v22 }
 0x10d   : > { %v1389_v50 = vpop.eup %1388  ;;  %1414 = vrcp.f32 %v935_v45  ;;  %v938_v51 = vadd.f32 1.0, %v1387_v47  ;;  %v816_v33 = vadd.f32 %v1601_v24, %v669_v23  ;;  %v1221_v37 = vmul.f32 -1.442695, %v818_v27 }
 0x10e   : > { %v1391_v54 = vpop.eup %1390  ;;  %1416 = vrcp.f32 %v922_v48  ;;  %v920_v55 = vadd.f32 1.0, %v1389_v50  ;;  %v1203_v39 = vmul.f32 -1.442695, %v800_v30 }
 0x10f   : > { %v1393_v59 = vpop.eup %1392  ;;  %1418 = vrcp.f32 %v938_v51  ;;  %v936_v60 = vadd.f32 1.0, %v1391_v54  ;;  %v1219_v41 = vmul.f32 -1.442695, %v816_v33 }
 0x110   : > { %v1395_v63 = vpop.eup %1394  ;;  %1013 = vst [vmem:[%s1626_s18 + $0x10] sm:$0xff] %v1393_v59  ;;  %1420 = vrcp.f32 %v920_v55 }
 0x111   : > { %v1397_v2 = vpop.eup %1396  ;;  %1029 = vst [vmem:[%s1626_s18 + $0x90] sm:$0xff] %v1395_v63  ;;  %1422 = vrcp.f32 %v936_v60 }
 0x112   : > { %v1399_v6 = vpop.eup %1398  ;;  %1011 = vst [vmem:[%s1626_s18] sm:$0xff] %v1397_v2  ;;  %1424 = vpow2.f32 %v1200_v56 }
 0x113   : > { %v1401_v10 = vpop.eup %1400  ;;  %1027 = vst [vmem:[%s1626_s18 + $0x80] sm:$0xff] %v1399_v6  ;;  %1426 = vpow2.f32 %v1216_v61 }
 0x114   : > { %v1403_v13 = vpop.eup %1402  ;;  %1014 = vst [vmem:[%s1626_s18 + $0x18] sm:$0xff] %v1401_v10  ;;  %1428 = vpow2.f32 %v1198_v0 }
 0x115   : > { %v1405_v16 = vpop.eup %1404  ;;  %1030 = vst [vmem:[%s1626_s18 + $0x98] sm:$0xff] %v1403_v13  ;;  %1430 = vpow2.f32 %v1214_v3 }
 0x116   : > { %v1407_v20 = vpop.eup %1406  ;;  %1012 = vst [vmem:[%s1626_s18 + $0x8] sm:$0xff] %v1405_v16  ;;  %1432 = vpow2.f32 %v1201_v7 }
 0x117   : > { %v1409_v25 = vpop.eup %1408  ;;  %1028 = vst [vmem:[%s1626_s18 + $0x88] sm:$0xff] %v1407_v20  ;;  %1434 = vpow2.f32 %v1217_v11 }
 0x118   : > { %v1411_v28 = vpop.eup %1410  ;;  %1017 = vst [vmem:[%s1626_s18 + $0x30] sm:$0xff] %v1409_v25  ;;  %1436 = vpow2.f32 %v1199_v14 }
 0x119   : > { %v1413_v31 = vpop.eup %1412  ;;  %1033 = vst [vmem:[%s1626_s18 + $0xb0] sm:$0xff] %v1411_v28  ;;  %1438 = vpow2.f32 %v1215_v17 }
 0x11a   : > { %v1415_v34 = vpop.eup %1414  ;;  %1015 = vst [vmem:[%s1626_s18 + $0x20] sm:$0xff] %v1413_v31  ;;  %1440 = vpow2.f32 %v1204_v21 }
 0x11b   : > { %v1417_v36 = vpop.eup %1416  ;;  %1031 = vst [vmem:[%s1626_s18 + $0xa0] sm:$0xff] %v1415_v34  ;;  %1442 = vpow2.f32 %v1220_v26 }
 0x11c   : > { %v1419_v38 = vpop.eup %1418  ;;  %1018 = vst [vmem:[%s1626_s18 + $0x38] sm:$0xff] %v1417_v36  ;;  %1444 = vpow2.f32 %v1202_v29 }
 0x11d   : > { %v1421_v40 = vpop.eup %1420  ;;  %1034 = vst [vmem:[%s1626_s18 + $0xb8] sm:$0xff] %v1419_v38  ;;  %1446 = vpow2.f32 %v1218_v32 }
 0x11e   : > { %v1423_v42 = vpop.eup %1422  ;;  %1016 = vst [vmem:[%s1626_s18 + $0x28] sm:$0xff] %v1421_v40  ;;  %1448 = vpow2.f32 %v1205_v35 }
 0x11f   : > { %v1425_v24 = vpop.eup %1424  ;;  %1032 = vst [vmem:[%s1626_s18 + $0xa8] sm:$0xff] %v1423_v42  ;;  %1450 = vpow2.f32 %v1221_v37 }
 0x120   : > { %v1427_v43 = vpop.eup %1426  ;;  %v925_v44 = vadd.f32 1.0, %v1425_v24  ;;  %1452 = vpow2.f32 %v1203_v39 }
 0x121   : > { %v1429_v45 = vpop.eup %1428  ;;  %v941_v46 = vadd.f32 1.0, %v1427_v43  ;;  %1454 = vpow2.f32 %v1219_v41 }
 0x122   : > { %v1431_v47 = vpop.eup %1430  ;;  %1456 = vrcp.f32 %v925_v44  ;;  %v923_v48 = vadd.f32 1.0, %v1429_v45 }
 0x123   : > { %v1433_v49 = vpop.eup %1432  ;;  %1458 = vrcp.f32 %v941_v46  ;;  %v939_v50 = vadd.f32 1.0, %v1431_v47 }
 0x124   : > { %v1435_v51 = vpop.eup %1434  ;;  %1460 = vrcp.f32 %v923_v48  ;;  %v926_v52 = vadd.f32 1.0, %v1433_v49 }
 0x125   : > { %v1437_v53 = vpop.eup %1436  ;;  %1462 = vrcp.f32 %v939_v50  ;;  %v942_v54 = vadd.f32 1.0, %v1435_v51 }
 0x126   : > { %v1439_v55 = vpop.eup %1438  ;;  %1464 = vrcp.f32 %v926_v52  ;;  %v924_v56 = vadd.f32 1.0, %v1437_v53 }
 0x127   : > { %v1441_v57 = vpop.eup %1440  ;;  %1466 = vrcp.f32 %v942_v54  ;;  %v940_v58 = vadd.f32 1.0, %v1439_v55 }
 0x128   : > { %v1443_v59 = vpop.eup %1442  ;;  %1468 = vrcp.f32 %v924_v56  ;;  %v929_v60 = vadd.f32 1.0, %v1441_v57 }
 0x129   : > { %v1445_v61 = vpop.eup %1444  ;;  %1470 = vrcp.f32 %v940_v58  ;;  %v945_v62 = vadd.f32 1.0, %v1443_v59 }
 0x12a   : > { %v1447_v63 = vpop.eup %1446  ;;  %1472 = vrcp.f32 %v929_v60  ;;  %v927_v0 = vadd.f32 1.0, %v1445_v61 }
 0x12b   : > { %v1449_v1 = vpop.eup %1448  ;;  %1474 = vrcp.f32 %v945_v62  ;;  %v943_v2 = vadd.f32 1.0, %v1447_v63 }
 0x12c   : > { %v1451_v3 = vpop.eup %1450  ;;  %1476 = vrcp.f32 %v927_v0  ;;  %v930_v4 = vadd.f32 1.0, %v1449_v1 }
 0x12d   : > { %v1453_v5 = vpop.eup %1452  ;;  %1478 = vrcp.f32 %v943_v2  ;;  %v946_v6 = vadd.f32 1.0, %v1451_v3 }
 0x12e   : > { %v1455_v7 = vpop.eup %1454  ;;  %1480 = vrcp.f32 %v930_v4  ;;  %v928_v8 = vadd.f32 1.0, %v1453_v5 }
 0x12f   : > { %v1457_v9 = vpop.eup %1456  ;;  %1482 = vrcp.f32 %v946_v6  ;;  %v944_v10 = vadd.f32 1.0, %v1455_v7 }
 0x130   : > { %v1459_v11 = vpop.eup %1458  ;;  %1021 = vst [vmem:[%s1626_s18 + $0x50] sm:$0xff] %v1457_v9  ;;  %1484 = vrcp.f32 %v928_v8 }
 0x131   : > { %v1461_v12 = vpop.eup %1460  ;;  %1037 = vst [vmem:[%s1626_s18 + $0xd0] sm:$0xff] %v1459_v11  ;;  %1486 = vrcp.f32 %v944_v10 }
 0x132   : > { %v1463_v13 = vpop.eup %1462  ;;  %1019 = vst [vmem:[%s1626_s18 + $0x40] sm:$0xff] %v1461_v12 }
 0x133   : > { %v1465_v14 = vpop.eup %1464  ;;  %1035 = vst [vmem:[%s1626_s18 + $0xc0] sm:$0xff] %v1463_v13 }
 0x134   : > { %v1467_v15 = vpop.eup %1466  ;;  %1022 = vst [vmem:[%s1626_s18 + $0x58] sm:$0xff] %v1465_v14 }
 0x135   : > { %v1469_v16 = vpop.eup %1468  ;;  %1038 = vst [vmem:[%s1626_s18 + $0xd8] sm:$0xff] %v1467_v15 }
 0x136   : > { %v1471_v17 = vpop.eup %1470  ;;  %1020 = vst [vmem:[%s1626_s18 + $0x48] sm:$0xff] %v1469_v16 }
 0x137   : > { %v1473_v18 = vpop.eup %1472  ;;  %1036 = vst [vmem:[%s1626_s18 + $0xc8] sm:$0xff] %v1471_v17 }
 0x138   : > { %v1475_v19 = vpop.eup %1474  ;;  %1025 = vst [vmem:[%s1626_s18 + $0x70] sm:$0xff] %v1473_v18 }
 0x139   : > { %v1477_v20 = vpop.eup %1476  ;;  %1041 = vst [vmem:[%s1626_s18 + $0xf0] sm:$0xff] %v1475_v19 }
 0x13a   : > { %v1479_v21 = vpop.eup %1478  ;;  %1023 = vst [vmem:[%s1626_s18 + $0x60] sm:$0xff] %v1477_v20 }
 0x13b   : > { %v1481_v22 = vpop.eup %1480  ;;  %1039 = vst [vmem:[%s1626_s18 + $0xe0] sm:$0xff] %v1479_v21 }
 0x13c   : > { %v1483_v23 = vpop.eup %1482  ;;  %1026 = vst [vmem:[%s1626_s18 + $0x78] sm:$0xff] %v1481_v22 }
 0x13d   : > { %v1485_v25 = vpop.eup %1484  ;;  %1042 = vst [vmem:[%s1626_s18 + $0xf8] sm:$0xff] %v1483_v23 }
 0x13e   : > { %v1487_v26 = vpop.eup %1486  ;;  %1024 = vst [vmem:[%s1626_s18 + $0x68] sm:$0xff] %v1485_v25 }
 0x13f   : > { %1040 = vst [vmem:[%s1626_s18 + $0xe8] sm:$0xff] %v1487_v26 }
 0x140 PF: > { %s13_s14 = sadd.s32 1, %s1510_s14   ;;  %s1686_s12 = smov %s1506_s13 }
 0x141   : > { %p10_p5 = scmp.ge.s32.totalorder %s13_s14, 4   ;;  %s1687_s13 = smov %s1689_s15 }
 0x143   :  { %12 = sbr.rel (!%p10_p5) target bundleno = 2 (0x2), region = 76 }

// kernel: bmn_forward.19
= control target key start
LH: loop header
LB: loop body
LE: loop exit
PB: predicated region body
PF: predicated region fallthrough
CT: control target
= control target key end

     0   :  { %s3909_s12 = smov 0   ;;  %s4890_s0 = inlined_call_operand.vmem [shape: bf16[2,288,384], index: 0, kind: input, shape index: {}]   ;;  %s4891_s1 = inlined_call_operand.vmem [shape: bf16[3,384,128], index: 1, kind: input, shape index: {}]   ;;  %s4892_s2 = inlined_call_operand.vmem [shape: f32[1,128], index: 2, kind: input, shape index: {}]   ;;  %s4893_s3 = inlined_call_operand.vmem [shape: bf16[2,256,128], index: 3, kind: output, shape index: {}]  }
   0x1 LB: > { %s2694_s13 = sadd.s32 4294967295, %s3887_s12   ;;  %p2698_p0 = scmp.ge.s32.totalorder %s3887_s12, 1  ;;  %s3887_s12 = sphi %s3909_s12, %s13_s12  }
   0x2   : > { %p137_p1 = scmp.lt.s32.totalorder %s3887_s12, 3 }
   0x4   : > { %p138_p2 = pnand %p2698_p0, %p137_p1 }
   0x6   : > { %141 = sbr.rel (%p138_p2) target bundleno = 536 (0x218), region = 32 }
   0xb   : > { %v3709_v0 = vld [vmem:[%s4891_s1 + $0x138] sm:$0xff]   ;;  %v3711_v2 = vld [vmem:[%s4891_s1 + $0x130] sm:$0xff]   ;;  %p161_p3 = scmp.lt.s32.totalorder %s2694_s13, 1  ;;  %v3713_v4 = vld [vmem:[%s4891_s1 + $0x128] sm:$0xff]  }
   0xc   : > { %v3710_v1 = vld [vmem:[%s4891_s1 + $0xf8] sm:$0xff]   ;;  %3132 = vmatprep.subr.bf16.mxu0 %v3709_v0  ;;  %3684 = vmatprep.subr.bf16.mxu1 %v3709_v0  ;;  %v3712_v3 = vld [vmem:[%s4891_s1 + $0xf0] sm:$0xff]   ;;  %v3714_v5 = vld [vmem:[%s4891_s1 + $0xe8] sm:$0xff]  }
   0xd   : > { %3133 = vmatpush3.bf16.msra.mxu0 %v3710_v1  ;;  %3692 = vmatpush3.bf16.msra.mxu1 %v3710_v1  ;;  %s4923_s13 = smov (!%p161_p3, %s2694_s13), 1  ;;  %v3715_v6 = vld [vmem:[%s4891_s1 + $0x120] sm:$0xff]   ;;  %v3717_v8 = vld [vmem:[%s4891_s1 + $0x118] sm:$0xff]   ;;  %v3719_v10 = vld [vmem:[%s4891_s1 + $0x110] sm:$0xff]  }
   0xe   : > { %3134 = vmatprep.subr.bf16.mxu0 %v3711_v2  ;;  %3685 = vmatprep.subr.bf16.mxu1 %v3711_v2  ;;  %s3700_s28 = smul.u32 432, %s4923_s13  ;;  %v3716_v7 = vld [vmem:[%s4891_s1 + $0xe0] sm:$0xff]   ;;  %v3718_v9 = vld [vmem:[%s4891_s1 + $0xd8] sm:$0xff]   ;;  %v3720_v13 = vld [vmem:[%s4891_s1 + $0xd0] sm:$0xff]   ;;  %s3004_s18 = sshll.u32 %s4923_s13, 7 }
   0xf   : > { %v3721_v14 = vld [vmem:[%s4891_s1 + $0x108] sm:$0xff]   ;;  %v3723_v16 = vld [vmem:[%s4891_s1 + $0x100] sm:$0xff]   ;;  %v3731_v18 = vld [vmem:[%s4891_s1 + $0x178] sm:$0xff]   ;;  %s4763_s20 = scalar_lea.vmem %s4893_s3, %s3004_s18 }
  0x10   : > { %s3950_s8 = scalar_lea.vmem %s4890_s0, %s3700_s28  ;;  %v3722_v15 = vld [vmem:[%s4891_s1 + $0xc8] sm:$0xff]   ;;  %v3724_v17 = vld [vmem:[%s4891_s1 + $0xc0] sm:$0xff]   ;;  %v3732_v19 = vld [vmem:[%s4891_s1 + $0xb8] sm:$0xff]  }
  0x11   : > { %3135 = vmatpush3.bf16.msra.mxu0 %v3712_v3  ;;  %3693 = vmatpush3.bf16.msra.mxu1 %v3712_v3  ;;  %v3959_v11 = vld [vmem:[%s3950_s8 + $0x1c] ss:$12 sps:$4 sm:$0xff]   ;;  %v3985_v20 = vld [vmem:[%s3950_s8 + $0x18] ss:$12 sps:$4 sm:$0xff]   ;;  %v3733_v22 = vld [vmem:[%s4891_s1 + $0x170] sm:$0xff]  }
  0x12   : > { %3136 = vmatprep.subr.bf16.mxu0 %v3713_v4  ;;  %3686 = vmatprep.subr.bf16.mxu1 %v3713_v4  ;;  %v3730_v12 = vld [vmem:[%s3950_s8 + $0x13c] ss:$12 sps:$4 sm:$0xff]   ;;  %v3988_v21 = vld [vmem:[%s3950_s8 + $0x138] ss:$12 sps:$4 sm:$0xff]   ;;  %v3994_v23 = vld [vmem:[%s3950_s8 + $0x34] ss:$12 sps:$4 sm:$0xff]  }
  0x13   : > { %769 = vmatprep.mubr.bf16.mxu0 %v3959_v11  ;;  %865 = vmatprep.mubr.bf16.mxu1 %v3730_v12  ;;  %v3997_v24 = vld [vmem:[%s3950_s8 + $0x154] ss:$12 sps:$4 sm:$0xff]   ;;  %v3740_v26 = vld [vmem:[%s4891_s1 + $0x168] sm:$0xff]   ;;  %v4013_v28 = vld [vmem:[%s3950_s8 + $0x30] ss:$12 sps:$4 sm:$0xff]  }
  0x14   : > { %v3742_v25 = vld [vmem:[%s4891_s1 + $0xb0] sm:$0xff]   ;;  %v3758_v27 = vld [vmem:[%s4891_s1 + $0xa8] sm:$0xff]   ;;  %v3741_v30 = vld [vmem:[%s4891_s1 + $0x160] sm:$0xff]  }
  0x15   : > { %3137 = vmatpush3.bf16.msra.mxu0 %v3714_v5  ;;  %3694 = vmatpush3.bf16.msra.mxu1 %v3714_v5  ;;  %v4016_v29 = vld [vmem:[%s3950_s8 + $0x150] ss:$12 sps:$4 sm:$0xff]   ;;  %v4022_v31 = vld [vmem:[%s3950_s8 + $0x4c] ss:$12 sps:$4 sm:$0xff]   ;;  %v3767_v33 = vld [vmem:[%s4891_s1 + $0xa0] sm:$0xff]  }
  0x16   : > { %3138 = vmatprep.subr.bf16.mxu0 %v3715_v6  ;;  %3687 = vmatprep.subr.bf16.mxu1 %v3715_v6  ;;  %v4025_v32 = vld [vmem:[%s3950_s8 + $0x16c] ss:$12 sps:$4 sm:$0xff]   ;;  %v4035_v34 = vld [vmem:[%s3950_s8 + $0x48] ss:$12 sps:$4 sm:$0xff]   ;;  %v4047_v38 = vld [vmem:[%s3950_s8 + $0x64] ss:$12 sps:$4 sm:$0xff]  }
  0x17   : > { %v3749_v35 = vld [vmem:[%s4891_s1 + $0x158] sm:$0xff]   ;;  %v4041_v36 = vld [vmem:[%s3950_s8 + $0x168] ss:$12 sps:$4 sm:$0xff]   ;;  %v3753_v39 = vld [vmem:[%s3950_s8 + $0x184] ss:$12 sps:$4 sm:$0xff]  }
  0x18   : > { %v3750_v37 = vld [vmem:[%s4891_s1 + $0x150] sm:$0xff]   ;;  %v4054_v40 = vld [vmem:[%s3950_s8 + $0x60] ss:$12 sps:$4 sm:$0xff]   ;;  %v3780_v43 = vld [vmem:[%s4891_s1 + $0x98] sm:$0xff]  }
  0x19   : > { %3139 = vmatpush3.bf16.msra.mxu0 %v3716_v7  ;;  %3695 = vmatpush3.bf16.msra.mxu1 %v3716_v7  ;;  %v3756_v41 = vld [vmem:[%s3950_s8 + $0x180] ss:$12 sps:$4 sm:$0xff]   ;;  %v4067_v45 = vld [vmem:[%s3950_s8 + $0x7c] ss:$12 sps:$4 sm:$0xff]   ;;  %v4076_v47 = vld [vmem:[%s3950_s8 + $0x78] ss:$12 sps:$4 sm:$0xff]  }
  0x1a   : > { %3140 = vmatprep.subr.bf16.mxu0 %v3717_v8  ;;  %3688 = vmatprep.subr.bf16.mxu1 %v3717_v8  ;;  %v3757_v42 = vld [vmem:[%s4891_s1 + $0x148] sm:$0xff]   ;;  %v3759_v44 = vld [vmem:[%s4891_s1 + $0x140] sm:$0xff]   ;;  %v3765_v49 = vld [vmem:[%s4891_s1 + $0x78] sm:$0xff]  }
  0x1b   : > { %v4070_v46 = vld [vmem:[%s3950_s8 + $0x20] ss:$12 sps:$4 sm:$0xff]   ;;  %v4079_v48 = vld [vmem:[%s3950_s8 + $0x38] ss:$12 sps:$4 sm:$0xff]   ;;  %v3790_v51 = vld [vmem:[%s4891_s1 + $0x90] sm:$0xff]  }
  0x1c   : > { %v3766_v50 = vld [vmem:[%s4891_s1 + $0x38] sm:$0xff]   ;;  %v4091_v52 = vld [vmem:[%s3950_s8 + $0x94] ss:$12 sps:$4 sm:$0xff]   ;;  %v3781_v57 = vld [vmem:[%s4891_s1 + $0x68] sm:$0xff]  }
  0x1d   : > { %3141 = vmatpush3.bf16.msra.mxu0 %v3718_v9  ;;  %3696 = vmatpush3.bf16.msra.mxu1 %v3718_v9  ;;  %v4094_v53 = vld [vmem:[%s3950_s8 + $0x50] ss:$12 sps:$4 sm:$0xff]   ;;  %v4113_v58 = vld [vmem:[%s3950_s8 + $0x68] ss:$12 sps:$4 sm:$0xff]   ;;  %v4116_v59 = vld [vmem:[%s3950_s8 + $0xac] ss:$12 sps:$4 sm:$0xff]  }
  0x1e   : > { %3142 = vmatprep.subr.bf16.mxu0 %v3719_v10  ;;  %3689 = vmatprep.subr.bf16.mxu1 %v3719_v10  ;;  %v3773_v54 = vld [vmem:[%s4891_s1 + $0x70] sm:$0xff]   ;;  %v4119_v60 = vld [vmem:[%s3950_s8 + $0x80] ss:$12 sps:$4 sm:$0xff]   ;;  %v4138_v1 = vld [vmem:[%s3950_s8 + $0x98] ss:$12 sps:$4 sm:$0xff]  }
  0x1f   : > { %v3774_v55 = vld [vmem:[%s4891_s1 + $0x30] sm:$0xff]   ;;  %v3803_v61 = vld [vmem:[%s4891_s1 + $0x88] sm:$0xff]   ;;  %v3788_v63 = vld [vmem:[%s4891_s1 + $0x60] sm:$0xff]  }
  0x20   : > { %v4107_v56 = vld [vmem:[%s3950_s8 + $0x90] ss:$12 sps:$4 sm:$0xff]   ;;  %v3782_v62 = vld [vmem:[%s4891_s1 + $0x28] sm:$0xff]   ;;  %v3789_v2 = vld [vmem:[%s4891_s1 + $0x20] sm:$0xff]  }
  0x21   : > { %3143 = vmatpush3.bf16.msra.mxu0 %v3720_v13  ;;  %3697 = vmatpush3.bf16.msra.mxu1 %v3720_v13  ;;  %v4135_v0 = vld [vmem:[%s3950_s8 + $0xa8] ss:$12 sps:$4 sm:$0xff]   ;;  %v4144_v3 = vld [vmem:[%s3950_s8 + $0xc4] ss:$12 sps:$4 sm:$0xff]   ;;  %v3796_v4 = vld [vmem:[%s4891_s1 + $0x58] sm:$0xff]  }
  0x22   : > { %3144 = vmatprep.subr.bf16.mxu0 %v3721_v14  ;;  %3690 = vmatprep.subr.bf16.mxu1 %v3721_v14  ;;  %v4150_v5 = vld [vmem:[%s3950_s8 + $0xb0] ss:$12 sps:$4 sm:$0xff]   ;;  %v3813_v6 = vld [vmem:[%s4891_s1 + $0x80] sm:$0xff]   ;;  %v4169_v10 = vld [vmem:[%s3950_s8 + $0xc8] ss:$12 sps:$4 sm:$0xff]  }
  0x23   : > { %v3797_v7 = vld [vmem:[%s4891_s1 + $0x18] sm:$0xff]   ;;  %v3804_v8 = vld [vmem:[%s4891_s1 + $0x50] sm:$0xff]   ;;  %v4166_v9 = vld [vmem:[%s3950_s8 + $0xc0] ss:$12 sps:$4 sm:$0xff]  }
  0x24   : > { %v3805_v12 = vld [vmem:[%s4891_s1 + $0x10] sm:$0xff]   ;;  %v3811_v13 = vld [vmem:[%s4891_s1 + $0x48] sm:$0xff]  }
  0x25   : > { %3145 = vmatpush3.bf16.msra.mxu0 %v3722_v15  ;;  %3698 = vmatpush3.bf16.msra.mxu1 %v3722_v15  ;;  %v4178_v14 = vld [vmem:[%s3950_s8 + $0xdc] ss:$12 sps:$4 sm:$0xff]   ;;  %v4181_v15 = vld [vmem:[%s3950_s8 + $0xe0] ss:$12 sps:$4 sm:$0xff]  }
  0x26   : > { %3146 = vmatprep.subr.bf16.mxu0 %v3723_v16  ;;  %3691 = vmatprep.subr.bf16.mxu1 %v3723_v16  ;;  %v3812_v16 = vld [vmem:[%s4891_s1 + $0x8] sm:$0xff]  }
  0x29   : > { %3147 = vmatpush3.bf16.msra.mxu0 %v3724_v17  ;;  %3699 = vmatpush3.bf16.msra.mxu1 %v3724_v17  ;;  %v3825_v17 = vld [vmem:[%s4891_s1 + $0x1f8] sm:$0xff]  }
  0x2a   : > { %3540 = vmatprep.subr.bf16.mxu1 %v3731_v18  ;;  %3588 = vmatprep.subr.bf16.mxu0 %v3732_v19 }
  0x2c   : > { %770 = vmatmul.mubr.bf16.vlgmr.msra.gmra.mxu0 %v3985_v20  ;;  %866 = vmatmul.mubr.bf16.vlgmr.msra.gmra.mxu1 %v3988_v21 }
  0x2d   : > { %3541 = vmatpush3.bf16.msra.mxu1 %v3731_v18  ;;  %3589 = vmatpush3.bf16.msra.mxu0 %v3732_v19  ;;  %v3819_v18 = vld [vmem:[%s4891_s1 + $0x40] sm:$0xff]  }
  0x2e   : > { %3542 = vmatprep.subr.bf16.mxu1 %v3733_v22  ;;  %777 = vmatprep.mubr.bf16.mxu0 %v3994_v23  ;;  %v4197_v19 = vld [vmem:[%s3950_s8 + $0xd8] ss:$12 sps:$4 sm:$0xff]  }
  0x2f   : > { %873 = vmatprep.mubr.bf16.mxu1 %v3997_v24  ;;  %3590 = vmatprep.subr.bf16.mxu0 %v3742_v25 }
  0x31   : > { %3543 = vmatpush3.bf16.msra.mxu1 %v3733_v22  ;;  %3591 = vmatpush3.bf16.msra.mxu0 %v3742_v25  ;;  %v4200_v22 = vld [vmem:[%s3950_s8 + $0xf8] ss:$12 sps:$4 sm:$0xff]  }
  0x32   : > { %3544 = vmatprep.subr.bf16.mxu1 %v3740_v26  ;;  %3592 = vmatprep.subr.bf16.mxu0 %v3758_v27  ;;  %v3820_v25 = vld [vmem:[%s4891_s1] sm:$0xff]  }
  0x34   : > { %778 = vmatmul.mubr.bf16.gmra.mxu0 %v4013_v28  ;;  %874 = vmatmul.mubr.bf16.gmra.mxu1 %v4016_v29 }
  0x35   : > { %3545 = vmatpush3.bf16.msra.mxu1 %v3740_v26  ;;  %785 = vmatprep.mubr.bf16.mxu0 %v4022_v31  ;;  %v3827_v26 = vld [vmem:[%s4891_s1 + $0x238] sm:$0xff]  }
  0x36   : > { %3546 = vmatprep.subr.bf16.mxu1 %v3741_v30  ;;  %881 = vmatprep.mubr.bf16.mxu1 %v4025_v32 }
  0x37   : > { %3593 = vmatpush3.bf16.msra.mxu0 %v3758_v27  ;;  %v4209_v27 = vld [vmem:[%s3950_s8 + $0xf4] ss:$12 sps:$4 sm:$0xff]  }
  0x38   : > { %3594 = vmatprep.subr.bf16.mxu0 %v3767_v33 }
  0x39   : > { %3547 = vmatpush3.bf16.msra.mxu1 %v3741_v30  ;;  %v4212_v30 = vld [vmem:[%s3950_s8 + $0x110] ss:$12 sps:$4 sm:$0xff]  }
  0x3a   : > { %3548 = vmatprep.subr.bf16.mxu1 %v3749_v35 }
  0x3b   : > { %3595 = vmatpush3.bf16.msra.mxu0 %v3767_v33  ;;  %v4219_v33 = vld [vmem:[%s3950_s8 + $0xf0] ss:$12 sps:$4 sm:$0xff]  }
  0x3c   : > { %786 = vmatmul.mubr.bf16.gmra.mxu0 %v4035_v34  ;;  %882 = vmatmul.mubr.bf16.gmra.mxu1 %v4041_v36 }
  0x3d   : > { %3549 = vmatpush3.bf16.msra.mxu1 %v3749_v35  ;;  %793 = vmatprep.mubr.bf16.mxu0 %v4047_v38  ;;  %v4222_v35 = vld [vmem:[%s3950_s8 + $0x128] ss:$12 sps:$4 sm:$0xff]  }
  0x3e   : > { %3550 = vmatprep.subr.bf16.mxu1 %v3750_v37  ;;  %889 = vmatprep.mubr.bf16.mxu1 %v3753_v39  ;;  %v4228_v39 = vld [vmem:[%s3950_s8 + $0x140] ss:$12 sps:$4 sm:$0xff]  }
  0x3f   : > { %3596 = vmatprep.subr.bf16.mxu0 %v3780_v43 }
  0x40   : > { %3597 = vmatpush3.bf16.msra.mxu0 %v3780_v43  ;;  %v4241_v43 = vld [vmem:[%s3950_s8 + $0x124] ss:$12 sps:$4 sm:$0xff]  }
  0x41   : > { %3551 = vmatpush3.bf16.msra.mxu1 %v3750_v37  ;;  %3598 = vmatprep.subr.bf16.mxu0 %v3790_v51  ;;  %v4225_v37 = vld [vmem:[%s3950_s8 + $0x10c] ss:$12 sps:$4 sm:$0xff]  }
  0x42   : > { %3552 = vmatprep.subr.bf16.mxu1 %v3757_v42 }
  0x44   : > { %794 = vmatmul.mubr.bf16.gmra.mxu0 %v4054_v40  ;;  %890 = vmatmul.mubr.bf16.gmra.mxu1 %v3756_v41  ;;  %v4235_v41 = vld [vmem:[%s3950_s8 + $0x108] ss:$12 sps:$4 sm:$0xff]  }
  0x45   : > { %3553 = vmatpush3.bf16.msra.mxu1 %v3757_v42  ;;  %801 = vmatprep.mubr.bf16.mxu0 %v4067_v45  ;;  %v4238_v42 = vld [vmem:[%s3950_s8 + $0x158] ss:$12 sps:$4 sm:$0xff]  }
  0x46   : > { %3554 = vmatprep.subr.bf16.mxu1 %v3759_v44  ;;  %3556 = vmatprep.mubr.bf16.mxu1 %v4070_v46 }
  0x47   : > { %3599 = vmatpush3.bf16.msra.mxu0 %v3790_v51  ;;  %v3823_v51 = vld [vmem:[%s3950_s8 + $0x4] ss:$12 sps:$4 sm:$0xff]  }
  0x48   : > { %3600 = vmatprep.subr.bf16.mxu0 %v3803_v61 }
  0x49   : > { %3555 = vmatpush3.bf16.msra.mxu1 %v3759_v44  ;;  %v4244_v44 = vld [vmem:[%s3950_s8 + $0x170] ss:$12 sps:$4 sm:$0xff]  }
  0x4a   : > { %3268 = vmatprep.subr.bf16.mxu1 %v3765_v49  ;;  %v4251_v49 = vld [vmem:[%s3950_s8 + $0x120] ss:$12 sps:$4 sm:$0xff]  }
  0x4b   : > { %3601 = vmatpush3.bf16.msra.mxu0 %v3803_v61  ;;  %v3828_v61 = vld [vmem:[%s4891_s1 + $0x1f0] sm:$0xff]  }
  0x4c   : > { %802 = vmatmul.mubr.bf16.gmra.mxu0 %v4076_v47  ;;  %3557 = vmatmul.mubr.bf16.vlgmr.msra.gmra.mxu1 %v4079_v48 }
  0x4d   : > { %3269 = vmatpush3.bf16.msra.mxu1 %v3766_v50  ;;  %809 = vmatprep.mubr.bf16.mxu0 %v4091_v52  ;;  %v3818_v50 = vld [vmem:[%s3950_s8 + $0x188] ss:$12 sps:$4 sm:$0xff]  }
  0x4e   : > { %3560 = vmatprep.mubr.bf16.mxu1 %v4094_v53  ;;  %3270 = vmatprep.subr.bf16.mxu1 %v3773_v54  ;;  %v3824_v54 = vld [vmem:[%s3950_s8 + $0x8] ss:$12 sps:$4 sm:$0xff]  }
  0x4f   : > { %3602 = vmatprep.subr.bf16.mxu0 %v3813_v6 }
  0x50   : > { %3603 = vmatpush3.bf16.msra.mxu0 %v3813_v6  ;;  %v3834_v6 = vld [vmem:[%s4891_s1 + $0x1a0] sm:$0xff]  }
  0x51   : > { %3271 = vmatpush3.bf16.msra.mxu1 %v3774_v55  ;;  %3404 = vmatprep.subr.bf16.mxu0 %v3825_v17  ;;  %v3821_v55 = vld [vmem:[%s3950_s8] ss:$12 sps:$4 sm:$0xff]  }
  0x52   : > { %3272 = vmatprep.subr.bf16.mxu1 %v3781_v57  ;;  %v3826_v57 = vld [vmem:[%s4891_s1 + $0x1b8] sm:$0xff]   ;;  %v3848_v17 = vld [vmem:[%s4891_s1 + $0x200] sm:$0xff]  }
  0x54   : > { %810 = vmatmul.mubr.bf16.gmra.mxu0 %v4107_v56  ;;  %3561 = vmatmul.mubr.bf16.gmra.mxu1 %v4113_v58 }
  0x55   : > { %817 = vmatprep.mubr.bf16.mxu0 %v4116_v59  ;;  %3564 = vmatprep.mubr.bf16.mxu1 %v4119_v60 }
  0x56   : > { %3273 = vmatpush3.bf16.msra.mxu1 %v3782_v62  ;;  %v3832_v62 = vld [vmem:[%s4891_s1 + $0x230] sm:$0xff]  }
  0x57   : > { %3274 = vmatprep.subr.bf16.mxu1 %v3788_v63  ;;  %v3829_v63 = vld [vmem:[%s4891_s1 + $0x1b0] sm:$0xff]  }
  0x5a   : > { %3275 = vmatpush3.bf16.msra.mxu1 %v3789_v2  ;;  %v3830_v2 = vld [vmem:[%s4891_s1 + $0x1e8] sm:$0xff]  }
  0x5b   : > { %3276 = vmatprep.subr.bf16.mxu1 %v3796_v4  ;;  %v3837_v4 = vld [vmem:[%s4891_s1 + $0x228] sm:$0xff]  }
  0x5c   : > { %818 = vmatmul.mubr.bf16.gmra.mxu0 %v4135_v0  ;;  %3565 = vmatmul.mubr.bf16.gmra.mxu1 %v4138_v1 }
  0x5d   : > { %825 = vmatprep.mubr.bf16.mxu0 %v4144_v3  ;;  %3568 = vmatprep.mubr.bf16.mxu1 %v4150_v5 }
  0x5e   : > { %3277 = vmatpush3.bf16.msra.mxu1 %v3797_v7  ;;  %v3835_v7 = vld [vmem:[%s4891_s1 + $0x1d8] sm:$0xff]  }
  0x5f   : > { %3278 = vmatprep.subr.bf16.mxu1 %v3804_v8  ;;  %v3846_v8 = vld [vmem:[%s4891_s1 + $0x210] sm:$0xff]  }
  0x62   : > { %3279 = vmatpush3.bf16.msra.mxu1 %v3805_v12  ;;  %v3839_v12 = vld [vmem:[%s4891_s1 + $0x190] sm:$0xff]  }
  0x63   : > { %3280 = vmatprep.subr.bf16.mxu1 %v3811_v13  ;;  %v3840_v13 = vld [vmem:[%s4891_s1 + $0x1c8] sm:$0xff]  }
  0x64   : > { %826 = vmatmul.mubr.bf16.gmra.mxu0 %v4166_v9  ;;  %3569 = vmatmul.mubr.bf16.gmra.mxu1 %v4169_v10 }
  0x65   : > { %833 = vmatprep.mubr.bf16.mxu0 %v4178_v14  ;;  %3572 = vmatprep.mubr.bf16.mxu1 %v4181_v15 }
  0x66   : > { %3281 = vmatpush3.bf16.msra.mxu1 %v3812_v16  ;;  %v3843_v16 = vld [vmem:[%s4891_s1 + $0x1c0] sm:$0xff]  }
  0x67   : > { %3282 = vmatprep.subr.bf16.mxu1 %v3819_v18  ;;  %v3844_v18 = vld [vmem:[%s4891_s1 + $0x180] sm:$0xff]  }
  0x6a   : > { %3283 = vmatpush3.bf16.msra.mxu1 %v3820_v25 }
  0x6b   : > { %3636 = vmatprep.subr.bf16.mxu1 %v3827_v26 }
  0x6c   : > { %834 = vmatmul.mubr.bf16.gmra.mxu0 %v4197_v19  ;;  %3573 = vmatmul.mubr.bf16.gmra.mxu1 %v4200_v22 }
  0x6d   : > { %841 = vmatprep.mubr.bf16.mxu0 %v4209_v27  ;;  %3576 = vmatprep.mubr.bf16.mxu1 %v4212_v30 }
  0x74   : > { %842 = vmatmul.mubr.bf16.gmra.mxu0 %v4219_v33  ;;  %3577 = vmatmul.mubr.bf16.gmra.mxu1 %v4222_v35 }
  0x75   : > { %849 = vmatprep.mubr.bf16.mxu0 %v4225_v37  ;;  %3580 = vmatprep.mubr.bf16.mxu1 %v4228_v39 }
  0x7c   : > { %850 = vmatmul.mubr.bf16.gmra.mxu0 %v4235_v41  ;;  %3581 = vmatmul.mubr.bf16.gmra.mxu1 %v4238_v42 }
  0x7d   : > { %857 = vmatprep.mubr.bf16.mxu0 %v4241_v43  ;;  %3584 = vmatprep.mubr.bf16.mxu1 %v4244_v44 }
  0x84   : > { %858 = vmatmul.mubr.bf16.gmra.mxu0 %v4251_v49  ;;  %3585 = vmatmul.mubr.bf16.gmra.mxu1 %v3818_v50 }
  0x85   : > { %1251 = vmatprep.mubr.bf16.mxu1 %v3823_v51  ;;  %3604 = vmatprep.mubr.bf16.mxu0 %v3824_v54 }
  0x8c   : > { %1252 = vmatmul.mubr.bf16.vlgmr.msra.gmra.mxu1 %v3821_v55  ;;  %3605 = vmatmul.mubr.bf16.vlgmr.msra.gmra.mxu0 %v4070_v46  ;;  %v3831_v46 = vld [vmem:[%s4891_s1 + $0x1a8] sm:$0xff]  }
  0x8d   : > { %3405 = vmatpush3.bf16.msra.mxu0 %v3826_v57  ;;  %3637 = vmatpush3.bf16.msra.mxu1 %v3827_v26 }
  0x8e   : > { %1259 = vmatprep.mubr.bf16.mxu1 %v3959_v11  ;;  %3608 = vmatprep.mubr.bf16.mxu0 %v4079_v48  ;;  %v3833_v11 = vld [vmem:[%s4891_s1 + $0x1e0] sm:$0xff]  }
  0x8f   : > { %3406 = vmatprep.subr.bf16.mxu0 %v3828_v61  ;;  %3638 = vmatprep.subr.bf16.mxu1 %v3832_v62  ;;  %v3842_v48 = vld [vmem:[%s4891_s1 + $0x220] sm:$0xff]  }
  0x91   : > { %3407 = vmatpush3.bf16.msra.mxu0 %v3829_v63  ;;  %3639 = vmatpush3.bf16.msra.mxu1 %v3832_v62  ;;  %v3849_v63 = vld [vmem:[%s3950_s8 + $0x38] ss:$12 sps:$4 sm:$0xff]  }
  0x92   : > { %3408 = vmatprep.subr.bf16.mxu0 %v3830_v2  ;;  %3640 = vmatprep.subr.bf16.mxu1 %v3837_v4 }
  0x94   : > { %1260 = vmatmul.mubr.bf16.gmra.mxu1 %v3985_v20  ;;  %3609 = vmatmul.mubr.bf16.gmra.mxu0 %v4094_v53  ;;  %v3845_v20 = vld [vmem:[%s4891_s1 + $0x218] sm:$0xff]  }
  0x95   : > { %1267 = vmatprep.mubr.bf16.mxu1 %v3994_v23  ;;  %3612 = vmatprep.mubr.bf16.mxu0 %v4113_v58  ;;  %v3836_v53 = vld [vmem:[%s4891_s1 + $0x198] sm:$0xff]   ;;  %v3838_v58 = vld [vmem:[%s4891_s1 + $0x1d0] sm:$0xff]  }
  0x96   : > { %3409 = vmatpush3.bf16.msra.mxu0 %v3831_v46  ;;  %3641 = vmatpush3.bf16.msra.mxu1 %v3837_v4 }
  0x97   : > { %3410 = vmatprep.subr.bf16.mxu0 %v3833_v11  ;;  %3642 = vmatprep.subr.bf16.mxu1 %v3842_v48 }
  0x9a   : > { %3411 = vmatpush3.bf16.msra.mxu0 %v3834_v6  ;;  %3643 = vmatpush3.bf16.msra.mxu1 %v3842_v48 }
  0x9b   : > { %3412 = vmatprep.subr.bf16.mxu0 %v3835_v7  ;;  %3644 = vmatprep.subr.bf16.mxu1 %v3845_v20 }
  0x9c   : > { %1268 = vmatmul.mubr.bf16.gmra.mxu1 %v4013_v28  ;;  %3613 = vmatmul.mubr.bf16.gmra.mxu0 %v4119_v60  ;;  %v3847_v60 = vld [vmem:[%s4891_s1 + $0x208] sm:$0xff]  }
  0x9d   : > { %1275 = vmatprep.mubr.bf16.mxu1 %v4022_v31  ;;  %3616 = vmatprep.mubr.bf16.mxu0 %v4138_v1  ;;  %v3841_v1 = vld [vmem:[%s4891_s1 + $0x188] sm:$0xff]  }
  0x9e   : > { %3413 = vmatpush3.bf16.msra.mxu0 %v3836_v53  ;;  %3645 = vmatpush3.bf16.msra.mxu1 %v3845_v20  ;;  %v3850_v53 = vld [vmem:[%s3950_s8 + $0x50] ss:$12 sps:$4 sm:$0xff]  }
  0x9f   : > { %3414 = vmatprep.subr.bf16.mxu0 %v3838_v58  ;;  %3646 = vmatprep.subr.bf16.mxu1 %v3846_v8  ;;  %v3851_v58 = vld [vmem:[%s3950_s8 + $0x68] ss:$12 sps:$4 sm:$0xff]  }
  0xa2   : > { %3415 = vmatpush3.bf16.msra.mxu0 %v3839_v12  ;;  %3647 = vmatpush3.bf16.msra.mxu1 %v3846_v8 }
  0xa3   : > { %3416 = vmatprep.subr.bf16.mxu0 %v3840_v13  ;;  %3648 = vmatprep.subr.bf16.mxu1 %v3847_v60 }
  0xa4   : > { %1276 = vmatmul.mubr.bf16.gmra.mxu1 %v4035_v34  ;;  %3617 = vmatmul.mubr.bf16.gmra.mxu0 %v4150_v5 }
  0xa5   : > { %1283 = vmatprep.mubr.bf16.mxu1 %v4047_v38  ;;  %3620 = vmatprep.mubr.bf16.mxu0 %v4169_v10 }
  0xa6   : > { %3417 = vmatpush3.bf16.msra.mxu0 %v3841_v1  ;;  %3649 = vmatpush3.bf16.msra.mxu1 %v3847_v60 }
  0xa7   : > { %3418 = vmatprep.subr.bf16.mxu0 %v3843_v16  ;;  %3650 = vmatprep.subr.bf16.mxu1 %v3848_v17 }
  0xaa   : > { %3419 = vmatpush3.bf16.msra.mxu0 %v3844_v18  ;;  %3651 = vmatpush3.bf16.msra.mxu1 %v3848_v17 }
  0xac   : > { %1284 = vmatmul.mubr.bf16.gmra.mxu1 %v4054_v40  ;;  %3621 = vmatmul.mubr.bf16.gmra.mxu0 %v4181_v15 }
  0xad   : > { %1291 = vmatprep.mubr.bf16.mxu1 %v4067_v45  ;;  %3624 = vmatprep.mubr.bf16.mxu0 %v4200_v22 }
  0xb4   : > { %1292 = vmatmul.mubr.bf16.gmra.mxu1 %v4076_v47  ;;  %3625 = vmatmul.mubr.bf16.gmra.mxu0 %v4212_v30 }
  0xb5   : > { %1299 = vmatprep.mubr.bf16.mxu1 %v4091_v52  ;;  %3628 = vmatprep.mubr.bf16.mxu0 %v4222_v35 }
  0xbc   : > { %1300 = vmatmul.mubr.bf16.gmra.mxu1 %v4107_v56  ;;  %3629 = vmatmul.mubr.bf16.gmra.mxu0 %v4228_v39 }
  0xbd   : > { %1307 = vmatprep.mubr.bf16.mxu1 %v4116_v59  ;;  %3632 = vmatprep.mubr.bf16.mxu0 %v4238_v42 }
  0xc4   : > { %1308 = vmatmul.mubr.bf16.gmra.mxu1 %v4135_v0  ;;  %3633 = vmatmul.mubr.bf16.gmra.mxu0 %v4244_v44 }
  0xc5   : > { %1315 = vmatprep.mubr.bf16.mxu1 %v4144_v3  ;;  %2086 = vmatprep.mubr.bf16.mxu0 %v3994_v23 }
  0xcc   : > { %1316 = vmatmul.mubr.bf16.gmra.mxu1 %v4166_v9  ;;  %2087 = vmatmul.mubr.bf16.vlgmr.msra.gmra.mxu0 %v4013_v28 }
  0xcd   : > { %1323 = vmatprep.mubr.bf16.mxu1 %v4178_v14  ;;  %2094 = vmatprep.mubr.bf16.mxu0 %v4022_v31  ;;  %v3880_v31 = vld [vmem:[%s3950_s8 + $0x13c] ss:$12 sps:$4 sm:$0xff]  }
  0xd4   : > { %1324 = vmatmul.mubr.bf16.gmra.mxu1 %v4197_v19  ;;  %2095 = vmatmul.mubr.bf16.gmra.mxu0 %v4035_v34 }
  0xd5   : > { %1331 = vmatprep.mubr.bf16.mxu1 %v4209_v27  ;;  %2102 = vmatprep.mubr.bf16.mxu0 %v4047_v38 }
  0xdc   : > { %1332 = vmatmul.mubr.bf16.gmra.mxu1 %v4219_v33  ;;  %2103 = vmatmul.mubr.bf16.gmra.mxu0 %v4054_v40 }
  0xdd   : > { %1339 = vmatprep.mubr.bf16.mxu1 %v4225_v37  ;;  %2110 = vmatprep.mubr.bf16.mxu0 %v4067_v45 }
  0xe4   : > { %1340 = vmatmul.mubr.bf16.gmra.mxu1 %v4235_v41  ;;  %2111 = vmatmul.mubr.bf16.gmra.mxu0 %v4076_v47 }
  0xe5   : > { %1347 = vmatprep.mubr.bf16.mxu1 %v4241_v43  ;;  %2118 = vmatprep.mubr.bf16.mxu0 %v4091_v52 }
  0xec   : > { %v3148_v23 = vpop.f32.mrf.mxu0  ;;  %v3220_v28 = vpop.f32.mrf.mxu1  ;;  %1348 = vmatmul.mubr.bf16.gmra.mxu1 %v4251_v49  ;;  %2119 = vmatmul.mubr.bf16.gmra.mxu0 %v4107_v56 }
  0xed   : > { %1355 = vmatprep.mubr.bf16.mxu1 %v3880_v31  ;;  %2126 = vmatprep.mubr.bf16.mxu0 %v4116_v59  ;;  %v3852_v31 = vld [vmem:[%s3950_s8 + $0x80] ss:$12 sps:$4 sm:$0xff]  }
  0xee   : > { %v3149_v34 = vpop.f32.mrf.mxu0  ;;  %v3221_v38 = vpop.f32.mrf.mxu1 }
  0xef   : > { %v4375_v40 = vadd.f32 %v3149_v34, %v3148_v23  ;;  %v4377_v45 = vadd.f32 %v3221_v38, %v3220_v28  ;;  %v3853_v38 = vld [vmem:[%s3950_s8 + $0x98] ss:$12 sps:$4 sm:$0xff]  }
  0xf0   : > { %v3151_v47 = vpop.f32.mrf.mxu0  ;;  %v3223_v5 = vpop.f32.mrf.mxu1 }
  0xf2   : > { %v3152_v10 = vpop.f32.mrf.mxu0  ;;  %v3224_v52 = vpop.f32.mrf.mxu1 }
  0xf3   : > { %v4379_v15 = vadd.f32 %v3152_v10, %v3151_v47  ;;  %v4381_v22 = vadd.f32 %v3224_v52, %v3223_v5 }
  0xf4   : > { %v3154_v25 = vpop.f32.mrf.mxu0  ;;  %v3226_v56 = vpop.f32.mrf.mxu1  ;;  %1356 = vmatmul.mubr.bf16.gmra.mxu1 %v3988_v21  ;;  %2127 = vmatmul.mubr.bf16.gmra.mxu0 %v4135_v0 }
  0xf5   : > { %1363 = vmatprep.mubr.bf16.mxu1 %v3997_v24  ;;  %2134 = vmatprep.mubr.bf16.mxu0 %v4144_v3 }
  0xf6   : > { %v3155_v59 = vpop.f32.mrf.mxu0  ;;  %v3227_v26 = vpop.f32.mrf.mxu1 }
  0xf7   : > { %v3156_v30 = vadd.f32 %v3155_v59, %v3154_v25  ;;  %v4387_v35 = vadd.f32 %v3227_v26, %v3226_v56 }
  0xf8   : > { %v3157_v39 = vpop.f32.mrf.mxu0  ;;  %v3229_v42 = vpop.f32.mrf.mxu1 }
  0xfa   : > { %v3158_v44 = vpop.f32.mrf.mxu0  ;;  %v3230_v50 = vpop.f32.mrf.mxu1 }
  0xfb   : > { %v3159_v51 = vadd.f32 %v3158_v44, %v3157_v39  ;;  %v4389_v54 = vadd.f32 %v3230_v50, %v3229_v42  ;;  %v3854_v39 = vld [vmem:[%s3950_s8 + $0xb0] ss:$12 sps:$4 sm:$0xff]   ;;  %v3858_v50 = vld [vmem:[%s3950_s8 + $0xc8] ss:$12 sps:$4 sm:$0xff]  }
  0xfc   : > { %v3160_v21 = vpop.f32.mrf.mxu0  ;;  %v3232_v55 = vpop.f32.mrf.mxu1  ;;  %1364 = vmatmul.mubr.bf16.gmra.mxu1 %v4016_v29  ;;  %2135 = vmatmul.mubr.bf16.gmra.mxu0 %v4166_v9  ;;  %v3857_v44 = vld [vmem:[%s3950_s8 + $0x13c] ss:$12 sps:$4 sm:$0xff]  }
  0xfd   : > { %1371 = vmatprep.mubr.bf16.mxu1 %v4025_v32  ;;  %2142 = vmatprep.mubr.bf16.mxu0 %v4178_v14 }
  0xfe   : > { %v3161_v24 = vpop.f32.mrf.mxu0  ;;  %v3233_v0 = vpop.f32.mrf.mxu1 }
  0xff   : > { %v3162_v3 = vadd.f32 %v3161_v24, %v3160_v21  ;;  %v4395_v57 = vadd.f32 %v3233_v0, %v3232_v55 }
 0x100   : > { %v3163_v61 = vpop.f32.mrf.mxu0  ;;  %v3235_v62 = vpop.f32.mrf.mxu1 }
 0x102   : > { %v3164_v2 = vpop.f32.mrf.mxu0  ;;  %v3236_v4 = vpop.f32.mrf.mxu1 }
 0x103   : > { %v3165_v46 = vadd.f32 %v3164_v2, %v3163_v61  ;;  %v4398_v29 = vadd.f32 %v3236_v4, %v3235_v62 }
 0x104   : > { %v3166_v9 = vpop.f32.mrf.mxu0  ;;  %v3238_v11 = vpop.f32.mrf.mxu1  ;;  %1372 = vmatmul.mubr.bf16.gmra.mxu1 %v4041_v36  ;;  %2143 = vmatmul.mubr.bf16.gmra.mxu0 %v4197_v19 }
 0x105   : > { %2150 = vmatprep.mubr.bf16.mxu0 %v4209_v27  ;;  %3652 = vmatprep.mubr.bf16.mxu1 %v3849_v63 }
 0x106   : > { %v3167_v32 = vpop.f32.mrf.mxu0  ;;  %v3239_v14 = vpop.f32.mrf.mxu1 }
 0x107   : > { %v3168_v48 = vadd.f32 %v3167_v32, %v3166_v9  ;;  %v4403_v6 = vadd.f32 %v3239_v14, %v3238_v11  ;;  %v3859_v9 = vld [vmem:[%s3950_s8 + $0xe0] ss:$12 sps:$4 sm:$0xff]   ;;  %v3863_v14 = vld [vmem:[%s3950_s8 + $0xf8] ss:$12 sps:$4 sm:$0xff]  }
 0x108   : > { %v3169_v7 = vpop.f32.mrf.mxu0  ;;  %v3241_v20 = vpop.f32.mrf.mxu1  ;;  %v3862_v32 = vld [vmem:[%s3950_s8 + $0x154] ss:$12 sps:$4 sm:$0xff]  }
 0x10a   : > { %v3170_v8 = vpop.f32.mrf.mxu0  ;;  %v3242_v12 = vpop.f32.mrf.mxu1 }
 0x10b   : > { %v3171_v13 = vadd.f32 %v3170_v8, %v3169_v7  ;;  %v4407_v60 = vadd.f32 %v3242_v12, %v3241_v20 }
 0x10c   : > { %v3172_v36 = vpop.f32.mrf.mxu0  ;;  %v3558_v19 = vpop.f32.mrf.mxu1  ;;  %2151 = vmatmul.mubr.bf16.gmra.mxu0 %v4219_v33  ;;  %3653 = vmatmul.mubr.bf16.vlgmr.msra.gmra.mxu1 %v3850_v53 }
 0x10d   : > { %v4410_v27 = vadd.f32 %v3558_v19, %v3156_v30  ;;  %2158 = vmatprep.mubr.bf16.mxu0 %v4225_v37  ;;  %3656 = vmatprep.mubr.bf16.mxu1 %v3851_v58 }
 0x10e   : > { %v3173_v1 = vpop.f32.mrf.mxu0  ;;  %v932_v16 = vpop.f32.mrf.mxu1 }
 0x10f   : > { %v3174_v17 = vadd.f32 %v3173_v1, %v3172_v36  ;;  %v4414_v18 = vadd.f32 %v4375_v40, %v932_v16  ;;  %v3860_v16 = vld [vmem:[%s3950_s8 + $0x150] ss:$12 sps:$4 sm:$0xff]  }
 0x110   : > { %v3175_v23 = vpop.f32.mrf.mxu0  ;;  %v3559_v28 = vpop.f32.mrf.mxu1 }
 0x111   : > { %v4417_v34 = vadd.f32 %v3559_v28, %v3159_v51  ;;  %v3867_v28 = vld [vmem:[%s3950_s8 + $0x16c] ss:$12 sps:$4 sm:$0xff]  }
 0x112   : > { %v3176_v47 = vpop.f32.mrf.mxu0  ;;  %v935_v33 = vpop.f32.mrf.mxu1 }
 0x113   : > { %v3177_v5 = vadd.f32 %v3176_v47, %v3175_v23  ;;  %v4421_v10 = vadd.f32 %v4379_v15, %v935_v33 }
 0x114   : > { %v3178_v37 = vpop.f32.mrf.mxu0  ;;  %v3562_v52 = vpop.f32.mrf.mxu1  ;;  %2159 = vmatmul.mubr.bf16.gmra.mxu0 %v4235_v41  ;;  %3657 = vmatmul.mubr.bf16.gmra.mxu1 %v3852_v31  ;;  %v3868_v31 = vld [vmem:[%s3950_s8 + $0x128] ss:$12 sps:$4 sm:$0xff]  }
 0x115   : > { %v4424_v40 = vadd.f32 %v3562_v52, %v3168_v48  ;;  %2166 = vmatprep.mubr.bf16.mxu0 %v4241_v43  ;;  %3660 = vmatprep.mubr.bf16.mxu1 %v3853_v38 }
 0x116   : > { %v3179_v25 = vpop.f32.mrf.mxu0  ;;  %v948_v56 = vpop.f32.mrf.mxu1 }
 0x117   : > { %v3180_v59 = vadd.f32 %v3179_v25, %v3178_v37  ;;  %v4427_v26 = vadd.f32 %v3162_v3, %v948_v56 }
 0x118   : > { %v3181_v30 = vpop.f32.mrf.mxu0  ;;  %v3563_v15 = vpop.f32.mrf.mxu1 }
 0x119   : > { %v4430_v42 = vadd.f32 %v3563_v15, %v3171_v13 }
 0x11a   : > { %v3182_v51 = vpop.f32.mrf.mxu0  ;;  %v951_v41 = vpop.f32.mrf.mxu1 }
 0x11b   : > { %v3183_v21 = vadd.f32 %v3182_v51, %v3181_v30  ;;  %v4434_v55 = vadd.f32 %v3165_v46, %v951_v41  ;;  %v3855_v46 = vld [vmem:[%s3950_s8 + $0x138] ss:$12 sps:$4 sm:$0xff]  }
 0x11c   : > { %v3184_v43 = vpop.f32.mrf.mxu0  ;;  %v3566_v24 = vpop.f32.mrf.mxu1  ;;  %2167 = vmatmul.mubr.bf16.gmra.mxu0 %v4251_v49  ;;  %3661 = vmatmul.mubr.bf16.gmra.mxu1 %v3854_v39  ;;  %v3872_v41 = vld [vmem:[%s3950_s8 + $0x184] ss:$12 sps:$4 sm:$0xff]  }
 0x11d   : > { %v4437_v0 = vadd.f32 %v3566_v24, %v3180_v59  ;;  %2174 = vmatprep.mubr.bf16.mxu0 %v3857_v44  ;;  %3664 = vmatprep.mubr.bf16.mxu1 %v3858_v50  ;;  %v3865_v44 = vld [vmem:[%s3950_s8 + $0x168] ss:$12 sps:$4 sm:$0xff]   ;;  %v3869_v50 = vld [vmem:[%s3950_s8 + $0x140] ss:$12 sps:$4 sm:$0xff]  }
 0x11e   : > { %v3185_v3 = vpop.f32.mrf.mxu0  ;;  %v964_v61 = vpop.f32.mrf.mxu1 }
 0x11f   : > { %v3186_v62 = vadd.f32 %v3185_v3, %v3184_v43  ;;  %v4439_v63 = vadd.f32 %v3174_v17, %v964_v61  ;;  %v3864_v17 = vld [vmem:[%s3950_s8 + $0x110] ss:$12 sps:$4 sm:$0xff]  }
 0x120   : > { %v3187_v2 = vpop.f32.mrf.mxu0  ;;  %v3567_v4 = vpop.f32.mrf.mxu1 }
 0x121   : > { %v4443_v11 = vadd.f32 %v3567_v4, %v3183_v21  ;;  %v3873_v21 = vld [vmem:[%s3950_s8 + $0x158] ss:$12 sps:$4 sm:$0xff]  }
 0x122   : > { %v3188_v48 = vpop.f32.mrf.mxu0  ;;  %v967_v49 = vpop.f32.mrf.mxu1 }
 0x123   : > { %v3189_v7 = vadd.f32 %v3188_v48, %v3187_v2  ;;  %v4447_v20 = vadd.f32 %v3177_v5, %v967_v49  ;;  %v3870_v48 = vld [vmem:[%s3950_s8 + $0x180] ss:$12 sps:$4 sm:$0xff]   ;;  %v3874_v49 = vld [vmem:[%s3950_s8 + $0x170] ss:$12 sps:$4 sm:$0xff]  }
 0x124   : > { %v3190_v53 = vpop.f32.mrf.mxu0  ;;  %v3570_v58 = vpop.f32.mrf.mxu1  ;;  %2175 = vmatmul.mubr.bf16.gmra.mxu0 %v3855_v46  ;;  %3665 = vmatmul.mubr.bf16.gmra.mxu1 %v3859_v9 }
 0x125   : > { %2182 = vmatprep.mubr.bf16.mxu0 %v3862_v32  ;;  %3668 = vmatprep.mubr.bf16.mxu1 %v3863_v14 }
 0x126   : > { %v3191_v8 = vpop.f32.mrf.mxu0  ;;  %v980_v12 = vpop.f32.mrf.mxu1 }
 0x127   : > { %v3192_v13 = vadd.f32 %v3191_v8, %v3190_v53  ;;  %v4449_v36 = vadd.f32 %v3186_v62, %v980_v12  ;;  %v3877_v53 = vld [vmem:[%s3950_s8 + $0x19c] ss:$12 sps:$4 sm:$0xff]  }
 0x128   : > { %v3193_v19 = vpop.f32.mrf.mxu0  ;;  %v3571_v1 = vpop.f32.mrf.mxu1 }
 0x129   : > { %v4453_v23 = vadd.f32 %v3570_v58, %v3192_v13  ;;  %v3878_v58 = vld [vmem:[%s3950_s8 + $0x188] ss:$12 sps:$4 sm:$0xff]  }
 0x12a   : > { %v3194_v38 = vpop.f32.mrf.mxu0  ;;  %v983_v47 = vpop.f32.mrf.mxu1 }
 0x12b   : > { %v3195_v33 = vadd.f32 %v3194_v38, %v3193_v19  ;;  %v4457_v5 = vadd.f32 %v3189_v7, %v983_v47 }
 0x12c   : > { %v3196_v37 = vpop.f32.mrf.mxu0  ;;  %v3574_v52 = vpop.f32.mrf.mxu1  ;;  %2183 = vmatmul.mubr.bf16.gmra.mxu0 %v3860_v16  ;;  %3669 = vmatmul.mubr.bf16.gmra.mxu1 %v3864_v17 }
 0x12d   : > { %v4459_v25 = vadd.f32 %v3571_v1, %v3195_v33  ;;  %2190 = vmatprep.mubr.bf16.mxu0 %v3867_v28  ;;  %3672 = vmatprep.mubr.bf16.mxu1 %v3868_v31 }
 0x12e   : > { %v3197_v56 = vpop.f32.mrf.mxu0  ;;  %v996_v59 = vpop.f32.mrf.mxu1 }
 0x12f   : > { %v3198_v30 = vadd.f32 %v3197_v56, %v3196_v37  ;;  %v3879_v56 = vld [vmem:[%s3950_s8 + $0x1a0] ss:$12 sps:$4 sm:$0xff]  }
 0x130   : > { %v3199_v15 = vpop.f32.mrf.mxu0  ;;  %v3575_v39 = vpop.f32.mrf.mxu1 }
 0x131   : > { %v4463_v51 = vadd.f32 %v3198_v30, %v996_v59 }
 0x132   : > { %v3200_v43 = vpop.f32.mrf.mxu0  ;;  %v999_v24 = vpop.f32.mrf.mxu1 }
 0x133   : > { %v3201_v3 = vadd.f32 %v3200_v43, %v3199_v15 }
 0x134   : > { %v3202_v61 = vpop.f32.mrf.mxu0  ;;  %v3578_v62 = vpop.f32.mrf.mxu1  ;;  %2191 = vmatmul.mubr.bf16.gmra.mxu0 %v3865_v44  ;;  %3673 = vmatmul.mubr.bf16.gmra.mxu1 %v3869_v50 }
 0x135   : > { %v4467_v2 = vadd.f32 %v3201_v3, %v999_v24  ;;  %2198 = vmatprep.mubr.bf16.mxu0 %v3872_v41  ;;  %3676 = vmatprep.mubr.bf16.mxu1 %v3873_v21 }
 0x136   : > { %v3203_v4 = vpop.f32.mrf.mxu0  ;;  %v1012_v46 = vpop.f32.mrf.mxu1 }
 0x137   : > { %v3204_v9 = vadd.f32 %v3203_v4, %v3202_v61 }
 0x138   : > { %v3205_v32 = vpop.f32.mrf.mxu0  ;;  %v3579_v14 = vpop.f32.mrf.mxu1 }
 0x139   : > { %v4471_v7 = vadd.f32 %v3574_v52, %v3204_v9  ;;  %v3875_v52 = vld [vmem:[%s3950_s8 + $0x198] ss:$12 sps:$4 sm:$0xff]  }
 0x13a   : > { %v3206_v8 = vpop.f32.mrf.mxu0  ;;  %v1015_v12 = vpop.f32.mrf.mxu1 }
 0x13b   : > { %v3207_v13 = vadd.f32 %v3206_v8, %v3205_v32 }
 0x13c   : > { %v3208_v19 = vpop.f32.mrf.mxu0  ;;  %v3582_v1 = vpop.f32.mrf.mxu1  ;;  %2199 = vmatmul.mubr.bf16.gmra.mxu0 %v3870_v48  ;;  %3677 = vmatmul.mubr.bf16.gmra.mxu1 %v3874_v49 }
 0x13d   : > { %v4475_v16 = vadd.f32 %v3575_v39, %v3207_v13  ;;  %v4478_v17 = vadd.f32 %v3582_v1, %v4387_v35  ;;  %2206 = vmatprep.mubr.bf16.mxu0 %v3877_v53  ;;  %3680 = vmatprep.mubr.bf16.mxu1 %v3878_v58 }
 0x13e   : > { %v3209_v28 = vpop.f32.mrf.mxu0  ;;  %v1028_v31 = vpop.f32.mrf.mxu1 }
 0x13f   : > { %v3210_v38 = vadd.f32 %v3209_v28, %v3208_v19  ;;  %v4481_v47 = vadd.f32 %v4377_v45, %v1028_v31 }
 0x140   : > { %v3211_v33 = vpop.f32.mrf.mxu0  ;;  %v3583_v37 = vpop.f32.mrf.mxu1 }
 0x141   : > { %v4485_v59 = vadd.f32 %v3210_v38, %v1012_v46  ;;  %v4488_v30 = vadd.f32 %v3583_v37, %v4389_v54 }
 0x142   : > { %v3212_v15 = vpop.f32.mrf.mxu0  ;;  %v1031_v35 = vpop.f32.mrf.mxu1 }
 0x143   : > { %v3213_v39 = vadd.f32 %v3212_v15, %v3211_v33  ;;  %v4491_v44 = vadd.f32 %v4381_v22, %v1031_v35 }
 0x144   : > { %v3214_v50 = vpop.f32.mrf.mxu0  ;;  %v3586_v41 = vpop.f32.mrf.mxu1  ;;  %2207 = vmatmul.mubr.bf16.gmra.mxu0 %v3875_v52  ;;  %3681 = vmatmul.mubr.bf16.gmra.mxu1 %v3879_v56 }
 0x145   : > { %v4493_v45 = vadd.f32 %v3213_v39, %v1015_v12  ;;  %v4496_v21 = vadd.f32 %v3586_v41, %v4403_v6 }
 0x146   : > { %v3215_v43 = vpop.f32.mrf.mxu0  ;;  %v1044_v24 = vpop.f32.mrf.mxu1 }
 0x147   : > { %v3216_v3 = vadd.f32 %v3215_v43, %v3214_v50  ;;  %v4499_v54 = vadd.f32 %v4395_v57, %v1044_v24 }
 0x148   : > { %v3217_v61 = vpop.f32.mrf.mxu0  ;;  %v3587_v4 = vpop.f32.mrf.mxu1 }
 0x149   : > { %v4501_v46 = vadd.f32 %v3578_v62, %v3216_v3  ;;  %v4504_v22 = vadd.f32 %v3587_v4, %v4407_v60 }
 0x14a   : > { %v3218_v9 = vpop.f32.mrf.mxu0  ;;  %v1047_v32 = vpop.f32.mrf.mxu1 }
 0x14b   : > { %v3219_v48 = vadd.f32 %v3218_v9, %v3217_v61  ;;  %v4507_v49 = vadd.f32 %v4398_v29, %v1047_v32 }
 0x14c   : > { %v3284_v6 = vpop.f32.mrf.mxu1  ;;  %v3606_v53 = vpop.f32.mrf.mxu0 }
 0x14d   : > { %v4509_v58 = vadd.f32 %v3579_v14, %v3219_v48 }
 0x14e   : > { %v3285_v8 = vpop.f32.mrf.mxu1  ;;  %v1414_v57 = vpop.f32.mrf.mxu0 }
 0x14f   : > { %v3286_v12 = vadd.f32 %v3285_v8, %v3284_v6 }
 0x150   : > { %v3287_v13 = vpop.f32.mrf.mxu1  ;;  %v3607_v19 = vpop.f32.mrf.mxu0 }
 0x151   : > { %v1254_v62 = vadd.f32 %v3286_v12, %v4414_v18 }
 0x152   : > { %v3288_v1 = vpop.f32.mrf.mxu1  ;;  %v1417_v60 = vpop.f32.mrf.mxu0 }
 0x153   : > { %v4512_v28 = vadd.f32 %v1414_v57, %v1254_v62  ;;  %v3289_v31 = vadd.f32 %v3288_v1, %v3287_v13 }
 0x154   : > { %v3290_v38 = vpop.f32.mrf.mxu1  ;;  %v3610_v33 = vpop.f32.mrf.mxu0 }
 0x155   : > { %v1257_v29 = vadd.f32 %v3289_v31, %v4421_v10 }
 0x156   : > { %v3291_v37 = vpop.f32.mrf.mxu1  ;;  %v1430_v52 = vpop.f32.mrf.mxu0 }
 0x157   : > { %v4515_v14 = vadd.f32 %v1417_v60, %v1257_v29  ;;  %v3292_v56 = vadd.f32 %v3291_v37, %v3290_v38 }
 0x158   : > { %v3293_v15 = vpop.f32.mrf.mxu1  ;;  %v3611_v35 = vpop.f32.mrf.mxu0 }
 0x159   : > { %v1262_v39 = vadd.f32 %v3292_v56, %v4410_v27 }
 0x15a   : > { %v3294_v50 = vpop.f32.mrf.mxu1  ;;  %v1433_v18 = vpop.f32.mrf.mxu0 }
 0x15b   : > { %v3295_v41 = vadd.f32 %v3294_v50, %v3293_v15  ;;  %v4518_v43 = vadd.f32 %v3606_v53, %v1262_v39 }
 0x15c   : > { %v3296_v24 = vpop.f32.mrf.mxu1  ;;  %v3614_v3 = vpop.f32.mrf.mxu0 }
 0x15d   : > { %v1265_v61 = vadd.f32 %v3295_v41, %v4417_v34 }
 0x15e   : > { %v3297_v4 = vpop.f32.mrf.mxu1  ;;  %v1446_v10 = vpop.f32.mrf.mxu0 }
 0x15f   : > { %v3298_v9 = vadd.f32 %v3297_v4, %v3296_v24  ;;  %v4521_v32 = vadd.f32 %v3607_v19, %v1265_v61 }
 0x160   : > { %v3299_v48 = vpop.f32.mrf.mxu1  ;;  %v3615_v6 = vpop.f32.mrf.mxu0 }
 0x161   : > { %v1270_v8 = vadd.f32 %v3298_v9, %v4427_v26 }
 0x162   : > { %v3300_v57 = vpop.f32.mrf.mxu1  ;;  %v1449_v27 = vpop.f32.mrf.mxu0 }
 0x163   : > { %v3301_v12 = vadd.f32 %v3300_v57, %v3299_v48  ;;  %v4524_v13 = vadd.f32 %v1430_v52, %v1270_v8 }
 0x164   : > { %v3302_v53 = vpop.f32.mrf.mxu1  ;;  %v4526_v62 = vpop.f32.mrf.mxu0 }
 0x165   : > { %v1273_v1 = vadd.f32 %v3301_v12, %v4434_v55 }
 0x166   : > { %v3303_v34 = vpop.f32.mrf.mxu1  ;;  %v1462_v60 = vpop.f32.mrf.mxu0 }
 0x167   : > { %v3304_v31 = vadd.f32 %v3303_v34, %v3302_v53  ;;  %v4529_v38 = vadd.f32 %v1433_v18, %v1273_v1 }
 0x168   : > { %v3305_v19 = vpop.f32.mrf.mxu1  ;;  %v4531_v29 = vpop.f32.mrf.mxu0 }
 0x169   : > { %v1278_v26 = vadd.f32 %v3304_v31, %v4424_v40 }
 0x16a   : > { %v3306_v37 = vpop.f32.mrf.mxu1  ;;  %v1465_v56 = vpop.f32.mrf.mxu0 }
 0x16b   : > { %v3307_v15 = vadd.f32 %v3306_v37, %v3305_v19  ;;  %v4534_v52 = vadd.f32 %v3610_v33, %v1278_v26 }
 0x16c   : > { %v3308_v39 = vpop.f32.mrf.mxu1  ;;  %v4536_v50 = vpop.f32.mrf.mxu0 }
 0x16d   : > { %v1281_v55 = vadd.f32 %v3307_v15, %v4430_v42 }
 0x16e   : > { %v3309_v41 = vpop.f32.mrf.mxu1  ;;  %v4539_v24 = vpop.f32.mrf.mxu0 }
 0x16f   : > { %v3310_v18 = vadd.f32 %v3309_v41, %v3308_v39  ;;  %v4541_v61 = vadd.f32 %v3611_v35, %v1281_v55 }
 0x170   : > { %v3311_v4 = vpop.f32.mrf.mxu1  ;;  %v4543_v9 = vpop.f32.mrf.mxu0 }
 0x171   : > { %v1286_v40 = vadd.f32 %v3310_v18, %v4439_v63 }
 0x172   : > { %v3312_v48 = vpop.f32.mrf.mxu1  ;;  %v4546_v8 = vpop.f32.mrf.mxu0 }
 0x173   : > { %v3313_v33 = vadd.f32 %v3312_v48, %v3311_v4  ;;  %v4548_v57 = vadd.f32 %v1446_v10, %v1286_v40 }
 0x174   : > { %v3314_v12 = vpop.f32.mrf.mxu1  ;;  %v4550_v53 = vpop.f32.mrf.mxu0 }
 0x175   : > { %v1289_v42 = vadd.f32 %v3313_v33, %v4447_v20 }
 0x176   : > { %v3315_v1 = vpop.f32.mrf.mxu1  ;;  %v4553_v34 = vpop.f32.mrf.mxu0 }
 0x177   : > { %v3316_v35 = vadd.f32 %v3315_v1, %v3314_v12  ;;  %v4555_v31 = vadd.f32 %v1449_v27, %v1289_v42 }
 0x178   : > { %v3317_v19 = vpop.f32.mrf.mxu1  ;;  %v4557_v26 = vpop.f32.mrf.mxu0 }
 0x179   : > { %v1294_v63 = vadd.f32 %v3316_v35, %v4437_v0 }
 0x17a   : > { %v3318_v37 = vpop.f32.mrf.mxu1  ;;  %v4560_v15 = vpop.f32.mrf.mxu0 }
 0x17b   : > { %v3319_v10 = vadd.f32 %v3318_v37, %v3317_v19  ;;  %v4562_v39 = vadd.f32 %v3614_v3, %v1294_v63 }
 0x17c   : > { %v3320_v55 = vpop.f32.mrf.mxu1  ;;  %v4564_v41 = vpop.f32.mrf.mxu0 }
 0x17d   : > { %v1297_v20 = vadd.f32 %v3319_v10, %v4443_v11 }
 0x17e   : > { %v3321_v18 = vpop.f32.mrf.mxu1  ;;  %v4567_v4 = vpop.f32.mrf.mxu0 }
 0x17f   : > { %v3322_v27 = vadd.f32 %v3321_v18, %v3320_v55  ;;  %v4569_v40 = vadd.f32 %v3615_v6, %v1297_v20 }
 0x180   : > { %v3323_v48 = vpop.f32.mrf.mxu1  ;;  %v4571_v33 = vpop.f32.mrf.mxu0 }
 0x181   : > { %v1302_v0 = vadd.f32 %v3322_v27, %v4449_v36 }
 0x182   : > { %v3324_v12 = vpop.f32.mrf.mxu1  ;;  %v4574_v42 = vpop.f32.mrf.mxu0 }
 0x183   : > { %v3325_v3 = vadd.f32 %v3324_v12, %v3323_v48  ;;  %v4576_v1 = vadd.f32 %v1462_v60, %v1302_v0 }
 0x184   : > { %v3326_v35 = vpop.f32.mrf.mxu1  ;;  %v4578_v19 = vpop.f32.mrf.mxu0 }
 0x185   : > { %4894 = vst [vmem:[#allocation2_spill] sm:$0xff] %v4578_v19  ;;  %v1305_v11 = vadd.f32 %v3325_v3, %v4457_v5 }
 0x186   : > { %v3327_v63 = vpop.f32.mrf.mxu1  ;;  %v4581_v37 = vpop.f32.mrf.mxu0 }
 0x187   : > { %v3328_v6 = vadd.f32 %v3327_v63, %v3326_v35  ;;  %v4583_v10 = vadd.f32 %v1465_v56, %v1305_v11 }
 0x188   : > { %v3329_v55 = vpop.f32.mrf.mxu1  ;;  %v4585_v20 = vpop.f32.mrf.mxu0 }
 0x189   : > { %4895 = vst [vmem:[#allocation3_spill] sm:$0xff] %v4585_v20  ;;  %v1310_v36 = vadd.f32 %v3328_v6, %v4453_v23 }
 0x18a   : > { %v3330_v18 = vpop.f32.mrf.mxu1  ;;  %v4588_v27 = vpop.f32.mrf.mxu0 }
 0x18b   : > { %v3331_v60 = vadd.f32 %v3330_v18, %v3329_v55  ;;  %v4591_v48 = vadd.f32 %v4526_v62, %v1310_v36 }
 0x18c   : > { %v3332_v0 = vpop.f32.mrf.mxu1  ;;  %v3420_v5 = vpop.f32.mrf.mxu0 }
 0x18d   : > { %v1313_v12 = vadd.f32 %v3331_v60, %v4459_v25 }
 0x18e   : > { %v3333_v3 = vpop.f32.mrf.mxu1  ;;  %v3421_v35 = vpop.f32.mrf.mxu0 }
 0x18f   : > { %v3334_v56 = vadd.f32 %v3333_v3, %v3332_v0  ;;  %v4594_v11 = vadd.f32 %v3421_v35, %v3420_v5  ;;  %v4597_v63 = vadd.f32 %v4531_v29, %v1313_v12 }
 0x190   : > { %v3335_v23 = vpop.f32.mrf.mxu1  ;;  %v4599_v6 = vpop.f32.mrf.mxu0 }
 0x191   : > { %v1318_v55 = vadd.f32 %v3334_v56, %v4463_v51 }
 0x192   : > { %v3336_v18 = vpop.f32.mrf.mxu1  ;;  %v4602_v62 = vpop.f32.mrf.mxu0 }
 0x193   : > { %v3337_v36 = vadd.f32 %v3336_v18, %v3335_v23  ;;  %v4605_v20 = vadd.f32 %v4539_v24, %v1318_v55 }
 0x194   : > { %v3338_v25 = vpop.f32.mrf.mxu1  ;;  %v4607_v60 = vpop.f32.mrf.mxu0 }
 0x195   : > { %v1321_v0 = vadd.f32 %v3337_v36, %v4467_v2 }
 0x196   : > { %v3339_v5 = vpop.f32.mrf.mxu1  ;;  %v4610_v29 = vpop.f32.mrf.mxu0 }
 0x197   : > { %v3340_v12 = vadd.f32 %v3339_v5, %v3338_v25  ;;  %v4613_v3 = vadd.f32 %v4546_v8, %v1321_v0 }
 0x198   : > { %v3341_v51 = vpop.f32.mrf.mxu1  ;;  %v4615_v35 = vpop.f32.mrf.mxu0 }
 0x199   : > { %4896 = vst [vmem:[#allocation4_spill] sm:$0xff] %v4613_v3  ;;  %v1326_v56 = vadd.f32 %v3340_v12, %v4471_v7 }
 0x19a   : > { %v3342_v23 = vpop.f32.mrf.mxu1  ;;  %v4618_v24 = vpop.f32.mrf.mxu0 }
 0x19b   : > { %v3343_v55 = vadd.f32 %v3342_v23, %v3341_v51  ;;  %v4621_v18 = vadd.f32 %v4536_v50, %v1326_v56 }
 0x19c   : > { %v3344_v2 = vpop.f32.mrf.mxu1  ;;  %v4623_v36 = vpop.f32.mrf.mxu0 }
 0x19d   : > { %v1329_v25 = vadd.f32 %v3343_v55, %v4475_v16 }
 0x19e   : > { %v3345_v5 = vpop.f32.mrf.mxu1  ;;  %v4626_v8 = vpop.f32.mrf.mxu0 }
 0x19f   : > { %v3346_v0 = vadd.f32 %v3345_v5, %v3344_v2  ;;  %v4629_v19 = vadd.f32 %v4543_v9, %v1329_v25 }
 0x1a0   : > { %v3347_v7 = vpop.f32.mrf.mxu1  ;;  %v4631_v12 = vpop.f32.mrf.mxu0 }
 0x1a1   : > { %4897 = vst [vmem:[#allocation5_spill] sm:$0xff] %v4629_v19  ;;  %v1334_v51 = vadd.f32 %v3346_v0, %v4485_v59 }
 0x1a2   : > { %v3348_v23 = vpop.f32.mrf.mxu1  ;;  %v4634_v50 = vpop.f32.mrf.mxu0 }
 0x1a3   : > { %v3349_v56 = vadd.f32 %v3348_v23, %v3347_v7  ;;  %v4637_v3 = vadd.f32 %v4553_v34, %v1334_v51 }
 0x1a4   : > { %v3350_v16 = vpop.f32.mrf.mxu1  ;;  %v4639_v55 = vpop.f32.mrf.mxu0 }
 0x1a5   : > { %4898 = vst [vmem:[#allocation6_spill] sm:$0xff] %v4637_v3  ;;  %v1337_v2 = vadd.f32 %v3349_v56, %v4493_v45 }
 0x1a6   : > { %v3351_v5 = vpop.f32.mrf.mxu1  ;;  %v4642_v9 = vpop.f32.mrf.mxu0 }
 0x1a7   : > { %v3352_v25 = vadd.f32 %v3351_v5, %v3350_v16  ;;  %v4645_v19 = vadd.f32 %v4560_v15, %v1337_v2 }
 0x1a8   : > { %v3353_v59 = vpop.f32.mrf.mxu1  ;;  %v4647_v0 = vpop.f32.mrf.mxu0 }
 0x1a9   : > { %4899 = vst [vmem:[#allocation7_spill] sm:$0xff] %v4645_v19  ;;  %v1342_v7 = vadd.f32 %v3352_v25, %v4501_v46 }
 0x1aa   : > { %v3354_v23 = vpop.f32.mrf.mxu1  ;;  %v4650_v34 = vpop.f32.mrf.mxu0 }
 0x1ab   : > { %v3355_v51 = vadd.f32 %v3354_v23, %v3353_v59  ;;  %v4653_v3 = vadd.f32 %v4550_v53, %v1342_v7 }
 0x1ac   : > { %v3356_v45 = vpop.f32.mrf.mxu1  ;;  %v4655_v56 = vpop.f32.mrf.mxu0 }
 0x1ad   : > { %4900 = vst [vmem:[#allocation8_spill] sm:$0xff] %v4653_v3  ;;  %v1345_v16 = vadd.f32 %v3355_v51, %v4509_v58 }
 0x1ae   : > { %v3357_v5 = vpop.f32.mrf.mxu1  ;;  %v4658_v15 = vpop.f32.mrf.mxu0 }
 0x1af   : > { %v3358_v2 = vadd.f32 %v3357_v5, %v3356_v45  ;;  %v4661_v19 = vadd.f32 %v4557_v26, %v1345_v16 }
 0x1b0   : > { %v3359_v46 = vpop.f32.mrf.mxu1  ;;  %v4663_v25 = vpop.f32.mrf.mxu0 }
 0x1b1   : > { %4901 = vst [vmem:[#allocation9_spill] sm:$0xff] %v4661_v19  ;;  %v1350_v59 = vadd.f32 %v3358_v2, %v4481_v47 }
 0x1b2   : > { %v3360_v23 = vpop.f32.mrf.mxu1  ;;  %v4666_v53 = vpop.f32.mrf.mxu0 }
 0x1b3   : > { %v3361_v7 = vadd.f32 %v3360_v23, %v3359_v46  ;;  %v4669_v3 = vadd.f32 %v4567_v4, %v1350_v59 }
 0x1b4   : > { %v3362_v58 = vpop.f32.mrf.mxu1  ;;  %v4671_v51 = vpop.f32.mrf.mxu0 }
 0x1b5   : > { %4902 = vst [vmem:[#allocation10_spill] sm:$0xff] %v4669_v3  ;;  %v1353_v45 = vadd.f32 %v3361_v7, %v4491_v44 }
 0x1b6   : > { %v3363_v5 = vpop.f32.mrf.mxu1  ;;  %v4674_v26 = vpop.f32.mrf.mxu0 }
 0x1b7   : > { %v3364_v16 = vadd.f32 %v3363_v5, %v3362_v58  ;;  %v4677_v19 = vadd.f32 %v4574_v42, %v1353_v45 }
 0x1b8   : > { %v3365_v47 = vpop.f32.mrf.mxu1  ;;  %v4679_v2 = vpop.f32.mrf.mxu0 }
 0x1b9   : > { %4903 = vst [vmem:[#allocation11_spill] sm:$0xff] %v4677_v19  ;;  %v1358_v46 = vadd.f32 %v3364_v16, %v4478_v17 }
 0x1ba   : > { %v3366_v23 = vpop.f32.mrf.mxu1  ;;  %v4682_v4 = vpop.f32.mrf.mxu0 }
 0x1bb   : > { %v3367_v59 = vadd.f32 %v3366_v23, %v3365_v47  ;;  %v4685_v3 = vadd.f32 %v4564_v41, %v1358_v46 }
 0x1bc   : > { %v3368_v44 = vpop.f32.mrf.mxu1  ;;  %v4687_v7 = vpop.f32.mrf.mxu0 }
 0x1bd   : > { %4904 = vst [vmem:[#allocation12_spill] sm:$0xff] %v4685_v3  ;;  %v1361_v58 = vadd.f32 %v3367_v59, %v4488_v30 }
 0x1be   : > { %v3369_v5 = vpop.f32.mrf.mxu1  ;;  %v4690_v42 = vpop.f32.mrf.mxu0 }
 0x1bf   : > { %v3370_v45 = vadd.f32 %v3369_v5, %v3368_v44  ;;  %v4693_v19 = vadd.f32 %v4571_v33, %v1361_v58 }
 0x1c0   : > { %v3371_v17 = vpop.f32.mrf.mxu1  ;;  %v4695_v16 = vpop.f32.mrf.mxu0 }
 0x1c1   : > { %4905 = vst [vmem:[#allocation13_spill] sm:$0xff] %v4693_v19  ;;  %v1366_v47 = vadd.f32 %v3370_v45, %v4499_v54 }
 0x1c2   : > { %v3372_v23 = vpop.f32.mrf.mxu1  ;;  %v4698_v41 = vpop.f32.mrf.mxu0 }
 0x1c3   : > { %v3373_v46 = vadd.f32 %v3372_v23, %v3371_v17  ;;  %v4701_v3 = vadd.f32 %v4581_v37, %v1366_v47  ;;  %v3428_v23 = vadd.f32 %v4610_v29, %v4607_v60  ;;  %v4734_v60 = vld [vmem:[%s4892_s2] ss:$0 sm:$0xff] }
 0x1c4   : > { %v3374_v30 = vpop.f32.mrf.mxu1  ;;  %v4703_v59 = vpop.f32.mrf.mxu0 }
 0x1c5   : > { %4906 = vst [vmem:[#allocation14_spill] sm:$0xff] %v4701_v3  ;;  %v1369_v44 = vadd.f32 %v3373_v46, %v4507_v49 }
 0x1c6   : > { %v3375_v5 = vpop.f32.mrf.mxu1  ;;  %v4706_v33 = vpop.f32.mrf.mxu0 }
 0x1c7   : > { %v3376_v58 = vadd.f32 %v3375_v5, %v3374_v30  ;;  %v4709_v19 = vadd.f32 %v4588_v27, %v1369_v44 }
 0x1c8   : > { %v3377_v54 = vpop.f32.mrf.mxu1  ;;  %v4711_v45 = vpop.f32.mrf.mxu0 }
 0x1c9   : > { %4907 = vst [vmem:[#allocation15_spill] sm:$0xff] %v4709_v19  ;;  %v4714_v17 = vadd.f32 %v3376_v58, %v4496_v21  ;;  %v3431_v21 = vadd.f32 %v4618_v24, %v4615_v35 }
 0x1ca   : > { %v3378_v37 = vpop.f32.mrf.mxu1  ;;  %v4716_v47 = vpop.f32.mrf.mxu0 }
 0x1cb   : > { %v3379_v49 = vadd.f32 %v3378_v37, %v3377_v54  ;;  %v3425_v37 = vadd.f32 %v4602_v62, %v4599_v6  ;;  %v3443_v62 = vadd.f32 %v4650_v34, %v4647_v0 }
 0x1cc   : > { %v4720_v46 = vpop.f32.mrf.mxu0  ;;  %v3654_v3 = vpop.f32.mrf.mxu1 }
 0x1cd   : > { %v4723_v30 = vadd.f32 %v3379_v49, %v4504_v22  ;;  %v2258_v27 = vadd.f32 %v3654_v3, %v3428_v23 }
 0x1ce   : > { %v4725_v44 = vpop.f32.mrf.mxu0  ;;  %v2249_v5 = vpop.f32.mrf.mxu1 }
 0x1cf   : > { %v2378_v58 = vadd.f32 %v2258_v27, %v4518_v43  ;;  %v2250_v19 = vadd.f32 %v4594_v11, %v2249_v5  ;;  %v3440_v11 = vadd.f32 %v4642_v9, %v4639_v55 }
 0x1d0   : > { %v4736_v29 = vpop.f32.mrf.mxu0  ;;  %v3655_v22 = vpop.f32.mrf.mxu1 }
 0x1d1   : > { %v2376_v3 = vadd.f32 %v2250_v19, %v4512_v28  ;;  %v2261_v54 = vadd.f32 %v3655_v22, %v3431_v21  ;;  %v2417_v24 = vadd.f32 %v4734_v60, %v2378_v58  ;;  %v3434_v28 = vadd.f32 %v4626_v8, %v4623_v36 }
 0x1d2   : > { %v4741_v35 = vpop.f32.mrf.mxu0  ;;  %v2252_v43 = vpop.f32.mrf.mxu1 }
 0x1d3   : > { %v2379_v23 = vadd.f32 %v2261_v54, %v4521_v32  ;;  %v2253_v49 = vadd.f32 %v3425_v37, %v2252_v43  ;;  %v2415_v55 = vadd.f32 %v4734_v60, %v2376_v3  ;;  %v2449_v58 = vmax.f32 %v2417_v24, 0.0 }
 0x1d4   : > { %v4747_v27 = vpop.f32.mrf.mxu0  ;;  %v3658_v5 = vpop.f32.mrf.mxu1  ;;  %v3437_v3 = vadd.f32 %v4634_v50, %v4631_v12  ;;  %v3446_v50 = vadd.f32 %v4658_v15, %v4655_v56 }
 0x1d5   : > { %v2418_v19 = vadd.f32 %v4734_v60, %v2379_v23  ;;  %v2274_v6 = vadd.f32 %v3658_v5, %v3440_v11  ;;  %v2377_v9 = vadd.f32 %v2253_v49, %v4515_v14  ;;  %v2447_v43 = vmax.f32 %v2415_v55, 0.0 }
 0x1d6   : > { %v4757_v21 = vpop.f32.mrf.mxu0  ;;  %v2265_v32 = vpop.f32.mrf.mxu1  ;;  %v3452_v49 = vadd.f32 %v4674_v26, %v4671_v51 }
 0x1d7   : > { %v2450_v22 = vmax.f32 %v2418_v19, 0.0  ;;  %v2382_v54 = vadd.f32 %v2274_v6, %v4534_v52  ;;  %v2266_v37 = vadd.f32 %v3434_v28, %v2265_v32  ;;  %v2416_v36 = vadd.f32 %v4734_v60, %v2377_v9 }
 0x1d8   : > { %v4766_v8 = vpop.f32.mrf.mxu0  ;;  %v3659_v0 = vpop.f32.mrf.mxu1  ;;  %v3455_v9 = vadd.f32 %v4682_v4, %v4679_v2 }
 0x1d9   : > { %v3045_v14 = vpack.c.bf16 %v2450_v22, %v2449_v58  ;;  %v2277_v34 = vadd.f32 %v3659_v0, %v3443_v62  ;;  %v2448_v11 = vmax.f32 %v2416_v36, 0.0  ;;  %v2380_v52 = vadd.f32 %v2266_v37, %v4524_v13 }
 0x1da   : > { %v4771_v24 = vpop.f32.mrf.mxu0  ;;  %v2268_v23 = vpop.f32.mrf.mxu1  ;;  %v2421_v5 = vadd.f32 %v4734_v60, %v2382_v54  ;;  %v3449_v0 = vadd.f32 %v4666_v53, %v4663_v25  ;;  %v3458_v53 = vadd.f32 %v4690_v42, %v4687_v7 }
 0x1db   : > { %3117 = vst [vmem:[%s4763_s20 + $0x8] sm:$0xff] %v3045_v14   ;;  %v2383_v28 = vadd.f32 %v2277_v34, %v4541_v61  ;;  %v3040_v19 = vpack.c.bf16 %v2448_v11, %v2447_v43  ;;  %v2269_v6 = vadd.f32 %v3437_v3, %v2268_v23  ;;  %v2419_v51 = vadd.f32 %v4734_v60, %v2380_v52 }
 0x1dc   : > { %v4778_v62 = vpop.f32.mrf.mxu0  ;;  %v3662_v12 = vpop.f32.mrf.mxu1  ;;  %v2453_v58 = vmax.f32 %v2421_v5, 0.0 }
 0x1dd   : > { %v2422_v13 = vadd.f32 %v4734_v60, %v2383_v28  ;;  %v2290_v55 = vadd.f32 %v3662_v12, %v3452_v49  ;;  %3041 = vst [vmem:[%s4763_s20] sm:$0xff] %v3040_v19   ;;  %v2381_v26 = vadd.f32 %v2269_v6, %v4529_v38  ;;  %v2451_v38 = vmax.f32 %v2419_v51, 0.0 }
 0x1de   : > { %v4788_v61 = vpop.f32.mrf.mxu0  ;;  %v2281_v32 = vpop.f32.mrf.mxu1  ;;  %v3467_v19 = vadd.f32 %v4716_v47, %v4711_v45  ;;  %v3461_v45 = vadd.f32 %v4698_v41, %v4695_v16  ;;  %v3470_v41 = vadd.f32 %v4725_v44, %v4720_v46 }
 0x1df   : > { %v2454_v22 = vmax.f32 %v2422_v13, 0.0  ;;  %v2386_v54 = vadd.f32 %v2290_v55, %v4562_v39  ;;  %v2282_v56 = vadd.f32 %v3446_v50, %v2281_v32  ;;  %v2420_v15 = vadd.f32 %v4734_v60, %v2381_v26 }
 0x1e0   : > { %v4792_v37 = vpop.f32.mrf.mxu0  ;;  %v3663_v36 = vpop.f32.mrf.mxu1  ;;  %v3464_v39 = vadd.f32 %v4706_v33, %v4703_v59 }
 0x1e1   : > { %v3055_v2 = vpack.c.bf16 %v2454_v22, %v2453_v58  ;;  %v2293_v4 = vadd.f32 %v3663_v36, %v3455_v9  ;;  %v2452_v14 = vmax.f32 %v2420_v15, 0.0  ;;  %v2384_v34 = vadd.f32 %v2282_v56, %v4548_v57 }
 0x1e2   : > { %v4797_v3 = vpop.f32.mrf.mxu0  ;;  %v2284_v43 = vpop.f32.mrf.mxu1  ;;  %v2425_v11 = vadd.f32 %v4734_v60, %v2386_v54 }
 0x1e3   : > { %3119 = vst [vmem:[%s4763_s20 + $0x18] sm:$0xff] %v3055_v2   ;;  %v2387_v52 = vadd.f32 %v2293_v4, %v4569_v40  ;;  %v3050_v23 = vpack.c.bf16 %v2452_v14, %v2451_v38  ;;  %v2285_v49 = vadd.f32 %v3449_v0, %v2284_v43  ;;  %v2423_v59 = vadd.f32 %v4734_v60, %v2384_v34 }
 0x1e4   : > { %v3486_v5 = vpop.f32.mrf.mxu0  ;;  %v3666_v25 = vpop.f32.mrf.mxu1  ;;  %v2457_v12 = vmax.f32 %v2425_v11, 0.0  ;;  %v3479_v0 = vadd.f32 %v4771_v24, %v4766_v8  ;;  %v3473_v24 = vadd.f32 %v4741_v35, %v4736_v29  ;;  %v3482_v29 = vadd.f32 %v4788_v61, %v4778_v62 }
 0x1e5   : > { %v2426_v57 = vadd.f32 %v4734_v60, %v2387_v52  ;;  %v2306_v28 = vadd.f32 %v3666_v25, %v3464_v39  ;;  %3118 = vst [vmem:[%s4763_s20 + $0x10] sm:$0xff] %v3050_v23   ;;  %v2385_v33 = vadd.f32 %v2285_v49, %v4555_v31  ;;  %v2455_v47 = vmax.f32 %v2423_v59, 0.0 }
 0x1e6   : > { %v3487_v6 = vpop.f32.mrf.mxu0  ;;  %v2297_v40 = vpop.f32.mrf.mxu1 }
 0x1e7   : > { %v2458_v50 = vmax.f32 %v2426_v57, 0.0  ;;  %v2390_v13 = vadd.f32 %v2306_v28, %v4591_v48  ;;  %v2298_v55 = vadd.f32 %v3458_v53, %v2297_v40  ;;  %v2424_v7 = vadd.f32 %v4734_v60, %v2385_v33  ;;  %v4908_v28 = vld [vmem:[#allocation5_spill] sm:$0xff] }
 0x1e8   : > { %v3489_v42 = vpop.f32.mrf.mxu0  ;;  %v3667_v9 = vpop.f32.mrf.mxu1  ;;  %v3476_v48 = vadd.f32 %v4757_v21, %v4747_v27  ;;  %v3488_v57 = vadd.f32 %v3487_v6, %v3486_v5  ;;  %v4909_v5 = vld [vmem:[#allocation4_spill] sm:$0xff] }
 0x1e9   : > { %v3065_v51 = vpack.c.bf16 %v2458_v50, %v2457_v12  ;;  %v2309_v26 = vadd.f32 %v3667_v9, %v3467_v19  ;;  %v2456_v32 = vmax.f32 %v2424_v7, 0.0  ;;  %v2388_v31 = vadd.f32 %v2298_v55, %v4576_v1 }
 0x1ea   : > { %v3490_v58 = vpop.f32.mrf.mxu0  ;;  %v2300_v22 = vpop.f32.mrf.mxu1  ;;  %v2429_v54 = vadd.f32 %v4734_v60, %v2390_v13 }
 0x1eb   : > { %3121 = vst [vmem:[%s4763_s20 + $0x28] sm:$0xff] %v3065_v51   ;;  %v2391_v56 = vadd.f32 %v2309_v26, %v4597_v63  ;;  %v3060_v15 = vpack.c.bf16 %v2456_v32, %v2455_v47  ;;  %v2301_v36 = vadd.f32 %v3461_v45, %v2300_v22  ;;  %v2427_v27 = vadd.f32 %v4734_v60, %v2388_v31  ;;  %v4910_v26 = vld [vmem:[#allocation8_spill] sm:$0xff] }
 0x1ec   : > { %v4822_v2 = vpop.f32.mrf.mxu0  ;;  %v3670_v16 = vpop.f32.mrf.mxu1  ;;  %v2461_v14 = vmax.f32 %v2429_v54, 0.0  ;;  %v3491_v13 = vadd.f32 %v3490_v58, %v3489_v42  ;;  %v3485_v42 = vadd.f32 %v4797_v3, %v4792_v37 }
 0x1ed   : > { %v2430_v1 = vadd.f32 %v4734_v60, %v2391_v56  ;;  %v2322_v4 = vadd.f32 %v3670_v16, %v3476_v48  ;;  %3120 = vst [vmem:[%s4763_s20 + $0x20] sm:$0xff] %v3060_v15   ;;  %v2389_v21 = vadd.f32 %v2301_v36, %v4583_v10  ;;  %v2459_v23 = vmax.f32 %v2427_v27, 0.0  ;;  %v4911_v56 = vld [vmem:[#allocation6_spill] sm:$0xff] }
 0x1ee   : > { %v3493_v63 = vpop.f32.mrf.mxu0  ;;  %v2313_v38 = vpop.f32.mrf.mxu1 }
 0x1ef   : > { %v2462_v34 = vmax.f32 %v2430_v1, 0.0  ;;  %v2394_v43 = vadd.f32 %v2322_v4, %v4621_v18  ;;  %v2314_v39 = vadd.f32 %v3470_v41, %v2313_v38  ;;  %v2428_v46 = vadd.f32 %v4734_v60, %v2389_v21  ;;  %v4912_v1 = vld [vmem:[#allocation9_spill] sm:$0xff] }
 0x1f0   : > { %v4834_v44 = vpop.f32.mrf.mxu0  ;;  %v3671_v11 = vpop.f32.mrf.mxu1  ;;  %v3494_v37 = vadd.f32 %v3493_v63, %v4822_v2 }
 0x1f1   : > { %v3075_v52 = vpack.c.bf16 %v2462_v34, %v2461_v14  ;;  %v2325_v8 = vadd.f32 %v3671_v11, %v3479_v0  ;;  %v2460_v10 = vmax.f32 %v2428_v46, 0.0  ;;  %v2392_v49 = vadd.f32 %v2314_v39, %v4605_v20  ;;  %v4913_v39 = vld [vmem:[#allocation7_spill] sm:$0xff] }
 0x1f2   : > { %v3496_v25 = vpop.f32.mrf.mxu0  ;;  %v2316_v53 = vpop.f32.mrf.mxu1  ;;  %v2433_v18 = vadd.f32 %v4734_v60, %v2394_v43 }
 0x1f3   : > { %3123 = vst [vmem:[%s4763_s20 + $0x38] sm:$0xff] %v3075_v52   ;;  %v2395_v19 = vadd.f32 %v2325_v8, %v4908_v28  ;;  %v3070_v59 = vpack.c.bf16 %v2460_v10, %v2459_v23  ;;  %v2317_v33 = vadd.f32 %v3473_v24, %v2316_v53  ;;  %v2431_v20 = vadd.f32 %v4734_v60, %v2392_v49  ;;  %v4914_v23 = vld [vmem:[#allocation12_spill] sm:$0xff] }
 0x1f4   : > { %v3498_v40 = vpop.f32.mrf.mxu0  ;;  %v3674_v12 = vpop.f32.mrf.mxu1  ;;  %v2465_v9 = vmax.f32 %v2433_v18, 0.0  ;;  %v3497_v28 = vadd.f32 %v3496_v25, %v4834_v44  ;;  %v4917_v25 = vld [vmem:[#allocation11_spill] sm:$0xff] }
 0x1f5   : > { %v2434_v35 = vadd.f32 %v4734_v60, %v2395_v19  ;;  %v2338_v50 = vadd.f32 %v3674_v12, %v3488_v57  ;;  %3122 = vst [vmem:[%s4763_s20 + $0x30] sm:$0xff] %v3070_v59   ;;  %v2393_v6 = vadd.f32 %v2317_v33, %v4909_v5  ;;  %v2463_v22 = vmax.f32 %v2431_v20, 0.0  ;;  %v4915_v33 = vld [vmem:[#allocation10_spill] sm:$0xff] }
 0x1f6   : > { %v3499_v55 = vpop.f32.mrf.mxu0  ;;  %v2329_v7 = vpop.f32.mrf.mxu1 }
 0x1f7   : > { %v2466_v51 = vmax.f32 %v2434_v35, 0.0  ;;  %v2398_v45 = vadd.f32 %v2338_v50, %v4910_v26  ;;  %v2330_v47 = vadd.f32 %v3482_v29, %v2329_v7  ;;  %v2432_v32 = vadd.f32 %v4734_v60, %v2393_v6  ;;  %v4916_v50 = vld [vmem:[#allocation13_spill] sm:$0xff] }
 0x1f8   : > { %v3501_v62 = vpop.f32.mrf.mxu0  ;;  %v3675_v61 = vpop.f32.mrf.mxu1  ;;  %v3500_v41 = vadd.f32 %v3499_v55, %v3498_v40 }
 0x1f9   : > { %v3085_v31 = vpack.c.bf16 %v2466_v51, %v2465_v9  ;;  %v2341_v58 = vadd.f32 %v3675_v61, %v3491_v13  ;;  %v2464_v48 = vmax.f32 %v2432_v32, 0.0  ;;  %v2437_v54 = vadd.f32 %v4734_v60, %v2398_v45 }
 0x1fa   : > { %v2396_v15 = vadd.f32 %v2330_v47, %v4911_v56  ;;  %v3502_v36 = vpop.f32.mrf.mxu0  ;;  %v2332_v16 = vpop.f32.mrf.mxu1 }
 0x1fb   : > { %3125 = vst [vmem:[%s4763_s20 + $0x48] sm:$0xff] %v3085_v31   ;;  %v2399_v4 = vadd.f32 %v2341_v58, %v4912_v1  ;;  %v3080_v0 = vpack.c.bf16 %v2464_v48, %v2463_v22  ;;  %v2333_v27 = vadd.f32 %v3485_v42, %v2332_v16  ;;  %v2469_v34 = vmax.f32 %v2437_v54, 0.0  ;;  %v4918_v42 = vld [vmem:[#allocation2_spill] sm:$0xff] }
 0x1fc   : > { %v3504_v21 = vpop.f32.mrf.mxu0  ;;  %v3678_v38 = vpop.f32.mrf.mxu1  ;;  %v2435_v43 = vadd.f32 %v4734_v60, %v2396_v15  ;;  %v3503_v24 = vadd.f32 %v3502_v36, %v3501_v62  ;;  %v1535_v31 = vadd.f32 %v4918_v42, %v4714_v17  ;;  %v4919_v36 = vld [vmem:[#allocation14_spill] sm:$0xff]  ;;  %v4920_v17 = vld [vmem:[#allocation3_spill] sm:$0xff] }
 0x1fd   : > { %v2438_v3 = vadd.f32 %v4734_v60, %v2399_v4  ;;  %v2354_v14 = vadd.f32 %v3678_v38, %v3500_v41  ;;  %3124 = vst [vmem:[%s4763_s20 + $0x40] sm:$0xff] %v3080_v0   ;;  %v2397_v46 = vadd.f32 %v2333_v27, %v4913_v39 }
 0x1fe   : > { %v3505_v11 = vpop.f32.mrf.mxu0  ;;  %v2345_v52 = vpop.f32.mrf.mxu1  ;;  %v2467_v19 = vmax.f32 %v2435_v43, 0.0  ;;  %v4921_v43 = vld [vmem:[#allocation15_spill] sm:$0xff] }
 0x1ff   : > { %v2470_v8 = vmax.f32 %v2438_v3, 0.0  ;;  %v2402_v10 = vadd.f32 %v2354_v14, %v4914_v23  ;;  %v2346_v49 = vadd.f32 %v3494_v37, %v2345_v52  ;;  %v2436_v53 = vadd.f32 %v4734_v60, %v2397_v46 }
 0x200   : > { %v3507_v2 = vpop.f32.mrf.mxu0  ;;  %v3679_v63 = vpop.f32.mrf.mxu1  ;;  %v3506_v7 = vadd.f32 %v3505_v11, %v3504_v21  ;;  %v1538_v3 = vadd.f32 %v4920_v17, %v4723_v30 }
 0x201   : > { %v3095_v57 = vpack.c.bf16 %v2470_v8, %v2469_v34  ;;  %v2357_v18 = vadd.f32 %v3679_v63, %v3503_v24  ;;  %v2468_v59 = vmax.f32 %v2436_v53, 0.0  ;;  %v2400_v40 = vadd.f32 %v2346_v49, %v4915_v33 }
 0x202   : > { %v3508_v12 = vpop.f32.mrf.mxu0  ;;  %v2348_v29 = vpop.f32.mrf.mxu1  ;;  %v2441_v35 = vadd.f32 %v4734_v60, %v2402_v10 }
 0x203   : > { %3127 = vst [vmem:[%s4763_s20 + $0x58] sm:$0xff] %v3095_v57   ;;  %v2403_v13 = vadd.f32 %v2357_v18, %v4916_v50  ;;  %v3090_v20 = vpack.c.bf16 %v2468_v59, %v2467_v19  ;;  %v2349_v5 = vadd.f32 %v3497_v28, %v2348_v29  ;;  %v2439_v44 = vadd.f32 %v4734_v60, %v2400_v40 }
 0x204   : > { %v3510_v6 = vpop.f32.mrf.mxu0  ;;  %v3682_v55 = vpop.f32.mrf.mxu1  ;;  %v2473_v47 = vmax.f32 %v2441_v35, 0.0  ;;  %v3509_v56 = vadd.f32 %v3508_v12, %v3507_v2 }
 0x205   : > { %v2442_v9 = vadd.f32 %v4734_v60, %v2403_v13  ;;  %3126 = vst [vmem:[%s4763_s20 + $0x50] sm:$0xff] %v3090_v20   ;;  %v2401_v51 = vadd.f32 %v2349_v5, %v4917_v25  ;;  %v2471_v41 = vmax.f32 %v2439_v44, 0.0 }
 0x206   : > { %v3511_v26 = vpop.f32.mrf.mxu0  ;;  %v2361_v45 = vpop.f32.mrf.mxu1 }
 0x207   : > { %v2474_v32 = vmax.f32 %v2442_v9, 0.0  ;;  %v3512_v62 = vadd.f32 %v3511_v26, %v3510_v6  ;;  %v2362_v61 = vadd.f32 %v3506_v7, %v2361_v45  ;;  %v2440_v58 = vadd.f32 %v4734_v60, %v2401_v51 }
 0x208   : > { %v3513_v22 = vpop.f32.mrf.mxu0  ;;  %v3683_v48 = vpop.f32.mrf.mxu1 }
 0x209   : > { %v3105_v54 = vpack.c.bf16 %v2474_v32, %v2473_v47  ;;  %v2370_v15 = vadd.f32 %v3682_v55, %v3512_v62  ;;  %v2404_v16 = vadd.f32 %v2362_v61, %v4919_v36  ;;  %v2472_v1 = vmax.f32 %v2440_v58, 0.0 }
 0x20a   : > { %v3514_v4 = vpop.f32.mrf.mxu0  ;;  %v2364_v0 = vpop.f32.mrf.mxu1 }
 0x20b   : > { %3129 = vst [vmem:[%s4763_s20 + $0x68] sm:$0xff] %v3105_v54   ;;  %v2406_v27 = vadd.f32 %v2370_v15, %v1535_v31  ;;  %v3515_v21 = vadd.f32 %v3514_v4, %v3513_v22  ;;  %v2365_v38 = vadd.f32 %v3509_v56, %v2364_v0  ;;  %v3100_v37 = vpack.c.bf16 %v2472_v1, %v2471_v41 }
 0x20c   : > { %v2443_v14 = vadd.f32 %v4734_v60, %v2404_v16 }
 0x20d   : > { %v2373_v34 = vadd.f32 %v3683_v48, %v3515_v21  ;;  %v2405_v39 = vadd.f32 %v2365_v38, %v4921_v43  ;;  %3128 = vst [vmem:[%s4763_s20 + $0x60] sm:$0xff] %v3100_v37   ;;  %v2445_v46 = vadd.f32 %v4734_v60, %v2406_v27 }
 0x20e   : > { %v2475_v8 = vmax.f32 %v2443_v14, 0.0 }
 0x20f   : > { %v2407_v11 = vadd.f32 %v2373_v34, %v1538_v3  ;;  %v2444_v52 = vadd.f32 %v4734_v60, %v2405_v39  ;;  %v2477_v10 = vmax.f32 %v2445_v46, 0.0 }
 0x211   : > { %v2446_v24 = vadd.f32 %v4734_v60, %v2407_v11  ;;  %v2476_v23 = vmax.f32 %v2444_v52, 0.0 }
 0x213   : > { %v2478_v49 = vmax.f32 %v2446_v24, 0.0  ;;  %v3110_v53 = vpack.c.bf16 %v2476_v23, %v2475_v8 }
 0x215   : > { %v3115_v30 = vpack.c.bf16 %v2478_v49, %v2477_v10  ;;  %3130 = vst [vmem:[%s4763_s20 + $0x70] sm:$0xff] %v3110_v53  }
 0x217   : > { %3131 = vst [vmem:[%s4763_s20 + $0x78] sm:$0xff] %v3115_v30  }
 0x218 PF: > { %s13_s12 = sadd.s32 1, %s3887_s12  }
 0x219   : > { %p10_p4 = scmp.ge.s32.totalorder %s13_s12, 4  }
 0x21b   :  { %12 = sbr.rel (!%p10_p4) target bundleno = 1 (0x1), region = 64 }

</bundles_post_ra>
